<compile_context>
chip_gen: v6e
topology: v6e:2x2x1
jax: 0.10.0
libtpu: 0.0.40
codegen_flags: <defaults>
</compile_context>

<pallas_src>
import jax
import jax.numpy as jnp
from jax import lax
from jax.experimental import pallas as pl
from jax.experimental.pallas import tpu as pltpu

LANES = 128  # all conv output channels / head columns are zero-padded to this


# ----------------------------- in-kernel helpers -----------------------------

def _conv3x3(v, w_ref, b, cin):
    """Valid 3x3 conv, stride 1, as 9 accumulated dots (one per tap, K=cin).
    v: (H, W, >=cin) f32; w_ref: (9, cin, 128) VMEM ref (tap-major, Co padded);
    b: (1, 128).  Returns (H-2, W-2, 128)."""
    h, w = v.shape[0], v.shape[1]
    ho, wo = h - 2, w - 2
    acc = jnp.zeros((ho * wo, LANES), jnp.float32) + b           # bias init, hoisted
    for ky in range(3):
        for kx in range(3):
            # ky: outer-dim pick (free); kx: sublane shift; channels: lane-0 slice.
            patch = v[ky:ky + ho, kx:kx + wo, :cin]              # (ho, wo, cin)
            pm = patch.reshape(ho * wo, cin)
            acc = acc + jnp.dot(pm, w_ref[ky * 3 + kx],
                                preferred_element_type=jnp.float32)
    return acc.reshape(ho, wo, LANES)


def _maxpool2x2(v):
    """MaxPool2d(kernel=2, stride=2), floor mode.  (H, W, C) -> (H//2, W//2, C)."""
    h, w, c = v.shape
    ho, wo = h // 2, w // 2
    v = v[:2 * ho, :2 * wo, :]
    v = v.reshape(ho, 2, 2 * wo, c)
    v = jnp.maximum(v[:, 0], v[:, 1])                 # row pairs (outer split: free)
    v = v.reshape(ho, wo, 2, c)
    v = jnp.maximum(v[:, :, 0, :], v[:, :, 1, :])     # column pairs
    return v


def _prelu(v, a_row):
    # nn.PReLU() default: one shared scalar, replicated across 128 lanes (1,1,128).
    return jnp.where(v > 0, v, a_row * v)


# --------------------------------- the kernel --------------------------------

def _pnet_kernel(x_ref, w1_ref, w2_ref, w3_ref, wh_ref, pk_ref, out_ref):
    x = x_ref[0]                                      # (H, W, 3) f32, one image

    # Packed params: one sublane row each -> every slice is lane-0 aligned.
    b1 = pk_ref[0:1, :]
    b2 = pk_ref[1:2, :]
    b3 = pk_ref[2:3, :]
    bh = pk_ref[3:4, :]
    a1 = pk_ref[4:5, :].reshape(1, 1, LANES)
    a2 = pk_ref[5:6, :].reshape(1, 1, LANES)
    a3 = pk_ref[6:7, :].reshape(1, 1, LANES)

    y = _conv3x3(x, w1_ref, b1, cin=3)                # Conv2d(3, 10, 3)
    y = _maxpool2x2(y)                                # MaxPool2d(2, 2)
    y = _prelu(y, a1)                                 # PReLU
    y = _conv3x3(y, w2_ref, b2, cin=10)               # Conv2d(10, 16, 3)
    y = _prelu(y, a2)                                 # PReLU
    y = _conv3x3(y, w3_ref, b3, cin=16)               # Conv2d(16, 32, 3)
    y = _prelu(y, a3)                                 # (Ho, Wo, 128)

    ho, wo, _ = y.shape
    feat = y.reshape(ho * wo, LANES)[:, 0:32]         # lane-0-aligned channel slice
    # Fused heads: column 0 = classification logit, columns 1..4 = regression.
    heads = jnp.dot(feat, wh_ref[...], preferred_element_type=jnp.float32) + bh
    sig = pl.reciprocal(1.0 + jnp.exp(-heads), approx=True)   # exp + recip on EUP
    lane = lax.broadcasted_iota(jnp.int32, (1, LANES), 1)     # single-vreg mask
    out_ref[0] = jnp.where(lane == 0, sig, heads).astype(out_ref.dtype)


# --------------------------------- wrapper ------------------------------------

def _pack_conv_w(w_hwio):
    """(3, 3, cin, co) HWIO -> (9, cin, 128): tap-major, output channels padded."""
    kh, kw, cin, co = w_hwio.shape
    w = w_hwio.reshape(kh * kw, cin, co)
    return jnp.pad(w, ((0, 0), (0, 0), (0, LANES - co)))


def _pad_row(b):
    """(1, co) -> (1, 128) zero-padded."""
    return jnp.pad(b, ((0, 0), (0, LANES - b.shape[1])))


@jax.jit
def pnet_forward(x_nchw, params):
    w1, b1, w2, b2, w3, b3, wc, bc, wr, br, alphas = params
    N, C, H, W = x_nchw.shape
    assert C == 3
    x = jnp.transpose(x_nchw, (0, 2, 3, 1))           # NCHW -> NHWC

    Hc1, Wc1 = H - 2, W - 2
    Hp, Wp = Hc1 // 2, Wc1 // 2
    Hc2, Wc2 = Hp - 2, Wp - 2
    Ho, Wo = Hc2 - 2, Wc2 - 2
    Mo = Ho * Wo

    # Pack parameters (tap-major conv weights, fused lane-padded head, one
    # (8, 128) block holding biases + PReLU alphas one per sublane row).
    w1p = _pack_conv_w(w1)                                       # (9, 3, 128)
    w2p = _pack_conv_w(w2)                                       # (9, 10, 128)
    w3p = _pack_conv_w(w3)                                       # (9, 16, 128)
    whp = jnp.pad(jnp.concatenate([wc, wr], axis=1),
                  ((0, 0), (0, LANES - 5)))                      # (32, 128)
    bh = jnp.concatenate([bc, br], axis=1)                       # (1, 5)
    pk = jnp.concatenate([
        _pad_row(b1), _pad_row(b2), _pad_row(b3), _pad_row(bh),
        jnp.full((1, LANES), alphas[0], jnp.float32),
        jnp.full((1, LANES), alphas[1], jnp.float32),
        jnp.full((1, LANES), alphas[2], jnp.float32),
        jnp.zeros((1, LANES), jnp.float32),
    ], axis=0)                                                   # (8, 128)

    out = pl.pallas_call(
        _pnet_kernel,
        grid=(N,),
        in_specs=[
            pl.BlockSpec((1, H, W, 3), lambda n: (n, 0, 0, 0)),   # image n
            pl.BlockSpec((9, 3, LANES), lambda n: (0, 0, 0)),     # conv1 weights
            pl.BlockSpec((9, 10, LANES), lambda n: (0, 0, 0)),    # conv2 weights
            pl.BlockSpec((9, 16, LANES), lambda n: (0, 0, 0)),    # conv3 weights
            pl.BlockSpec((32, LANES), lambda n: (0, 0)),          # fused heads
            pl.BlockSpec((8, LANES), lambda n: (0, 0)),           # biases + alphas
        ],
        out_specs=pl.BlockSpec((1, Mo, LANES), lambda n: (n, 0, 0)),
        out_shape=jax.ShapeDtypeStruct((N, Mo, LANES), jnp.float32),
        compiler_params=pltpu.CompilerParams(
            dimension_semantics=("parallel",),          # shard batch across TCs (v7x)
            vmem_limit_bytes=32 * 1024 * 1024),         # explicit per-step VMEM cap
    )(x, w1p, w2p, w3p, whp, pk)

    out = out.reshape(N, Ho, Wo, LANES)
    cls = jnp.transpose(out[..., 0:1], (0, 3, 1, 2))   # (N, 1, Ho, Wo)
    reg = jnp.transpose(out[..., 1:5], (0, 3, 1, 2))   # (N, 4, Ho, Wo)
    return cls, reg


# -------------------------- deterministic parameters --------------------------

def make_params(key):
    # TODO(synk): load_parameters (.pth checkpoint I/O) has no Pallas equivalent;
    # deterministic synthetic weights are used instead.
    ks = jax.random.split(key, 10)

    def conv_w(k, cout, cin, kh, kw, scale):
        w_oihw = scale * jax.random.normal(k, (cout, cin, kh, kw), jnp.float32)
        return jnp.transpose(w_oihw, (2, 3, 1, 0))      # OIHW -> HWIO

    def bias(k, cout, scale):
        return scale * jax.random.normal(k, (1, cout), jnp.float32)

    w1 = conv_w(ks[0], 10, 3, 3, 3, 0.20); b1 = bias(ks[1], 10, 0.05)
    w2 = conv_w(ks[2], 16, 10, 3, 3, 0.10); b2 = bias(ks[3], 16, 0.05)
    w3 = conv_w(ks[4], 32, 16, 3, 3, 0.10); b3 = bias(ks[5], 32, 0.05)
    wc = 0.10 * jax.random.normal(ks[6], (32, 1), jnp.float32); bc = bias(ks[7], 1, 0.05)
    wr = 0.10 * jax.random.normal(ks[8], (32, 4), jnp.float32); br = bias(ks[9], 4, 0.05)
    alphas = jnp.full((3,), 0.25, jnp.float32)          # nn.PReLU default init
    return (w1, b1, w2, b2, w3, b3, wc, bc, wr, br, alphas)


# ------------------------------ pure-JAX reference -----------------------------

def pnet_reference(x_nchw, params):
    w1, b1, w2, b2, w3, b3, wc, bc, wr, br, alphas = params
    x = jnp.transpose(x_nchw, (0, 2, 3, 1))

    def conv(x, w, b):
        dn = lax.conv_dimension_numbers(x.shape, w.shape, ('NHWC', 'HWIO', 'NHWC'))
        y = lax.conv_general_dilated(x, w, (1, 1), 'VALID', dimension_numbers=dn)
        return y + b.reshape(1, 1, 1, -1)

    def prelu(x, a):
        return jnp.where(x > 0, x, a * x)

    y = conv(x, w1, b1)
    y = lax.reduce_window(y, -jnp.inf, lax.max, (1, 2, 2, 1), (1, 2, 2, 1), 'VALID')
    y = prelu(y, alphas[0])
    y = prelu(conv(y, w2, b2), alphas[1])
    y = prelu(conv(y, w3, b3), alphas[2])
    cls = jax.nn.sigmoid(conv(y, wc.reshape(1, 1, 32, 1), bc))
    reg = conv(y, wr.reshape(1, 1, 32, 4), br)
    return (jnp.transpose(cls, (0, 3, 1, 2)), jnp.transpose(reg, (0, 3, 1, 2)))


# ----------------------------------- main --------------------------------------

if __name__ == "__main__":
    key = jax.random.PRNGKey(0)
    k_x, k_p = jax.random.split(key)

    # batch=2, channels=3 (module requirement), spatial=16x16 -> outputs 3x3
    x = jax.random.normal(k_x, (2, 3, 16, 16), jnp.float32)
    params = make_params(k_p)

    cls, reg = pnet_forward(x, params)
    jax.block_until_ready((cls, reg))

    cls_ref, reg_ref = pnet_reference(x, params)
    assert cls.shape == (2, 1, 3, 3) and reg.shape == (2, 4, 3, 3)
    assert jnp.allclose(cls, cls_ref, atol=1e-3, rtol=1e-3)
    assert jnp.allclose(reg, reg_ref, atol=1e-3, rtol=1e-3)

    print("KERNEL_OK")
</pallas_src>

<mosaic_0001>
module attributes {stable_mosaic.version = 11 : i64} {
  func.func @_pnet_kernel(%arg0: i32, %arg1: memref<1x16x16x3xf32, #tpu.memory_space<vmem>>, %arg2: memref<9x3x128xf32, #tpu.memory_space<vmem>>, %arg3: memref<9x10x128xf32, #tpu.memory_space<vmem>>, %arg4: memref<9x16x128xf32, #tpu.memory_space<vmem>>, %arg5: memref<32x128xf32, #tpu.memory_space<vmem>>, %arg6: memref<8x128xf32, #tpu.memory_space<vmem>>, %arg7: memref<1x9x128xf32, #tpu.memory_space<vmem>>) attributes {dimension_semantics = [#tpu.dimension_semantics<parallel>], iteration_bounds = array<i64: 2>, scalar_prefetch = 0 : i64, scratch_operands = 0 : i64, tpu.core_type = #tpu.core_type<tc>, window_params = [{transform_indices = @transform_0, window_bounds = array<i64: 1, 16, 16, 3>}, {pipeline_mode = #tpu.pipeline_mode<synchronous>, transform_indices = @transform_1, window_bounds = array<i64: 9, 3, 128>}, {pipeline_mode = #tpu.pipeline_mode<synchronous>, transform_indices = @transform_2, window_bounds = array<i64: 9, 10, 128>}, {pipeline_mode = #tpu.pipeline_mode<synchronous>, transform_indices = @transform_3, window_bounds = array<i64: 9, 16, 128>}, {pipeline_mode = #tpu.pipeline_mode<synchronous>, transform_indices = @transform_4, window_bounds = array<i64: 32, 128>}, {pipeline_mode = #tpu.pipeline_mode<synchronous>, transform_indices = @transform_5, window_bounds = array<i64: 8, 128>}, {transform_indices = @transform_6, window_bounds = array<i64: 1, 9, 128>}]} {
    %c0 = arith.constant 0 : index
    %c0_0 = arith.constant 0 : index
    %c0_1 = arith.constant 0 : index
    %c0_2 = arith.constant 0 : index
    %0 = vector.load %arg1[%c0, %c0_0, %c0_1, %c0_2] : memref<1x16x16x3xf32, #tpu.memory_space<vmem>>, vector<1x16x16x3xf32>
    %1 = vector.shape_cast %0 : vector<1x16x16x3xf32> to vector<16x16x3xf32>
    %c0_3 = arith.constant 0 : index
    %c0_4 = arith.constant 0 : index
    %2 = vector.load %arg6[%c0_3, %c0_4] : memref<8x128xf32, #tpu.memory_space<vmem>>, vector<1x128xf32>
    %c1 = arith.constant 1 : index
    %c0_5 = arith.constant 0 : index
    %3 = vector.load %arg6[%c1, %c0_5] : memref<8x128xf32, #tpu.memory_space<vmem>>, vector<1x128xf32>
    %c2 = arith.constant 2 : index
    %c0_6 = arith.constant 0 : index
    %4 = vector.load %arg6[%c2, %c0_6] : memref<8x128xf32, #tpu.memory_space<vmem>>, vector<1x128xf32>
    %c3 = arith.constant 3 : index
    %c0_7 = arith.constant 0 : index
    %5 = vector.load %arg6[%c3, %c0_7] : memref<8x128xf32, #tpu.memory_space<vmem>>, vector<1x128xf32>
    %c4 = arith.constant 4 : index
    %c0_8 = arith.constant 0 : index
    %6 = vector.load %arg6[%c4, %c0_8] : memref<8x128xf32, #tpu.memory_space<vmem>>, vector<1x128xf32>
    %7 = vector.shape_cast %6 : vector<1x128xf32> to vector<1x1x128xf32>
    %c5 = arith.constant 5 : index
    %c0_9 = arith.constant 0 : index
    %8 = vector.load %arg6[%c5, %c0_9] : memref<8x128xf32, #tpu.memory_space<vmem>>, vector<1x128xf32>
    %9 = vector.shape_cast %8 : vector<1x128xf32> to vector<1x1x128xf32>
    %c6 = arith.constant 6 : index
    %c0_10 = arith.constant 0 : index
    %10 = vector.load %arg6[%c6, %c0_10] : memref<8x128xf32, #tpu.memory_space<vmem>>, vector<1x128xf32>
    %11 = vector.shape_cast %10 : vector<1x128xf32> to vector<1x1x128xf32>
    %cst = arith.constant 0.000000e+00 : f32
    %12 = vector.broadcast %cst : f32 to vector<196x128xf32>
    %13 = vector.broadcast %2 : vector<1x128xf32> to vector<196x128xf32>
    %14 = arith.addf %12, %13 : vector<196x128xf32>
    %15 = vector.extract_strided_slice %1 {offsets = [0, 0, 0], sizes = [14, 14, 3], strides = [1, 1, 1]} : vector<16x16x3xf32> to vector<14x14x3xf32>
    %16 = vector.shape_cast %15 : vector<14x14x3xf32> to vector<196x3xf32>
    %c0_11 = arith.constant 0 : index
    %c0_12 = arith.constant 0 : index
    %c0_13 = arith.constant 0 : index
    %17 = vector.load %arg2[%c0_11, %c0_12, %c0_13] : memref<9x3x128xf32, #tpu.memory_space<vmem>>, vector<1x3x128xf32>
    %18 = vector.shape_cast %17 : vector<1x3x128xf32> to vector<3x128xf32>
    %cst_14 = arith.constant dense<0.000000e+00> : vector<196x128xf32>
    %19 = tpu.matmul %16, %18, %cst_14 {dimension_numbers = #tpu.dot_dimension_numbers<[1], [0], [0], [1], [0, 0, 1, 1], [], []>} : vector<196x3xf32>, vector<3x128xf32>, vector<196x128xf32> -> vector<196x128xf32>
    %20 = arith.addf %14, %19 : vector<196x128xf32>
    %21 = vector.extract_strided_slice %1 {offsets = [0, 1, 0], sizes = [14, 14, 3], strides = [1, 1, 1]} : vector<16x16x3xf32> to vector<14x14x3xf32>
    %22 = vector.shape_cast %21 : vector<14x14x3xf32> to vector<196x3xf32>
    %c1_15 = arith.constant 1 : index
    %c0_16 = arith.constant 0 : index
    %c0_17 = arith.constant 0 : index
    %23 = vector.load %arg2[%c1_15, %c0_16, %c0_17] : memref<9x3x128xf32, #tpu.memory_space<vmem>>, vector<1x3x128xf32>
    %24 = vector.shape_cast %23 : vector<1x3x128xf32> to vector<3x128xf32>
    %cst_18 = arith.constant dense<0.000000e+00> : vector<196x128xf32>
    %25 = tpu.matmul %22, %24, %cst_18 {dimension_numbers = #tpu.dot_dimension_numbers<[1], [0], [0], [1], [0, 0, 1, 1], [], []>} : vector<196x3xf32>, vector<3x128xf32>, vector<196x128xf32> -> vector<196x128xf32>
    %26 = arith.addf %20, %25 : vector<196x128xf32>
    %27 = vector.extract_strided_slice %1 {offsets = [0, 2, 0], sizes = [14, 14, 3], strides = [1, 1, 1]} : vector<16x16x3xf32> to vector<14x14x3xf32>
    %28 = vector.shape_cast %27 : vector<14x14x3xf32> to vector<196x3xf32>
    %c2_19 = arith.constant 2 : index
    %c0_20 = arith.constant 0 : index
    %c0_21 = arith.constant 0 : index
    %29 = vector.load %arg2[%c2_19, %c0_20, %c0_21] : memref<9x3x128xf32, #tpu.memory_space<vmem>>, vector<1x3x128xf32>
    %30 = vector.shape_cast %29 : vector<1x3x128xf32> to vector<3x128xf32>
    %cst_22 = arith.constant dense<0.000000e+00> : vector<196x128xf32>
    %31 = tpu.matmul %28, %30, %cst_22 {dimension_numbers = #tpu.dot_dimension_numbers<[1], [0], [0], [1], [0, 0, 1, 1], [], []>} : vector<196x3xf32>, vector<3x128xf32>, vector<196x128xf32> -> vector<196x128xf32>
    %32 = arith.addf %26, %31 : vector<196x128xf32>
    %33 = vector.extract_strided_slice %1 {offsets = [1, 0, 0], sizes = [14, 14, 3], strides = [1, 1, 1]} : vector<16x16x3xf32> to vector<14x14x3xf32>
    %34 = vector.shape_cast %33 : vector<14x14x3xf32> to vector<196x3xf32>
    %c3_23 = arith.constant 3 : index
    %c0_24 = arith.constant 0 : index
    %c0_25 = arith.constant 0 : index
    %35 = vector.load %arg2[%c3_23, %c0_24, %c0_25] : memref<9x3x128xf32, #tpu.memory_space<vmem>>, vector<1x3x128xf32>
    %36 = vector.shape_cast %35 : vector<1x3x128xf32> to vector<3x128xf32>
    %cst_26 = arith.constant dense<0.000000e+00> : vector<196x128xf32>
    %37 = tpu.matmul %34, %36, %cst_26 {dimension_numbers = #tpu.dot_dimension_numbers<[1], [0], [0], [1], [0, 0, 1, 1], [], []>} : vector<196x3xf32>, vector<3x128xf32>, vector<196x128xf32> -> vector<196x128xf32>
    %38 = arith.addf %32, %37 : vector<196x128xf32>
    %39 = vector.extract_strided_slice %1 {offsets = [1, 1, 0], sizes = [14, 14, 3], strides = [1, 1, 1]} : vector<16x16x3xf32> to vector<14x14x3xf32>
    %40 = vector.shape_cast %39 : vector<14x14x3xf32> to vector<196x3xf32>
    %c4_27 = arith.constant 4 : index
    %c0_28 = arith.constant 0 : index
    %c0_29 = arith.constant 0 : index
    %41 = vector.load %arg2[%c4_27, %c0_28, %c0_29] : memref<9x3x128xf32, #tpu.memory_space<vmem>>, vector<1x3x128xf32>
    %42 = vector.shape_cast %41 : vector<1x3x128xf32> to vector<3x128xf32>
    %cst_30 = arith.constant dense<0.000000e+00> : vector<196x128xf32>
    %43 = tpu.matmul %40, %42, %cst_30 {dimension_numbers = #tpu.dot_dimension_numbers<[1], [0], [0], [1], [0, 0, 1, 1], [], []>} : vector<196x3xf32>, vector<3x128xf32>, vector<196x128xf32> -> vector<196x128xf32>
    %44 = arith.addf %38, %43 : vector<196x128xf32>
    %45 = vector.extract_strided_slice %1 {offsets = [1, 2, 0], sizes = [14, 14, 3], strides = [1, 1, 1]} : vector<16x16x3xf32> to vector<14x14x3xf32>
    %46 = vector.shape_cast %45 : vector<14x14x3xf32> to vector<196x3xf32>
    %c5_31 = arith.constant 5 : index
    %c0_32 = arith.constant 0 : index
    %c0_33 = arith.constant 0 : index
    %47 = vector.load %arg2[%c5_31, %c0_32, %c0_33] : memref<9x3x128xf32, #tpu.memory_space<vmem>>, vector<1x3x128xf32>
    %48 = vector.shape_cast %47 : vector<1x3x128xf32> to vector<3x128xf32>
    %cst_34 = arith.constant dense<0.000000e+00> : vector<196x128xf32>
    %49 = tpu.matmul %46, %48, %cst_34 {dimension_numbers = #tpu.dot_dimension_numbers<[1], [0], [0], [1], [0, 0, 1, 1], [], []>} : vector<196x3xf32>, vector<3x128xf32>, vector<196x128xf32> -> vector<196x128xf32>
    %50 = arith.addf %44, %49 : vector<196x128xf32>
    %51 = vector.extract_strided_slice %1 {offsets = [2, 0, 0], sizes = [14, 14, 3], strides = [1, 1, 1]} : vector<16x16x3xf32> to vector<14x14x3xf32>
    %52 = vector.shape_cast %51 : vector<14x14x3xf32> to vector<196x3xf32>
    %c6_35 = arith.constant 6 : index
    %c0_36 = arith.constant 0 : index
    %c0_37 = arith.constant 0 : index
    %53 = vector.load %arg2[%c6_35, %c0_36, %c0_37] : memref<9x3x128xf32, #tpu.memory_space<vmem>>, vector<1x3x128xf32>
    %54 = vector.shape_cast %53 : vector<1x3x128xf32> to vector<3x128xf32>
    %cst_38 = arith.constant dense<0.000000e+00> : vector<196x128xf32>
    %55 = tpu.matmul %52, %54, %cst_38 {dimension_numbers = #tpu.dot_dimension_numbers<[1], [0], [0], [1], [0, 0, 1, 1], [], []>} : vector<196x3xf32>, vector<3x128xf32>, vector<196x128xf32> -> vector<196x128xf32>
    %56 = arith.addf %50, %55 : vector<196x128xf32>
    %57 = vector.extract_strided_slice %1 {offsets = [2, 1, 0], sizes = [14, 14, 3], strides = [1, 1, 1]} : vector<16x16x3xf32> to vector<14x14x3xf32>
    %58 = vector.shape_cast %57 : vector<14x14x3xf32> to vector<196x3xf32>
    %c7 = arith.constant 7 : index
    %c0_39 = arith.constant 0 : index
    %c0_40 = arith.constant 0 : index
    %59 = vector.load %arg2[%c7, %c0_39, %c0_40] : memref<9x3x128xf32, #tpu.memory_space<vmem>>, vector<1x3x128xf32>
    %60 = vector.shape_cast %59 : vector<1x3x128xf32> to vector<3x128xf32>
    %cst_41 = arith.constant dense<0.000000e+00> : vector<196x128xf32>
    %61 = tpu.matmul %58, %60, %cst_41 {dimension_numbers = #tpu.dot_dimension_numbers<[1], [0], [0], [1], [0, 0, 1, 1], [], []>} : vector<196x3xf32>, vector<3x128xf32>, vector<196x128xf32> -> vector<196x128xf32>
    %62 = arith.addf %56, %61 : vector<196x128xf32>
    %63 = vector.extract_strided_slice %1 {offsets = [2, 2, 0], sizes = [14, 14, 3], strides = [1, 1, 1]} : vector<16x16x3xf32> to vector<14x14x3xf32>
    %64 = vector.shape_cast %63 : vector<14x14x3xf32> to vector<196x3xf32>
    %c8 = arith.constant 8 : index
    %c0_42 = arith.constant 0 : index
    %c0_43 = arith.constant 0 : index
    %65 = vector.load %arg2[%c8, %c0_42, %c0_43] : memref<9x3x128xf32, #tpu.memory_space<vmem>>, vector<1x3x128xf32>
    %66 = vector.shape_cast %65 : vector<1x3x128xf32> to vector<3x128xf32>
    %cst_44 = arith.constant dense<0.000000e+00> : vector<196x128xf32>
    %67 = tpu.matmul %64, %66, %cst_44 {dimension_numbers = #tpu.dot_dimension_numbers<[1], [0], [0], [1], [0, 0, 1, 1], [], []>} : vector<196x3xf32>, vector<3x128xf32>, vector<196x128xf32> -> vector<196x128xf32>
    %68 = arith.addf %62, %67 : vector<196x128xf32>
    %69 = vector.shape_cast %68 : vector<196x128xf32> to vector<14x14x128xf32>
    %70 = vector.shape_cast %69 : vector<14x14x128xf32> to vector<7x2x14x128xf32>
    %71 = vector.extract_strided_slice %70 {offsets = [0, 0, 0, 0], sizes = [7, 1, 14, 128], strides = [1, 1, 1, 1]} : vector<7x2x14x128xf32> to vector<7x1x14x128xf32>
    %72 = vector.shape_cast %71 : vector<7x1x14x128xf32> to vector<7x14x128xf32>
    %73 = vector.extract_strided_slice %70 {offsets = [0, 1, 0, 0], sizes = [7, 1, 14, 128], strides = [1, 1, 1, 1]} : vector<7x2x14x128xf32> to vector<7x1x14x128xf32>
    %74 = vector.shape_cast %73 : vector<7x1x14x128xf32> to vector<7x14x128xf32>
    %75 = arith.maximumf %72, %74 : vector<7x14x128xf32>
    %76 = vector.shape_cast %75 : vector<7x14x128xf32> to vector<7x7x2x128xf32>
    %77 = vector.extract_strided_slice %76 {offsets = [0, 0, 0, 0], sizes = [7, 7, 1, 128], strides = [1, 1, 1, 1]} : vector<7x7x2x128xf32> to vector<7x7x1x128xf32>
    %78 = vector.shape_cast %77 : vector<7x7x1x128xf32> to vector<7x7x128xf32>
    %79 = vector.extract_strided_slice %76 {offsets = [0, 0, 1, 0], sizes = [7, 7, 1, 128], strides = [1, 1, 1, 1]} : vector<7x7x2x128xf32> to vector<7x7x1x128xf32>
    %80 = vector.shape_cast %79 : vector<7x7x1x128xf32> to vector<7x7x128xf32>
    %81 = arith.maximumf %78, %80 : vector<7x7x128xf32>
    %cst_45 = arith.constant 0.000000e+00 : f32
    %82 = vector.broadcast %cst_45 : f32 to vector<7x7x128xf32>
    %83 = arith.cmpf ogt, %81, %82 : vector<7x7x128xf32>
    %84 = vector.broadcast %7 : vector<1x1x128xf32> to vector<7x7x128xf32>
    %85 = arith.mulf %84, %81 : vector<7x7x128xf32>
    %86 = arith.select %83, %81, %85 : vector<7x7x128xi1>, vector<7x7x128xf32>
    %cst_46 = arith.constant 0.000000e+00 : f32
    %87 = vector.broadcast %cst_46 : f32 to vector<25x128xf32>
    %88 = vector.broadcast %3 : vector<1x128xf32> to vector<25x128xf32>
    %89 = arith.addf %87, %88 : vector<25x128xf32>
    %90 = vector.extract_strided_slice %86 {offsets = [0, 0, 0], sizes = [5, 5, 10], strides = [1, 1, 1]} : vector<7x7x128xf32> to vector<5x5x10xf32>
    %91 = vector.shape_cast %90 : vector<5x5x10xf32> to vector<25x10xf32>
    %c0_47 = arith.constant 0 : index
    %c0_48 = arith.constant 0 : index
    %c0_49 = arith.constant 0 : index
    %92 = vector.load %arg3[%c0_47, %c0_48, %c0_49] : memref<9x10x128xf32, #tpu.memory_space<vmem>>, vector<1x10x128xf32>
    %93 = vector.shape_cast %92 : vector<1x10x128xf32> to vector<10x128xf32>
    %cst_50 = arith.constant dense<0.000000e+00> : vector<25x128xf32>
    %94 = tpu.matmul %91, %93, %cst_50 {dimension_numbers = #tpu.dot_dimension_numbers<[1], [0], [0], [1], [0, 0, 1, 1], [], []>} : vector<25x10xf32>, vector<10x128xf32>, vector<25x128xf32> -> vector<25x128xf32>
    %95 = arith.addf %89, %94 : vector<25x128xf32>
    %96 = vector.extract_strided_slice %86 {offsets = [0, 1, 0], sizes = [5, 5, 10], strides = [1, 1, 1]} : vector<7x7x128xf32> to vector<5x5x10xf32>
    %97 = vector.shape_cast %96 : vector<5x5x10xf32> to vector<25x10xf32>
    %c1_51 = arith.constant 1 : index
    %c0_52 = arith.constant 0 : index
    %c0_53 = arith.constant 0 : index
    %98 = vector.load %arg3[%c1_51, %c0_52, %c0_53] : memref<9x10x128xf32, #tpu.memory_space<vmem>>, vector<1x10x128xf32>
    %99 = vector.shape_cast %98 : vector<1x10x128xf32> to vector<10x128xf32>
    %cst_54 = arith.constant dense<0.000000e+00> : vector<25x128xf32>
    %100 = tpu.matmul %97, %99, %cst_54 {dimension_numbers = #tpu.dot_dimension_numbers<[1], [0], [0], [1], [0, 0, 1, 1], [], []>} : vector<25x10xf32>, vector<10x128xf32>, vector<25x128xf32> -> vector<25x128xf32>
    %101 = arith.addf %95, %100 : vector<25x128xf32>
    %102 = vector.extract_strided_slice %86 {offsets = [0, 2, 0], sizes = [5, 5, 10], strides = [1, 1, 1]} : vector<7x7x128xf32> to vector<5x5x10xf32>
    %103 = vector.shape_cast %102 : vector<5x5x10xf32> to vector<25x10xf32>
    %c2_55 = arith.constant 2 : index
    %c0_56 = arith.constant 0 : index
    %c0_57 = arith.constant 0 : index
    %104 = vector.load %arg3[%c2_55, %c0_56, %c0_57] : memref<9x10x128xf32, #tpu.memory_space<vmem>>, vector<1x10x128xf32>
    %105 = vector.shape_cast %104 : vector<1x10x128xf32> to vector<10x128xf32>
    %cst_58 = arith.constant dense<0.000000e+00> : vector<25x128xf32>
    %106 = tpu.matmul %103, %105, %cst_58 {dimension_numbers = #tpu.dot_dimension_numbers<[1], [0], [0], [1], [0, 0, 1, 1], [], []>} : vector<25x10xf32>, vector<10x128xf32>, vector<25x128xf32> -> vector<25x128xf32>
    %107 = arith.addf %101, %106 : vector<25x128xf32>
    %108 = vector.extract_strided_slice %86 {offsets = [1, 0, 0], sizes = [5, 5, 10], strides = [1, 1, 1]} : vector<7x7x128xf32> to vector<5x5x10xf32>
    %109 = vector.shape_cast %108 : vector<5x5x10xf32> to vector<25x10xf32>
    %c3_59 = arith.constant 3 : index
    %c0_60 = arith.constant 0 : index
    %c0_61 = arith.constant 0 : index
    %110 = vector.load %arg3[%c3_59, %c0_60, %c0_61] : memref<9x10x128xf32, #tpu.memory_space<vmem>>, vector<1x10x128xf32>
    %111 = vector.shape_cast %110 : vector<1x10x128xf32> to vector<10x128xf32>
    %cst_62 = arith.constant dense<0.000000e+00> : vector<25x128xf32>
    %112 = tpu.matmul %109, %111, %cst_62 {dimension_numbers = #tpu.dot_dimension_numbers<[1], [0], [0], [1], [0, 0, 1, 1], [], []>} : vector<25x10xf32>, vector<10x128xf32>, vector<25x128xf32> -> vector<25x128xf32>
    %113 = arith.addf %107, %112 : vector<25x128xf32>
    %114 = vector.extract_strided_slice %86 {offsets = [1, 1, 0], sizes = [5, 5, 10], strides = [1, 1, 1]} : vector<7x7x128xf32> to vector<5x5x10xf32>
    %115 = vector.shape_cast %114 : vector<5x5x10xf32> to vector<25x10xf32>
    %c4_63 = arith.constant 4 : index
    %c0_64 = arith.constant 0 : index
    %c0_65 = arith.constant 0 : index
    %116 = vector.load %arg3[%c4_63, %c0_64, %c0_65] : memref<9x10x128xf32, #tpu.memory_space<vmem>>, vector<1x10x128xf32>
    %117 = vector.shape_cast %116 : vector<1x10x128xf32> to vector<10x128xf32>
    %cst_66 = arith.constant dense<0.000000e+00> : vector<25x128xf32>
    %118 = tpu.matmul %115, %117, %cst_66 {dimension_numbers = #tpu.dot_dimension_numbers<[1], [0], [0], [1], [0, 0, 1, 1], [], []>} : vector<25x10xf32>, vector<10x128xf32>, vector<25x128xf32> -> vector<25x128xf32>
    %119 = arith.addf %113, %118 : vector<25x128xf32>
    %120 = vector.extract_strided_slice %86 {offsets = [1, 2, 0], sizes = [5, 5, 10], strides = [1, 1, 1]} : vector<7x7x128xf32> to vector<5x5x10xf32>
    %121 = vector.shape_cast %120 : vector<5x5x10xf32> to vector<25x10xf32>
    %c5_67 = arith.constant 5 : index
    %c0_68 = arith.constant 0 : index
    %c0_69 = arith.constant 0 : index
    %122 = vector.load %arg3[%c5_67, %c0_68, %c0_69] : memref<9x10x128xf32, #tpu.memory_space<vmem>>, vector<1x10x128xf32>
    %123 = vector.shape_cast %122 : vector<1x10x128xf32> to vector<10x128xf32>
    %cst_70 = arith.constant dense<0.000000e+00> : vector<25x128xf32>
    %124 = tpu.matmul %121, %123, %cst_70 {dimension_numbers = #tpu.dot_dimension_numbers<[1], [0], [0], [1], [0, 0, 1, 1], [], []>} : vector<25x10xf32>, vector<10x128xf32>, vector<25x128xf32> -> vector<25x128xf32>
    %125 = arith.addf %119, %124 : vector<25x128xf32>
    %126 = vector.extract_strided_slice %86 {offsets = [2, 0, 0], sizes = [5, 5, 10], strides = [1, 1, 1]} : vector<7x7x128xf32> to vector<5x5x10xf32>
    %127 = vector.shape_cast %126 : vector<5x5x10xf32> to vector<25x10xf32>
    %c6_71 = arith.constant 6 : index
    %c0_72 = arith.constant 0 : index
    %c0_73 = arith.constant 0 : index
    %128 = vector.load %arg3[%c6_71, %c0_72, %c0_73] : memref<9x10x128xf32, #tpu.memory_space<vmem>>, vector<1x10x128xf32>
    %129 = vector.shape_cast %128 : vector<1x10x128xf32> to vector<10x128xf32>
    %cst_74 = arith.constant dense<0.000000e+00> : vector<25x128xf32>
    %130 = tpu.matmul %127, %129, %cst_74 {dimension_numbers = #tpu.dot_dimension_numbers<[1], [0], [0], [1], [0, 0, 1, 1], [], []>} : vector<25x10xf32>, vector<10x128xf32>, vector<25x128xf32> -> vector<25x128xf32>
    %131 = arith.addf %125, %130 : vector<25x128xf32>
    %132 = vector.extract_strided_slice %86 {offsets = [2, 1, 0], sizes = [5, 5, 10], strides = [1, 1, 1]} : vector<7x7x128xf32> to vector<5x5x10xf32>
    %133 = vector.shape_cast %132 : vector<5x5x10xf32> to vector<25x10xf32>
    %c7_75 = arith.constant 7 : index
    %c0_76 = arith.constant 0 : index
    %c0_77 = arith.constant 0 : index
    %134 = vector.load %arg3[%c7_75, %c0_76, %c0_77] : memref<9x10x128xf32, #tpu.memory_space<vmem>>, vector<1x10x128xf32>
    %135 = vector.shape_cast %134 : vector<1x10x128xf32> to vector<10x128xf32>
    %cst_78 = arith.constant dense<0.000000e+00> : vector<25x128xf32>
    %136 = tpu.matmul %133, %135, %cst_78 {dimension_numbers = #tpu.dot_dimension_numbers<[1], [0], [0], [1], [0, 0, 1, 1], [], []>} : vector<25x10xf32>, vector<10x128xf32>, vector<25x128xf32> -> vector<25x128xf32>
    %137 = arith.addf %131, %136 : vector<25x128xf32>
    %138 = vector.extract_strided_slice %86 {offsets = [2, 2, 0], sizes = [5, 5, 10], strides = [1, 1, 1]} : vector<7x7x128xf32> to vector<5x5x10xf32>
    %139 = vector.shape_cast %138 : vector<5x5x10xf32> to vector<25x10xf32>
    %c8_79 = arith.constant 8 : index
    %c0_80 = arith.constant 0 : index
    %c0_81 = arith.constant 0 : index
    %140 = vector.load %arg3[%c8_79, %c0_80, %c0_81] : memref<9x10x128xf32, #tpu.memory_space<vmem>>, vector<1x10x128xf32>
    %141 = vector.shape_cast %140 : vector<1x10x128xf32> to vector<10x128xf32>
    %cst_82 = arith.constant dense<0.000000e+00> : vector<25x128xf32>
    %142 = tpu.matmul %139, %141, %cst_82 {dimension_numbers = #tpu.dot_dimension_numbers<[1], [0], [0], [1], [0, 0, 1, 1], [], []>} : vector<25x10xf32>, vector<10x128xf32>, vector<25x128xf32> -> vector<25x128xf32>
    %143 = arith.addf %137, %142 : vector<25x128xf32>
    %144 = vector.shape_cast %143 : vector<25x128xf32> to vector<5x5x128xf32>
    %cst_83 = arith.constant 0.000000e+00 : f32
    %145 = vector.broadcast %cst_83 : f32 to vector<5x5x128xf32>
    %146 = arith.cmpf ogt, %144, %145 : vector<5x5x128xf32>
    %147 = vector.broadcast %9 : vector<1x1x128xf32> to vector<5x5x128xf32>
    %148 = arith.mulf %147, %144 : vector<5x5x128xf32>
    %149 = arith.select %146, %144, %148 : vector<5x5x128xi1>, vector<5x5x128xf32>
    %cst_84 = arith.constant 0.000000e+00 : f32
    %150 = vector.broadcast %cst_84 : f32 to vector<9x128xf32>
    %151 = vector.broadcast %4 : vector<1x128xf32> to vector<9x128xf32>
    %152 = arith.addf %150, %151 : vector<9x128xf32>
    %153 = vector.extract_strided_slice %149 {offsets = [0, 0, 0], sizes = [3, 3, 16], strides = [1, 1, 1]} : vector<5x5x128xf32> to vector<3x3x16xf32>
    %154 = vector.shape_cast %153 : vector<3x3x16xf32> to vector<9x16xf32>
    %c0_85 = arith.constant 0 : index
    %c0_86 = arith.constant 0 : index
    %c0_87 = arith.constant 0 : index
    %155 = vector.load %arg4[%c0_85, %c0_86, %c0_87] : memref<9x16x128xf32, #tpu.memory_space<vmem>>, vector<1x16x128xf32>
    %156 = vector.shape_cast %155 : vector<1x16x128xf32> to vector<16x128xf32>
    %cst_88 = arith.constant dense<0.000000e+00> : vector<9x128xf32>
    %157 = tpu.matmul %154, %156, %cst_88 {dimension_numbers = #tpu.dot_dimension_numbers<[1], [0], [0], [1], [0, 0, 1, 1], [], []>} : vector<9x16xf32>, vector<16x128xf32>, vector<9x128xf32> -> vector<9x128xf32>
    %158 = arith.addf %152, %157 : vector<9x128xf32>
    %159 = vector.extract_strided_slice %149 {offsets = [0, 1, 0], sizes = [3, 3, 16], strides = [1, 1, 1]} : vector<5x5x128xf32> to vector<3x3x16xf32>
    %160 = vector.shape_cast %159 : vector<3x3x16xf32> to vector<9x16xf32>
    %c1_89 = arith.constant 1 : index
    %c0_90 = arith.constant 0 : index
    %c0_91 = arith.constant 0 : index
    %161 = vector.load %arg4[%c1_89, %c0_90, %c0_91] : memref<9x16x128xf32, #tpu.memory_space<vmem>>, vector<1x16x128xf32>
    %162 = vector.shape_cast %161 : vector<1x16x128xf32> to vector<16x128xf32>
    %cst_92 = arith.constant dense<0.000000e+00> : vector<9x128xf32>
    %163 = tpu.matmul %160, %162, %cst_92 {dimension_numbers = #tpu.dot_dimension_numbers<[1], [0], [0], [1], [0, 0, 1, 1], [], []>} : vector<9x16xf32>, vector<16x128xf32>, vector<9x128xf32> -> vector<9x128xf32>
    %164 = arith.addf %158, %163 : vector<9x128xf32>
    %165 = vector.extract_strided_slice %149 {offsets = [0, 2, 0], sizes = [3, 3, 16], strides = [1, 1, 1]} : vector<5x5x128xf32> to vector<3x3x16xf32>
    %166 = vector.shape_cast %165 : vector<3x3x16xf32> to vector<9x16xf32>
    %c2_93 = arith.constant 2 : index
    %c0_94 = arith.constant 0 : index
    %c0_95 = arith.constant 0 : index
    %167 = vector.load %arg4[%c2_93, %c0_94, %c0_95] : memref<9x16x128xf32, #tpu.memory_space<vmem>>, vector<1x16x128xf32>
    %168 = vector.shape_cast %167 : vector<1x16x128xf32> to vector<16x128xf32>
    %cst_96 = arith.constant dense<0.000000e+00> : vector<9x128xf32>
    %169 = tpu.matmul %166, %168, %cst_96 {dimension_numbers = #tpu.dot_dimension_numbers<[1], [0], [0], [1], [0, 0, 1, 1], [], []>} : vector<9x16xf32>, vector<16x128xf32>, vector<9x128xf32> -> vector<9x128xf32>
    %170 = arith.addf %164, %169 : vector<9x128xf32>
    %171 = vector.extract_strided_slice %149 {offsets = [1, 0, 0], sizes = [3, 3, 16], strides = [1, 1, 1]} : vector<5x5x128xf32> to vector<3x3x16xf32>
    %172 = vector.shape_cast %171 : vector<3x3x16xf32> to vector<9x16xf32>
    %c3_97 = arith.constant 3 : index
    %c0_98 = arith.constant 0 : index
    %c0_99 = arith.constant 0 : index
    %173 = vector.load %arg4[%c3_97, %c0_98, %c0_99] : memref<9x16x128xf32, #tpu.memory_space<vmem>>, vector<1x16x128xf32>
    %174 = vector.shape_cast %173 : vector<1x16x128xf32> to vector<16x128xf32>
    %cst_100 = arith.constant dense<0.000000e+00> : vector<9x128xf32>
    %175 = tpu.matmul %172, %174, %cst_100 {dimension_numbers = #tpu.dot_dimension_numbers<[1], [0], [0], [1], [0, 0, 1, 1], [], []>} : vector<9x16xf32>, vector<16x128xf32>, vector<9x128xf32> -> vector<9x128xf32>
    %176 = arith.addf %170, %175 : vector<9x128xf32>
    %177 = vector.extract_strided_slice %149 {offsets = [1, 1, 0], sizes = [3, 3, 16], strides = [1, 1, 1]} : vector<5x5x128xf32> to vector<3x3x16xf32>
    %178 = vector.shape_cast %177 : vector<3x3x16xf32> to vector<9x16xf32>
    %c4_101 = arith.constant 4 : index
    %c0_102 = arith.constant 0 : index
    %c0_103 = arith.constant 0 : index
    %179 = vector.load %arg4[%c4_101, %c0_102, %c0_103] : memref<9x16x128xf32, #tpu.memory_space<vmem>>, vector<1x16x128xf32>
    %180 = vector.shape_cast %179 : vector<1x16x128xf32> to vector<16x128xf32>
    %cst_104 = arith.constant dense<0.000000e+00> : vector<9x128xf32>
    %181 = tpu.matmul %178, %180, %cst_104 {dimension_numbers = #tpu.dot_dimension_numbers<[1], [0], [0], [1], [0, 0, 1, 1], [], []>} : vector<9x16xf32>, vector<16x128xf32>, vector<9x128xf32> -> vector<9x128xf32>
    %182 = arith.addf %176, %181 : vector<9x128xf32>
    %183 = vector.extract_strided_slice %149 {offsets = [1, 2, 0], sizes = [3, 3, 16], strides = [1, 1, 1]} : vector<5x5x128xf32> to vector<3x3x16xf32>
    %184 = vector.shape_cast %183 : vector<3x3x16xf32> to vector<9x16xf32>
    %c5_105 = arith.constant 5 : index
    %c0_106 = arith.constant 0 : index
    %c0_107 = arith.constant 0 : index
    %185 = vector.load %arg4[%c5_105, %c0_106, %c0_107] : memref<9x16x128xf32, #tpu.memory_space<vmem>>, vector<1x16x128xf32>
    %186 = vector.shape_cast %185 : vector<1x16x128xf32> to vector<16x128xf32>
    %cst_108 = arith.constant dense<0.000000e+00> : vector<9x128xf32>
    %187 = tpu.matmul %184, %186, %cst_108 {dimension_numbers = #tpu.dot_dimension_numbers<[1], [0], [0], [1], [0, 0, 1, 1], [], []>} : vector<9x16xf32>, vector<16x128xf32>, vector<9x128xf32> -> vector<9x128xf32>
    %188 = arith.addf %182, %187 : vector<9x128xf32>
    %189 = vector.extract_strided_slice %149 {offsets = [2, 0, 0], sizes = [3, 3, 16], strides = [1, 1, 1]} : vector<5x5x128xf32> to vector<3x3x16xf32>
    %190 = vector.shape_cast %189 : vector<3x3x16xf32> to vector<9x16xf32>
    %c6_109 = arith.constant 6 : index
    %c0_110 = arith.constant 0 : index
    %c0_111 = arith.constant 0 : index
    %191 = vector.load %arg4[%c6_109, %c0_110, %c0_111] : memref<9x16x128xf32, #tpu.memory_space<vmem>>, vector<1x16x128xf32>
    %192 = vector.shape_cast %191 : vector<1x16x128xf32> to vector<16x128xf32>
    %cst_112 = arith.constant dense<0.000000e+00> : vector<9x128xf32>
    %193 = tpu.matmul %190, %192, %cst_112 {dimension_numbers = #tpu.dot_dimension_numbers<[1], [0], [0], [1], [0, 0, 1, 1], [], []>} : vector<9x16xf32>, vector<16x128xf32>, vector<9x128xf32> -> vector<9x128xf32>
    %194 = arith.addf %188, %193 : vector<9x128xf32>
    %195 = vector.extract_strided_slice %149 {offsets = [2, 1, 0], sizes = [3, 3, 16], strides = [1, 1, 1]} : vector<5x5x128xf32> to vector<3x3x16xf32>
    %196 = vector.shape_cast %195 : vector<3x3x16xf32> to vector<9x16xf32>
    %c7_113 = arith.constant 7 : index
    %c0_114 = arith.constant 0 : index
    %c0_115 = arith.constant 0 : index
    %197 = vector.load %arg4[%c7_113, %c0_114, %c0_115] : memref<9x16x128xf32, #tpu.memory_space<vmem>>, vector<1x16x128xf32>
    %198 = vector.shape_cast %197 : vector<1x16x128xf32> to vector<16x128xf32>
    %cst_116 = arith.constant dense<0.000000e+00> : vector<9x128xf32>
    %199 = tpu.matmul %196, %198, %cst_116 {dimension_numbers = #tpu.dot_dimension_numbers<[1], [0], [0], [1], [0, 0, 1, 1], [], []>} : vector<9x16xf32>, vector<16x128xf32>, vector<9x128xf32> -> vector<9x128xf32>
    %200 = arith.addf %194, %199 : vector<9x128xf32>
    %201 = vector.extract_strided_slice %149 {offsets = [2, 2, 0], sizes = [3, 3, 16], strides = [1, 1, 1]} : vector<5x5x128xf32> to vector<3x3x16xf32>
    %202 = vector.shape_cast %201 : vector<3x3x16xf32> to vector<9x16xf32>
    %c8_117 = arith.constant 8 : index
    %c0_118 = arith.constant 0 : index
    %c0_119 = arith.constant 0 : index
    %203 = vector.load %arg4[%c8_117, %c0_118, %c0_119] : memref<9x16x128xf32, #tpu.memory_space<vmem>>, vector<1x16x128xf32>
    %204 = vector.shape_cast %203 : vector<1x16x128xf32> to vector<16x128xf32>
    %cst_120 = arith.constant dense<0.000000e+00> : vector<9x128xf32>
    %205 = tpu.matmul %202, %204, %cst_120 {dimension_numbers = #tpu.dot_dimension_numbers<[1], [0], [0], [1], [0, 0, 1, 1], [], []>} : vector<9x16xf32>, vector<16x128xf32>, vector<9x128xf32> -> vector<9x128xf32>
    %206 = arith.addf %200, %205 : vector<9x128xf32>
    %207 = vector.shape_cast %206 : vector<9x128xf32> to vector<3x3x128xf32>
    %cst_121 = arith.constant 0.000000e+00 : f32
    %208 = vector.broadcast %cst_121 : f32 to vector<3x3x128xf32>
    %209 = arith.cmpf ogt, %207, %208 : vector<3x3x128xf32>
    %210 = vector.broadcast %11 : vector<1x1x128xf32> to vector<3x3x128xf32>
    %211 = arith.mulf %210, %207 : vector<3x3x128xf32>
    %212 = arith.select %209, %207, %211 : vector<3x3x128xi1>, vector<3x3x128xf32>
    %213 = vector.shape_cast %212 : vector<3x3x128xf32> to vector<9x128xf32>
    %214 = vector.extract_strided_slice %213 {offsets = [0, 0], sizes = [9, 32], strides = [1, 1]} : vector<9x128xf32> to vector<9x32xf32>
    %c0_122 = arith.constant 0 : index
    %c0_123 = arith.constant 0 : index
    %215 = vector.load %arg5[%c0_122, %c0_123] : memref<32x128xf32, #tpu.memory_space<vmem>>, vector<32x128xf32>
    %cst_124 = arith.constant dense<0.000000e+00> : vector<9x128xf32>
    %216 = tpu.matmul %214, %215, %cst_124 {dimension_numbers = #tpu.dot_dimension_numbers<[1], [0], [0], [1], [0, 0, 1, 1], [], []>} : vector<9x32xf32>, vector<32x128xf32>, vector<9x128xf32> -> vector<9x128xf32>
    %217 = vector.broadcast %5 : vector<1x128xf32> to vector<9x128xf32>
    %218 = arith.addf %216, %217 : vector<9x128xf32>
    %cst_125 = arith.constant 0.000000e+00 : f32
    %219 = vector.broadcast %cst_125 : f32 to vector<9x128xf32>
    %220 = arith.subf %219, %218 : vector<9x128xf32>
    %221 = math.exp %220 : vector<9x128xf32>
    %cst_126 = arith.constant 1.000000e+00 : f32
    %222 = vector.broadcast %cst_126 : f32 to vector<9x128xf32>
    %223 = arith.addf %222, %221 : vector<9x128xf32>
    %224 = tpu.reciprocal %223 {approx = true} : vector<9x128xf32> -> vector<9x128xf32>
    %225 = tpu.iota {dimensions = array<i32: 1>} : vector<1x128xi32>
    %c0_i32 = arith.constant 0 : i32
    %226 = vector.broadcast %c0_i32 : i32 to vector<1x128xi32>
    %227 = arith.cmpi eq, %225, %226 : vector<1x128xi32>
    %228 = vector.shape_cast %227 : vector<1x128xi1> to vector<1x128xi1>
    %229 = vector.broadcast %228 : vector<1x128xi1> to vector<9x128xi1>
    %230 = arith.select %229, %224, %218 : vector<9x128xi1>, vector<9x128xf32>
    %c0_127 = arith.constant 0 : index
    %c0_128 = arith.constant 0 : index
    %c0_129 = arith.constant 0 : index
    %231 = vector.load %arg7[%c0_127, %c0_128, %c0_129] : memref<1x9x128xf32, #tpu.memory_space<vmem>>, vector<1x9x128xf32>
    %232 = vector.shape_cast %231 : vector<1x9x128xf32> to vector<9x128xf32>
    %233 = vector.shape_cast %230 : vector<9x128xf32> to vector<1x9x128xf32>
    tpu.vector_store %arg7[%c0_127, %c0_128, %c0_129], %233 {strides = array<i32>} : memref<1x9x128xf32, #tpu.memory_space<vmem>>, vector<1x9x128xf32>,
    return
  }
  func.func @transform_0(%arg0: i32) -> (i32, i32, i32, i32) {
    %c0_i32 = arith.constant 0 : i32
    %c0_i32_0 = arith.constant 0 : i32
    %c0_i32_1 = arith.constant 0 : i32
    %c0_i32_2 = arith.constant 0 : i32
    return %arg0, %c0_i32, %c0_i32_0, %c0_i32_1 : i32, i32, i32, i32
  }
  func.func @transform_1(%arg0: i32) -> (i32, i32, i32) {
    %c0_i32 = arith.constant 0 : i32
    %c0_i32_0 = arith.constant 0 : i32
    %c0_i32_1 = arith.constant 0 : i32
    %c0_i32_2 = arith.constant 0 : i32
    return %c0_i32, %c0_i32_0, %c0_i32_1 : i32, i32, i32
  }
  func.func @transform_2(%arg0: i32) -> (i32, i32, i32) {
    %c0_i32 = arith.constant 0 : i32
    %c0_i32_0 = arith.constant 0 : i32
    %c0_i32_1 = arith.constant 0 : i32
    %c0_i32_2 = arith.constant 0 : i32
    return %c0_i32, %c0_i32_0, %c0_i32_1 : i32, i32, i32
  }
  func.func @transform_3(%arg0: i32) -> (i32, i32, i32) {
    %c0_i32 = arith.constant 0 : i32
    %c0_i32_0 = arith.constant 0 : i32
    %c0_i32_1 = arith.constant 0 : i32
    %c0_i32_2 = arith.constant 0 : i32
    return %c0_i32, %c0_i32_0, %c0_i32_1 : i32, i32, i32
  }
  func.func @transform_4(%arg0: i32) -> (i32, i32) {
    %c0_i32 = arith.constant 0 : i32
    %c0_i32_0 = arith.constant 0 : i32
    %c0_i32_1 = arith.constant 0 : i32
    return %c0_i32, %c0_i32_0 : i32, i32
  }
  func.func @transform_5(%arg0: i32) -> (i32, i32) {
    %c0_i32 = arith.constant 0 : i32
    %c0_i32_0 = arith.constant 0 : i32
    %c0_i32_1 = arith.constant 0 : i32
    return %c0_i32, %c0_i32_0 : i32, i32
  }
  func.func @transform_6(%arg0: i32) -> (i32, i32, i32) {
    %c0_i32 = arith.constant 0 : i32
    %c0_i32_0 = arith.constant 0 : i32
    %c0_i32_1 = arith.constant 0 : i32
    return %arg0, %c0_i32, %c0_i32_0 : i32, i32, i32
  }
}

</mosaic_0001>

<bundles_post_ra>
// kernel: pnet_forward.1
= control target key start
LH: loop header
LB: loop body
LE: loop exit
PB: predicated region body
PF: predicated region fallthrough
CT: control target
= control target key end

     0   :  { %s12753_s21 = smov 0   ;;  %s18516_s0 = inlined_call_operand.vmem [shape: f32[2,16,16,3], index: 0, kind: input, shape index: {}]   ;;  %s18517_s1 = inlined_call_operand.vmem [shape: f32[9,3,128], index: 1, kind: input, shape index: {}]   ;;  %s18518_s2 = inlined_call_operand.vmem [shape: f32[9,10,128], index: 2, kind: input, shape index: {}]   ;;  %s18519_s3 = inlined_call_operand.vmem [shape: f32[9,16,128], index: 3, kind: input, shape index: {}]   ;;  %s18520_s4 = inlined_call_operand.vmem [shape: f32[32,128], index: 4, kind: input, shape index: {}]   ;;  %s18521_s5 = inlined_call_operand.vmem [shape: f32[8,128], index: 5, kind: input, shape index: {}]   ;;  %s18522_s6 = inlined_call_operand.vmem [shape: f32[2,9,128], index: 6, kind: output, shape index: {}]  }
   0x1 LB: > { %s11021_s22 = sadd.s32 4294967295, %s12712_s21   ;;  %p11025_p0 = scmp.ge.s32.totalorder %s12712_s21, 1  ;;  %s12712_s21 = sphi %s12753_s21, %s16_s21  }
   0x2   : > { %p212_p1 = scmp.lt.s32.totalorder %s12712_s21, 3 }
   0x4   : > { %p213_p2 = pnand %p11025_p0, %p212_p1 }
   0x6   : > { %216 = sbr.rel (%p213_p2) target bundleno = 1669 (0x685), region = 44 }
   0xb   : > { %v786_v0 = vld [vmem:[%s18517_s1] sm:$0x7]  ;;  %vm1254_vm0 = vcmask 1042432   ;;  %p242_p3 = scmp.lt.s32.totalorder %s11021_s22, 1  ;;  %v18523_v1 = vlaneseq  ;;  %v18524_v2 = vmov 0.0   ;;  %vm12715_vm1 = vmmov 0  }
   0xc   : > { %11794 = vmatprep.subr.mxu0 %v18524_v2  ;;  %12651 = vmatprep.subr.mxu1 %v18524_v2  ;;  %v12716_v3 = vmov 1983009808   ;;  %vm1487_vm2 = vcmask 1040384   ;;  %vm1488_vm3 = vcmask 1042434   ;;  %vm1490_vm5 = vcmask 1044484  }
   0xd   : > { %11795 = vmatpush3.msk.msra.mxu0 %vm1254_vm0, %v786_v0  ;;  %11796 = vmatprep.mubr.msk.f32.mxu0 %vm12715_vm1, %v18524_v2  ;;  %s19684_s22 = smov (!%p242_p3, %s11021_s22), 1  ;;  %v326_v4 = vunpack.c.l.s4 %v12716_v3  ;;  %v12772_v5 = vshrl.u32 %v18523_v1, 7  ;;  %vm12786_vm4 = vmor %vm1487_vm2, %vm1488_vm3  ;;  %vm1203_vm6 = vcmask 23552   ;;  %vm1492_vm7 = vcmask 1046534   ;;  %v11071_v43 = vld [vmem:[%s18517_s1 + $0x4] sm:$0x7] }
   0xe   : > { %11948 = vmatprep.subr.mxu0 %v18524_v2  ;;  %12652 = vmatpush3.msk.msra.mxu1 %vm1254_vm0, %v786_v0  ;;  %s11462_s25 = sshll.u32 %s19684_s22, 8  ;;  %vm1491_vm8 = vmor %vm12786_vm4, %vm1490_vm5  ;;  %v18894_v30 = vmov 0  ;;  %v11098_v56 = vld [vmem:[%s18517_s1 + $0x8] sm:$0x7]  ;;  %vm7376_vm10 = vcmask 1041408   ;;  %vm6909_vm11 = vcmask 1041409  }
   0xf   : > { %18890 = vst [vmem:[#allocation2_spill] sm:$0xff] %v12772_v5  ;;  %v327_v6 = vunpack.c.0.s8 %v326_v4  ;;  %11868 = vmatprep.mubr.msk.f32.mxu1 %vm12715_vm1, %v18524_v2  ;;  %11871 = vmatprep.subr.mxu1 %v18524_v2  ;;  %s12783_s28 = scalar_lea.vmem %s18516_s0, %s11462_s25  ;;  %vm12836_vm9 = vmor %vm1491_vm8, %vm1492_vm7  ;;  %vm6912_vm12 = vcmask 1043459   ;;  %vm6915_vm13 = vcmask 1045509   ;;  %s11463_s7 = sshll.u32 %s19684_s22, 4 }
  0x10   : > { %v252_v8 = vld [vmem:[%s12783_s28] sm:$0xff]  ;;  %v279_v10 = vld [vmem:[%s12783_s28 + $0xd8] sm:$0xff]  ;;  %v253_v11 = vld [vmem:[%s12783_s28 + $0x8] sm:$0xff]  ;;  %v18895_v30 = vsel %vm12836_vm9, 4294967295, %v18894_v30  ;;  %s251_s10 = scalar_lea.vmem %s18522_s6, %s11463_s7 }
  0x11   : > { %v12792_v9 = vsub.s32 %v327_v6, %v12772_v5  ;;  %v324_v12 = vcombine.high %v252_v8, %v252_v8  ;;  %v770_v13 = vcombine.high %v279_v10, %v279_v10  ;;  %v254_v14 = vld [vmem:[%s12783_s28 + $0x10] sm:$0xff]  ;;  %v341_v15 = vcombine.high %v253_v11, %v253_v11  ;;  %18896 = vst [vmem:[#allocation4_spill] sm:$0xff] %v18895_v30  ;;  %v255_v50 = vld [vmem:[%s12783_s28 + $0x18] sm:$0xff] }
  0x12   : > { %v357_v23 = vcombine.high %v254_v14, %v254_v14  ;;  %v374_v54 = vcombine.high %v255_v50, %v255_v50 }
  0x13   : > { %v331_v16 = vrot.slane %v252_v8, %v12792_v9  ;;  %v12799_v17 = vrot.slane %v279_v10, %v12792_v9  ;;  %v12802_v18 = vrot.slane %v253_v11, %v12792_v9  ;;  %v12805_v19 = vrot.slane %v254_v14, %v12792_v9 }
  0x14   : > { %v12811_v20 = vrot.slane %v324_v12, %v12792_v9  ;;  %v12814_v21 = vrot.slane %v770_v13, %v12792_v9  ;;  %v12817_v22 = vrot.slane %v341_v15, %v12792_v9  ;;  %v12871_v52 = vrot.slane %v357_v23, %v12792_v9  ;;  %v256_v12 = vld [vmem:[%s12783_s28 + $0x20] sm:$0xff] }
  0x15   : > { %v12819_v24 = vcombine.high %v331_v16, %v331_v16  ;;  %v11057_v25 = vrot.slane %v331_v16, 9  ;;  %v12823_v26 = vcombine.high %v12799_v17, %v12799_v17  ;;  %v12827_v27 = vcombine.high %v12802_v18, %v12802_v18 }
  0x16   : > { %18893 = vst [vmem:[#allocation3_spill] sm:$0xff] %v12814_v21  ;;  %v12831_v28 = vcombine.high %v12811_v20, %v12811_v20  ;;  %v805_v29 = vcombine.low %v12817_v22, %v12805_v19  ;;  %v1499_v31 = vrot.slane %v12811_v20, 7  ;;  %v1505_v32 = vrot.slane %v12802_v18, 7 }
  0x17   : > { %v787_v33 = vcombine.low %v331_v16, %v12819_v24  ;;  %v1496_v34 = vrot.slane %v12819_v24, 7  ;;  %v1195_v36 = vcombine.low %v12823_v26, %v12814_v21  ;;  %v804_v39 = vcombine.low %v12802_v18, %v12827_v27 }
  0x18   : > { %v788_v37 = vcombine.low %v12811_v20, %v12831_v28  ;;  %v1502_v38 = vrot.slane %v12831_v28, 7  ;;  %v819_v40 = vrot.slane %v805_v29, %v12792_v9  ;;  %v1501_v48 = vrot.slane %v1499_v31, 2 }
  0x19   : > { %v795_v41 = vrot.slane %v787_v33, %v12792_v9  ;;  %v12856_v42 = vrot.slane %v1195_v36, %v12792_v9  ;;  %v1497_v44 = vsel %vm12836_vm9, %v11057_v25, %v1496_v34  ;;  %v1498_v45 = vrot.slane %v1496_v34, 2 }
  0x1a   : > { %v802_v46 = vrot.slane %v788_v37, %v12792_v9  ;;  %v812_v47 = vrot.slane %v804_v39, %v12792_v9  ;;  %v1504_v49 = vrot.slane %v1502_v38, 2  ;;  %v12875_v53 = vcombine.high %v12805_v19, %v12805_v19 }
  0x1b   : > { %18897 = vst [vmem:[#allocation5_spill] sm:$0xff] %v12856_v42  ;;  %11869 = vmatmul.mubr.msk.f32.vlgmr.msra.gmra.mxu1 %vm1203_vm6, %v12856_v42  ;;  %v1500_v51 = vsel %vm12836_vm9, %v1498_v45, %v1499_v31  ;;  %v1503_v58 = vsel %vm12836_vm9, %v1501_v48, %v1502_v38  ;;  %v1507_v59 = vrot.slane %v1505_v32, 2  ;;  %v12889_v62 = vcombine.high %v12871_v52, %v12871_v52 }
  0x1c   : > { %v803_v55 = vcombine.low %v795_v41, %v802_v46  ;;  %v820_v57 = vcombine.low %v812_v47, %v819_v40  ;;  %11872 = vmatpush3.msk.msra.mxu1 %vm1254_vm0, %v11071_v43  ;;  %11873 = vmatprep.mubr.msk.f32.mxu1 %vm12715_vm1, %v18524_v2  ;;  %v1506_v60 = vsel %vm12836_vm9, %v1504_v49, %v1505_v32  ;;  %v1508_v10 = vrot.slane %v12827_v27, 7 }
  0x1d   : > { %v1804_v61 = vcombine.low %v1497_v44, %v1500_v51  ;;  %v12892_v63 = vrot.slane %v255_v50, %v12792_v9  ;;  %12025 = vmatprep.subr.mxu1 %v18524_v2  ;;  %v1805_v0 = vcombine.low %v1503_v58, %v1506_v60  ;;  %v12897_v3 = vrot.slane %v374_v54, %v12792_v9 }
  0x1e   : > { %11797 = vmatmul.mubr.msk.f32.vlgmr.msra.gmra.mxu0 %vm1203_vm6, %v803_v55  ;;  %v821_v4 = vcombine.low %v12875_v53, %v12871_v52  ;;  %v1473_v6 = vcombine.high %v12817_v22, %v12817_v22  ;;  %v1511_v11 = vrot.slane %v12817_v22, 7  ;;  %v11058_v16 = vrot.slane %v12805_v19, 9 }
  0x1f   : > { %18898 = vst [vmem:[#allocation6_spill] sm:$0xff] %v12897_v3  ;;  %11949 = vmatpush3.msk.msra.mxu0 %vm1254_vm0, %v11098_v56  ;;  %11799 = vmatprep.mubr.msk.f32.mxu0 %vm12715_vm1, %v18524_v2  ;;  %v1812_v7 = vrot.slane %v1804_v61, %v12792_v9  ;;  %v822_v8 = vcombine.low %v12889_v62, %v12892_v63  ;;  %v1510_v29 = vrot.slane %v1508_v10, 2  ;;  %v1518_v33 = vrot.slane %v12875_v53, 7 }
  0x20   : > { %v1819_v13 = vrot.slane %v1805_v0, %v12792_v9  ;;  %v829_v14 = vrot.slane %v821_v4, %v12792_v9  ;;  %v1514_v15 = vrot.slane %v1473_v6, 7  ;;  %12102 = vmatprep.subr.mxu0 %v18524_v2  ;;  %v1509_v25 = vsel %vm12836_vm9, %v1507_v59, %v1508_v10  ;;  %v257_v10 = vld [vmem:[%s12783_s28 + $0x28] sm:$0xff] }
  0x21   : > { %v836_v23 = vrot.slane %v822_v8, %v12792_v9  ;;  %v1513_v31 = vrot.slane %v1511_v11, 2  ;;  %v12923_v34 = vcombine.high %v12892_v63, %v12892_v63  ;;  %v12926_v36 = vrot.slane %v256_v12, %v12792_v9 }
  0x22   : > { %11800 = vmatmul.mubr.msk.f32.gmra.mxu0 %vm1203_vm6, %v820_v57  ;;  %v1820_v32 = vcombine.low %v1812_v7, %v1819_v13  ;;  %v1512_v38 = vsel %vm12836_vm9, %v1510_v29, %v1511_v11  ;;  %v1521_v40 = vrot.slane %v12871_v52, 7  ;;  %v12940_v41 = vsel %vm12836_vm9, %v11058_v16, %v1518_v33 }
  0x23   : > { %18899 = vst [vmem:[#allocation7_spill] sm:$0xff] %v12926_v36  ;;  %11802 = vmatprep.mubr.msk.f32.mxu0 %vm12715_vm1, %v18524_v2  ;;  %v12930_v37 = vcombine.low %v829_v14, %v836_v23  ;;  %v1515_v39 = vsel %vm12836_vm9, %v1513_v31, %v1514_v15  ;;  %18901 = vst [vmem:[#allocation9_spill] sm:$0xff] %v12940_v41  ;;  %v1821_v43 = vcombine.low %v1509_v25, %v1512_v38 }
  0x24   : > { %11874 = vmatmul.mubr.msk.f32.vlgmr.msra.gmra.mxu1 %vm1203_vm6, %v1820_v32  ;;  %v12944_v44 = vcombine.high %v12926_v36, %v12926_v36  ;;  %v838_v45 = vcombine.low %v12923_v34, %v12897_v3  ;;  %v1822_v46 = vcombine.low %v1515_v39, %v12940_v41  ;;  %v1520_v47 = vrot.slane %v1518_v33, 2 }
  0x25   : > { %18900 = vst [vmem:[#allocation8_spill] sm:$0xff] %v12930_v37  ;;  %11876 = vmatprep.mubr.msk.f32.mxu1 %vm12715_vm1, %v18524_v2  ;;  %v1523_v48 = vrot.slane %v1521_v40, 2  ;;  %v1524_v49 = vrot.slane %v12889_v62, 7  ;;  %v1829_v50 = vrot.slane %v1821_v43, %v12792_v9  ;;  %v1527_v55 = vrot.slane %v12892_v63, 7 }
  0x26   : > { %11803 = vmatmul.mubr.msk.f32.gmra.mxu0 %vm1203_vm6, %v12930_v37  ;;  %v839_v51 = vcombine.low %v12926_v36, %v12944_v44  ;;  %v12958_v54 = vrot.slane %v838_v45, %v12792_v9  ;;  %v1836_v56 = vrot.slane %v1822_v46, %v12792_v9  ;;  %v12966_v57 = vsel %vm12836_vm9, %v1520_v47, %v1521_v40 }
  0x27   : > { %11805 = vmatprep.mubr.msk.f32.mxu0 %vm12715_vm1, %v18524_v2  ;;  %18903 = vst [vmem:[#allocation11_spill] sm:$0xff] %v12966_v57  ;;  %v12970_v58 = vsel %vm12836_vm9, %v1523_v48, %v1524_v49  ;;  %v1526_v59 = vrot.slane %v1524_v49, 2  ;;  %v1529_v61 = vrot.slane %v1527_v55, 2  ;;  %v1530_v0 = vrot.slane %v12923_v34, 7  ;;  %v258_v48 = vld [vmem:[%s12783_s28 + $0x30] sm:$0xff] }
  0x28   : > { %18902 = vst [vmem:[#allocation10_spill] sm:$0xff] %v12958_v54  ;;  %18904 = vst [vmem:[#allocation12_spill] sm:$0xff] %v12970_v58  ;;  %v12973_v60 = vrot.slane %v839_v51, %v12792_v9  ;;  %v1838_v4 = vcombine.low %v12966_v57, %v12970_v58  ;;  %v1837_v6 = vcombine.low %v1829_v50, %v1836_v56  ;;  %v1533_v40 = vrot.slane %v12897_v3, 7  ;;  %v263_v57 = vld [vmem:[%s12783_s28 + $0x58] sm:$0xff] }
  0x29   : > { %v12980_v7 = vsel %vm12836_vm9, %v1526_v59, %v1527_v55  ;;  %v390_v11 = vcombine.high %v256_v12, %v256_v12  ;;  %v12989_v14 = vsel %vm12836_vm9, %v1529_v61, %v1530_v0  ;;  %v407_v12 = vcombine.high %v257_v10, %v257_v10 }
  0x2a   : > { %18905 = vst [vmem:[#allocation13_spill] sm:$0xff] %v12973_v60  ;;  %18906 = vst [vmem:[#allocation14_spill] sm:$0xff] %v12980_v7  ;;  %v854_v13 = vcombine.low %v12958_v54, %v12973_v60  ;;  %11877 = vmatmul.mubr.msk.f32.gmra.mxu1 %vm1203_vm6, %v1837_v6  ;;  %v1839_v16 = vcombine.low %v12980_v7, %v12989_v14  ;;  %v1846_v23 = vrot.slane %v1838_v4, %v12792_v9 }
  0x2b   : > { %18907 = vst [vmem:[#allocation15_spill] sm:$0xff] %v12989_v14  ;;  %v12998_v25 = vrot.slane %v390_v11, %v12792_v9  ;;  %11879 = vmatprep.mubr.msk.f32.mxu1 %vm12715_vm1, %v18524_v2  ;;  %v13004_v29 = vrot.slane %v257_v10, %v12792_v9  ;;  %v13008_v31 = vcombine.high %v12897_v3, %v12897_v3  ;;  %v1532_v32 = vrot.slane %v1530_v0, 2 }
  0x2c   : > { %11806 = vmatmul.mubr.msk.f32.gmra.mxu0 %vm1203_vm6, %v854_v13  ;;  %v1853_v33 = vrot.slane %v1839_v16, %v12792_v9  ;;  %v13018_v39 = vrot.slane %v407_v12, %v12792_v9  ;;  %v11059_v46 = vrot.slane %v12926_v36, 9  ;;  %v1540_v47 = vrot.slane %v12944_v44, 7 }
  0x2d   : > { %11808 = vmatprep.mubr.msk.f32.mxu0 %vm12715_vm1, %v18524_v2  ;;  %v13015_v38 = vcombine.high %v12998_v25, %v12998_v25  ;;  %v13023_v43 = vcombine.high %v13004_v29, %v13004_v29  ;;  %v1536_v45 = vrot.slane %v13008_v31, 7  ;;  %v13033_v51 = vsel %vm12836_vm9, %v1532_v32, %v1533_v40 }
  0x2e   : > { %18908 = vst [vmem:[#allocation16_spill] sm:$0xff] %v13018_v39  ;;  %v1854_v49 = vcombine.low %v1846_v23, %v1853_v33  ;;  %18909 = vst [vmem:[#allocation17_spill] sm:$0xff] %v13033_v51  ;;  %v1535_v55 = vrot.slane %v1533_v40, 2  ;;  %v13039_v59 = vsel %vm12836_vm9, %v11059_v46, %v1540_v47  ;;  %v1542_v61 = vrot.slane %v1540_v47, 2 }
  0x2f   : > { %v855_v50 = vcombine.low %v12998_v25, %v13015_v38  ;;  %v856_v56 = vcombine.low %v13004_v29, %v13023_v43  ;;  %18910 = vst [vmem:[#allocation18_spill] sm:$0xff] %v13039_v59  ;;  %v1543_v0 = vrot.slane %v12998_v25, 7  ;;  %v423_v10 = vcombine.high %v258_v48, %v258_v48 }
  0x30   : > { %11880 = vmatmul.mubr.msk.f32.gmra.mxu1 %vm1203_vm6, %v1854_v49  ;;  %v13048_v6 = vsel %vm12836_vm9, %v1535_v55, %v1536_v45  ;;  %v13051_v11 = vrot.slane %v258_v48, %v12792_v9  ;;  %v1546_v49 = vrot.slane %v13015_v38, 7  ;;  %v1555_v1 = vrot.slane %v13018_v39, 7 }
  0x31   : > { %v13044_v4 = vrot.slane %v855_v50, %v12792_v9  ;;  %18912 = vst [vmem:[#allocation20_spill] sm:$0xff] %v13048_v6  ;;  %v13054_v13 = vrot.slane %v856_v56, %v12792_v9  ;;  %11882 = vmatprep.mubr.msk.f32.mxu1 %vm12715_vm1, %v18524_v2  ;;  %v13060_v16 = vsel %vm12836_vm9, %v1542_v61, %v1543_v0  ;;  %v1545_v12 = vrot.slane %v1543_v0, 2  ;;  %v259_v0 = vld [vmem:[%s12783_s28 + $0x38] sm:$0xff] }
  0x32   : > { %18914 = vst [vmem:[#allocation22_spill] sm:$0xff] %v13060_v16  ;;  %v1855_v23 = vcombine.low %v13033_v51, %v13048_v6  ;;  %v1856_v33 = vcombine.low %v13039_v59, %v13060_v16  ;;  %v13069_v40 = vrot.slane %v423_v10, %v12792_v9  ;;  %v13073_v45 = vcombine.high %v13051_v11, %v13051_v11  ;;  %v262_v6 = vld [vmem:[%s12783_s28 + $0x50] sm:$0xff] }
  0x33   : > { %18911 = vst [vmem:[#allocation19_spill] sm:$0xff] %v13044_v4  ;;  %18913 = vst [vmem:[#allocation21_spill] sm:$0xff] %v13054_v13  ;;  %v13077_v46 = vcombine.low %v13044_v4, %v13054_v13  ;;  %v872_v48 = vcombine.low %v13018_v39, %v13051_v11  ;;  %v1549_v56 = vrot.slane %v13004_v29, 7  ;;  %v1552_v61 = vrot.slane %v13023_v43, 7 }
  0x34   : > { %v1863_v47 = vrot.slane %v1855_v23, %v12792_v9  ;;  %v13084_v50 = vrot.slane %v1856_v33, %v12792_v9  ;;  %v873_v55 = vcombine.low %v13073_v45, %v13069_v40  ;;  %v13098_v23 = vsel %vm12836_vm9, %v1545_v12, %v1546_v49 }
  0x35   : > { %18915 = vst [vmem:[#allocation23_spill] sm:$0xff] %v13077_v46  ;;  %11809 = vmatmul.mubr.msk.f32.gmra.mxu0 %vm1203_vm6, %v13077_v46  ;;  %v13094_v10 = vrot.slane %v872_v48, %v12792_v9  ;;  %18918 = vst [vmem:[#allocation26_spill] sm:$0xff] %v13098_v23  ;;  %v1548_v33 = vrot.slane %v1546_v49, 2  ;;  %v1551_v8 = vrot.slane %v1549_v56, 2  ;;  %v1554_v35 = vrot.slane %v1552_v61, 2 }
  0x36   : > { %18916 = vst [vmem:[#allocation24_spill] sm:$0xff] %v13084_v50  ;;  %v1871_v32 = vcombine.low %v1863_v47, %v13084_v50  ;;  %11811 = vmatprep.mubr.msk.f32.mxu0 %vm12715_vm1, %v18524_v2  ;;  %v13105_v15 = vrot.slane %v873_v55, %v12792_v9  ;;  %v13115_v49 = vcombine.high %v13069_v40, %v13069_v40  ;;  %v11060_v13 = vrot.slane %v13051_v11, 9 }
  0x37   : > { %18917 = vst [vmem:[#allocation25_spill] sm:$0xff] %v13094_v10  ;;  %v13111_v12 = vsel %vm12836_vm9, %v1548_v33, %v1549_v56  ;;  %v440_v47 = vcombine.high %v259_v0, %v259_v0  ;;  %v13122_v2 = vsel %vm12836_vm9, %v1551_v8, %v1552_v61  ;;  %v13126_v48 = vsel %vm12836_vm9, %v1554_v35, %v1555_v1 }
  0x38   : > { %18919 = vst [vmem:[#allocation27_spill] sm:$0xff] %v13105_v15  ;;  %18920 = vst [vmem:[#allocation28_spill] sm:$0xff] %v13111_v12  ;;  %11883 = vmatmul.mubr.msk.f32.gmra.mxu1 %vm1203_vm6, %v1871_v32  ;;  %v888_v55 = vcombine.low %v13094_v10, %v13105_v15  ;;  %v1872_v56 = vcombine.low %v13098_v23, %v13111_v12  ;;  %v18923_v33 = vmov 0.0   ;;  %v1873_v32 = vcombine.low %v13122_v2, %v13126_v48  ;;  %v260_v15 = vld [vmem:[%s12783_s28 + $0x40] sm:$0xff] }
  0x39   : > { %18921 = vst [vmem:[#allocation29_spill] sm:$0xff] %v13122_v2  ;;  %18922 = vst [vmem:[#allocation30_spill] sm:$0xff] %v13126_v48  ;;  %11885 = vmatprep.mubr.msk.f32.mxu1 %vm12715_vm1, %v18923_v33  ;;  %v13135_v5 = vrot.slane %v259_v0, %v12792_v9  ;;  %v13138_v10 = vrot.slane %v440_v47, %v12792_v9  ;;  %v13142_v35 = vcombine.high %v13018_v39, %v13018_v39 }
  0x3a   : > { %11812 = vmatmul.mubr.msk.f32.gmra.mxu0 %vm1203_vm6, %v888_v55  ;;  %v13146_v8 = vrot.slane %v1872_v56, %v12792_v9  ;;  %v1557_v61 = vrot.slane %v1555_v1, 2  ;;  %v1562_v4 = vrot.slane %v13073_v45, 7  ;;  %v13151_v0 = vrot.slane %v1873_v32, %v12792_v9 }
  0x3b   : > { %18924 = vst [vmem:[#allocation31_spill] sm:$0xff] %v13138_v10  ;;  %18925 = vst [vmem:[#allocation32_spill] sm:$0xff] %v13142_v35  ;;  %11814 = vmatprep.mubr.msk.f32.mxu0 %vm12715_vm1, %v18923_v33  ;;  %v13157_v47 = vcombine.high %v13135_v5, %v13135_v5  ;;  %v889_v55 = vcombine.low %v13115_v49, %v13135_v5  ;;  %v1558_v56 = vrot.slane %v13142_v35, 7  ;;  %v1565_v42 = vrot.slane %v13069_v40, 7 }
  0x3c   : > { %18926 = vst [vmem:[#allocation33_spill] sm:$0xff] %v13146_v8  ;;  %18927 = vst [vmem:[#allocation34_spill] sm:$0xff] %v13151_v0  ;;  %v13166_v60 = vsel %vm12836_vm9, %v11060_v13, %v1562_v4  ;;  %v1564_v32 = vrot.slane %v1562_v4, 2  ;;  %v1888_v46 = vcombine.low %v13146_v8, %v13151_v0  ;;  %v1568_v50 = vrot.slane %v13115_v49, 7 }
  0x3d   : > { %18928 = vst [vmem:[#allocation35_spill] sm:$0xff] %v13166_v60  ;;  %v890_v54 = vcombine.low %v13157_v47, %v13138_v10  ;;  %v13175_v37 = vrot.slane %v889_v55, %v12792_v9  ;;  %v13179_v1 = vsel %vm12836_vm9, %v1557_v61, %v1558_v56  ;;  %v1567_v4 = vrot.slane %v1565_v42, 2 }
  0x3e   : > { %18930 = vst [vmem:[#allocation37_spill] sm:$0xff] %v13179_v1  ;;  %v13183_v13 = vsel %vm12836_vm9, %v1564_v32, %v1565_v42  ;;  %v1889_v8 = vcombine.low %v13179_v1, %v13166_v60  ;;  %11886 = vmatmul.mubr.msk.f32.gmra.mxu1 %vm1203_vm6, %v1888_v46  ;;  %v456_v55 = vcombine.high %v260_v15, %v260_v15  ;;  %v1571_v48 = vrot.slane %v13135_v5, 7  ;;  %v261_v1 = vld [vmem:[%s12783_s28 + $0x48] sm:$0xff] }
  0x3f   : > { %18929 = vst [vmem:[#allocation36_spill] sm:$0xff] %v13175_v37  ;;  %18931 = vst [vmem:[#allocation38_spill] sm:$0xff] %v13183_v13  ;;  %v13190_v35 = vrot.slane %v890_v54, %v12792_v9  ;;  %v13193_v61 = vrot.slane %v260_v15, %v12792_v9  ;;  %11888 = vmatprep.mubr.msk.f32.mxu1 %vm12715_vm1, %v18923_v33  ;;  %v13199_v42 = vsel %vm12836_vm9, %v1567_v4, %v1568_v50 }
  0x40   : > { %18934 = vst [vmem:[#allocation41_spill] sm:$0xff] %v13199_v42  ;;  %v13202_v56 = vrot.slane %v1889_v8, %v12792_v9  ;;  %v13206_v46 = vcombine.high %v13138_v10, %v13138_v10  ;;  %v1570_v54 = vrot.slane %v1568_v50, 2  ;;  %v1890_v15 = vcombine.low %v13183_v13, %v13199_v42 }
  0x41   : > { %18932 = vst [vmem:[#allocation39_spill] sm:$0xff] %v13190_v35  ;;  %18933 = vst [vmem:[#allocation40_spill] sm:$0xff] %v13193_v61  ;;  %v13210_v32 = vcombine.low %v13175_v37, %v13190_v35  ;;  %v13215_v60 = vrot.slane %v456_v55, %v12792_v9  ;;  %v13219_v4 = vcombine.high %v13193_v61, %v13193_v61  ;;  %v1574_v50 = vrot.slane %v13157_v47, 7 }
  0x42   : > { %18935 = vst [vmem:[#allocation42_spill] sm:$0xff] %v13202_v56  ;;  %v1577_v37 = vrot.slane %v13138_v10, 7  ;;  %v13230_v55 = vrot.slane %v1890_v15, %v12792_v9  ;;  %v1580_v0 = vrot.slane %v13206_v46, 7  ;;  %v13243_v13 = vsel %vm12836_vm9, %v1570_v54, %v1571_v48 }
  0x43   : > { %18936 = vst [vmem:[#allocation43_spill] sm:$0xff] %v13210_v32  ;;  %11815 = vmatmul.mubr.msk.f32.gmra.mxu0 %vm1203_vm6, %v13210_v32  ;;  %v13234_v42 = vcombine.high %v13215_v60, %v13215_v60  ;;  %v906_v8 = vcombine.low %v13193_v61, %v13219_v4  ;;  %18939 = vst [vmem:[#allocation46_spill] sm:$0xff] %v13243_v13  ;;  %v1573_v32 = vrot.slane %v1571_v48, 2  ;;  %v1576_v12 = vrot.slane %v1574_v50, 2 }
  0x44   : > { %18937 = vst [vmem:[#allocation44_spill] sm:$0xff] %v13230_v55  ;;  %11817 = vmatprep.mubr.msk.f32.mxu0 %vm12715_vm1, %v18923_v33  ;;  %v1579_v15 = vrot.slane %v1577_v37, 2  ;;  %v1905_v2 = vcombine.low %v13202_v56, %v13230_v55  ;;  %v473_v59 = vcombine.high %v261_v1, %v261_v1  ;;  %v13266_v56 = vrot.slane %v261_v1, %v12792_v9 }
  0x45   : > { %18938 = vst [vmem:[#allocation45_spill] sm:$0xff] %v13234_v42  ;;  %v907_v16 = vcombine.low %v13215_v60, %v13234_v42  ;;  %v13250_v23 = vrot.slane %v906_v8, %v12792_v9  ;;  %v13255_v14 = vsel %vm12836_vm9, %v1573_v32, %v1574_v50  ;;  %v13259_v48 = vsel %vm12836_vm9, %v1576_v12, %v1577_v37 }
  0x46   : > { %18941 = vst [vmem:[#allocation48_spill] sm:$0xff] %v13255_v14  ;;  %18942 = vst [vmem:[#allocation49_spill] sm:$0xff] %v13259_v48  ;;  %v13263_v54 = vsel %vm12836_vm9, %v1579_v15, %v1580_v0  ;;  %11889 = vmatmul.mubr.msk.f32.gmra.mxu1 %vm1203_vm6, %v1905_v2  ;;  %v1906_v50 = vcombine.low %v13243_v13, %v13255_v14  ;;  %v13281_v12 = vrot.slane %v473_v59, %v12792_v9 }
  0x47   : > { %18940 = vst [vmem:[#allocation47_spill] sm:$0xff] %v13250_v23  ;;  %18943 = vst [vmem:[#allocation50_spill] sm:$0xff] %v13263_v54  ;;  %v13270_v8 = vrot.slane %v907_v16, %v12792_v9  ;;  %v1907_v37 = vcombine.low %v13259_v48, %v13263_v54  ;;  %11891 = vmatprep.mubr.msk.f32.mxu1 %vm12715_vm1, %v18923_v33  ;;  %v13285_v2 = vcombine.high %v13266_v56, %v13266_v56 }
  0x48   : > { %18945 = vst [vmem:[#allocation52_spill] sm:$0xff] %v13281_v12  ;;  %v13288_v16 = vrot.slane %v262_v6, %v12792_v9  ;;  %v11061_v0 = vrot.slane %v13193_v61, 9  ;;  %v13294_v15 = vrot.slane %v1906_v50, %v12792_v9  ;;  %v1584_v59 = vrot.slane %v13219_v4, 7  ;;  %v11132_v50 = vld [vmem:[%s18517_s1 + $0xc] sm:$0x7] }
  0x49   : > { %18944 = vst [vmem:[#allocation51_spill] sm:$0xff] %v13270_v8  ;;  %18946 = vst [vmem:[#allocation53_spill] sm:$0xff] %v13285_v2  ;;  %v922_v1 = vcombine.low %v13250_v23, %v13270_v8  ;;  %v13297_v32 = vrot.slane %v1907_v37, %v12792_v9  ;;  %v923_v35 = vcombine.low %v13266_v56, %v13285_v2  ;;  %v1587_v14 = vrot.slane %v13215_v60, 7 }
  0x4a   : > { %18947 = vst [vmem:[#allocation54_spill] sm:$0xff] %v13288_v16  ;;  %18948 = vst [vmem:[#allocation55_spill] sm:$0xff] %v13294_v15  ;;  %v924_v54 = vcombine.low %v13281_v12, %v13288_v16  ;;  %v1590_v48 = vrot.slane %v13234_v42, 7  ;;  %v13316_v8 = vsel %vm12836_vm9, %v11061_v0, %v1584_v59  ;;  %v1586_v13 = vrot.slane %v1584_v59, 2  ;;  %12026 = vmatpush3.msk.msra.mxu1 %vm1254_vm0, %v11132_v50 }
  0x4b   : > { %18949 = vst [vmem:[#allocation56_spill] sm:$0xff] %v13297_v32  ;;  %11818 = vmatmul.mubr.msk.f32.gmra.mxu0 %vm1203_vm6, %v922_v1  ;;  %v1922_v37 = vcombine.low %v13294_v15, %v13297_v32  ;;  %18950 = vst [vmem:[#allocation57_spill] sm:$0xff] %v13316_v8  ;;  %v13322_v51 = vrot.slane %v923_v35, %v12792_v9  ;;  %v1589_v7 = vrot.slane %v1587_v14, 2  ;;  %12179 = vmatprep.subr.mxu1 %v18923_v33 }
  0x4c   : > { %11820 = vmatprep.mubr.msk.f32.mxu0 %vm12715_vm1, %v18923_v33  ;;  %v13325_v1 = vrot.slane %v924_v54, %v12792_v9  ;;  %v1592_v58 = vrot.slane %v1590_v48, 2  ;;  %v13332_v0 = vsel %vm12836_vm9, %v1586_v13, %v1587_v14  ;;  %v1593_v59 = vrot.slane %v13266_v56, 7 }
  0x4d   : > { %18951 = vst [vmem:[#allocation58_spill] sm:$0xff] %v13322_v51  ;;  %11892 = vmatmul.mubr.msk.f32.gmra.mxu1 %vm1203_vm6, %v1922_v37  ;;  %18953 = vst [vmem:[#allocation60_spill] sm:$0xff] %v13332_v0  ;;  %v489_v50 = vcombine.high %v262_v6, %v262_v6  ;;  %v13337_v35 = vcombine.high %v13288_v16, %v13288_v16  ;;  %v13345_v37 = vsel %vm12836_vm9, %v1589_v7, %v1590_v48 }
  0x4e   : > { %18952 = vst [vmem:[#allocation59_spill] sm:$0xff] %v13325_v1  ;;  %v939_v54 = vcombine.low %v13322_v51, %v13325_v1  ;;  %11894 = vmatprep.mubr.msk.f32.mxu1 %vm12715_vm1, %v18923_v33  ;;  %18955 = vst [vmem:[#allocation62_spill] sm:$0xff] %v13345_v37  ;;  %v1923_v14 = vcombine.low %v13316_v8, %v13332_v0  ;;  %v506_v13 = vcombine.high %v263_v57, %v263_v57 }
  0x4f   : > { %18954 = vst [vmem:[#allocation61_spill] sm:$0xff] %v13337_v35  ;;  %v13351_v6 = vsel %vm12836_vm9, %v1592_v58, %v1593_v59  ;;  %v13354_v23 = vrot.slane %v489_v50, %v12792_v9  ;;  %v13357_v15 = vrot.slane %v263_v57, %v12792_v9  ;;  %v13361_v55 = vcombine.high %v13281_v12, %v13281_v12 }
  0x50   : > { %18956 = vst [vmem:[#allocation63_spill] sm:$0xff] %v13351_v6  ;;  %11821 = vmatmul.mubr.msk.f32.gmra.mxu0 %vm1203_vm6, %v939_v54  ;;  %v1924_v7 = vcombine.low %v13345_v37, %v13351_v6  ;;  %v13367_v48 = vrot.slane %v1923_v14, %v12792_v9  ;;  %v13370_v58 = vrot.slane %v506_v13, %v12792_v9  ;;  %v1595_v50 = vrot.slane %v1593_v59, 2 }
  0x51   : > { %18957 = vst [vmem:[#allocation64_spill] sm:$0xff] %v13354_v23  ;;  %18958 = vst [vmem:[#allocation65_spill] sm:$0xff] %v13357_v15  ;;  %11823 = vmatprep.mubr.msk.f32.mxu0 %vm12715_vm1, %v18923_v33  ;;  %v13376_v57 = vcombine.high %v13354_v23, %v13354_v23  ;;  %v13380_v54 = vcombine.high %v13357_v15, %v13357_v15  ;;  %v940_v14 = vcombine.low %v13337_v35, %v13354_v23 }
  0x52   : > { %18959 = vst [vmem:[#allocation66_spill] sm:$0xff] %v13361_v55  ;;  %18960 = vst [vmem:[#allocation67_spill] sm:$0xff] %v13367_v48  ;;  %v1596_v51 = vrot.slane %v13285_v2, 7  ;;  %v13386_v13 = vrot.slane %v1924_v7, %v12792_v9  ;;  %v1599_v6 = vrot.slane %v13281_v12, 7  ;;  %v1602_v0 = vrot.slane %v13361_v55, 7  ;;  %v264_v2 = vld [vmem:[%s12783_s28 + $0x60] sm:$0xff] }
  0x53   : > { %18961 = vst [vmem:[#allocation68_spill] sm:$0xff] %v13370_v58  ;;  %18962 = vst [vmem:[#allocation69_spill] sm:$0xff] %v13376_v57  ;;  %v941_v37 = vcombine.low %v13376_v57, %v13357_v15  ;;  %v13395_v8 = vrot.slane %v940_v14, %v12792_v9  ;;  %v957_v41 = vcombine.low %v13380_v54, %v13370_v58  ;;  %v11062_v55 = vrot.slane %v13288_v16, 9 }
  0x54   : > { %18963 = vst [vmem:[#allocation70_spill] sm:$0xff] %v13380_v54  ;;  %18964 = vst [vmem:[#allocation71_spill] sm:$0xff] %v13386_v13  ;;  %v13401_v7 = vsel %vm12836_vm9, %v1595_v50, %v1596_v51  ;;  %v1939_v59 = vcombine.low %v13367_v48, %v13386_v13  ;;  %v1598_v32 = vrot.slane %v1596_v51, 2  ;;  %v1601_v61 = vrot.slane %v1599_v6, 2 }
  0x55   : > { %18965 = vst [vmem:[#allocation72_spill] sm:$0xff] %v13395_v8  ;;  %18966 = vst [vmem:[#allocation73_spill] sm:$0xff] %v13401_v7  ;;  %v13408_v12 = vrot.slane %v941_v37, %v12792_v9  ;;  %v1606_v42 = vrot.slane %v13337_v35, 7  ;;  %v13423_v48 = vrot.slane %v264_v2, %v12792_v9  ;;  %v1609_v37 = vrot.slane %v13354_v23, 7 }
  0x56   : > { %11895 = vmatmul.mubr.msk.f32.gmra.mxu1 %vm1203_vm6, %v1939_v59  ;;  %v13416_v50 = vsel %vm12836_vm9, %v1598_v32, %v1599_v6  ;;  %v13420_v51 = vsel %vm12836_vm9, %v1601_v61, %v1602_v0  ;;  %v13431_v1 = vrot.slane %v957_v41, %v12792_v9 }
  0x57   : > { %18967 = vst [vmem:[#allocation74_spill] sm:$0xff] %v13408_v12  ;;  %18968 = vst [vmem:[#allocation75_spill] sm:$0xff] %v13416_v50  ;;  %v13428_v14 = vcombine.low %v13395_v8, %v13408_v12  ;;  %11897 = vmatprep.mubr.msk.f32.mxu1 %vm12715_vm1, %v18923_v33  ;;  %v13437_v32 = vsel %vm12836_vm9, %v11062_v55, %v1606_v42  ;;  %v1940_v61 = vcombine.low %v13401_v7, %v13416_v50 }
  0x58   : > { %18969 = vst [vmem:[#allocation76_spill] sm:$0xff] %v13420_v51  ;;  %18970 = vst [vmem:[#allocation77_spill] sm:$0xff] %v13423_v48  ;;  %v1941_v0 = vcombine.low %v13420_v51, %v13437_v32  ;;  %v13445_v6 = vcombine.high %v13423_v48, %v13423_v48  ;;  %v1608_v59 = vrot.slane %v1606_v42, 2  ;;  %v1611_v41 = vrot.slane %v1609_v37, 2 }
  0x59   : > { %18971 = vst [vmem:[#allocation78_spill] sm:$0xff] %v13428_v14  ;;  %18972 = vst [vmem:[#allocation79_spill] sm:$0xff] %v13431_v1  ;;  %11824 = vmatmul.mubr.msk.f32.gmra.mxu0 %vm1203_vm6, %v13428_v14  ;;  %v13450_v8 = vrot.slane %v1940_v61, %v12792_v9  ;;  %v1612_v55 = vrot.slane %v13376_v57, 7  ;;  %v1615_v12 = vrot.slane %v13357_v15, 7  ;;  %v1618_v50 = vrot.slane %v13380_v54, 7 }
  0x5a   : > { %18973 = vst [vmem:[#allocation80_spill] sm:$0xff] %v13437_v32  ;;  %18974 = vst [vmem:[#allocation81_spill] sm:$0xff] %v13445_v6  ;;  %v13456_v51 = vrot.slane %v1941_v0, %v12792_v9  ;;  %11826 = vmatprep.mubr.msk.f32.mxu0 %vm12715_vm1, %v18923_v33  ;;  %v958_v42 = vcombine.low %v13423_v48, %v13445_v6  ;;  %v13464_v61 = vsel %vm12836_vm9, %v1608_v59, %v1609_v37  ;;  %v265_v59 = vld [vmem:[%s12783_s28 + $0x68] sm:$0xff] }
  0x5b   : > { %18975 = vst [vmem:[#allocation82_spill] sm:$0xff] %v13450_v8  ;;  %18977 = vst [vmem:[#allocation84_spill] sm:$0xff] %v13464_v61  ;;  %v522_v14 = vcombine.high %v264_v2, %v264_v2  ;;  %v13470_v35 = vsel %vm12836_vm9, %v1611_v41, %v1612_v55  ;;  %v1614_v0 = vrot.slane %v1612_v55, 2  ;;  %v1617_v15 = vrot.slane %v1615_v12, 2 }
  0x5c   : > { %18976 = vst [vmem:[#allocation83_spill] sm:$0xff] %v13456_v51  ;;  %18978 = vst [vmem:[#allocation85_spill] sm:$0xff] %v13470_v35  ;;  %v1956_v54 = vcombine.low %v13450_v8, %v13456_v51  ;;  %v13475_v23 = vrot.slane %v958_v42, %v12792_v9  ;;  %v1957_v37 = vcombine.low %v13464_v61, %v13470_v35  ;;  %v266_v35 = vld [vmem:[%s12783_s28 + $0x70] sm:$0xff]  ;;  %v1628_v61 = vrot.slane %v13445_v6, 7 }
  0x5d   : > { %v13484_v7 = vsel %vm12836_vm9, %v1614_v0, %v1615_v12  ;;  %v13488_v41 = vsel %vm12836_vm9, %v1617_v15, %v1618_v50  ;;  %v13491_v55 = vrot.slane %v522_v14, %v12792_v9  ;;  %v539_v42 = vcombine.high %v265_v59, %v265_v59 }
  0x5e   : > { %18979 = vst [vmem:[#allocation86_spill] sm:$0xff] %v13475_v23  ;;  %18980 = vst [vmem:[#allocation87_spill] sm:$0xff] %v13484_v7  ;;  %11898 = vmatmul.mubr.msk.f32.gmra.mxu1 %vm1203_vm6, %v1956_v54  ;;  %v973_v8 = vcombine.low %v13431_v1, %v13475_v23  ;;  %v1958_v2 = vcombine.low %v13484_v7, %v13488_v41  ;;  %v13499_v13 = vrot.slane %v1957_v37, %v12792_v9 }
  0x5f   : > { %18981 = vst [vmem:[#allocation88_spill] sm:$0xff] %v13488_v41  ;;  %18982 = vst [vmem:[#allocation89_spill] sm:$0xff] %v13491_v55  ;;  %11900 = vmatprep.mubr.msk.f32.mxu1 %vm12715_vm1, %v18923_v33  ;;  %v13507_v15 = vcombine.high %v13491_v55, %v13491_v55  ;;  %v13510_v54 = vrot.slane %v265_v59, %v12792_v9  ;;  %v13513_v14 = vrot.slane %v539_v42, %v12792_v9 }
  0x60   : > { %18983 = vst [vmem:[#allocation90_spill] sm:$0xff] %v13499_v13  ;;  %v13517_v0 = vcombine.high %v13370_v58, %v13370_v58  ;;  %11827 = vmatmul.mubr.msk.f32.gmra.mxu0 %vm1203_vm6, %v973_v8  ;;  %v13521_v37 = vrot.slane %v1958_v2, %v12792_v9  ;;  %v1620_v1 = vrot.slane %v1618_v50, 2  ;;  %v1621_v7 = vrot.slane %v13370_v58, 7 }
  0x61   : > { %18984 = vst [vmem:[#allocation91_spill] sm:$0xff] %v13507_v15  ;;  %18985 = vst [vmem:[#allocation92_spill] sm:$0xff] %v13510_v54  ;;  %11829 = vmatprep.mubr.msk.f32.mxu0 %vm12715_vm1, %v18923_v33  ;;  %v13530_v59 = vcombine.high %v13510_v54, %v13510_v54  ;;  %v974_v42 = vcombine.low %v13491_v55, %v13507_v15  ;;  %v11063_v2 = vrot.slane %v13423_v48, 9 }
  0x62   : > { %18986 = vst [vmem:[#allocation93_spill] sm:$0xff] %v13513_v14  ;;  %18987 = vst [vmem:[#allocation94_spill] sm:$0xff] %v13517_v0  ;;  %v1624_v8 = vrot.slane %v13517_v0, 7  ;;  %v1973_v50 = vcombine.low %v13499_v13, %v13521_v37  ;;  %v13541_v12 = vsel %vm12836_vm9, %v1620_v1, %v1621_v7  ;;  %v1623_v51 = vrot.slane %v1621_v7, 2 }
  0x63   : > { %18988 = vst [vmem:[#allocation95_spill] sm:$0xff] %v13521_v37  ;;  %18989 = vst [vmem:[#allocation96_spill] sm:$0xff] %v13530_v59  ;;  %v975_v32 = vcombine.low %v13510_v54, %v13530_v59  ;;  %v13547_v58 = vrot.slane %v974_v42, %v12792_v9  ;;  %v1631_v0 = vrot.slane %v13491_v55, 7  ;;  %v13559_v7 = vsel %vm12836_vm9, %v11063_v2, %v1628_v61 }
  0x64   : > { %18990 = vst [vmem:[#allocation97_spill] sm:$0xff] %v13541_v12  ;;  %11901 = vmatmul.mubr.msk.f32.gmra.mxu1 %vm1203_vm6, %v1973_v50  ;;  %v13555_v1 = vsel %vm12836_vm9, %v1623_v51, %v1624_v8  ;;  %18993 = vst [vmem:[#allocation100_spill] sm:$0xff] %v13559_v7  ;;  %v1630_v13 = vrot.slane %v1628_v61, 2  ;;  %v555_v6 = vcombine.high %v266_v35, %v266_v35 }
  0x65   : > { %18991 = vst [vmem:[#allocation98_spill] sm:$0xff] %v13547_v58  ;;  %18992 = vst [vmem:[#allocation99_spill] sm:$0xff] %v13555_v1  ;;  %v13562_v42 = vrot.slane %v975_v32, %v12792_v9  ;;  %11903 = vmatprep.mubr.msk.f32.mxu1 %vm12715_vm1, %v18923_v33  ;;  %v1974_v50 = vcombine.low %v13541_v12, %v13555_v1  ;;  %v13577_v61 = vrot.slane %v266_v35, %v12792_v9 }
  0x66   : > { %v13574_v8 = vsel %vm12836_vm9, %v1630_v13, %v1631_v0  ;;  %v13580_v32 = vrot.slane %v555_v6, %v12792_v9  ;;  %v1633_v2 = vrot.slane %v1631_v0, 2  ;;  %v1634_v13 = vrot.slane %v13507_v15, 7  ;;  %v267_v15 = vld [vmem:[%s12783_s28 + $0x78] sm:$0xff] }
  0x67   : > { %18994 = vst [vmem:[#allocation101_spill] sm:$0xff] %v13562_v42  ;;  %18995 = vst [vmem:[#allocation102_spill] sm:$0xff] %v13574_v8  ;;  %v13584_v55 = vcombine.low %v13547_v58, %v13562_v42  ;;  %v1975_v48 = vcombine.low %v13559_v7, %v13574_v8  ;;  %v13589_v51 = vrot.slane %v1974_v50, %v12792_v9  ;;  %v1637_v0 = vrot.slane %v13510_v54, 7 }
  0x68   : > { %18996 = vst [vmem:[#allocation103_spill] sm:$0xff] %v13577_v61  ;;  %18997 = vst [vmem:[#allocation104_spill] sm:$0xff] %v13580_v32  ;;  %v13594_v35 = vcombine.high %v13577_v61, %v13577_v61  ;;  %v991_v6 = vcombine.low %v13513_v14, %v13577_v61  ;;  %v1640_v58 = vrot.slane %v13530_v59, 7  ;;  %v13609_v7 = vsel %vm12836_vm9, %v1633_v2, %v1634_v13 }
  0x69   : > { %18998 = vst [vmem:[#allocation105_spill] sm:$0xff] %v13584_v55  ;;  %18999 = vst [vmem:[#allocation106_spill] sm:$0xff] %v13589_v51  ;;  %11830 = vmatmul.mubr.msk.f32.gmra.mxu0 %vm1203_vm6, %v13584_v55  ;;  %v13603_v50 = vrot.slane %v1975_v48, %v12792_v9  ;;  %v1636_v1 = vrot.slane %v1634_v13, 2  ;;  %v1639_v55 = vrot.slane %v1637_v0, 2  ;;  %v1643_v13 = vrot.slane %v13513_v14, 7 }
  0x6a   : > { %19000 = vst [vmem:[#allocation107_spill] sm:$0xff] %v13594_v35  ;;  %19002 = vst [vmem:[#allocation109_spill] sm:$0xff] %v13609_v7  ;;  %11832 = vmatprep.mubr.msk.f32.mxu0 %vm12715_vm1, %v18923_v33  ;;  %v992_v12 = vcombine.low %v13594_v35, %v13580_v32  ;;  %v13616_v41 = vrot.slane %v991_v6, %v12792_v9  ;;  %v1642_v48 = vrot.slane %v1640_v58, 2  ;;  %v11064_v42 = vrot.slane %v13577_v61, 9 }
  0x6b   : > { %19001 = vst [vmem:[#allocation108_spill] sm:$0xff] %v13603_v50  ;;  %v1990_v23 = vcombine.low %v13589_v51, %v13603_v50  ;;  %v13623_v2 = vsel %vm12836_vm9, %v1636_v1, %v1637_v0  ;;  %v13635_v59 = vsel %vm12836_vm9, %v1639_v55, %v1640_v58  ;;  %v13648_v6 = vcombine.high %v13580_v32, %v13580_v32 }
  0x6c   : > { %19003 = vst [vmem:[#allocation110_spill] sm:$0xff] %v13616_v41  ;;  %19004 = vst [vmem:[#allocation111_spill] sm:$0xff] %v13623_v2  ;;  %v13629_v54 = vrot.slane %v992_v12, %v12792_v9  ;;  %v1991_v1 = vcombine.low %v13609_v7, %v13623_v2  ;;  %v13642_v0 = vsel %vm12836_vm9, %v1642_v48, %v1643_v13 }
  0x6d   : > { %19006 = vst [vmem:[#allocation113_spill] sm:$0xff] %v13635_v59  ;;  %11904 = vmatmul.mubr.msk.f32.gmra.mxu1 %vm1203_vm6, %v1990_v23  ;;  %19007 = vst [vmem:[#allocation114_spill] sm:$0xff] %v13642_v0  ;;  %v572_v37 = vcombine.high %v267_v15, %v267_v15  ;;  %v1992_v23 = vcombine.low %v13635_v59, %v13642_v0  ;;  %v13660_v48 = vrot.slane %v267_v15, %v12792_v9 }
  0x6e   : > { %19005 = vst [vmem:[#allocation112_spill] sm:$0xff] %v13629_v54  ;;  %19008 = vst [vmem:[#allocation115_spill] sm:$0xff] %v13648_v6  ;;  %v1007_v58 = vcombine.low %v13616_v41, %v13629_v54  ;;  %11906 = vmatprep.mubr.msk.f32.mxu1 %vm12715_vm1, %v18923_v33  ;;  %v13657_v55 = vrot.slane %v1991_v1, %v12792_v9  ;;  %v13667_v51 = vcombine.high %v13513_v14, %v13513_v14  ;;  %v268_v54 = vld [vmem:[%s12783_s28 + $0x80] sm:$0xff] }
  0x6f   : > { %19010 = vst [vmem:[#allocation117_spill] sm:$0xff] %v13660_v48  ;;  %v13663_v12 = vrot.slane %v572_v37, %v12792_v9  ;;  %v1645_v41 = vrot.slane %v1643_v13, 2  ;;  %v13673_v59 = vrot.slane %v1992_v23, %v12792_v9  ;;  %v13679_v37 = vcombine.high %v13660_v48, %v13660_v48 }
  0x70   : > { %19009 = vst [vmem:[#allocation116_spill] sm:$0xff] %v13657_v55  ;;  %19012 = vst [vmem:[#allocation119_spill] sm:$0xff] %v13667_v51  ;;  %11833 = vmatmul.mubr.msk.f32.gmra.mxu0 %vm1203_vm6, %v1007_v58  ;;  %v1008_v1 = vcombine.low %v13648_v6, %v13660_v48  ;;  %v1646_v13 = vrot.slane %v13667_v51, 7  ;;  %v1650_v58 = vrot.slane %v13594_v35, 7  ;;  %v1653_v23 = vrot.slane %v13580_v32, 7 }
  0x71   : > { %19011 = vst [vmem:[#allocation118_spill] sm:$0xff] %v13663_v12  ;;  %19013 = vst [vmem:[#allocation120_spill] sm:$0xff] %v13673_v59  ;;  %11835 = vmatprep.mubr.msk.f32.mxu0 %vm12715_vm1, %v18923_v33  ;;  %v1656_v2 = vrot.slane %v13648_v6, 7  ;;  %v2007_v15 = vcombine.low %v13657_v55, %v13673_v59  ;;  %v1009_v50 = vcombine.low %v13679_v37, %v13663_v12 }
  0x72   : > { %19014 = vst [vmem:[#allocation121_spill] sm:$0xff] %v13679_v37  ;;  %v13694_v7 = vrot.slane %v1008_v1, %v12792_v9  ;;  %v588_v8 = vcombine.high %v268_v54, %v268_v54  ;;  %v13698_v61 = vsel %vm12836_vm9, %v1645_v41, %v1646_v13  ;;  %v13702_v51 = vsel %vm12836_vm9, %v11064_v42, %v1650_v58 }
  0x73   : > { %19016 = vst [vmem:[#allocation123_spill] sm:$0xff] %v13698_v61  ;;  %19017 = vst [vmem:[#allocation124_spill] sm:$0xff] %v13702_v51  ;;  %v1652_v35 = vrot.slane %v1650_v58, 2  ;;  %v1655_v32 = vrot.slane %v1653_v23, 2  ;;  %11907 = vmatmul.mubr.msk.f32.gmra.mxu1 %vm1203_vm6, %v2007_v15  ;;  %v13706_v55 = vrot.slane %v1009_v50, %v12792_v9  ;;  %v2008_v1 = vcombine.low %v13698_v61, %v13702_v51  ;;  %v269_v61 = vld [vmem:[%s12783_s28 + $0x88] sm:$0xff] }
  0x74   : > { %19015 = vst [vmem:[#allocation122_spill] sm:$0xff] %v13694_v7  ;;  %11909 = vmatprep.mubr.msk.f32.mxu1 %vm12715_vm1, %v18923_v33  ;;  %v13723_v50 = vrot.slane %v268_v54, %v12792_v9  ;;  %v13726_v15 = vrot.slane %v588_v8, %v12792_v9  ;;  %v1658_v6 = vrot.slane %v1656_v2, 2 }
  0x75   : > { %19018 = vst [vmem:[#allocation125_spill] sm:$0xff] %v13706_v55  ;;  %v13716_v41 = vsel %vm12836_vm9, %v1652_v35, %v1653_v23  ;;  %v13720_v42 = vsel %vm12836_vm9, %v1655_v32, %v1656_v2  ;;  %v13730_v13 = vcombine.low %v13694_v7, %v13706_v55  ;;  %v13735_v35 = vrot.slane %v2008_v1, %v12792_v9 }
  0x76   : > { %19019 = vst [vmem:[#allocation126_spill] sm:$0xff] %v13716_v41  ;;  %19020 = vst [vmem:[#allocation127_spill] sm:$0xff] %v13720_v42  ;;  %v2009_v58 = vcombine.low %v13716_v41, %v13720_v42  ;;  %v13741_v54 = vcombine.high %v13723_v50, %v13723_v50  ;;  %v13745_v8 = vcombine.high %v13726_v15, %v13726_v15  ;;  %v1659_v7 = vrot.slane %v13660_v48, 7 }
  0x77   : > { %19021 = vst [vmem:[#allocation128_spill] sm:$0xff] %v13723_v50  ;;  %19022 = vst [vmem:[#allocation129_spill] sm:$0xff] %v13726_v15  ;;  %v13749_v23 = vcombine.high %v13663_v12, %v13663_v12  ;;  %11836 = vmatmul.mubr.msk.f32.gmra.mxu0 %vm1203_vm6, %v13730_v13  ;;  %v1662_v41 = vrot.slane %v13679_v37, 7 }
  0x78   : > { %19023 = vst [vmem:[#allocation130_spill] sm:$0xff] %v13730_v13  ;;  %19024 = vst [vmem:[#allocation131_spill] sm:$0xff] %v13735_v35  ;;  %v13754_v1 = vrot.slane %v2009_v58, %v12792_v9  ;;  %11838 = vmatprep.mubr.msk.f32.mxu0 %vm12715_vm1, %v18923_v33  ;;  %v1025_v51 = vcombine.low %v13723_v50, %v13741_v54  ;;  %v1026_v2 = vcombine.low %v13726_v15, %v13745_v8 }
  0x79   : > { %19025 = vst [vmem:[#allocation132_spill] sm:$0xff] %v13741_v54  ;;  %19026 = vst [vmem:[#allocation133_spill] sm:$0xff] %v13745_v8  ;;  %v1665_v58 = vrot.slane %v13663_v12, 7  ;;  %v1668_v13 = vrot.slane %v13749_v23, 7  ;;  %v13773_v59 = vsel %vm12836_vm9, %v1658_v6, %v1659_v7  ;;  %v1661_v0 = vrot.slane %v1659_v7, 2  ;;  %v270_v6 = vld [vmem:[%s12783_s28 + $0x90] sm:$0xff] }
  0x7a   : > { %19027 = vst [vmem:[#allocation134_spill] sm:$0xff] %v13749_v23  ;;  %19028 = vst [vmem:[#allocation135_spill] sm:$0xff] %v13754_v1  ;;  %v2024_v32 = vcombine.low %v13735_v35, %v13754_v1  ;;  %v1664_v48 = vrot.slane %v1662_v41, 2  ;;  %v13776_v37 = vrot.slane %v1025_v51, %v12792_v9  ;;  %v13779_v14 = vrot.slane %v1026_v2, %v12792_v9 }
  0x7b   : > { %19029 = vst [vmem:[#allocation136_spill] sm:$0xff] %v13773_v59  ;;  %v1667_v57 = vrot.slane %v1665_v58, 2  ;;  %v13786_v35 = vsel %vm12836_vm9, %v1661_v0, %v1662_v41  ;;  %v605_v51 = vcombine.high %v269_v61, %v269_v61  ;;  %v13794_v23 = vrot.slane %v269_v61, %v12792_v9 }
  0x7c   : > { %19030 = vst [vmem:[#allocation137_spill] sm:$0xff] %v13776_v37  ;;  %19031 = vst [vmem:[#allocation138_spill] sm:$0xff] %v13779_v14  ;;  %11910 = vmatmul.mubr.msk.f32.gmra.mxu1 %vm1203_vm6, %v2024_v32  ;;  %v13790_v7 = vsel %vm12836_vm9, %v1664_v48, %v1665_v58  ;;  %v1041_v2 = vcombine.low %v13776_v37, %v13779_v14  ;;  %v2025_v48 = vcombine.low %v13773_v59, %v13786_v35 }
  0x7d   : > { %19032 = vst [vmem:[#allocation139_spill] sm:$0xff] %v13786_v35  ;;  %19033 = vst [vmem:[#allocation140_spill] sm:$0xff] %v13790_v7  ;;  %11912 = vmatprep.mubr.msk.f32.mxu1 %vm12715_vm1, %v18923_v33  ;;  %v13804_v0 = vsel %vm12836_vm9, %v1667_v57, %v1668_v13  ;;  %v13813_v32 = vrot.slane %v605_v51, %v12792_v9  ;;  %v13817_v58 = vcombine.high %v13794_v23, %v13794_v23 }
  0x7e   : > { %19034 = vst [vmem:[#allocation141_spill] sm:$0xff] %v13794_v23  ;;  %19035 = vst [vmem:[#allocation142_spill] sm:$0xff] %v13804_v0  ;;  %v2026_v61 = vcombine.low %v13790_v7, %v13804_v0  ;;  %11839 = vmatmul.mubr.msk.f32.gmra.mxu0 %vm1203_vm6, %v1041_v2  ;;  %v13821_v57 = vrot.slane %v2025_v48, %v12792_v9  ;;  %v13824_v13 = vrot.slane %v270_v6, %v12792_v9 }
  0x7f   : > { %19036 = vst [vmem:[#allocation143_spill] sm:$0xff] %v13813_v32  ;;  %19037 = vst [vmem:[#allocation144_spill] sm:$0xff] %v13817_v58  ;;  %v11065_v12 = vrot.slane %v13723_v50, 9  ;;  %v1672_v37 = vrot.slane %v13741_v54, 7  ;;  %11841 = vmatprep.mubr.msk.f32.mxu0 %vm12715_vm1, %v18923_v33  ;;  %v1042_v51 = vcombine.low %v13794_v23, %v13817_v58  ;;  %v1675_v2 = vrot.slane %v13726_v15, 7  ;;  %v272_v54 = vld [vmem:[%s12783_s28 + $0xa0] sm:$0xff] }
  0x80   : > { %19038 = vst [vmem:[#allocation145_spill] sm:$0xff] %v13821_v57  ;;  %v13829_v41 = vrot.slane %v2026_v61, %v12792_v9  ;;  %v1678_v48 = vrot.slane %v13745_v8, 7  ;;  %v1043_v14 = vcombine.low %v13813_v32, %v13824_v13  ;;  %v1681_v1 = vrot.slane %v13794_v23, 7 }
  0x81   : > { %v13843_v61 = vsel %vm12836_vm9, %v11065_v12, %v1672_v37  ;;  %v1674_v7 = vrot.slane %v1672_v37, 2  ;;  %v13848_v59 = vrot.slane %v1042_v51, %v12792_v9  ;;  %v1677_v42 = vrot.slane %v1675_v2, 2  ;;  %v271_v37 = vld [vmem:[%s12783_s28 + $0x98] sm:$0xff] }
  0x82   : > { %19039 = vst [vmem:[#allocation146_spill] sm:$0xff] %v13829_v41  ;;  %19040 = vst [vmem:[#allocation147_spill] sm:$0xff] %v13843_v61  ;;  %v2041_v35 = vcombine.low %v13821_v57, %v13829_v41  ;;  %v1680_v50 = vrot.slane %v1678_v48, 2  ;;  %v13851_v8 = vrot.slane %v1043_v14, %v12792_v9  ;;  %v621_v57 = vcombine.high %v270_v6, %v270_v6 }
  0x83   : > { %19041 = vst [vmem:[#allocation148_spill] sm:$0xff] %v13848_v59  ;;  %v13855_v55 = vsel %vm12836_vm9, %v1674_v7, %v1675_v2  ;;  %v13864_v51 = vsel %vm12836_vm9, %v1677_v42, %v1678_v48  ;;  %v13870_v7 = vcombine.high %v13824_v13, %v13824_v13  ;;  %v638_v48 = vcombine.high %v271_v37, %v271_v37 }
  0x84   : > { %19042 = vst [vmem:[#allocation149_spill] sm:$0xff] %v13851_v8  ;;  %19043 = vst [vmem:[#allocation150_spill] sm:$0xff] %v13855_v55  ;;  %11913 = vmatmul.mubr.msk.f32.gmra.mxu1 %vm1203_vm6, %v2041_v35  ;;  %v2042_v14 = vcombine.low %v13843_v61, %v13855_v55  ;;  %v1058_v2 = vcombine.low %v13848_v59, %v13851_v8  ;;  %v13878_v35 = vsel %vm12836_vm9, %v1680_v50, %v1681_v1 }
  0x85   : > { %19044 = vst [vmem:[#allocation151_spill] sm:$0xff] %v13864_v51  ;;  %19045 = vst [vmem:[#allocation152_spill] sm:$0xff] %v13870_v7  ;;  %11915 = vmatprep.mubr.msk.f32.mxu1 %vm12715_vm1, %v18923_v33  ;;  %v2043_v6 = vcombine.low %v13864_v51, %v13878_v35  ;;  %v13888_v61 = vrot.slane %v621_v57, %v12792_v9  ;;  %v13891_v59 = vrot.slane %v271_v37, %v12792_v9 }
  0x86   : > { %19046 = vst [vmem:[#allocation153_spill] sm:$0xff] %v13878_v35  ;;  %v13885_v12 = vrot.slane %v2042_v14, %v12792_v9  ;;  %11842 = vmatmul.mubr.msk.f32.gmra.mxu0 %vm1203_vm6, %v1058_v2  ;;  %v13895_v50 = vrot.slane %v638_v48, %v12792_v9  ;;  %v13899_v42 = vcombine.high %v13813_v32, %v13813_v32  ;;  %v1683_v51 = vrot.slane %v1681_v1, 2 }
  0x87   : > { %19048 = vst [vmem:[#allocation155_spill] sm:$0xff] %v13888_v61  ;;  %19049 = vst [vmem:[#allocation156_spill] sm:$0xff] %v13891_v59  ;;  %v1684_v14 = vrot.slane %v13817_v58, 7  ;;  %v13903_v55 = vrot.slane %v2043_v6, %v12792_v9  ;;  %11844 = vmatprep.mubr.msk.f32.mxu0 %vm12715_vm1, %v18923_v33  ;;  %v13911_v37 = vcombine.high %v13888_v61, %v13888_v61  ;;  %v1687_v57 = vrot.slane %v13813_v32, 7 }
  0x88   : > { %19047 = vst [vmem:[#allocation154_spill] sm:$0xff] %v13885_v12  ;;  %19050 = vst [vmem:[#allocation157_spill] sm:$0xff] %v13895_v50  ;;  %v13915_v2 = vcombine.high %v13891_v59, %v13891_v59  ;;  %v1059_v1 = vcombine.low %v13870_v7, %v13888_v61  ;;  %v1690_v23 = vrot.slane %v13899_v42, 7  ;;  %v11066_v32 = vrot.slane %v13824_v13, 9 }
  0x89   : > { %19051 = vst [vmem:[#allocation158_spill] sm:$0xff] %v13899_v42  ;;  %19052 = vst [vmem:[#allocation159_spill] sm:$0xff] %v13903_v55  ;;  %v13921_v48 = vsel %vm12836_vm9, %v1683_v51, %v1684_v14  ;;  %v1686_v6 = vrot.slane %v1684_v14, 2  ;;  %v2058_v41 = vcombine.low %v13885_v12, %v13903_v55  ;;  %v1060_v0 = vcombine.low %v13911_v37, %v13891_v59 }
  0x8a   : > { %19053 = vst [vmem:[#allocation160_spill] sm:$0xff] %v13911_v37  ;;  %19054 = vst [vmem:[#allocation161_spill] sm:$0xff] %v13915_v2  ;;  %v1076_v58 = vcombine.low %v13915_v2, %v13895_v50  ;;  %v13933_v15 = vrot.slane %v1059_v1, %v12792_v9  ;;  %v1689_v14 = vrot.slane %v1687_v57, 2  ;;  %v1694_v16 = vrot.slane %v13870_v7, 7 }
  0x8b   : > { %19055 = vst [vmem:[#allocation162_spill] sm:$0xff] %v13921_v48  ;;  %v13937_v51 = vsel %vm12836_vm9, %v1686_v6, %v1687_v57  ;;  %11916 = vmatmul.mubr.msk.f32.gmra.mxu1 %vm1203_vm6, %v2058_v41  ;;  %v13942_v12 = vrot.slane %v1060_v0, %v12792_v9  ;;  %v13958_v0 = vrot.slane %v272_v54, %v12792_v9 }
  0x8c   : > { %19056 = vst [vmem:[#allocation163_spill] sm:$0xff] %v13933_v15  ;;  %19057 = vst [vmem:[#allocation164_spill] sm:$0xff] %v13937_v51  ;;  %v2059_v42 = vcombine.low %v13921_v48, %v13937_v51  ;;  %11918 = vmatprep.mubr.msk.f32.mxu1 %vm12715_vm1, %v18923_v33  ;;  %v13953_v57 = vsel %vm12836_vm9, %v1689_v14, %v1690_v23  ;;  %v13965_v7 = vrot.slane %v1076_v58, %v12792_v9 }
  0x8d   : > { %19058 = vst [vmem:[#allocation165_spill] sm:$0xff] %v13942_v12  ;;  %19059 = vst [vmem:[#allocation166_spill] sm:$0xff] %v13953_v57  ;;  %v13962_v6 = vcombine.low %v13933_v15, %v13942_v12  ;;  %v13969_v1 = vsel %vm12836_vm9, %v11066_v32, %v1694_v16  ;;  %v13980_v15 = vcombine.high %v13958_v0, %v13958_v0  ;;  %v1696_v8 = vrot.slane %v1694_v16, 2 }
  0x8e   : > { %19060 = vst [vmem:[#allocation167_spill] sm:$0xff] %v13958_v0  ;;  %19062 = vst [vmem:[#allocation169_spill] sm:$0xff] %v13965_v7  ;;  %v13972_v23 = vrot.slane %v2059_v42, %v12792_v9  ;;  %v2060_v14 = vcombine.low %v13953_v57, %v13969_v1  ;;  %v1697_v58 = vrot.slane %v13888_v61, 7  ;;  %v1700_v42 = vrot.slane %v13911_v37, 7  ;;  %v273_v61 = vld [vmem:[%s12783_s28 + $0xa8] sm:$0xff] }
  0x8f   : > { %19061 = vst [vmem:[#allocation168_spill] sm:$0xff] %v13962_v6  ;;  %19063 = vst [vmem:[#allocation170_spill] sm:$0xff] %v13969_v1  ;;  %11845 = vmatmul.mubr.msk.f32.gmra.mxu0 %vm1203_vm6, %v13962_v6  ;;  %v1703_v12 = vrot.slane %v13891_v59, 7  ;;  %v1077_v16 = vcombine.low %v13958_v0, %v13980_v15  ;;  %v1706_v6 = vrot.slane %v13915_v2, 7  ;;  %v654_v57 = vcombine.high %v272_v54, %v272_v54 }
  0x90   : > { %19064 = vst [vmem:[#allocation171_spill] sm:$0xff] %v13972_v23  ;;  %19065 = vst [vmem:[#allocation172_spill] sm:$0xff] %v13980_v15  ;;  %v13990_v41 = vrot.slane %v2060_v14, %v12792_v9  ;;  %11847 = vmatprep.mubr.msk.f32.mxu0 %vm12715_vm1, %v18923_v33  ;;  %v13999_v32 = vsel %vm12836_vm9, %v1696_v8, %v1697_v58  ;;  %v1699_v55 = vrot.slane %v1697_v58, 2  ;;  %v1702_v51 = vrot.slane %v1700_v42, 2 }
  0x91   : > { %19067 = vst [vmem:[#allocation174_spill] sm:$0xff] %v13999_v32  ;;  %v1705_v48 = vrot.slane %v1703_v12, 2  ;;  %v14004_v35 = vrot.slane %v1077_v16, %v12792_v9  ;;  %v14010_v2 = vrot.slane %v654_v57, %v12792_v9  ;;  %v671_v16 = vcombine.high %v273_v61, %v273_v61 }
  0x92   : > { %19066 = vst [vmem:[#allocation173_spill] sm:$0xff] %v13990_v41  ;;  %v2075_v14 = vcombine.low %v13972_v23, %v13990_v41  ;;  %v14014_v54 = vsel %vm12836_vm9, %v1699_v55, %v1700_v42  ;;  %v14018_v8 = vsel %vm12836_vm9, %v1702_v51, %v1703_v12  ;;  %v14040_v51 = vrot.slane %v273_v61, %v12792_v9 }
  0x93   : > { %19068 = vst [vmem:[#allocation175_spill] sm:$0xff] %v14004_v35  ;;  %19069 = vst [vmem:[#allocation176_spill] sm:$0xff] %v14010_v2  ;;  %v14022_v58 = vsel %vm12836_vm9, %v1705_v48, %v1706_v6  ;;  %v1092_v59 = vcombine.low %v13965_v7, %v14004_v35  ;;  %v2076_v57 = vcombine.low %v13999_v32, %v14014_v54  ;;  %v1708_v7 = vrot.slane %v1706_v6, 2 }
  0x94   : > { %19070 = vst [vmem:[#allocation177_spill] sm:$0xff] %v14014_v54  ;;  %19071 = vst [vmem:[#allocation178_spill] sm:$0xff] %v14018_v8  ;;  %11919 = vmatmul.mubr.msk.f32.gmra.mxu1 %vm1203_vm6, %v2075_v14  ;;  %v2077_v55 = vcombine.low %v14018_v8, %v14022_v58  ;;  %v14037_v48 = vcombine.high %v14010_v2, %v14010_v2  ;;  %v14043_v42 = vrot.slane %v671_v16, %v12792_v9  ;;  %v274_v54 = vld [vmem:[%s12783_s28 + $0xb0] sm:$0xff] }
  0x95   : > { %19072 = vst [vmem:[#allocation179_spill] sm:$0xff] %v14022_v58  ;;  %11921 = vmatprep.mubr.msk.f32.mxu1 %vm12715_vm1, %v18923_v33  ;;  %19074 = vst [vmem:[#allocation181_spill] sm:$0xff] %v14040_v51  ;;  %v14047_v14 = vcombine.high %v13895_v50, %v13895_v50  ;;  %11848 = vmatmul.mubr.msk.f32.gmra.mxu0 %vm1203_vm6, %v1092_v59  ;;  %v14051_v12 = vrot.slane %v2076_v57, %v12792_v9  ;;  %v1709_v8 = vrot.slane %v13895_v50, 7 }
  0x96   : > { %19073 = vst [vmem:[#allocation180_spill] sm:$0xff] %v14037_v48  ;;  %19075 = vst [vmem:[#allocation182_spill] sm:$0xff] %v14043_v42  ;;  %v14054_v23 = vrot.slane %v2077_v55, %v12792_v9  ;;  %11850 = vmatprep.mubr.msk.f32.mxu0 %vm12715_vm1, %v18923_v33  ;;  %v14061_v61 = vcombine.high %v14040_v51, %v14040_v51  ;;  %v1093_v16 = vcombine.low %v14010_v2, %v14037_v48 }
  0x97   : > { %19076 = vst [vmem:[#allocation183_spill] sm:$0xff] %v14047_v14  ;;  %19077 = vst [vmem:[#allocation184_spill] sm:$0xff] %v14051_v12  ;;  %v1712_v59 = vrot.slane %v14047_v14, 7  ;;  %v11067_v57 = vrot.slane %v13958_v0, 9  ;;  %v14074_v32 = vsel %vm12836_vm9, %v1708_v7, %v1709_v8  ;;  %v1711_v1 = vrot.slane %v1709_v8, 2 }
  0x98   : > { %19078 = vst [vmem:[#allocation185_spill] sm:$0xff] %v14054_v23  ;;  %19079 = vst [vmem:[#allocation186_spill] sm:$0xff] %v14061_v61  ;;  %v2092_v6 = vcombine.low %v14051_v12, %v14054_v23  ;;  %v1094_v50 = vcombine.low %v14040_v51, %v14061_v61  ;;  %v14079_v37 = vrot.slane %v1093_v16, %v12792_v9  ;;  %v1716_v0 = vrot.slane %v13980_v15, 7 }
  0x99   : > { %19080 = vst [vmem:[#allocation187_spill] sm:$0xff] %v14074_v32  ;;  %v1719_v14 = vrot.slane %v14010_v2, 7  ;;  %v14086_v55 = vsel %vm12836_vm9, %v1711_v1, %v1712_v59  ;;  %v687_v8 = vcombine.high %v274_v54, %v274_v54  ;;  %v14091_v12 = vrot.slane %v274_v54, %v12792_v9 }
  0x9a   : > { %19081 = vst [vmem:[#allocation188_spill] sm:$0xff] %v14079_v37  ;;  %11922 = vmatmul.mubr.msk.f32.gmra.mxu1 %vm1203_vm6, %v2092_v6  ;;  %19082 = vst [vmem:[#allocation189_spill] sm:$0xff] %v14086_v55  ;;  %v14094_v16 = vrot.slane %v1094_v50, %v12792_v9  ;;  %v14102_v1 = vsel %vm12836_vm9, %v11067_v57, %v1716_v0  ;;  %v1718_v59 = vrot.slane %v1716_v0, 2 }
  0x9b   : > { %19083 = vst [vmem:[#allocation190_spill] sm:$0xff] %v14091_v12  ;;  %11924 = vmatprep.mubr.msk.f32.mxu1 %vm12715_vm1, %v18923_v33  ;;  %19085 = vst [vmem:[#allocation192_spill] sm:$0xff] %v14102_v1  ;;  %v2093_v6 = vcombine.low %v14074_v32, %v14086_v55  ;;  %v14109_v50 = vrot.slane %v687_v8, %v12792_v9  ;;  %v14113_v41 = vcombine.high %v14091_v12, %v14091_v12 }
  0x9c   : > { %19084 = vst [vmem:[#allocation191_spill] sm:$0xff] %v14094_v16  ;;  %v14117_v7 = vcombine.low %v14079_v37, %v14094_v16  ;;  %v14121_v0 = vsel %vm12836_vm9, %v1718_v59, %v1719_v14  ;;  %v1110_v57 = vcombine.low %v14043_v42, %v14091_v12  ;;  %v1721_v54 = vrot.slane %v1719_v14, 2 }
  0x9d   : > { %19086 = vst [vmem:[#allocation193_spill] sm:$0xff] %v14109_v50  ;;  %19087 = vst [vmem:[#allocation194_spill] sm:$0xff] %v14113_v41  ;;  %v2094_v8 = vcombine.low %v14102_v1, %v14121_v0  ;;  %v14128_v35 = vrot.slane %v2093_v6, %v12792_v9  ;;  %v1111_v55 = vcombine.low %v14113_v41, %v14109_v50  ;;  %v1722_v37 = vrot.slane %v14037_v48, 7  ;;  %v275_v48 = vld [vmem:[%s12783_s28 + $0xb8] sm:$0xff] }
  0x9e   : > { %19088 = vst [vmem:[#allocation195_spill] sm:$0xff] %v14117_v7  ;;  %19089 = vst [vmem:[#allocation196_spill] sm:$0xff] %v14121_v0  ;;  %11851 = vmatmul.mubr.msk.f32.gmra.mxu0 %vm1203_vm6, %v14117_v7  ;;  %v14136_v59 = vrot.slane %v1110_v57, %v12792_v9  ;;  %v1725_v32 = vrot.slane %v14040_v51, 7  ;;  %v1728_v14 = vrot.slane %v14061_v61, 7  ;;  %v1731_v1 = vrot.slane %v14043_v42, 7 }
  0x9f   : > { %19090 = vst [vmem:[#allocation197_spill] sm:$0xff] %v14128_v35  ;;  %v14142_v6 = vrot.slane %v2094_v8, %v12792_v9  ;;  %11853 = vmatprep.mubr.msk.f32.mxu0 %vm12715_vm1, %v18923_v33  ;;  %v14149_v7 = vrot.slane %v1111_v55, %v12792_v9  ;;  %v14153_v57 = vsel %vm12836_vm9, %v1721_v54, %v1722_v37  ;;  %v1724_v15 = vrot.slane %v1722_v37, 2 }
  0xa0   : > { %19091 = vst [vmem:[#allocation198_spill] sm:$0xff] %v14136_v59  ;;  %19094 = vst [vmem:[#allocation201_spill] sm:$0xff] %v14153_v57  ;;  %v1727_v8 = vrot.slane %v1725_v32, 2  ;;  %v1730_v2 = vrot.slane %v1728_v14, 2  ;;  %v14166_v54 = vcombine.high %v14109_v50, %v14109_v50 }
  0xa1   : > { %19092 = vst [vmem:[#allocation199_spill] sm:$0xff] %v14142_v6  ;;  %19093 = vst [vmem:[#allocation200_spill] sm:$0xff] %v14149_v7  ;;  %v2109_v58 = vcombine.low %v14128_v35, %v14142_v6  ;;  %v1126_v23 = vcombine.low %v14136_v59, %v14149_v7  ;;  %v14170_v61 = vsel %vm12836_vm9, %v1724_v15, %v1725_v32  ;;  %v1738_v59 = vrot.slane %v14113_v41, 7 }
  0xa2   : > { %19095 = vst [vmem:[#allocation202_spill] sm:$0xff] %v14166_v54  ;;  %19096 = vst [vmem:[#allocation203_spill] sm:$0xff] %v14170_v61  ;;  %v14174_v37 = vsel %vm12836_vm9, %v1727_v8, %v1728_v14  ;;  %v14178_v51 = vsel %vm12836_vm9, %v1730_v2, %v1731_v1  ;;  %v704_v35 = vcombine.high %v275_v48, %v275_v48  ;;  %v1733_v14 = vrot.slane %v1731_v1, 2 }
  0xa3   : > { %19097 = vst [vmem:[#allocation204_spill] sm:$0xff] %v14174_v37  ;;  %19098 = vst [vmem:[#allocation205_spill] sm:$0xff] %v14178_v51  ;;  %11925 = vmatmul.mubr.msk.f32.gmra.mxu1 %vm1203_vm6, %v2109_v58  ;;  %11854 = vmatmul.mubr.msk.f32.gmra.mxu0 %vm1203_vm6, %v1126_v23  ;;  %v2110_v55 = vcombine.low %v14153_v57, %v14170_v61  ;;  %v2111_v15 = vcombine.low %v14174_v37, %v14178_v51  ;;  %v11068_v8 = vrot.slane %v14091_v12, 9 }
  0xa4   : > { %11927 = vmatprep.mubr.msk.f32.mxu1 %vm12715_vm1, %v18923_v33  ;;  %11856 = vmatprep.mubr.msk.f32.mxu0 %vm12715_vm1, %v18923_v33  ;;  %v14193_v2 = vrot.slane %v275_v48, %v12792_v9  ;;  %v14196_v23 = vrot.slane %v704_v35, %v12792_v9  ;;  %v14200_v58 = vcombine.high %v14043_v42, %v14043_v42  ;;  %v1741_v48 = vrot.slane %v14109_v50, 7 }
  0xa5   : > { %v14204_v1 = vrot.slane %v2110_v55, %v12792_v9  ;;  %v14207_v32 = vrot.slane %v2111_v15, %v12792_v9  ;;  %v1744_v37 = vrot.slane %v14166_v54, 7  ;;  %v276_v55 = vld [vmem:[%s12783_s28 + $0xc0] sm:$0xff]  ;;  %v14226_v57 = vsel %vm12836_vm9, %v11068_v8, %v1738_v59 }
  0xa6   : > { %19099 = vst [vmem:[#allocation206_spill] sm:$0xff] %v14193_v2  ;;  %19100 = vst [vmem:[#allocation207_spill] sm:$0xff] %v14196_v23  ;;  %v14213_v35 = vcombine.high %v14193_v2, %v14193_v2  ;;  %v1127_v16 = vcombine.low %v14166_v54, %v14193_v2  ;;  %v1734_v7 = vrot.slane %v14200_v58, 7  ;;  %v1740_v0 = vrot.slane %v1738_v59, 2 }
  0xa7   : > { %19101 = vst [vmem:[#allocation208_spill] sm:$0xff] %v14200_v58  ;;  %19102 = vst [vmem:[#allocation209_spill] sm:$0xff] %v14204_v1  ;;  %v2126_v15 = vcombine.low %v14204_v1, %v14207_v32  ;;  %v1743_v54 = vrot.slane %v1741_v48, 2  ;;  %v720_v1 = vcombine.high %v276_v55, %v276_v55  ;;  %v1746_v8 = vrot.slane %v1744_v37, 2 }
  0xa8   : > { %19103 = vst [vmem:[#allocation210_spill] sm:$0xff] %v14207_v32  ;;  %19104 = vst [vmem:[#allocation211_spill] sm:$0xff] %v14213_v35  ;;  %v1128_v41 = vcombine.low %v14213_v35, %v14196_v23  ;;  %v14231_v50 = vrot.slane %v1127_v16, %v12792_v9  ;;  %v14235_v58 = vsel %vm12836_vm9, %v1733_v14, %v1734_v7  ;;  %v1747_v6 = vrot.slane %v14193_v2, 7  ;;  %v277_v32 = vld [vmem:[%s12783_s28 + $0xc8] sm:$0xff] }
  0xa9   : > { %19105 = vst [vmem:[#allocation212_spill] sm:$0xff] %v14226_v57  ;;  %19107 = vst [vmem:[#allocation214_spill] sm:$0xff] %v14235_v58  ;;  %11928 = vmatmul.mubr.msk.f32.gmra.mxu1 %vm1203_vm6, %v2126_v15  ;;  %v14240_v61 = vsel %vm12836_vm9, %v1740_v0, %v1741_v48  ;;  %v2127_v59 = vcombine.low %v14235_v58, %v14226_v57  ;;  %v14253_v7 = vsel %vm12836_vm9, %v1743_v54, %v1744_v37 }
  0xaa   : > { %19106 = vst [vmem:[#allocation213_spill] sm:$0xff] %v14231_v50  ;;  %19108 = vst [vmem:[#allocation215_spill] sm:$0xff] %v14240_v61  ;;  %v14247_v16 = vrot.slane %v1128_v41, %v12792_v9  ;;  %11930 = vmatprep.mubr.msk.f32.mxu1 %vm12715_vm1, %v18923_v33  ;;  %v2128_v14 = vcombine.low %v14240_v61, %v14253_v7  ;;  %v14263_v41 = vrot.slane %v276_v55, %v12792_v9 }
  0xab   : > { %19110 = vst [vmem:[#allocation217_spill] sm:$0xff] %v14253_v7  ;;  %v14260_v48 = vrot.slane %v2127_v59, %v12792_v9  ;;  %v14266_v15 = vrot.slane %v720_v1, %v12792_v9  ;;  %v14274_v0 = vcombine.high %v14196_v23, %v14196_v23  ;;  %v14294_v37 = vsel %vm12836_vm9, %v1746_v8, %v1747_v6 }
  0xac   : > { %19109 = vst [vmem:[#allocation216_spill] sm:$0xff] %v14247_v16  ;;  %19112 = vst [vmem:[#allocation219_spill] sm:$0xff] %v14263_v41  ;;  %v14270_v54 = vcombine.low %v14231_v50, %v14247_v16  ;;  %v14278_v59 = vrot.slane %v2128_v14, %v12792_v9  ;;  %v14284_v1 = vcombine.high %v14263_v41, %v14263_v41  ;;  %v1749_v14 = vrot.slane %v1747_v6, 2  ;;  %v278_v6 = vld [vmem:[%s12783_s28 + $0xd0] sm:$0xff] }
  0xad   : > { %19111 = vst [vmem:[#allocation218_spill] sm:$0xff] %v14260_v48  ;;  %19114 = vst [vmem:[#allocation221_spill] sm:$0xff] %v14274_v0  ;;  %v14288_v50 = vcombine.high %v14266_v15, %v14266_v15  ;;  %v1750_v61 = vrot.slane %v14213_v35, 7  ;;  %v1753_v55 = vrot.slane %v14196_v23, 7  ;;  %v1756_v8 = vrot.slane %v14274_v0, 7 }
  0xae   : > { %19113 = vst [vmem:[#allocation220_spill] sm:$0xff] %v14270_v54  ;;  %19115 = vst [vmem:[#allocation222_spill] sm:$0xff] %v14278_v59  ;;  %11857 = vmatmul.mubr.msk.f32.gmra.mxu0 %vm1203_vm6, %v14270_v54  ;;  %v2143_v57 = vcombine.low %v14260_v48, %v14278_v59  ;;  %v1144_v58 = vcombine.low %v14263_v41, %v14284_v1  ;;  %v737_v42 = vcombine.high %v277_v32, %v277_v32 }
  0xaf   : > { %19116 = vst [vmem:[#allocation223_spill] sm:$0xff] %v14288_v50  ;;  %19117 = vst [vmem:[#allocation224_spill] sm:$0xff] %v14294_v37  ;;  %11859 = vmatprep.mubr.msk.f32.mxu0 %vm12715_vm1, %v18923_v33  ;;  %v1145_v54 = vcombine.low %v14266_v15, %v14288_v50  ;;  %v14311_v51 = vsel %vm12836_vm9, %v1749_v14, %v1750_v61  ;;  %v1752_v2 = vrot.slane %v1750_v61, 2  ;;  %v1755_v35 = vrot.slane %v1753_v55, 2 }
  0xb0   : > { %19118 = vst [vmem:[#allocation225_spill] sm:$0xff] %v14311_v51  ;;  %11931 = vmatmul.mubr.msk.f32.gmra.mxu1 %vm1203_vm6, %v2143_v57  ;;  %v14317_v23 = vrot.slane %v1144_v58, %v12792_v9  ;;  %v2144_v0 = vcombine.low %v14294_v37, %v14311_v51  ;;  %v14335_v58 = vrot.slane %v277_v32, %v12792_v9 }
  0xb1   : > { %v14320_v12 = vrot.slane %v1145_v54, %v12792_v9  ;;  %11933 = vmatprep.mubr.msk.f32.mxu1 %vm12715_vm1, %v18923_v33  ;;  %v14328_v61 = vsel %vm12836_vm9, %v1752_v2, %v1753_v55  ;;  %v14332_v57 = vsel %vm12836_vm9, %v1755_v35, %v1756_v8  ;;  %v14338_v54 = vrot.slane %v278_v6, %v12792_v9 }
  0xb2   : > { %19119 = vst [vmem:[#allocation226_spill] sm:$0xff] %v14317_v23  ;;  %19121 = vst [vmem:[#allocation228_spill] sm:$0xff] %v14328_v61  ;;  %v2145_v2 = vcombine.low %v14328_v61, %v14332_v57  ;;  %v14347_v55 = vrot.slane %v2144_v0, %v12792_v9  ;;  %v14352_v32 = vrot.slane %v737_v42, %v12792_v9  ;;  %v1763_v35 = vrot.slane %v14266_v15, 7 }
  0xb3   : > { %19120 = vst [vmem:[#allocation227_spill] sm:$0xff] %v14320_v12  ;;  %19122 = vst [vmem:[#allocation229_spill] sm:$0xff] %v14332_v57  ;;  %v1160_v14 = vcombine.low %v14317_v23, %v14320_v12  ;;  %v14356_v8 = vcombine.high %v14335_v58, %v14335_v58  ;;  %v11069_v12 = vrot.slane %v14263_v41, 9  ;;  %v1760_v23 = vrot.slane %v14284_v1, 7 }
  0xb4   : > { %19123 = vst [vmem:[#allocation230_spill] sm:$0xff] %v14335_v58  ;;  %19124 = vst [vmem:[#allocation231_spill] sm:$0xff] %v14347_v55  ;;  %v14361_v48 = vrot.slane %v2145_v2, %v12792_v9  ;;  %v1162_v16 = vcombine.low %v14352_v32, %v14338_v54  ;;  %v1769_v2 = vrot.slane %v14335_v58, 7  ;;  %v1765_v51 = vrot.slane %v1763_v35, 2 }
  0xb5   : > { %19125 = vst [vmem:[#allocation232_spill] sm:$0xff] %v14352_v32  ;;  %19126 = vst [vmem:[#allocation233_spill] sm:$0xff] %v14356_v8  ;;  %11860 = vmatmul.mubr.msk.f32.gmra.mxu0 %vm1203_vm6, %v1160_v14  ;;  %v1161_v42 = vcombine.low %v14335_v58, %v14356_v8  ;;  %v1766_v14 = vrot.slane %v14288_v50, 7  ;;  %v14379_v59 = vsel %vm12836_vm9, %v11069_v12, %v1760_v23  ;;  %v1762_v61 = vrot.slane %v1760_v23, 2 }
  0xb6   : > { %19127 = vst [vmem:[#allocation234_spill] sm:$0xff] %v14361_v48  ;;  %11862 = vmatprep.mubr.msk.f32.mxu0 %vm12715_vm1, %v18923_v33  ;;  %v2160_v0 = vcombine.low %v14347_v55, %v14361_v48  ;;  %19128 = vst [vmem:[#allocation235_spill] sm:$0xff] %v14379_v59  ;;  %v14385_v7 = vrot.slane %v1162_v16, %v12792_v9  ;;  %v753_v23 = vcombine.high %v278_v6, %v278_v6 }
  0xb7   : > { %v14382_v37 = vrot.slane %v1161_v42, %v12792_v9  ;;  %v1768_v41 = vrot.slane %v1766_v14, 2  ;;  %v14392_v55 = vsel %vm12836_vm9, %v1762_v61, %v1763_v35  ;;  %v14396_v12 = vsel %vm12836_vm9, %v1765_v51, %v1766_v14 }
  0xb8   : > { %19130 = vst [vmem:[#allocation237_spill] sm:$0xff] %v14385_v7  ;;  %11934 = vmatmul.mubr.msk.f32.gmra.mxu1 %vm1203_vm6, %v2160_v0  ;;  %19131 = vst [vmem:[#allocation238_spill] sm:$0xff] %v14392_v55  ;;  %v14400_v42 = vcombine.high %v14338_v54, %v14338_v54  ;;  %v2161_v61 = vcombine.low %v14379_v59, %v14392_v55  ;;  %v14417_v35 = vrot.slane %v753_v23, %v12792_v9 }
  0xb9   : > { %19129 = vst [vmem:[#allocation236_spill] sm:$0xff] %v14382_v37  ;;  %19132 = vst [vmem:[#allocation239_spill] sm:$0xff] %v14396_v12  ;;  %v1177_v16 = vcombine.low %v14382_v37, %v14385_v7  ;;  %11936 = vmatprep.mubr.msk.f32.mxu1 %vm12715_vm1, %v18923_v33  ;;  %v14408_v0 = vsel %vm12836_vm9, %v1768_v41, %v1769_v2  ;;  %v14421_v14 = vcombine.high %v14352_v32, %v14352_v32 }
  0xba   : > { %v2162_v6 = vcombine.low %v14396_v12, %v14408_v0  ;;  %v1771_v50 = vrot.slane %v1769_v2, 2  ;;  %v14425_v41 = vrot.slane %v2161_v61, %v12792_v9  ;;  %v1772_v37 = vrot.slane %v14356_v8, 7 }
  0xbb   : > { %19133 = vst [vmem:[#allocation240_spill] sm:$0xff] %v14421_v14  ;;  %11863 = vmatmul.mubr.msk.f32.gmra.mxu0 %vm1203_vm6, %v1177_v16  ;;  %v1775_v51 = vrot.slane %v14352_v32, 7  ;;  %v11070_v55 = vrot.slane %v14338_v54, 9  ;;  %v14437_v2 = vcombine.high %v14417_v35, %v14417_v35  ;;  %v1178_v23 = vcombine.low %v14400_v42, %v14417_v35 }
  0xbc   : > { %19134 = vst [vmem:[#allocation241_spill] sm:$0xff] %v14425_v41  ;;  %v14431_v12 = vrot.slane %v2162_v6, %v12792_v9  ;;  %11865 = vmatprep.mubr.msk.f32.mxu0 %vm12715_vm1, %v18923_v33  ;;  %v1778_v16 = vrot.slane %v14421_v14, 7  ;;  %v14446_v59 = vsel %vm12836_vm9, %v1771_v50, %v1772_v37  ;;  %v1774_v6 = vrot.slane %v1772_v37, 2 }
  0xbd   : > { %v1777_v57 = vrot.slane %v1775_v51, 2  ;;  %v1179_v58 = vcombine.low %v14437_v2, %v12799_v17  ;;  %v14453_v32 = vrot.slane %v1178_v23, %v12792_v9  ;;  %v1782_v14 = vrot.slane %v14400_v42, 7 }
  0xbe   : > { %19135 = vst [vmem:[#allocation242_spill] sm:$0xff] %v14431_v12  ;;  %v2177_v8 = vcombine.low %v14425_v41, %v14431_v12  ;;  %v14458_v61 = vsel %vm12836_vm9, %v1774_v6, %v1775_v51  ;;  %v2491_v41 = vcombine.low %v12831_v28, %v12802_v18  ;;  %v1785_v28 = vrot.slane %v14417_v35, 7 }
  0xbf   : > { %19136 = vst [vmem:[#allocation243_spill] sm:$0xff] %v14453_v32  ;;  %19137 = vst [vmem:[#allocation244_spill] sm:$0xff] %v14458_v61  ;;  %v14462_v50 = vsel %vm12836_vm9, %v1777_v57, %v1778_v16  ;;  %v14470_v23 = vrot.slane %v1179_v58, %v12792_v9  ;;  %v14476_v51 = vsel %vm12836_vm9, %v11070_v55, %v1782_v14  ;;  %v1784_v48 = vrot.slane %v1782_v14, 2 }
  0xc0   : > { %19138 = vst [vmem:[#allocation245_spill] sm:$0xff] %v14462_v50  ;;  %11937 = vmatmul.mubr.msk.f32.gmra.mxu1 %vm1203_vm6, %v2177_v8  ;;  %19140 = vst [vmem:[#allocation247_spill] sm:$0xff] %v14476_v51  ;;  %v2178_v57 = vcombine.low %v14446_v59, %v14458_v61  ;;  %v2179_v18 = vcombine.low %v14462_v50, %v14476_v51  ;;  %v19141_v58 = vcombine.low %v12819_v24, %v12811_v20 }
  0xc1   : > { %19139 = vst [vmem:[#allocation246_spill] sm:$0xff] %v14470_v23  ;;  %11939 = vmatprep.mubr.msk.f32.mxu1 %vm12715_vm1, %v18923_v33  ;;  %v2505_v55 = vrot.slane %v2491_v41, %v12792_v9  ;;  %v14493_v16 = vcombine.low %v14453_v32, %v14470_v23  ;;  %v1788_v50 = vrot.slane %v14437_v2, 7  ;;  %v1791_v24 = vrot.slane %v12799_v17, 7  ;;  %v280_v32 = vld [vmem:[%s12783_s28 + $0xe0] sm:$0xff] }
  0xc2   : > { %v2498_v8 = vrot.slane %v19141_v58, %v12792_v9  ;;  %v14496_v6 = vrot.slane %v2178_v57, %v12792_v9  ;;  %v14499_v37 = vrot.slane %v2179_v18, %v12792_v9  ;;  %v1794_v41 = vrot.slane %v12823_v26, 7 }
  0xc3   : > { %19142 = vst [vmem:[#allocation248_spill] sm:$0xff] %v14493_v16  ;;  %11866 = vmatmul.mubr.msk.f32.gmra.mxu0 %vm1203_vm6, %v14493_v16  ;;  %v2507_v14 = vcombine.low %v12827_v27, %v12817_v22  ;;  %v14517_v18 = vsel %vm12836_vm9, %v1784_v48, %v1785_v28  ;;  %v1787_v58 = vrot.slane %v1785_v28, 2  ;;  %v1793_v20 = vrot.slane %v1791_v24, 2 }
  0xc4   : > { %19143 = vst [vmem:[#allocation249_spill] sm:$0xff] %v14496_v6  ;;  %19144 = vst [vmem:[#allocation250_spill] sm:$0xff] %v14499_v37  ;;  %v2506_v7 = vcombine.low %v2498_v8, %v2505_v55  ;;  %v2194_v57 = vcombine.low %v14496_v6, %v14499_v37  ;;  %11950 = vmatprep.mubr.msk.f32.mxu0 %vm12715_vm1, %v18923_v33  ;;  %v1790_v8 = vrot.slane %v1788_v50, 2  ;;  %v11160_v55 = vld [vmem:[%s18517_s1 + $0x10] sm:$0x7]  ;;  %v1796_v27 = vrot.slane %v1794_v41, 2 }
  0xc5   : > { %19145 = vst [vmem:[#allocation251_spill] sm:$0xff] %v14517_v18  ;;  %v11099_v6 = vcombine.high %v12817_v22, %v12805_v19  ;;  %v2515_v12 = vrot.slane %v2507_v14, %v12792_v9  ;;  %v14531_v48 = vsel %vm12836_vm9, %v1787_v58, %v1788_v50  ;;  %v14539_v23 = vcombine.high %v12814_v21, %v12814_v21 }
  0xc6   : > { %11940 = vmatmul.mubr.msk.f32.gmra.mxu1 %vm1203_vm6, %v2194_v57  ;;  %19146 = vst [vmem:[#allocation252_spill] sm:$0xff] %v14531_v48  ;;  %v14535_v28 = vsel %vm12836_vm9, %v1790_v8, %v1791_v24  ;;  %v14546_v22 = vsel %vm12836_vm9, %v1793_v20, %v1794_v41  ;;  %v2195_v50 = vcombine.low %v14517_v18, %v14531_v48  ;;  %v1797_v14 = vrot.slane %v12814_v21, 7  ;;  %v19219_v48 = vld [vmem:[#allocation133_spill] sm:$0xff] }
  0xc7   : > { %19147 = vst [vmem:[#allocation253_spill] sm:$0xff] %v14535_v28  ;;  %11942 = vmatprep.mubr.msk.f32.mxu1 %vm12715_vm1, %v18923_v33  ;;  %11951 = vmatmul.mubr.msk.f32.vlgmr.msra.gmra.mxu0 %vm1203_vm6, %v2506_v7  ;;  %v2196_v57 = vcombine.low %v14535_v28, %v14546_v22  ;;  %v2522_v7 = vrot.slane %v11099_v6, %v12792_v9  ;;  %v1800_v20 = vrot.slane %v14539_v23, 7 }
  0xc8   : > { %12103 = vmatpush3.msk.msra.mxu0 %vm1254_vm0, %v11160_v55  ;;  %11953 = vmatprep.mubr.msk.f32.mxu0 %vm12715_vm1, %v18923_v33  ;;  %v3176_v41 = vcombine.high %v280_v32, %v280_v32  ;;  %v14561_v58 = vrot.slane %v2195_v50, %v12792_v9  ;;  %v14565_v8 = vsel %vm12836_vm9, %v1796_v27, %v1797_v14  ;;  %v1799_v24 = vrot.slane %v1797_v14, 2 }
  0xc9   : > { %v14568_v55 = vrot.slane %v280_v32, %v12792_v9  ;;  %12256 = vmatprep.subr.mxu0 %v18923_v33  ;;  %v14572_v16 = vrot.slane %v2196_v57, %v12792_v9  ;;  %v2523_v6 = vcombine.low %v2515_v12, %v2522_v7  ;;  %v2525_v50 = vcombine.low %v12892_v63, %v12923_v34 }
  0xca   : > { %19148 = vst [vmem:[#allocation254_spill] sm:$0xff] %v14561_v58  ;;  %v14580_v27 = vsel %vm12836_vm9, %v1799_v24, %v1800_v20  ;;  %v14593_v7 = vrot.slane %v3176_v41, %v12792_v9  ;;  %v2524_v20 = vcombine.low %v12871_v52, %v12889_v62  ;;  %v3211_v41 = vcombine.low %v12805_v19, %v12875_v53 }
  0xcb   : > { %19149 = vst [vmem:[#allocation255_spill] sm:$0xff] %v14568_v55  ;;  %19150 = vst [vmem:[#allocation256_spill] sm:$0xff] %v14572_v16  ;;  %v14584_v32 = vcombine.high %v14568_v55, %v14568_v55  ;;  %v2211_v14 = vcombine.low %v14561_v58, %v14572_v16  ;;  %11954 = vmatmul.mubr.msk.f32.gmra.mxu0 %vm1203_vm6, %v2523_v6  ;;  %v2212_v12 = vcombine.low %v14565_v8, %v14580_v27 }
  0xcc   : > { %v11159_v57 = vrot.slane %v14568_v55, 9  ;;  %11956 = vmatprep.mubr.msk.f32.mxu0 %vm12715_vm1, %v18923_v33  ;;  %v18799_v58 = vrot.slane %v14593_v7, 7  ;;  %v2532_v37 = vrot.slane %v2524_v20, %v12792_v9  ;;  %v2539_v52 = vrot.slane %v2525_v50, %v12792_v9 }
  0xcd   : > { %19151 = vst [vmem:[#allocation257_spill] sm:$0xff] %v14584_v32  ;;  %v3642_v24 = vrot.slane %v14584_v32, 7  ;;  %11943 = vmatmul.mubr.msk.f32.gmra.mxu1 %vm1203_vm6, %v2211_v14  ;;  %v14604_v6 = vrot.slane %v2212_v12, %v12792_v9  ;;  %v3218_v34 = vrot.slane %v3211_v41, %v12792_v9  ;;  %v2541_v14 = vcombine.low %v12897_v3, %v13008_v31  ;;  %v19213_v32 = vld [vmem:[#allocation190_spill] sm:$0xff] }
  0xce   : > { %11945 = vmatprep.mubr.msk.f32.mxu1 %vm12715_vm1, %v18923_v33  ;;  %v2540_v53 = vcombine.low %v2532_v37, %v2539_v52  ;;  %v2542_v50 = vcombine.low %v12944_v44, %v12998_v25  ;;  %v3220_v31 = vcombine.low %v12897_v3, %v12926_v36  ;;  %v2558_v44 = vcombine.low %v13015_v38, %v13004_v29 }
  0xcf   : > { %19152 = vst [vmem:[#allocation258_spill] sm:$0xff] %v14604_v6  ;;  %v3644_v28 = vrot.slane %v3642_v24, 2  ;;  %v14615_v62 = vsel %vm12836_vm9, %v11159_v57, %v3642_v24  ;;  %v3219_v57 = vcombine.low %v3218_v34, %v2532_v37  ;;  %v2559_v25 = vcombine.low %v13023_v43, %v13018_v39 }
  0xd0   : > { %19153 = vst [vmem:[#allocation259_spill] sm:$0xff] %v14615_v62  ;;  %11957 = vmatmul.mubr.msk.f32.gmra.mxu0 %vm1203_vm6, %v2540_v53  ;;  %v2556_v24 = vrot.slane %v2542_v50, %v12792_v9  ;;  %v11100_v37 = vcombine.high %v13018_v39, %v13051_v11  ;;  %v2576_v20 = vcombine.low %v13069_v40, %v13115_v49 }
  0xd1   : > { %v14624_v19 = vsel %vm12836_vm9, %v3644_v28, %v18799_v58  ;;  %11946 = vmatmul.mubr.msk.f32.gmra.mxu1 %vm1203_vm6, %v14604_v6  ;;  %v2549_v28 = vrot.slane %v2541_v14, %v12792_v9  ;;  %11959 = vmatprep.mubr.msk.f32.mxu0 %vm12715_vm1, %v18923_v33  ;;  %v3227_v34 = vrot.slane %v3220_v31, %v12792_v9  ;;  %v19184_v6 = vld [vmem:[#allocation118_spill] sm:$0xff] }
  0xd2   : > { %19154 = vst [vmem:[#allocation260_spill] sm:$0xff] %v14624_v19  ;;  %12027 = vmatprep.mubr.msk.f32.mxu1 %vm12715_vm1, %v18923_v33  ;;  %v3230_v53 = vcombine.low %v13051_v11, %v13073_v45  ;;  %v2592_v14 = vcombine.low %v13135_v5, %v13157_v47  ;;  %v2566_v29 = vrot.slane %v2558_v44, %v12792_v9  ;;  %v11187_v11 = vld [vmem:[%s18517_s1 + $0x14] sm:$0x7] }
  0xd3   : > { %v2557_v41 = vcombine.low %v2549_v28, %v2556_v24  ;;  %v14659_v38 = vrot.slane %v2559_v25, %v12792_v9  ;;  %v14662_v43 = vrot.slane %v11100_v37, %v12792_v9  ;;  %v2590_v40 = vrot.slane %v2576_v20, %v12792_v9  ;;  %v19186_v19 = vld [vmem:[#allocation132_spill] sm:$0xff] }
  0xd4   : > { %v3228_v5 = vcombine.low %v2539_v52, %v3227_v34  ;;  %v2593_v45 = vcombine.low %v13138_v10, %v13206_v46  ;;  %v3237_v28 = vrot.slane %v3230_v53, %v12792_v9  ;;  %v2609_v31 = vcombine.low %v13219_v4, %v13215_v60  ;;  %v19161_v4 = vld [vmem:[#allocation45_spill] sm:$0xff] }
  0xd5   : > { %12028 = vmatmul.mubr.msk.f32.vlgmr.msra.gmra.mxu1 %vm1203_vm6, %v3219_v57  ;;  %19155 = vst [vmem:[#allocation261_spill] sm:$0xff] %v14659_v38  ;;  %19156 = vst [vmem:[#allocation262_spill] sm:$0xff] %v14662_v43  ;;  %11960 = vmatmul.mubr.msk.f32.gmra.mxu0 %vm1203_vm6, %v2557_v41  ;;  %v2574_v47 = vcombine.low %v2566_v29, %v14659_v38  ;;  %v14687_v46 = vcombine.low %v2556_v24, %v2566_v29  ;;  %v19162_v24 = vld [vmem:[#allocation54_spill] sm:$0xff]  ;;  %v19163_v41 = vld [vmem:[#allocation52_spill] sm:$0xff] }
  0xd6   : > { %12030 = vmatprep.mubr.msk.f32.mxu1 %vm12715_vm1, %v18923_v33  ;;  %11962 = vmatprep.mubr.msk.f32.mxu0 %vm12715_vm1, %v18923_v33  ;;  %v2591_v52 = vcombine.low %v14662_v43, %v2590_v40  ;;  %v2600_v25 = vrot.slane %v2592_v14, %v12792_v9  ;;  %v14692_v37 = vrot.slane %v2593_v45, %v12792_v9  ;;  %v19169_v29 = vld [vmem:[#allocation65_spill] sm:$0xff] }
  0xd7   : > { %12180 = vmatpush3.msk.msra.mxu1 %vm1254_vm0, %v11187_v11  ;;  %19158 = vst [vmem:[#allocation264_spill] sm:$0xff] %v14687_v46  ;;  %v14698_v60 = vrot.slane %v2609_v31, %v12792_v9  ;;  %v2610_v20 = vcombine.low %v19161_v4, %v13266_v56  ;;  %v11101_v34 = vcombine.high %v19163_v41, %v19162_v24  ;;  %v19164_v11 = vld [vmem:[#allocation69_spill] sm:$0xff] }
  0xd8   : > { %19159 = vst [vmem:[#allocation265_spill] sm:$0xff] %v14692_v37  ;;  %v3238_v14 = vcombine.low %v14659_v38, %v3237_v28  ;;  %12333 = vmatprep.subr.mxu1 %v18923_v33  ;;  %v2608_v56 = vcombine.low %v2600_v25, %v14692_v37  ;;  %v19167_v28 = vld [vmem:[#allocation53_spill] sm:$0xff] }
  0xd9   : > { %12031 = vmatmul.mubr.msk.f32.gmra.mxu1 %vm1203_vm6, %v3228_v5  ;;  %11963 = vmatmul.mubr.msk.f32.gmra.mxu0 %vm1203_vm6, %v2574_v47  ;;  %19160 = vst [vmem:[#allocation266_spill] sm:$0xff] %v14698_v60  ;;  %v19165_v5 = vld [vmem:[#allocation64_spill] sm:$0xff]  ;;  %v2626_v4 = vcombine.low %v19167_v28, %v19163_v41  ;;  %v19174_v37 = vld [vmem:[#allocation93_spill] sm:$0xff] }
  0xda   : > { %12033 = vmatprep.mubr.msk.f32.mxu1 %vm12715_vm1, %v18923_v33  ;;  %11965 = vmatprep.mubr.msk.f32.mxu0 %vm12715_vm1, %v18923_v33  ;;  %v2643_v45 = vcombine.low %v19165_v5, %v19164_v11  ;;  %v2624_v11 = vrot.slane %v2610_v20, %v12792_v9  ;;  %v14728_v5 = vrot.slane %v11101_v34, %v12792_v9  ;;  %v19173_v28 = vld [vmem:[#allocation68_spill] sm:$0xff] }
  0xdb   : > { %v14665_v49 = vpop.f32.mrf.mxu1  ;;  %v19175_v20 = vld [vmem:[#allocation96_spill] sm:$0xff] }
  0xdc   : > { %19157 = vst [vmem:[#allocation263_spill] sm:$0xff] %v14665_v49  ;;  %19170 = vst [vmem:[#allocation45_spill] sm:$0xff] %v14728_v5  ;;  %v14731_v63 = vrot.slane %v2643_v45, %v12792_v9  ;;  %v2678_v43 = vcombine.low %v19175_v20, %v19174_v37  ;;  %v14746_v45 = vcombine.low %v2590_v40, %v2600_v25  ;;  %v19185_v49 = vld [vmem:[#allocation129_spill] sm:$0xff] }
  0xdd   : > { %v11870_v57 = vpop.f32.mrf.mxu1  ;;  %12034 = vmatmul.mubr.msk.f32.gmra.mxu1 %vm1203_vm6, %v14687_v46  ;;  %11966 = vmatmul.mubr.msk.f32.gmra.mxu0 %vm1203_vm6, %v2591_v52  ;;  %v2625_v20 = vcombine.low %v14698_v60, %v2624_v11 }
  0xde   : > { %v14683_v44 = vpop.f32.mrf.mxu0  ;;  %v19166_v57 = vld [vmem:[#allocation40_spill] sm:$0xff]  ;;  %12036 = vmatprep.mubr.msk.f32.mxu1 %vm12715_vm1, %v18923_v33  ;;  %19171 = vst [vmem:[#allocation54_spill] sm:$0xff] %v14731_v63  ;;  %11968 = vmatprep.mubr.msk.f32.mxu0 %vm12715_vm1, %v18923_v33  ;;  %19176 = vst [vmem:[#allocation69_spill] sm:$0xff] %v14746_v45 }
  0xdf   : > { %v3240_v31 = vcombine.low %v13138_v10, %v19166_v57  ;;  %v19200_v10 = vld [vmem:[#allocation183_spill] sm:$0xff]  ;;  %v19201_v57 = vld [vmem:[#allocation157_spill] sm:$0xff] }
  0xe0   : > { %v11798_v53 = vpop.f32.mrf.mxu0  ;;  %v2779_v39 = vcombine.low %v19201_v57, %v19200_v10 }
  0xe1   : > { %v19168_v53 = vld [vmem:[#allocation70_spill] sm:$0xff]  ;;  %12037 = vmatmul.mubr.msk.f32.gmra.mxu1 %vm1203_vm6, %v3238_v14  ;;  %11969 = vmatmul.mubr.msk.f32.gmra.mxu0 %vm1203_vm6, %v2608_v56  ;;  %v19179_v14 = vld [vmem:[#allocation103_spill] sm:$0xff] }
  0xe2   : > { %v14711_v47 = vpop.f32.mrf.mxu0  ;;  %v2644_v50 = vcombine.low %v19169_v29, %v19168_v53  ;;  %v19172_v29 = vld [vmem:[#allocation94_spill] sm:$0xff]  ;;  %12039 = vmatprep.mubr.msk.f32.mxu1 %vm12715_vm1, %v18923_v33  ;;  %v11102_v40 = vcombine.high %v19174_v37, %v19179_v14  ;;  %11971 = vmatprep.mubr.msk.f32.mxu0 %vm12715_vm1, %v18923_v33  ;;  %v14843_v10 = vrot.slane %v2779_v39, %v12792_v9 }
  0xe3   : > { %v2660_v52 = vcombine.low %v19173_v28, %v19172_v29 }
  0xe4   : > { %v14733_v12 = vpop.f32.mrf.mxu1  ;;  %v11801_v58 = vpop.f32.mrf.mxu0  ;;  %v14750_v46 = vrot.slane %v2644_v50, %v12792_v9  ;;  %v14772_v53 = vrot.slane %v11102_v40, %v12792_v9  ;;  %v2728_v50 = vcombine.low %v19186_v19, %v19185_v49  ;;  %v19188_v40 = vld [vmem:[#allocation81_spill] sm:$0xff]  ;;  %19205 = vst [vmem:[#allocation129_spill] sm:$0xff] %v14843_v10 }
  0xe5   : > { %v3247_v58 = vrot.slane %v3240_v31, %v12792_v9  ;;  %v14753_v29 = vrot.slane %v2660_v52, %v12792_v9  ;;  %v19180_v31 = vld [vmem:[#allocation61_spill] sm:$0xff]  ;;  %v14769_v52 = vrot.slane %v2678_v43, %v12792_v9  ;;  %12040 = vmatmul.mubr.msk.f32.gmra.mxu1 %vm1203_vm6, %v14746_v45  ;;  %11972 = vmatmul.mubr.msk.f32.gmra.mxu0 %vm1203_vm6, %v2625_v20 }
  0xe6   : > { %v11875_v34 = vpop.f32.mrf.mxu1  ;;  %v14743_v38 = vpop.f32.mrf.mxu0  ;;  %19177 = vst [vmem:[#allocation64_spill] sm:$0xff] %v14750_v46  ;;  %v3250_v56 = vcombine.low %v19162_v24, %v19180_v31  ;;  %19182 = vst [vmem:[#allocation65_spill] sm:$0xff] %v14772_v53  ;;  %12042 = vmatprep.mubr.msk.f32.mxu1 %vm12715_vm1, %v18923_v33  ;;  %v19187_v24 = vld [vmem:[#allocation89_spill] sm:$0xff]  ;;  %11974 = vmatprep.mubr.msk.f32.mxu0 %vm12715_vm1, %v18923_v33  ;;  %v14799_v49 = vrot.slane %v2728_v50, %v12792_v9 }
  0xe7   : > { %19178 = vst [vmem:[#allocation53_spill] sm:$0xff] %v14753_v29  ;;  %v2634_v34 = vrot.slane %v2626_v4, %v12792_v9  ;;  %19181 = vst [vmem:[#allocation70_spill] sm:$0xff] %v14769_v52  ;;  %v3248_v4 = vcombine.low %v3247_v58, %v14698_v60  ;;  %v2661_v31 = vcombine.low %v19188_v40, %v19187_v24 }
  0xe8   : > { %v11804_v25 = vpop.f32.mrf.mxu0  ;;  %19190 = vst [vmem:[#allocation96_spill] sm:$0xff] %v14799_v49  ;;  %v2659_v50 = vcombine.low %v14731_v63, %v14750_v46 }
  0xe9   : > { %v19183_v25 = vld [vmem:[#allocation134_spill] sm:$0xff]  ;;  %v2642_v43 = vcombine.low %v2634_v34, %v14728_v5  ;;  %v19191_v5 = vld [vmem:[#allocation77_spill] sm:$0xff]  ;;  %12043 = vmatmul.mubr.msk.f32.gmra.mxu1 %vm1203_vm6, %v3248_v4  ;;  %v14805_v58 = vcombine.low %v2624_v11, %v2634_v34  ;;  %v19195_v4 = vld [vmem:[#allocation91_spill] sm:$0xff] }
  0xea   : > { %v2712_v16 = vcombine.low %v19184_v6, %v19183_v25  ;;  %v14781_v37 = vpop.f32.mrf.mxu1  ;;  %v3257_v25 = vrot.slane %v3250_v56, %v12792_v9  ;;  %v3259_v24 = vcombine.low %v19173_v28, %v19191_v5  ;;  %12045 = vmatprep.mubr.msk.f32.mxu1 %vm12715_vm1, %v18923_v33  ;;  %v2675_v56 = vrot.slane %v2661_v31, %v12792_v9  ;;  %v19196_v34 = vld [vmem:[#allocation160_spill] sm:$0xff]  ;;  %v19198_v28 = vld [vmem:[#allocation161_spill] sm:$0xff] }
  0xeb   : > { %19192 = vst [vmem:[#allocation103_spill] sm:$0xff] %v14805_v58  ;;  %11975 = vmatmul.mubr.msk.f32.gmra.mxu0 %vm1203_vm6, %v2642_v43  ;;  %v19199_v5 = vld [vmem:[#allocation156_spill] sm:$0xff] }
  0xec   : > { %v14791_v60 = vpop.f32.mrf.mxu0  ;;  %v14796_v19 = vrot.slane %v2712_v16, %v12792_v9  ;;  %v11878_v20 = vpop.f32.mrf.mxu1  ;;  %v19193_v16 = vld [vmem:[#allocation143_spill] sm:$0xff]  ;;  %11977 = vmatprep.mubr.msk.f32.mxu0 %vm12715_vm1, %v18923_v33  ;;  %v2763_v43 = vcombine.low %v19199_v5, %v19198_v28  ;;  %v3258_v36 = vcombine.low %v3257_v25, %v14731_v63  ;;  %v3266_v31 = vrot.slane %v3259_v24, %v12792_v9  ;;  %v19210_v63 = vld [vmem:[#allocation186_spill] sm:$0xff] }
  0xed   : > { %v11103_v41 = vcombine.high %v19193_v16, %v13824_v13  ;;  %v19194_v20 = vld [vmem:[#allocation92_spill] sm:$0xff]  ;;  %12046 = vmatmul.mubr.msk.f32.gmra.mxu1 %vm1203_vm6, %v14805_v58  ;;  %v2676_v25 = vcombine.low %v14753_v29, %v2675_v56  ;;  %v19206_v24 = vld [vmem:[#allocation115_spill] sm:$0xff] }
  0xee   : > { %19189 = vst [vmem:[#allocation94_spill] sm:$0xff] %v14796_v19  ;;  %v11807_v40 = vpop.f32.mrf.mxu0  ;;  %v2677_v11 = vcombine.low %v19195_v4, %v19194_v20  ;;  %v14840_v5 = vrot.slane %v2763_v43, %v12792_v9  ;;  %12048 = vmatprep.mubr.msk.f32.mxu1 %vm12715_vm1, %v18923_v33 }
  0xef   : > { %v19197_v40 = vld [vmem:[#allocation155_spill] sm:$0xff]  ;;  %v14834_v20 = vrot.slane %v11103_v41, %v12792_v9  ;;  %11978 = vmatmul.mubr.msk.f32.gmra.mxu0 %vm1203_vm6, %v2659_v50 }
  0xf0   : > { %v2762_v45 = vcombine.low %v19197_v40, %v19196_v34  ;;  %v14827_v3 = vpop.f32.mrf.mxu1  ;;  %19204 = vst [vmem:[#allocation118_spill] sm:$0xff] %v14840_v5  ;;  %v2685_v41 = vrot.slane %v2677_v11, %v12792_v9  ;;  %v19207_v34 = vld [vmem:[#allocation104_spill] sm:$0xff]  ;;  %11980 = vmatprep.mubr.msk.f32.mxu0 %vm12715_vm1, %v18923_v33  ;;  %v19208_v50 = vld [vmem:[#allocation107_spill] sm:$0xff]  ;;  %v3267_v11 = vcombine.low %v14750_v46, %v3266_v31 }
  0xf1   : > { %19202 = vst [vmem:[#allocation61_spill] sm:$0xff] %v14834_v20  ;;  %v3269_v43 = vcombine.low %v19179_v14, %v19208_v50  ;;  %12049 = vmatmul.mubr.msk.f32.gmra.mxu1 %vm1203_vm6, %v3258_v36 }
  0xf2   : > { %v14837_v4 = vrot.slane %v2762_v45, %v12792_v9  ;;  %v11881_v28 = vpop.f32.mrf.mxu1  ;;  %v2695_v45 = vcombine.low %v19207_v34, %v19206_v24  ;;  %v19211_v24 = vld [vmem:[#allocation121_spill] sm:$0xff]  ;;  %12051 = vmatprep.mubr.msk.f32.mxu1 %vm12715_vm1, %v18923_v33  ;;  %v2693_v14 = vcombine.low %v2685_v41, %v14769_v52 }
  0xf3   : > { %v19209_v28 = vld [vmem:[#allocation182_spill] sm:$0xff]  ;;  %v19212_v34 = vld [vmem:[#allocation117_spill] sm:$0xff]  ;;  %11981 = vmatmul.mubr.msk.f32.gmra.mxu0 %vm1203_vm6, %v2676_v25  ;;  %v3276_v46 = vrot.slane %v3269_v43, %v12792_v9 }
  0xf4   : > { %19203 = vst [vmem:[#allocation134_spill] sm:$0xff] %v14837_v4  ;;  %v2797_v29 = vcombine.low %v19210_v63, %v19209_v28  ;;  %v2711_v30 = vcombine.low %v19212_v34, %v19211_v24  ;;  %v11104_v39 = vcombine.high %v19209_v28, %v19213_v32  ;;  %v2709_v63 = vrot.slane %v2695_v45, %v12792_v9  ;;  %v19216_v24 = vld [vmem:[#allocation221_spill] sm:$0xff]  ;;  %v19217_v34 = vld [vmem:[#allocation207_spill] sm:$0xff] }
  0xf5   : > { %v14862_v58 = vpop.f32.mrf.mxu0  ;;  %11983 = vmatprep.mubr.msk.f32.mxu0 %vm12715_vm1, %v18923_v33  ;;  %v2831_v25 = vcombine.low %v19217_v34, %v19216_v24  ;;  %v19218_v28 = vld [vmem:[#allocation141_spill] sm:$0xff]  ;;  %12052 = vmatmul.mubr.msk.f32.gmra.mxu1 %vm1203_vm6, %v3267_v11  ;;  %v19227_v11 = vld [vmem:[#allocation14_spill] sm:$0xff] }
  0xf6   : > { %v14878_v36 = vrot.slane %v2797_v29, %v12792_v9  ;;  %v14881_v31 = vrot.slane %v11104_v39, %v12792_v9  ;;  %v2729_v45 = vcombine.low %v19219_v48, %v19218_v28  ;;  %v14893_v29 = vcombine.low %v2675_v56, %v2685_v41  ;;  %12054 = vmatprep.mubr.msk.f32.mxu1 %vm12715_vm1, %v18923_v33  ;;  %v19224_v56 = vld [vmem:[#allocation11_spill] sm:$0xff]  ;;  %v19226_v28 = vld [vmem:[#allocation12_spill] sm:$0xff] }
  0xf7   : > { %v11810_v50 = vpop.f32.mrf.mxu0  ;;  %v2719_v39 = vrot.slane %v2711_v30, %v12792_v9  ;;  %11984 = vmatmul.mubr.msk.f32.gmra.mxu0 %vm1203_vm6, %v2693_v14  ;;  %v2710_v48 = vcombine.low %v14772_v53, %v2709_v63  ;;  %v19223_v30 = vld [vmem:[#allocation9_spill] sm:$0xff]  ;;  %v19228_v14 = vcombine.low %v19226_v28, %v19227_v11  ;;  %v3277_v53 = vcombine.low %v14769_v52, %v3276_v46  ;;  %v19230_v28 = vld [vmem:[#allocation128_spill] sm:$0xff] }
  0xf8   : > { %19214 = vst [vmem:[#allocation132_spill] sm:$0xff] %v14878_v36  ;;  %19215 = vst [vmem:[#allocation89_spill] sm:$0xff] %v14881_v31  ;;  %v14885_v40 = vpop.f32.mrf.mxu1  ;;  %v2847_v50 = vcombine.low %v14284_v1, %v14266_v15  ;;  %v14905_v15 = vrot.slane %v2831_v25, %v12792_v9  ;;  %v19225_v41 = vcombine.low %v19223_v30, %v19224_v56  ;;  %11986 = vmatprep.mubr.msk.f32.mxu0 %vm12715_vm1, %v18923_v33  ;;  %v19229_v25 = vld [vmem:[#allocation232_spill] sm:$0xff] }
  0xf9   : > { %19220 = vst [vmem:[#allocation81_spill] sm:$0xff] %v14893_v29  ;;  %v11105_v18 = vcombine.high %v19229_v25, %v14338_v54  ;;  %v2743_v61 = vrot.slane %v2729_v45, %v12792_v9  ;;  %v2881_v56 = vcombine.low %v14417_v35, %v14437_v2  ;;  %12055 = vmatmul.mubr.msk.f32.gmra.mxu1 %vm1203_vm6, %v14893_v29  ;;  %v14944_v45 = vld [vmem:[%s18521_s5] ss:$0 sm:$0xff] }
  0xfa   : > { %v11884_v24 = vpop.f32.mrf.mxu1  ;;  %v14898_v51 = vpop.f32.mrf.mxu0  ;;  %19221 = vst [vmem:[#allocation143_spill] sm:$0xff] %v14905_v15  ;;  %v14908_v1 = vrot.slane %v2847_v50, %v12792_v9  ;;  %v14914_v43 = vrot.slane %v19225_v41, %v12792_v9  ;;  %v2727_v41 = vcombine.low %v2719_v39, %v14796_v19  ;;  %v3279_v11 = vcombine.low %v19184_v6, %v19230_v28 }
  0xfb   : > { %v14920_v24 = vrot.slane %v19228_v14, %v12792_v9  ;;  %v19231_v14 = vld [vmem:[#allocation144_spill] sm:$0xff]  ;;  %v3328_v46 = vcombine.low %v14338_v54, %v14400_v42  ;;  %11987 = vmatmul.mubr.msk.f32.gmra.mxu0 %vm1203_vm6, %v2710_v48  ;;  %12057 = vmatprep.mubr.msk.f32.mxu1 %vm12715_vm1, %v18923_v33  ;;  %v14950_v35 = vrot.slane %v11105_v18, %v12792_v9 }
  0xfc   : > { %19222 = vst [vmem:[#allocation92_spill] sm:$0xff] %v14908_v1  ;;  %v11813_v50 = vpop.f32.mrf.mxu0  ;;  %v14953_v2 = vrot.slane %v2881_v56, %v12792_v9  ;;  %11989 = vmatprep.mubr.msk.f32.mxu0 %vm12715_vm1, %v18923_v33  ;;  %v14961_v42 = vcombine.low %v2709_v63, %v2719_v39  ;;  %v2744_v30 = vcombine.low %v14799_v49, %v2743_v61  ;;  %v19240_v18 = vld [vmem:[#allocation172_spill] sm:$0xff] }
  0xfd   : > { %v2745_v50 = vcombine.low %v19231_v14, %v19193_v16  ;;  %19232 = vst [vmem:[#allocation91_spill] sm:$0xff] %v14950_v35  ;;  %v2882_v14 = vcombine.low %v12799_v17, %v12823_v26  ;;  %v14964_v48 = vrot.slane %v3328_v46, %v12792_v9  ;;  %v1448_v56 = vadd.f32 %v14944_v45, %v14683_v44 }
  0xfe   : > { %19233 = vst [vmem:[#allocation160_spill] sm:$0xff] %v14953_v2  ;;  %v14957_v54 = vpop.f32.mrf.mxu1  ;;  %19234 = vst [vmem:[#allocation155_spill] sm:$0xff] %v14961_v42  ;;  %v2898_v17 = vcombine.low %v12814_v21, %v14539_v23  ;;  %12058 = vmatmul.mubr.msk.f32.gmra.mxu1 %vm1203_vm6, %v3277_v53  ;;  %v3286_v63 = vrot.slane %v3279_v11, %v12792_v9 }
  0xff   : > { %v2753_v39 = vrot.slane %v2745_v50, %v12792_v9  ;;  %11990 = vmatmul.mubr.msk.f32.gmra.mxu0 %vm1203_vm6, %v2727_v41  ;;  %12060 = vmatprep.mubr.msk.f32.mxu1 %vm12715_vm1, %v18923_v33  ;;  %v14984_v23 = vrot.slane %v2882_v14, %v12792_v9  ;;  %v14990_v53 = vadd.f32 %v14733_v12, %v1448_v56  ;;  %v19239_v56 = vld [vmem:[#allocation176_spill] sm:$0xff] }
 0x100   : > { %v11887_v26 = vpop.f32.mrf.mxu1  ;;  %v14987_v44 = vrot.slane %v2898_v17, %v12792_v9  ;;  %11992 = vmatprep.mubr.msk.f32.mxu0 %vm12715_vm1, %v18923_v33  ;;  %v1449_v50 = vadd.f32 %v14944_v45, %v14711_v47  ;;  %v3287_v14 = vcombine.low %v3286_v63, %v14799_v49  ;;  %v19238_v17 = vld [vmem:[#allocation152_spill] sm:$0xff]  ;;  %v2780_v19 = vcombine.low %v19240_v18, %v19239_v56  ;;  %v19266_v49 = vld [vmem:[#allocation97_spill] sm:$0xff] }
 0x101   : > { %19235 = vst [vmem:[#allocation161_spill] sm:$0xff] %v14984_v23  ;;  %19237 = vst [vmem:[#allocation183_spill] sm:$0xff] %v14990_v53  ;;  %v3289_v12 = vcombine.low %v13824_v13, %v19238_v17  ;;  %v2761_v47 = vcombine.low %v2753_v39, %v14834_v20  ;;  %v1450_v13 = vadd.f32 %v14944_v45, %v14743_v38  ;;  %v19245_v38 = vld [vmem:[#allocation181_spill] sm:$0xff] }
 0x102   : > { %19236 = vst [vmem:[#allocation156_spill] sm:$0xff] %v14987_v44  ;;  %12061 = vmatmul.mubr.msk.f32.gmra.mxu1 %vm1203_vm6, %v14961_v42  ;;  %v15006_v46 = vadd.f32 %v14781_v37, %v1449_v50  ;;  %v15016_v63 = vcombine.low %v2743_v61, %v2753_v39  ;;  %v19243_v50 = vld [vmem:[#allocation167_spill] sm:$0xff]  ;;  %v2778_v61 = vcombine.low %v14837_v4, %v14840_v5  ;;  %v19246_v39 = vld [vmem:[#allocation180_spill] sm:$0xff] }
 0x103   : > { %v1354_v11 = vpop.f32.mrf.mxu0  ;;  %11993 = vmatmul.mubr.msk.f32.gmra.mxu0 %vm1203_vm6, %v2744_v30  ;;  %12063 = vmatprep.mubr.msk.f32.mxu1 %vm12715_vm1, %v18923_v33  ;;  %v3296_v37 = vrot.slane %v3289_v12, %v12792_v9  ;;  %v2794_v30 = vrot.slane %v2780_v19, %v12792_v9  ;;  %v3298_v17 = vcombine.low %v19201_v57, %v19243_v50  ;;  %v19269_v42 = vld [vmem:[#allocation100_spill] sm:$0xff] }
 0x104   : > { %19241 = vst [vmem:[#allocation157_spill] sm:$0xff] %v15006_v46  ;;  %11995 = vmatprep.mubr.msk.f32.mxu0 %vm12715_vm1, %v18923_v33  ;;  %19242 = vst [vmem:[#allocation115_spill] sm:$0xff] %v15016_v63  ;;  %v15024_v56 = vadd.f32 %v14827_v3, %v1450_v13  ;;  %v1451_v19 = vadd.f32 %v14944_v45, %v14791_v60  ;;  %v1452_v60 = vadd.f32 %v14944_v45, %v14862_v58  ;;  %v19320_v46 = vld [vmem:[#allocation196_spill] sm:$0xff] }
 0x105   : > { %v11816_v26 = vpop.f32.mrf.mxu0  ;;  %v2795_v41 = vcombine.low %v14843_v10, %v2794_v30 }
 0x106   : > { %v2364_v26 = vpop.f32.mrf.mxu1  ;;  %12064 = vmatmul.mubr.msk.f32.gmra.mxu1 %vm1203_vm6, %v3287_v14  ;;  %19244 = vst [vmem:[#allocation104_spill] sm:$0xff] %v15024_v56  ;;  %v2796_v14 = vcombine.low %v19246_v39, %v19245_v38  ;;  %v15038_v3 = vadd.f32 %v14885_v40, %v1451_v19  ;;  %v3305_v38 = vrot.slane %v3298_v17, %v12792_v9  ;;  %v19248_v39 = vld [vmem:[#allocation202_spill] sm:$0xff]  ;;  %v19249_v19 = vld [vmem:[#allocation193_spill] sm:$0xff]  ;;  %v19317_v56 = vld [vmem:[#allocation192_spill] sm:$0xff] }
 0x107   : > { %11996 = vmatmul.mubr.msk.f32.gmra.mxu0 %vm1203_vm6, %v2761_v47  ;;  %12066 = vmatprep.mubr.msk.f32.mxu1 %vm12715_vm1, %v18923_v33  ;;  %v15058_v17 = vadd.f32 %v14957_v54, %v1452_v60  ;;  %v19258_v60 = vld [vmem:[#allocation84_spill] sm:$0xff] }
 0x108   : > { %v11890_v18 = vpop.f32.mrf.mxu1  ;;  %11998 = vmatprep.mubr.msk.f32.mxu0 %vm12715_vm1, %v18923_v33  ;;  %19247 = vst [vmem:[#allocation107_spill] sm:$0xff] %v15038_v3  ;;  %v2804_v40 = vrot.slane %v2796_v14, %v12792_v9  ;;  %v3306_v14 = vcombine.low %v14840_v5, %v3305_v38  ;;  %v19257_v38 = vld [vmem:[#allocation80_spill] sm:$0xff] }
 0x109   : > { %v3297_v18 = vcombine.low %v3296_v37, %v14837_v4  ;;  %v1453_v37 = vadd.f32 %v14944_v45, %v14898_v51  ;;  %19250 = vst [vmem:[#allocation186_spill] sm:$0xff] %v15058_v17 }
 0x10a   : > { %12067 = vmatmul.mubr.msk.f32.gmra.mxu1 %vm1203_vm6, %v15016_v63  ;;  %v2812_v54 = vcombine.low %v2804_v40, %v14878_v36 }
 0x10b   : > { %v1359_v12 = vpop.f32.mrf.mxu0  ;;  %11999 = vmatmul.mubr.msk.f32.gmra.mxu0 %vm1203_vm6, %v2778_v61  ;;  %12069 = vmatprep.mubr.msk.f32.mxu1 %vm12715_vm1, %v18923_v33  ;;  %v19251_v61 = vld [vmem:[#allocation194_spill] sm:$0xff]  ;;  %v15062_v20 = vadd.f32 %v2364_v26, %v1453_v37  ;;  %v15076_v26 = vcombine.high %v14593_v7, %v14593_v7  ;;  %v19259_v37 = vcombine.low %v19257_v38, %v19258_v60 }
 0x10c   : > { %12001 = vmatprep.mubr.msk.f32.mxu0 %vm12715_vm1, %v18923_v33  ;;  %v3308_v10 = vcombine.low %v19213_v32, %v19251_v61  ;;  %v19260_v61 = vld [vmem:[#allocation85_spill] sm:$0xff] }
 0x10d   : > { %v2369_v47 = vpop.f32.mrf.mxu1  ;;  %v11819_v13 = vpop.f32.mrf.mxu0  ;;  %19252 = vst [vmem:[#allocation121_spill] sm:$0xff] %v15062_v20 }
 0x10e   : > { %v2814_v13 = vcombine.low %v19249_v19, %v19248_v39  ;;  %12070 = vmatmul.mubr.msk.f32.gmra.mxu1 %vm1203_vm6, %v3297_v18  ;;  %v19253_v39 = vld [vmem:[#allocation211_spill] sm:$0xff]  ;;  %v19254_v19 = vld [vmem:[#allocation206_spill] sm:$0xff]  ;;  %v15080_v18 = vcombine.low %v2794_v30, %v2804_v40 }
 0x10f   : > { %v11893_v4 = vpop.f32.mrf.mxu1  ;;  %v2830_v51 = vcombine.low %v19254_v19, %v19253_v39  ;;  %12002 = vmatmul.mubr.msk.f32.gmra.mxu0 %vm1203_vm6, %v2795_v41  ;;  %12072 = vmatprep.mubr.msk.f32.mxu1 %vm12715_vm1, %v18923_v33  ;;  %v3315_v41 = vrot.slane %v3308_v10, %v12792_v9  ;;  %v19261_v39 = vld [vmem:[#allocation87_spill] sm:$0xff] }
 0x110   : > { %v1364_v58 = vpop.f32.mrf.mxu0  ;;  %v1454_v4 = vadd.f32 %v14944_v45, %v1354_v11  ;;  %v2828_v32 = vrot.slane %v2814_v13, %v12792_v9  ;;  %12004 = vmatprep.mubr.msk.f32.mxu0 %vm12715_vm1, %v18923_v33  ;;  %19255 = vst [vmem:[#allocation117_spill] sm:$0xff] %v15080_v18  ;;  %v15090_v13 = vrot.slane %v19259_v37, %v12792_v9  ;;  %v19264_v10 = vld [vmem:[#allocation223_spill] sm:$0xff] }
 0x111   : > { %v19262_v19 = vcombine.low %v19260_v61, %v19261_v39  ;;  %v2838_v30 = vrot.slane %v2830_v51, %v12792_v9  ;;  %v19268_v37 = vld [vmem:[#allocation99_spill] sm:$0xff]  ;;  %v1456_v20 = vadd.f32 %v14944_v45, %v1364_v58 }
 0x112   : > { %v11822_v63 = vpop.f32.mrf.mxu0  ;;  %v15082_v11 = vadd.f32 %v2369_v47, %v1454_v4  ;;  %12073 = vmatmul.mubr.msk.f32.gmra.mxu1 %vm1203_vm6, %v3306_v14  ;;  %v19263_v47 = vld [vmem:[#allocation230_spill] sm:$0xff]  ;;  %v19265_v4 = vld [vmem:[#allocation88_spill] sm:$0xff]  ;;  %v19270_v61 = vcombine.low %v19268_v37, %v19269_v42  ;;  %v2829_v14 = vcombine.low %v14881_v31, %v2828_v32  ;;  %v19272_v42 = vld [vmem:[#allocation219_spill] sm:$0xff] }
 0x113   : > { %v1455_v63 = vadd.f32 %v14944_v45, %v1359_v12  ;;  %v15096_v5 = vrot.slane %v19262_v19, %v12792_v9  ;;  %v2848_v40 = vcombine.low %v19264_v10, %v19263_v47  ;;  %v19267_v38 = vcombine.low %v19265_v4, %v19266_v49  ;;  %12005 = vmatmul.mubr.msk.f32.gmra.mxu0 %vm1203_vm6, %v2812_v54  ;;  %v19273_v4 = vld [vmem:[#allocation102_spill] sm:$0xff]  ;;  %v19277_v51 = vld [vmem:[#allocation111_spill] sm:$0xff]  ;;  %v19278_v31 = vld [vmem:[#allocation113_spill] sm:$0xff] }
 0x114   : > { %19256 = vst [vmem:[#allocation190_spill] sm:$0xff] %v15082_v11  ;;  %v15112_v39 = vrot.slane %v19270_v61, %v12792_v9  ;;  %12075 = vmatprep.mubr.msk.f32.mxu1 %vm12715_vm1, %v18923_v33  ;;  %v4039_v49 = vcombine.low %v14580_v27, %v14615_v62  ;;  %12007 = vmatprep.mubr.msk.f32.mxu0 %vm12715_vm1, %v18923_v33  ;;  %v19281_v62 = vld [vmem:[#allocation123_spill] sm:$0xff] }
 0x115   : > { %v15106_v60 = vrot.slane %v19267_v38, %v12792_v9  ;;  %v3318_v47 = vcombine.low %v19217_v34, %v19272_v42  ;;  %v19274_v38 = vld [vmem:[#allocation109_spill] sm:$0xff]  ;;  %v19279_v52 = vcombine.low %v19277_v51, %v19278_v31  ;;  %v15159_v31 = vcombine.low %v2828_v32, %v2838_v30  ;;  %v19287_v51 = vld [vmem:[#allocation127_spill] sm:$0xff]  ;;  %v19296_v32 = vld [vmem:[#allocation150_spill] sm:$0xff] }
 0x116   : > { %v2374_v12 = vpop.f32.mrf.mxu1  ;;  %v19275_v37 = vcombine.low %v19273_v4, %v19274_v38  ;;  %v19283_v4 = vld [vmem:[#allocation124_spill] sm:$0xff]  ;;  %v19284_v38 = vld [vmem:[#allocation126_spill] sm:$0xff]  ;;  %12076 = vmatmul.mubr.msk.f32.gmra.mxu1 %vm1203_vm6, %v15080_v18  ;;  %v2897_v34 = vcombine.low %v14953_v2, %v14984_v23 }
 0x117   : > { %v15120_v19 = vadd.f32 %v2374_v12, %v1455_v63  ;;  %v19276_v63 = vld [vmem:[#allocation233_spill] sm:$0xff]  ;;  %v15142_v29 = vrot.slane %v19279_v52, %v12792_v9  ;;  %19286 = vst [vmem:[#allocation141_spill] sm:$0xff] %v15159_v31  ;;  %v2862_v52 = vrot.slane %v2848_v40, %v12792_v9  ;;  %12008 = vmatmul.mubr.msk.f32.gmra.mxu0 %vm1203_vm6, %v2829_v14  ;;  %v19290_v14 = vld [vmem:[#allocation139_spill] sm:$0xff] }
 0x118   : > { %v11896_v54 = vpop.f32.mrf.mxu1  ;;  %v15134_v61 = vrot.slane %v19275_v37, %v12792_v9  ;;  %v2864_v12 = vcombine.low %v19276_v63, %v19229_v25  ;;  %v19285_v37 = vcombine.low %v19283_v4, %v19284_v38  ;;  %v3316_v63 = vcombine.low %v14878_v36, %v3315_v41  ;;  %12078 = vmatprep.mubr.msk.f32.mxu1 %vm12715_vm1, %v18923_v33  ;;  %v19297_v41 = vld [vmem:[#allocation151_spill] sm:$0xff]  ;;  %v19327_v25 = vld [vmem:[#allocation205_spill] sm:$0xff] }
 0x119   : > { %19271 = vst [vmem:[#allocation221_spill] sm:$0xff] %v15120_v19  ;;  %v1369_v27 = vpop.f32.mrf.mxu0  ;;  %v19280_v54 = vld [vmem:[#allocation114_spill] sm:$0xff]  ;;  %v2846_v4 = vcombine.low %v2838_v30, %v14905_v15  ;;  %12010 = vmatprep.mubr.msk.f32.mxu0 %vm12715_vm1, %v18923_v33  ;;  %v3325_v40 = vrot.slane %v3318_v47, %v12792_v9  ;;  %v19298_v36 = vcombine.low %v19296_v32, %v19297_v41 }
 0x11a   : > { %v19282_v10 = vcombine.low %v19280_v54, %v19281_v62  ;;  %v15154_v11 = vrot.slane %v19285_v37, %v12792_v9  ;;  %v19288_v62 = vld [vmem:[#allocation136_spill] sm:$0xff]  ;;  %v19293_v30 = vld [vmem:[#allocation142_spill] sm:$0xff]  ;;  %v2872_v47 = vrot.slane %v2864_v12, %v12792_v9  ;;  %12079 = vmatmul.mubr.msk.f32.gmra.mxu1 %vm1203_vm6, %v3316_v63  ;;  %v2863_v58 = vcombine.low %v14908_v1, %v2862_v52 }
 0x11b   : > { %v11825_v38 = vpop.f32.mrf.mxu0  ;;  %v19291_v37 = vld [vmem:[#allocation140_spill] sm:$0xff]  ;;  %v15195_v18 = vrot.slane %v19298_v36, %v12792_v9  ;;  %v15213_v36 = vld [vmem:[%s12783_s28 + $0xe8] sm:$0xff]  ;;  %v19305_v41 = vld [vmem:[#allocation170_spill] sm:$0xff]  ;;  %12011 = vmatmul.mubr.msk.f32.gmra.mxu0 %vm1203_vm6, %v2846_v4  ;;  %12081 = vmatprep.mubr.msk.f32.mxu1 %vm12715_vm1, %v18923_v33 }
 0x11c   : > { %v15148_v19 = vrot.slane %v19282_v10, %v12792_v9  ;;  %v19289_v10 = vcombine.low %v19287_v51, %v19288_v62  ;;  %v19292_v51 = vcombine.low %v19290_v14, %v19291_v37  ;;  %v19299_v14 = vld [vmem:[#allocation153_spill] sm:$0xff]  ;;  %v19300_v37 = vld [vmem:[#allocation162_spill] sm:$0xff]  ;;  %12013 = vmatprep.mubr.msk.f32.mxu0 %vm12715_vm1, %v18923_v33 }
 0x11e   : > { %v15166_v54 = vrot.slane %v19289_v10, %v12792_v9  ;;  %v15183_v62 = vrot.slane %v19292_v51, %v12792_v9  ;;  %v19294_v10 = vld [vmem:[#allocation147_spill] sm:$0xff]  ;;  %v19301_v51 = vcombine.low %v19299_v14, %v19300_v37  ;;  %v2379_v32 = vpop.f32.mrf.mxu1  ;;  %v19306_v14 = vld [vmem:[#allocation174_spill] sm:$0xff]  ;;  %12082 = vmatmul.mubr.msk.f32.gmra.mxu1 %vm1203_vm6, %v15159_v31 }
 0x11f   : > { %v19295_v38 = vcombine.low %v19293_v30, %v19294_v10  ;;  %v19302_v30 = vld [vmem:[#allocation164_spill] sm:$0xff]  ;;  %v19303_v10 = vld [vmem:[#allocation166_spill] sm:$0xff]  ;;  %v19307_v37 = vcombine.low %v19305_v41, %v19306_v14  ;;  %v15235_v12 = vadd.f32 %v2379_v32, %v1456_v20  ;;  %v19312_v14 = vcombine.low %v14546_v22, %v14565_v8  ;;  %v19313_v20 = vld [vmem:[#allocation179_spill] sm:$0xff]  ;;  %12014 = vmatmul.mubr.msk.f32.gmra.mxu0 %vm1203_vm6, %v2863_v58 }
 0x120   : > { %v15203_v17 = vrot.slane %v19301_v51, %v12792_v9  ;;  %v11899_v4 = vpop.f32.mrf.mxu1  ;;  %v19314_v32 = vld [vmem:[#allocation187_spill] sm:$0xff]  ;;  %v19316_v41 = vld [vmem:[#allocation189_spill] sm:$0xff]  ;;  %12084 = vmatprep.mubr.msk.f32.mxu1 %vm12715_vm1, %v18923_v33  ;;  %12016 = vmatprep.mubr.msk.f32.mxu0 %vm12715_vm1, %v18923_v33 }
 0x121   : > { %v15189_v15 = vrot.slane %v19295_v38, %v12792_v9  ;;  %v19304_v38 = vcombine.low %v19302_v30, %v19303_v10  ;;  %v15223_v51 = vrot.slane %v19307_v37, %v12792_v9  ;;  %v19308_v30 = vld [vmem:[#allocation177_spill] sm:$0xff]  ;;  %v19309_v10 = vld [vmem:[#allocation178_spill] sm:$0xff]  ;;  %19311 = vst [vmem:[#allocation133_spill] sm:$0xff] %v15235_v12  ;;  %v15243_v37 = vrot.slane %v19312_v14, %v12792_v9 }
 0x122   : > { %v19318_v22 = vcombine.low %v19316_v41, %v19317_v56  ;;  %v15262_v14 = vrot.slane %v4039_v49, %v12792_v9  ;;  %v3326_v4 = vcombine.low %v3325_v40, %v14908_v1  ;;  %v2880_v56 = vcombine.low %v2872_v47, %v14950_v35  ;;  %v19323_v40 = vld [vmem:[#allocation203_spill] sm:$0xff]  ;;  %v19332_v35 = vld [vmem:[#allocation212_spill] sm:$0xff] }
 0x123   : > { %v15209_v3 = vrot.slane %v19304_v38, %v12792_v9  ;;  %v19310_v38 = vcombine.low %v19308_v30, %v19309_v10  ;;  %v1374_v30 = vpop.f32.mrf.mxu0  ;;  %v15267_v10 = vrot.slane %v15213_v36, %v12792_v9  ;;  %v1457_v49 = vadd.f32 %v14944_v45, %v1369_v27  ;;  %v19336_v27 = vld [vmem:[#allocation217_spill] sm:$0xff] }
 0x124   : > { %v15259_v8 = vrot.slane %v19318_v22, %v12792_v9  ;;  %19319 = vst [vmem:[#allocation9_spill] sm:$0xff] %v15262_v14  ;;  %v19324_v22 = vld [vmem:[#allocation204_spill] sm:$0xff]  ;;  %v2384_v58 = vpop.f32.mrf.mxu1  ;;  %12085 = vmatmul.mubr.msk.f32.gmra.mxu1 %vm1203_vm6, %v3326_v4  ;;  %12017 = vmatmul.mubr.msk.f32.gmra.mxu0 %vm1203_vm6, %v2880_v56  ;;  %v19351_v4 = vcombine.low %v14408_v0, %v14446_v59  ;;  %v19356_v59 = vld [vmem:[#allocation247_spill] sm:$0xff] }
 0x125   : > { %v15229_v63 = vrot.slane %v19310_v38, %v12792_v9  ;;  %v19315_v38 = vcombine.low %v19313_v20, %v19314_v32  ;;  %v19321_v20 = vld [vmem:[#allocation201_spill] sm:$0xff]  ;;  %v11828_v41 = vpop.f32.mrf.mxu0  ;;  %v19325_v1 = vcombine.low %v19323_v40, %v19324_v22  ;;  %v19333_v40 = vld [vmem:[#allocation215_spill] sm:$0xff]  ;;  %12087 = vmatprep.mubr.msk.f32.mxu1 %vm12715_vm1, %v18923_v33  ;;  %12019 = vmatprep.mubr.msk.f32.mxu0 %vm12715_vm1, %v18923_v33 }
 0x126   : > { %v19322_v32 = vcombine.low %v19320_v46, %v19321_v20  ;;  %v19328_v46 = vld [vmem:[#allocation214_spill] sm:$0xff]  ;;  %v15295_v41 = vcombine.low %v2862_v52, %v2872_v47  ;;  %v19337_v47 = vld [vmem:[#allocation224_spill] sm:$0xff]  ;;  %v15329_v52 = vadd.f32 %v2384_v58, %v1457_v49  ;;  %v19349_v58 = vld [vmem:[#allocation239_spill] sm:$0xff]  ;;  %v19380_v14 = vcombine.low %v14914_v43, %v14920_v24 }
 0x127   : > { %v15253_v12 = vrot.slane %v19315_v38, %v12792_v9  ;;  %v15284_v53 = vrot.slane %v19325_v1, %v12792_v9  ;;  %v19329_v20 = vcombine.low %v19327_v25, %v19328_v46  ;;  %v19334_v1 = vcombine.low %v19332_v35, %v19333_v40  ;;  %v19340_v35 = vld [vmem:[#allocation225_spill] sm:$0xff]  ;;  %v19341_v40 = vld [vmem:[#allocation228_spill] sm:$0xff]  ;;  %v19348_v49 = vld [vmem:[#allocation238_spill] sm:$0xff] }
 0x128   : > { %v15273_v38 = vrot.slane %v19322_v32, %v12792_v9  ;;  %19331 = vst [vmem:[#allocation14_spill] sm:$0xff] %v15295_v41  ;;  %v3337_v25 = vcombine.low %v12814_v21, %v14568_v55  ;;  %v19338_v46 = vcombine.low %v19336_v27, %v19337_v47  ;;  %v15327_v21 = vcombine.high %v15267_v10, %v15267_v10  ;;  %v19357_v0 = vld [vmem:[#allocation251_spill] sm:$0xff] }
 0x129   : > { %19326 = vst [vmem:[#allocation11_spill] sm:$0xff] %v15284_v53  ;;  %v15290_v32 = vrot.slane %v19329_v20, %v12792_v9  ;;  %v15302_v22 = vrot.slane %v19334_v1, %v12792_v9  ;;  %v19342_v1 = vcombine.low %v19340_v35, %v19341_v40  ;;  %19344 = vst [vmem:[#allocation176_spill] sm:$0xff] %v15329_v52  ;;  %v19345_v40 = vld [vmem:[#allocation229_spill] sm:$0xff]  ;;  %v1379_v53 = vpop.f32.mrf.mxu0  ;;  %12088 = vmatmul.mubr.msk.f32.gmra.mxu1 %vm1203_vm6, %v15295_v41 }
 0x12a   : > { %v15315_v20 = vrot.slane %v19338_v46, %v12792_v9  ;;  %v3193_v47 = vcombine.high %v15213_v36, %v15213_v36  ;;  %v11902_v46 = vpop.f32.mrf.mxu1  ;;  %v19350_v52 = vcombine.low %v19348_v49, %v19349_v58  ;;  %v3344_v58 = vrot.slane %v3337_v25, %v12792_v9  ;;  %v19364_v25 = vld [vmem:[#allocation15_spill] sm:$0xff]  ;;  %12020 = vmatmul.mubr.msk.f32.gmra.mxu0 %vm1203_vm6, %v2897_v34 }
 0x12b   : > { %19330 = vst [vmem:[#allocation12_spill] sm:$0xff] %v15290_v32  ;;  %19335 = vst [vmem:[#allocation128_spill] sm:$0xff] %v15302_v22  ;;  %v15321_v31 = vrot.slane %v19342_v1, %v12792_v9  ;;  %v19346_v1 = vld [vmem:[#allocation235_spill] sm:$0xff]  ;;  %v15358_v46 = vrot.slane %v19351_v4, %v12792_v9  ;;  %v19358_v4 = vcombine.low %v19356_v59, %v19357_v0  ;;  %v19363_v22 = vld [vmem:[#allocation17_spill] sm:$0xff]  ;;  %12090 = vmatprep.mubr.msk.f32.mxu1 %vm12715_vm1, %v18923_v33 }
 0x12c   : > { %19339 = vst [vmem:[#allocation144_spill] sm:$0xff] %v15315_v20  ;;  %v19347_v55 = vcombine.low %v19345_v40, %v19346_v1  ;;  %v15348_v27 = vrot.slane %v19350_v52, %v12792_v9  ;;  %v19353_v40 = vld [vmem:[#allocation245_spill] sm:$0xff]  ;;  %v19355_v52 = vrot.slane %v15267_v10, 7  ;;  %v3681_v32 = vcombine.low %v19364_v25, %v19363_v22  ;;  %v11831_v22 = vpop.f32.mrf.mxu0  ;;  %12022 = vmatprep.mubr.msk.f32.mxu0 %vm12715_vm1, %v18923_v33  ;;  %v19588_v59 = vld [vmem:[#allocation264_spill] sm:$0xff] }
 0x12d   : > { %19343 = vst [vmem:[#allocation152_spill] sm:$0xff] %v15321_v31  ;;  %v15377_v36 = vrot.slane %v19358_v4, %v12792_v9  ;;  %v3347_v0 = vcombine.low %v15076_v26, %v15267_v10  ;;  %v19365_v4 = vld [vmem:[#allocation18_spill] sm:$0xff]  ;;  %v19367_v25 = vrot.slane %v15327_v21, 7  ;;  %v2389_v41 = vpop.f32.mrf.mxu1 }
 0x12e   : > { %v15342_v42 = vrot.slane %v19347_v55, %v12792_v9  ;;  %v19352_v55 = vld [vmem:[#allocation244_spill] sm:$0xff]  ;;  %v3653_v56 = vrot.slane %v19355_v52, 2  ;;  %v19362_v52 = vld [vmem:[#allocation257_spill] sm:$0xff]  ;;  %v3689_v22 = vrot.slane %v3681_v32, %v12792_v9  ;;  %12023 = vmatmul.mubr.msk.f32.gmra.mxu0 %vm1203_vm6, %v14987_v44  ;;  %v19371_v32 = vld [vmem:[#allocation26_spill] sm:$0xff] }
 0x12f   : > { %v19354_v1 = vcombine.low %v19352_v55, %v19353_v40  ;;  %v19359_v55 = vld [vmem:[#allocation252_spill] sm:$0xff]  ;;  %v19360_v40 = vld [vmem:[#allocation253_spill] sm:$0xff]  ;;  %v3346_v20 = vcombine.low %v19362_v52, %v14593_v7  ;;  %v19369_v52 = vcombine.low %v14964_v48, %v14953_v2  ;;  %12104 = vmatprep.mubr.msk.f32.mxu0 %vm12715_vm1, %v18923_v33  ;;  %v19377_v44 = vld [vmem:[#allocation30_spill] sm:$0xff] }
 0x130   : > { %v15408_v35 = vsel %vm12836_vm9, %v3653_v56, %v19367_v25  ;;  %v3361_v56 = vrot.slane %v3347_v0, %v12792_v9  ;;  %v11905_v0 = vpop.f32.mrf.mxu1 }
 0x131   : > { %v15364_v49 = vrot.slane %v19354_v1, %v12792_v9  ;;  %v19361_v1 = vcombine.low %v19359_v55, %v19360_v40  ;;  %v19366_v55 = vld [vmem:[#allocation20_spill] sm:$0xff]  ;;  %v3354_v34 = vrot.slane %v3346_v20, %v12792_v9  ;;  %12091 = vmatmul.mubr.msk.f32.gmra.mxu1 %vm1203_vm6, %v19369_v52  ;;  %v19372_v20 = vld [vmem:[#allocation22_spill] sm:$0xff]  ;;  %v19379_v0 = vld [vmem:[#allocation35_spill] sm:$0xff] }
 0x132   : > { %v3682_v40 = vcombine.low %v19366_v55, %v19365_v4  ;;  %v1458_v4 = vadd.f32 %v14944_v45, %v1374_v30  ;;  %v3345_v55 = vcombine.low %v14984_v23, %v3344_v58  ;;  %12093 = vmatprep.mubr.msk.f32.mxu1 %vm12715_vm1, %v18923_v33  ;;  %v3698_v48 = vcombine.low %v19372_v20, %v19371_v32  ;;  %v19373_v58 = vld [vmem:[#allocation29_spill] sm:$0xff]  ;;  %v19374_v52 = vld [vmem:[#allocation28_spill] sm:$0xff] }
 0x133   : > { %v15383_v31 = vrot.slane %v19361_v1, %v12792_v9  ;;  %v15415_v1 = vrot.slane %v3193_v47, %v12792_v9  ;;  %v3699_v23 = vcombine.low %v19374_v52, %v19373_v58  ;;  %v15445_v47 = vcombine.low %v3354_v34, %v3361_v56  ;;  %v19376_v20 = vld [vmem:[#allocation37_spill] sm:$0xff]  ;;  %v19378_v52 = vld [vmem:[#allocation38_spill] sm:$0xff]  ;;  %12105 = vmatmul.mubr.msk.f32.vlgmr.msra.gmra.mxu0 %vm1203_vm6, %v19380_v14 }
 0x134   : > { %v3696_v25 = vrot.slane %v3682_v40, %v12792_v9  ;;  %v15425_v30 = vadd.f32 %v2389_v41, %v1458_v4  ;;  %v1384_v41 = vpop.f32.mrf.mxu0  ;;  %v11221_v40 = vld [vmem:[%s18517_s1 + $0x18] sm:$0x7]  ;;  %v3715_v58 = vcombine.low %v19377_v44, %v19376_v20  ;;  %v3716_v2 = vcombine.low %v19379_v0, %v19378_v52  ;;  %12107 = vmatprep.mubr.msk.f32.mxu0 %vm12715_vm1, %v18923_v33  ;;  %v2394_v44 = vpop.f32.mrf.mxu1  ;;  %v19387_v0 = vld [vmem:[#allocation48_spill] sm:$0xff] }
 0x135   : > { %v3363_v4 = vcombine.low %v15327_v21, %v15415_v1  ;;  %12094 = vmatmul.mubr.msk.f32.gmra.mxu1 %vm1203_vm6, %v3345_v55  ;;  %19375 = vst [vmem:[#allocation167_spill] sm:$0xff] %v15445_v47  ;;  %v3706_v55 = vrot.slane %v3698_v48, %v12792_v9  ;;  %v3713_v34 = vrot.slane %v3699_v23, %v12792_v9  ;;  %v19382_v23 = vld [vmem:[#allocation7_spill] sm:$0xff]  ;;  %v19385_v48 = vld [vmem:[#allocation41_spill] sm:$0xff] }
 0x136   : > { %19370 = vst [vmem:[#allocation172_spill] sm:$0xff] %v15425_v30  ;;  %v3697_v32 = vcombine.low %v3689_v22, %v3696_v25  ;;  %v11834_v30 = vpop.f32.mrf.mxu0  ;;  %12096 = vmatprep.mubr.msk.f32.mxu1 %vm12715_vm1, %v18923_v33  ;;  %v1459_v22 = vadd.f32 %v14944_v45, %v1379_v53  ;;  %12257 = vmatpush3.msk.msra.mxu0 %vm1254_vm0, %v11221_v40  ;;  %v19383_v53 = vld [vmem:[#allocation6_spill] sm:$0xff]  ;;  %v11908_v20 = vpop.f32.mrf.mxu1  ;;  %v19386_v52 = vld [vmem:[#allocation49_spill] sm:$0xff] }
 0x137   : > { %v15464_v56 = vrot.slane %v3363_v4, %v12792_v9  ;;  %12410 = vmatprep.subr.mxu0 %v18923_v33  ;;  %v3723_v43 = vrot.slane %v3715_v58, %v12792_v9  ;;  %v3730_v24 = vrot.slane %v3716_v2, %v12792_v9  ;;  %v11188_v14 = vcombine.high %v19383_v53, %v19382_v23  ;;  %v19384_v30 = vld [vmem:[#allocation46_spill] sm:$0xff]  ;;  %v19388_v53 = vld [vmem:[#allocation57_spill] sm:$0xff]  ;;  %v19391_v20 = vld [vmem:[#allocation60_spill] sm:$0xff] }
 0x138   : > { %v15466_v25 = vadd.f32 %v2394_v44, %v1459_v22  ;;  %v3732_v40 = vcombine.low %v19385_v48, %v19384_v30  ;;  %12108 = vmatmul.mubr.msk.f32.gmra.mxu0 %vm1203_vm6, %v3697_v32  ;;  %v3714_v4 = vcombine.low %v3706_v55, %v3713_v34  ;;  %v3733_v22 = vcombine.low %v19387_v0, %v19386_v52  ;;  %v1389_v2 = vpop.f32.mrf.mxu0  ;;  %v19389_v30 = vld [vmem:[#allocation50_spill] sm:$0xff] }
 0x139   : > { %19381 = vst [vmem:[#allocation181_spill] sm:$0xff] %v15464_v56  ;;  %12097 = vmatmul.mubr.msk.f32.gmra.mxu1 %vm1203_vm6, %v15445_v47  ;;  %12110 = vmatprep.mubr.msk.f32.mxu0 %vm12715_vm1, %v18923_v33  ;;  %v3731_v58 = vcombine.low %v3723_v43, %v3730_v24  ;;  %v4357_v44 = vrot.slane %v11188_v14, %v12792_v9  ;;  %v19390_v34 = vld [vmem:[#allocation62_spill] sm:$0xff] }
 0x13a   : > { %12099 = vmatprep.mubr.msk.f32.mxu1 %vm12715_vm1, %v18923_v33  ;;  %v3740_v23 = vrot.slane %v3732_v40, %v12792_v9  ;;  %v3749_v48 = vcombine.low %v19389_v30, %v19388_v53  ;;  %v11837_v32 = vpop.f32.mrf.mxu0  ;;  %v3747_v55 = vrot.slane %v3733_v22, %v12792_v9  ;;  %v3750_v52 = vcombine.low %v19391_v20, %v19390_v34  ;;  %v11249_v40 = vld [vmem:[%s18517_s1 + $0x1c] sm:$0x7]  ;;  %v19394_v0 = vld [vmem:[#allocation10_spill] sm:$0xff]  ;;  %v19395_v30 = vld [vmem:[#allocation32_spill] sm:$0xff] }
 0x13b   : > { %v1460_v43 = vadd.f32 %v14944_v45, %v1384_v41  ;;  %v4358_v22 = vcombine.low %v19394_v0, %v4357_v44  ;;  %v19396_v32 = vld [vmem:[#allocation16_spill] sm:$0xff]  ;;  %v19397_v34 = vld [vmem:[#allocation73_spill] sm:$0xff]  ;;  %v19398_v20 = vld [vmem:[#allocation63_spill] sm:$0xff] }
 0x13c   : > { %12111 = vmatmul.mubr.msk.f32.gmra.mxu0 %vm1203_vm6, %v3714_v4  ;;  %v2399_v24 = vpop.f32.mrf.mxu1  ;;  %v19393_v4 = vld [vmem:[#allocation8_spill] sm:$0xff]  ;;  %v3757_v53 = vrot.slane %v3749_v48, %v12792_v9  ;;  %v4359_v41 = vcombine.low %v19396_v32, %v19395_v30  ;;  %v3766_v47 = vcombine.low %v19398_v20, %v19397_v34 }
 0x13d   : > { %12100 = vmatmul.mubr.msk.f32.gmra.mxu1 %vm1203_vm6, %v15464_v56  ;;  %12113 = vmatprep.mubr.msk.f32.mxu0 %vm12715_vm1, %v18923_v33  ;;  %v15499_v14 = vadd.f32 %v2399_v24, %v1460_v43  ;;  %v3748_v43 = vcombine.low %v3740_v23, %v3747_v55  ;;  %v3764_v24 = vrot.slane %v3750_v52, %v12792_v9  ;;  %v19403_v32 = vld [vmem:[#allocation40_spill] sm:$0xff] }
 0x13e   : > { %12181 = vmatprep.mubr.msk.f32.mxu1 %vm12715_vm1, %v18923_v33  ;;  %v11911_v56 = vpop.f32.mrf.mxu1  ;;  %v1394_v0 = vpop.f32.mrf.mxu0  ;;  %v1461_v52 = vadd.f32 %v14944_v45, %v1389_v2 }
 0x13f   : > { %19392 = vst [vmem:[#allocation180_spill] sm:$0xff] %v15499_v14  ;;  %v19400_v14 = vld [vmem:[#allocation75_spill] sm:$0xff]  ;;  %v4366_v56 = vrot.slane %v4359_v41, %v12792_v9  ;;  %v3765_v23 = vcombine.low %v3757_v53, %v3764_v24 }
 0x140   : > { %12114 = vmatmul.mubr.msk.f32.gmra.mxu0 %vm1203_vm6, %v3731_v58  ;;  %v11840_v48 = vpop.f32.mrf.mxu0  ;;  %v3774_v58 = vrot.slane %v3766_v47, %v12792_v9  ;;  %v19402_v47 = vld [vmem:[#allocation27_spill] sm:$0xff] }
 0x141   : > { %12182 = vmatmul.mubr.msk.f32.vlgmr.msra.gmra.mxu1 %vm1203_vm6, %v19393_v4  ;;  %v19399_v4 = vld [vmem:[#allocation76_spill] sm:$0xff]  ;;  %12116 = vmatprep.mubr.msk.f32.mxu0 %vm12715_vm1, %v18923_v33  ;;  %v4367_v30 = vcombine.low %v4366_v56, %v19402_v47  ;;  %v19404_v41 = vld [vmem:[#allocation31_spill] sm:$0xff]  ;;  %v1462_v56 = vadd.f32 %v14944_v45, %v1394_v0 }
 0x142   : > { %12184 = vmatprep.mubr.msk.f32.mxu1 %vm12715_vm1, %v18923_v33  ;;  %v3767_v44 = vcombine.low %v19400_v14, %v19399_v4  ;;  %12334 = vmatpush3.msk.msra.mxu1 %vm1254_vm0, %v11249_v40  ;;  %v11189_v34 = vcombine.high %v19404_v41, %v19403_v32  ;;  %v19405_v4 = vld [vmem:[#allocation66_spill] sm:$0xff]  ;;  %v19409_v32 = vcombine.low %v15090_v13, %v15096_v5 }
 0x143   : > { %v19410_v41 = vld [vmem:[#allocation58_spill] sm:$0xff]  ;;  %v19413_v5 = vcombine.low %v15106_v60, %v15112_v39  ;;  %v19414_v60 = vcombine.low %v15134_v61, %v15142_v29  ;;  %v19419_v61 = vcombine.low %v15148_v19, %v15154_v11  ;;  %v19421_v19 = vld [vmem:[#allocation105_spill] sm:$0xff] }
 0x144   : > { %12117 = vmatmul.mubr.msk.f32.gmra.mxu0 %vm1203_vm6, %v3748_v43  ;;  %v3781_v55 = vrot.slane %v3767_v44, %v12792_v9  ;;  %v2404_v14 = vpop.f32.mrf.mxu1  ;;  %v4375_v24 = vrot.slane %v11189_v34, %v12792_v9  ;;  %v19406_v44 = vld [vmem:[#allocation52_spill] sm:$0xff] }
 0x145   : > { %12185 = vmatmul.mubr.msk.f32.gmra.mxu1 %vm1203_vm6, %v4358_v22  ;;  %12119 = vmatprep.mubr.msk.f32.mxu0 %vm12715_vm1, %v18923_v33  ;;  %v15531_v40 = vadd.f32 %v2404_v14, %v1461_v52  ;;  %v19401_v22 = vld [vmem:[#allocation23_spill] sm:$0xff]  ;;  %v4377_v48 = vcombine.low %v19406_v44, %v19405_v4 }
 0x146   : > { %12187 = vmatprep.mubr.msk.f32.mxu1 %vm12715_vm1, %v18923_v33  ;;  %v11914_v20 = vpop.f32.mrf.mxu1  ;;  %v3782_v2 = vcombine.low %v3774_v58, %v3781_v55  ;;  %v1399_v53 = vpop.f32.mrf.mxu0  ;;  %v19407_v55 = vld [vmem:[#allocation43_spill] sm:$0xff] }
 0x147   : > { %v19408_v52 = vld [vmem:[#allocation51_spill] sm:$0xff]  ;;  %v19411_v20 = vld [vmem:[#allocation77_spill] sm:$0xff]  ;;  %v1463_v13 = vadd.f32 %v14944_v45, %v1399_v53 }
 0x148   : > { %12120 = vmatmul.mubr.msk.f32.gmra.mxu0 %vm1203_vm6, %v3765_v23  ;;  %v11843_v43 = vpop.f32.mrf.mxu0  ;;  %v4376_v14 = vcombine.low %v4375_v24, %v19408_v52 }
 0x149   : > { %12188 = vmatmul.mubr.msk.f32.gmra.mxu1 %vm1203_vm6, %v19401_v22  ;;  %12122 = vmatprep.mubr.msk.f32.mxu0 %vm12715_vm1, %v18923_v33  ;;  %v4384_v22 = vrot.slane %v4377_v48, %v12792_v9 }
 0x14a   : > { %12190 = vmatprep.mubr.msk.f32.mxu1 %vm12715_vm1, %v18923_v33 }
 0x14b   : > { %v2409_v58 = vpop.f32.mrf.mxu1  ;;  %v4385_v34 = vcombine.low %v19410_v41, %v4384_v22  ;;  %v19417_v22 = vld [vmem:[#allocation119_spill] sm:$0xff] }
 0x14c   : > { %12123 = vmatmul.mubr.msk.f32.gmra.mxu0 %vm1203_vm6, %v3782_v2  ;;  %v15553_v23 = vadd.f32 %v2409_v58, %v1462_v56  ;;  %v19412_v2 = vld [vmem:[#allocation68_spill] sm:$0xff]  ;;  %v19415_v58 = vld [vmem:[#allocation78_spill] sm:$0xff] }
 0x14d   : > { %12191 = vmatmul.mubr.msk.f32.gmra.mxu1 %vm1203_vm6, %v4367_v30  ;;  %12125 = vmatprep.mubr.msk.f32.mxu0 %vm12715_vm1, %v18923_v33  ;;  %v11917_v30 = vpop.f32.mrf.mxu1  ;;  %v11190_v43 = vcombine.high %v19412_v2, %v19411_v20 }
 0x14e   : > { %12193 = vmatprep.mubr.msk.f32.mxu1 %vm12715_vm1, %v18923_v33  ;;  %v19418_v30 = vld [vmem:[#allocation93_spill] sm:$0xff] }
 0x14f   : > { %v1404_v0 = vpop.f32.mrf.mxu0  ;;  %v4393_v44 = vrot.slane %v11190_v43, %v12792_v9 }
 0x150   : > { %12126 = vmatmul.mubr.msk.f32.gmra.mxu0 %vm1203_vm6, %v19409_v32  ;;  %v4395_v32 = vcombine.low %v19418_v30, %v19417_v22  ;;  %v1464_v29 = vadd.f32 %v14944_v45, %v1404_v0  ;;  %v19420_v0 = vcombine.low %v15166_v54, %v15183_v62  ;;  %v19423_v54 = vcombine.low %v15189_v15, %v15195_v18 }
 0x151   : > { %12194 = vmatmul.mubr.msk.f32.gmra.mxu1 %vm1203_vm6, %v19407_v55  ;;  %12128 = vmatprep.mubr.msk.f32.mxu0 %vm12715_vm1, %v18923_v33  ;;  %v11846_v24 = vpop.f32.mrf.mxu0  ;;  %v19416_v55 = vld [vmem:[#allocation79_spill] sm:$0xff]  ;;  %v19425_v18 = vcombine.low %v15203_v17, %v15209_v3  ;;  %v19428_v3 = vcombine.low %v15223_v51, %v15229_v63  ;;  %v19430_v51 = vcombine.low %v15253_v12, %v15259_v8 }
 0x152   : > { %12196 = vmatprep.mubr.msk.f32.mxu1 %vm12715_vm1, %v18923_v33  ;;  %v4402_v43 = vrot.slane %v4395_v32, %v12792_v9  ;;  %v19422_v24 = vld [vmem:[#allocation112_spill] sm:$0xff] }
 0x154   : > { %12129 = vmatmul.mubr.msk.f32.gmra.mxu0 %vm1203_vm6, %v19413_v5  ;;  %v2414_v4 = vpop.f32.mrf.mxu1  ;;  %v4403_v5 = vcombine.low %v4402_v43, %v19422_v24 }
 0x155   : > { %12197 = vmatmul.mubr.msk.f32.gmra.mxu1 %vm1203_vm6, %v4376_v14  ;;  %12131 = vmatprep.mubr.msk.f32.mxu0 %vm12715_vm1, %v18923_v33  ;;  %v15582_v48 = vadd.f32 %v2414_v4, %v1463_v13  ;;  %v1409_v56 = vpop.f32.mrf.mxu0  ;;  %v4394_v14 = vcombine.low %v19416_v55, %v4393_v44  ;;  %v11191_v13 = vcombine.high %v19184_v6, %v19230_v28  ;;  %v19424_v28 = vld [vmem:[#allocation158_spill] sm:$0xff] }
 0x156   : > { %12199 = vmatprep.mubr.msk.f32.mxu1 %vm12715_vm1, %v18923_v33  ;;  %v11920_v39 = vpop.f32.mrf.mxu1  ;;  %v1465_v62 = vadd.f32 %v14944_v45, %v1409_v56 }
 0x157   : > { %v11849_v53 = vpop.f32.mrf.mxu0  ;;  %v4411_v6 = vrot.slane %v11191_v13, %v12792_v9  ;;  %v4413_v39 = vcombine.low %v19193_v16, %v19424_v28  ;;  %v19434_v13 = vld [vmem:[#allocation169_spill] sm:$0xff] }
 0x158   : > { %12132 = vmatmul.mubr.msk.f32.gmra.mxu0 %vm1203_vm6, %v19414_v60 }
 0x159   : > { %12200 = vmatmul.mubr.msk.f32.gmra.mxu1 %vm1203_vm6, %v4385_v34  ;;  %12134 = vmatprep.mubr.msk.f32.mxu0 %vm12715_vm1, %v18923_v33  ;;  %v4420_v22 = vrot.slane %v4413_v39, %v12792_v9  ;;  %v3648_v39 = vrot.slane %v15076_v26, 7 }
 0x15a   : > { %12202 = vmatprep.mubr.msk.f32.mxu1 %vm12715_vm1, %v18923_v33  ;;  %v2419_v34 = vpop.f32.mrf.mxu1 }
 0x15b   : > { %v15606_v20 = vadd.f32 %v2419_v34, %v1464_v29 }
 0x15c   : > { %12135 = vmatmul.mubr.msk.f32.gmra.mxu0 %vm1203_vm6, %v19419_v61  ;;  %v11923_v2 = vpop.f32.mrf.mxu1  ;;  %v19429_v61 = vld [vmem:[#allocation148_spill] sm:$0xff] }
 0x15d   : > { %12203 = vmatmul.mubr.msk.f32.gmra.mxu1 %vm1203_vm6, %v19415_v58  ;;  %12137 = vmatprep.mubr.msk.f32.mxu0 %vm12715_vm1, %v18923_v33  ;;  %v19426_v58 = vld [vmem:[#allocation130_spill] sm:$0xff]  ;;  %v4421_v34 = vcombine.low %v19429_v61, %v4420_v22  ;;  %v11192_v2 = vcombine.high %v19201_v57, %v19243_v50  ;;  %v19431_v57 = vld [vmem:[#allocation11_spill] sm:$0xff] }
 0x15e   : > { %12205 = vmatprep.mubr.msk.f32.mxu1 %vm12715_vm1, %v18923_v33  ;;  %v1414_v11 = vpop.f32.mrf.mxu0  ;;  %v19432_v50 = vcombine.low %v15273_v38, %v19431_v57  ;;  %v19447_v57 = vld [vmem:[#allocation207_spill] sm:$0xff] }
 0x15f   : > { %v1466_v30 = vadd.f32 %v14944_v45, %v1414_v11  ;;  %v4429_v43 = vrot.slane %v11192_v2, %v12792_v9 }
 0x160   : > { %12138 = vmatmul.mubr.msk.f32.gmra.mxu0 %vm1203_vm6, %v19420_v0  ;;  %v11852_v4 = vpop.f32.mrf.mxu0 }
 0x161   : > { %12206 = vmatmul.mubr.msk.f32.gmra.mxu1 %vm1203_vm6, %v4394_v14  ;;  %12140 = vmatprep.mubr.msk.f32.mxu0 %vm12715_vm1, %v18923_v33  ;;  %v19427_v14 = vld [vmem:[#allocation138_spill] sm:$0xff]  ;;  %v4430_v4 = vcombine.low %v19434_v13, %v4429_v43 }
 0x162   : > { %12208 = vmatprep.mubr.msk.f32.mxu1 %vm12715_vm1, %v18923_v33  ;;  %v4412_v16 = vcombine.low %v4411_v6, %v19427_v14 }
 0x163   : > { %v2424_v44 = vpop.f32.mrf.mxu1  ;;  %v1419_v60 = vpop.f32.mrf.mxu0 }
 0x164   : > { %12141 = vmatmul.mubr.msk.f32.gmra.mxu0 %vm1203_vm6, %v19423_v54  ;;  %v15636_v15 = vadd.f32 %v2424_v44, %v1465_v62  ;;  %v1467_v0 = vadd.f32 %v14944_v45, %v1419_v60  ;;  %v19435_v54 = vld [vmem:[#allocation208_spill] sm:$0xff]  ;;  %v19436_v62 = vld [vmem:[#allocation182_spill] sm:$0xff] }
 0x165   : > { %12209 = vmatmul.mubr.msk.f32.gmra.mxu1 %vm1203_vm6, %v19421_v19  ;;  %12143 = vmatprep.mubr.msk.f32.mxu0 %vm12715_vm1, %v18923_v33  ;;  %v11926_v56 = vpop.f32.mrf.mxu1  ;;  %v11855_v53 = vpop.f32.mrf.mxu0  ;;  %v4431_v38 = vcombine.low %v19436_v62, %v19435_v54  ;;  %v19437_v44 = vld [vmem:[#allocation12_spill] sm:$0xff] }
 0x166   : > { %12211 = vmatprep.mubr.msk.f32.mxu1 %vm12715_vm1, %v18923_v33  ;;  %v19438_v60 = vld [vmem:[#allocation128_spill] sm:$0xff] }
 0x167   : > { %v19439_v6 = vcombine.low %v19437_v44, %v19438_v60  ;;  %v4438_v53 = vrot.slane %v4431_v38, %v12792_v9  ;;  %v19450_v44 = vld [vmem:[#allocation240_spill] sm:$0xff] }
 0x168   : > { %12144 = vmatmul.mubr.msk.f32.gmra.mxu0 %vm1203_vm6, %v19425_v18  ;;  %v19451_v60 = vld [vmem:[#allocation232_spill] sm:$0xff] }
 0x169   : > { %12212 = vmatmul.mubr.msk.f32.gmra.mxu1 %vm1203_vm6, %v4403_v5  ;;  %12146 = vmatprep.mubr.msk.f32.mxu0 %vm12715_vm1, %v18923_v33  ;;  %v2429_v17 = vpop.f32.mrf.mxu1  ;;  %v19433_v5 = vld [vmem:[#allocation168_spill] sm:$0xff] }
 0x16a   : > { %12214 = vmatprep.mubr.msk.f32.mxu1 %vm12715_vm1, %v18923_v33  ;;  %v15659_v32 = vadd.f32 %v2429_v17, %v1466_v30 }
 0x16b   : > { %v11929_v29 = vpop.f32.mrf.mxu1 }
 0x16c   : > { %12147 = vmatmul.mubr.msk.f32.gmra.mxu0 %vm1203_vm6, %v19428_v3  ;;  %v19443_v3 = vrot.slane %v14593_v7, 7 }
 0x16d   : > { %12215 = vmatmul.mubr.msk.f32.gmra.mxu1 %vm1203_vm6, %v19426_v58  ;;  %12149 = vmatprep.mubr.msk.f32.mxu0 %vm12715_vm1, %v18923_v33  ;;  %v19440_v58 = vld [vmem:[#allocation144_spill] sm:$0xff] }
 0x16e   : > { %12217 = vmatprep.mubr.msk.f32.mxu1 %vm12715_vm1, %v18923_v33  ;;  %v1424_v63 = vpop.f32.mrf.mxu0  ;;  %v3647_v17 = vrot.slane %v19443_v3, 2  ;;  %v19455_v3 = vld [vmem:[#allocation220_spill] sm:$0xff] }
 0x16f   : > { %v1468_v56 = vadd.f32 %v14944_v45, %v1424_v63  ;;  %v19445_v63 = vld [vmem:[#allocation200_spill] sm:$0xff] }
 0x170   : > { %12150 = vmatmul.mubr.msk.f32.gmra.mxu0 %vm1203_vm6, %v19430_v51  ;;  %v11858_v11 = vpop.f32.mrf.mxu0  ;;  %v2434_v12 = vpop.f32.mrf.mxu1  ;;  %v19444_v51 = vld [vmem:[#allocation195_spill] sm:$0xff]  ;;  %v4439_v43 = vcombine.low %v4438_v53, %v19445_v63 }
 0x171   : > { %12218 = vmatmul.mubr.msk.f32.gmra.mxu1 %vm1203_vm6, %v4412_v16  ;;  %12152 = vmatprep.mubr.msk.f32.mxu0 %vm12715_vm1, %v18923_v33  ;;  %v15684_v8 = vadd.f32 %v2434_v12, %v1467_v0  ;;  %v19441_v16 = vld [vmem:[#allocation152_spill] sm:$0xff]  ;;  %v19446_v11 = vld [vmem:[#allocation219_spill] sm:$0xff]  ;;  %v19448_v12 = vcombine.low %v15342_v42, %v15348_v27  ;;  %v15740_v42 = vcombine.high %v15415_v1, %v15415_v1  ;;  %v3657_v27 = vrot.slane %v15415_v1, 7 }
 0x172   : > { %12220 = vmatprep.mubr.msk.f32.mxu1 %vm12715_vm1, %v18923_v33  ;;  %v11932_v19 = vpop.f32.mrf.mxu1  ;;  %v19442_v22 = vcombine.low %v19440_v58, %v19441_v16  ;;  %v19454_v16 = vrot.slane %v15327_v21, 7 }
 0x173   : > { %v15728_v19 = vsel %vm12836_vm9, %v3647_v17, %v3648_v39  ;;  %v19456_v17 = vld [vmem:[#allocation227_spill] sm:$0xff] }
 0x174   : > { %12153 = vmatmul.mubr.msk.f32.gmra.mxu0 %vm1203_vm6, %v19432_v50  ;;  %v11193_v50 = vcombine.high %v19447_v57, %v19446_v11 }
 0x175   : > { %12221 = vmatmul.mubr.msk.f32.gmra.mxu1 %vm1203_vm6, %v4421_v34  ;;  %12155 = vmatprep.mubr.msk.f32.mxu0 %vm12715_vm1, %v18923_v33  ;;  %v1429_v28 = vpop.f32.mrf.mxu0  ;;  %v3650_v34 = vrot.slane %v3648_v39, 2  ;;  %v19452_v39 = vld [vmem:[#allocation260_spill] sm:$0xff] }
 0x176   : > { %12223 = vmatprep.mubr.msk.f32.mxu1 %vm12715_vm1, %v18923_v33  ;;  %v1469_v62 = vadd.f32 %v14944_v45, %v1429_v28  ;;  %v4447_v38 = vrot.slane %v11193_v50, %v12792_v9 }
 0x177   : > { %v11861_v18 = vpop.f32.mrf.mxu0 }
 0x178   : > { %12156 = vmatmul.mubr.msk.f32.gmra.mxu0 %vm1203_vm6, %v19439_v6  ;;  %v2439_v30 = vpop.f32.mrf.mxu1  ;;  %v4449_v6 = vcombine.low %v19451_v60, %v19450_v44  ;;  %v4055_v18 = vcombine.low %v19452_v39, %v15728_v19  ;;  %v19460_v44 = vld [vmem:[#allocation3_spill] sm:$0xff] }
 0x179   : > { %12224 = vmatmul.mubr.msk.f32.gmra.mxu1 %vm1203_vm6, %v19433_v5  ;;  %12158 = vmatprep.mubr.msk.f32.mxu0 %vm12715_vm1, %v18923_v33  ;;  %v15713_v29 = vadd.f32 %v2439_v30, %v1468_v56  ;;  %v19453_v56 = vcombine.low %v15358_v46, %v15364_v49  ;;  %v3659_v30 = vrot.slane %v3657_v27, 2  ;;  %v3660_v46 = vrot.slane %v15740_v42, 7 }
 0x17a   : > { %12226 = vmatprep.mubr.msk.f32.mxu1 %vm12715_vm1, %v18923_v33  ;;  %v11935_v2 = vpop.f32.mrf.mxu1  ;;  %v4063_v11 = vrot.slane %v4055_v18, %v12792_v9 }
 0x17b   : > { %v1434_v0 = vpop.f32.mrf.mxu0  ;;  %v4456_v2 = vrot.slane %v4449_v6, %v12792_v9  ;;  %v19461_v6 = vld [vmem:[#allocation9_spill] sm:$0xff] }
 0x17c   : > { %12159 = vmatmul.mubr.msk.f32.gmra.mxu0 %vm1203_vm6, %v19442_v22  ;;  %v3656_v22 = vrot.slane %v19454_v16, 2  ;;  %v19462_v18 = vcombine.low %v15243_v37, %v19461_v6  ;;  %v19463_v16 = vld [vmem:[#allocation183_spill] sm:$0xff] }
 0x17d   : > { %12227 = vmatmul.mubr.msk.f32.gmra.mxu1 %vm1203_vm6, %v4430_v4  ;;  %12161 = vmatprep.mubr.msk.f32.mxu0 %vm12715_vm1, %v18923_v33  ;;  %v11864_v5 = vpop.f32.mrf.mxu0  ;;  %v19449_v4 = vrot.slane %v15267_v10, 7 }
 0x17e   : > { %12229 = vmatprep.mubr.msk.f32.mxu1 %vm12715_vm1, %v18923_v33  ;;  %v15781_v50 = vsel %vm12836_vm9, %v3656_v22, %v3657_v27 }
 0x17f   : > { %v15736_v54 = vsel %vm12836_vm9, %v3650_v34, %v19449_v4  ;;  %v4448_v34 = vcombine.low %v4447_v38, %v19456_v17  ;;  %v19458_v4 = vld [vmem:[#allocation236_spill] sm:$0xff]  ;;  %v19459_v38 = vld [vmem:[#allocation255_spill] sm:$0xff] }
 0x180   : > { %12162 = vmatmul.mubr.msk.f32.gmra.mxu0 %vm1203_vm6, %v19448_v12  ;;  %v2444_v53 = vpop.f32.mrf.mxu1  ;;  %v4056_v28 = vcombine.low %v15736_v54, %v15408_v35  ;;  %v11194_v60 = vcombine.high %v19460_v44, %v19459_v38 }
 0x181   : > { %12230 = vmatmul.mubr.msk.f32.gmra.mxu1 %vm1203_vm6, %v19444_v51  ;;  %12164 = vmatprep.mubr.msk.f32.mxu0 %vm12715_vm1, %v18923_v33  ;;  %v15760_v58 = vadd.f32 %v2444_v53, %v1469_v62  ;;  %v19457_v51 = vcombine.low %v15377_v36, %v15383_v31  ;;  %v15785_v31 = vsel %vm12836_vm9, %v3659_v30, %v3660_v46 }
 0x182   : > { %12232 = vmatprep.mubr.msk.f32.mxu1 %vm12715_vm1, %v18923_v33  ;;  %v11938_v49 = vpop.f32.mrf.mxu1  ;;  %v4070_v57 = vrot.slane %v4056_v28, %v12792_v9  ;;  %v1470_v36 = vadd.f32 %v14944_v45, %v1434_v0  ;;  %v4457_v62 = vcombine.low %v19458_v4, %v4456_v2  ;;  %v4072_v53 = vcombine.low %v15781_v50, %v15785_v31  ;;  %v19464_v2 = vld [vmem:[#allocation157_spill] sm:$0xff] }
 0x183   : > { %v4465_v37 = vrot.slane %v11194_v60, %v12792_v9  ;;  %v4467_v46 = vcombine.low %v14593_v7, %v15076_v26  ;;  %v19466_v7 = vld [vmem:[#allocation5_spill] sm:$0xff]  ;;  %v19468_v60 = vld [vmem:[#allocation263_spill] sm:$0xff] }
 0x184   : > { %12165 = vmatmul.mubr.msk.f32.gmra.mxu0 %vm1203_vm6, %v19453_v56  ;;  %v4071_v56 = vcombine.low %v4063_v11, %v4070_v57  ;;  %v4079_v49 = vrot.slane %v4072_v53, %v12792_v9  ;;  %v19465_v57 = vld [vmem:[#allocation248_spill] sm:$0xff]  ;;  %v1472_v6 = vadd.f32 %v14944_v45, %v19468_v60  ;;  %v19477_v60 = vld [vmem:[#allocation107_spill] sm:$0xff] }
 0x185   : > { %12233 = vmatmul.mubr.msk.f32.gmra.mxu1 %vm1203_vm6, %v4439_v43  ;;  %12167 = vmatprep.mubr.msk.f32.mxu0 %vm12715_vm1, %v18923_v33  ;;  %v1439_v43 = vpop.f32.mrf.mxu0  ;;  %v4466_v26 = vcombine.low %v19466_v7, %v4465_v37  ;;  %v19472_v37 = vld [vmem:[#allocation104_spill] sm:$0xff] }
 0x186   : > { %12235 = vmatprep.mubr.msk.f32.mxu1 %vm12715_vm1, %v18923_v33  ;;  %v2449_v5 = vpop.f32.mrf.mxu1 }
 0x187   : > { %v11867_v12 = vpop.f32.mrf.mxu0  ;;  %v15798_v27 = vadd.f32 %v2449_v5, %v1470_v36  ;;  %v19467_v5 = vcombine.low %v15267_v10, %v15327_v21  ;;  %v11276_v21 = vld [vmem:[%s18517_s1 + $0x20] sm:$0x7] }
 0x188   : > { %12168 = vmatmul.mubr.msk.f32.gmra.mxu0 %vm1203_vm6, %v19457_v51  ;;  %v11941_v28 = vpop.f32.mrf.mxu1  ;;  %v15821_v12 = vrot.slane %v4467_v46, %v12792_v9 }
 0x189   : > { %12236 = vmatmul.mubr.msk.f32.gmra.mxu1 %vm1203_vm6, %v19455_v3  ;;  %12170 = vmatprep.mubr.msk.f32.mxu0 %vm12715_vm1, %v18923_v33  ;;  %v3025_v0 = vpop.f32.mrf.mxu0  ;;  %v19470_v28 = vld [vmem:[#allocation19_spill] sm:$0xff] }
 0x18a   : > { %12238 = vmatprep.mubr.msk.f32.mxu1 %vm12715_vm1, %v18923_v33  ;;  %v3149_v22 = vadd.f32 %v3025_v0, %v19463_v16  ;;  %v4484_v0 = vcombine.low %v15415_v1, %v15740_v42 }
 0x18b   : > { %v11952_v30 = vpop.f32.mrf.mxu0 }
 0x18c   : > { %12171 = vmatmul.mubr.msk.f32.gmra.mxu0 %vm1203_vm6, %v19462_v18 }
 0x18d   : > { %12239 = vmatmul.mubr.msk.f32.gmra.mxu1 %vm1203_vm6, %v4448_v34  ;;  %12173 = vmatprep.mubr.msk.f32.mxu0 %vm12715_vm1, %v18923_v33  ;;  %v3030_v3 = vpop.f32.mrf.mxu0  ;;  %v1471_v34 = vadd.f32 %v14944_v45, %v1439_v43  ;;  %v2454_v11 = vpop.f32.mrf.mxu1  ;;  %v19469_v45 = vld [vmem:[#allocation13_spill] sm:$0xff] }
 0x18e   : > { %12241 = vmatprep.mubr.msk.f32.mxu1 %vm12715_vm1, %v18923_v33  ;;  %v3150_v51 = vadd.f32 %v3030_v3, %v19464_v2  ;;  %v19471_v16 = vcombine.low %v19469_v45, %v19470_v28  ;;  %v4491_v3 = vrot.slane %v4484_v0, %v12792_v9  ;;  %v19478_v0 = vld [vmem:[#allocation186_spill] sm:$0xff] }
 0x18f   : > { %v11955_v36 = vpop.f32.mrf.mxu0  ;;  %v15829_v44 = vadd.f32 %v2454_v11, %v1471_v34  ;;  %v11944_v43 = vpop.f32.mrf.mxu1  ;;  %v19473_v34 = vld [vmem:[#allocation36_spill] sm:$0xff] }
 0x190   : > { %12174 = vmatmul.mubr.msk.f32.gmra.mxu0 %vm1203_vm6, %v4071_v56  ;;  %v4779_v2 = vcombine.low %v19402_v47, %v19473_v34  ;;  %v19475_v36 = vld [vmem:[#allocation25_spill] sm:$0xff] }
 0x191   : > { %12242 = vmatmul.mubr.msk.f32.gmra.mxu1 %vm1203_vm6, %v4457_v62  ;;  %12176 = vmatprep.mubr.msk.f32.mxu0 %vm12715_vm1, %v18923_v33  ;;  %v15827_v62 = vrot.slane %v19467_v5, %v12792_v9  ;;  %v2459_v10 = vpop.f32.mrf.mxu1  ;;  %v3035_v53 = vpop.f32.mrf.mxu0 }
 0x192   : > { %12244 = vmatprep.mubr.msk.f32.mxu1 %vm12715_vm1, %v18923_v33  ;;  %v15846_v56 = vadd.f32 %v2459_v10, %v1472_v6  ;;  %v3151_v46 = vadd.f32 %v3035_v53, %v19472_v37 }
 0x193   : > { %v4483_v18 = vcombine.low %v15821_v12, %v15827_v62  ;;  %v11947_v30 = vpop.f32.mrf.mxu1  ;;  %v11958_v42 = vpop.f32.mrf.mxu0 }
 0x194   : > { %12177 = vmatmul.mubr.msk.f32.gmra.mxu0 %vm1203_vm6, %v4079_v49  ;;  %v19480_v30 = vld [vmem:[#allocation33_spill] sm:$0xff] }
 0x195   : > { %12245 = vmatmul.mubr.msk.f32.gmra.mxu1 %vm1203_vm6, %v19465_v57  ;;  %12258 = vmatprep.mubr.msk.f32.mxu0 %vm12715_vm1, %v18923_v33  ;;  %v3490_v49 = vpop.f32.mrf.mxu1  ;;  %v3040_v57 = vpop.f32.mrf.mxu0 }
 0x196   : > { %12247 = vmatprep.mubr.msk.f32.mxu1 %vm12715_vm1, %v18923_v33  ;;  %v15862_v11 = vadd.f32 %v3490_v49, %v3149_v22  ;;  %v3152_v6 = vadd.f32 %v3040_v57, %v19477_v60  ;;  %v19482_v49 = vld [vmem:[#allocation39_spill] sm:$0xff]  ;;  %v19487_v60 = vld [vmem:[#allocation42_spill] sm:$0xff] }
 0x197   : > { %v12029_v43 = vpop.f32.mrf.mxu1 }
 0x198   : > { %12259 = vmatmul.mubr.msk.f32.vlgmr.msra.gmra.mxu0 %vm1203_vm6, %v19471_v16  ;;  %v19479_v16 = vld [vmem:[#allocation24_spill] sm:$0xff]  ;;  %v19486_v43 = vld [vmem:[#allocation34_spill] sm:$0xff] }
 0x199   : > { %12248 = vmatmul.mubr.msk.f32.gmra.mxu1 %vm1203_vm6, %v4466_v26  ;;  %12411 = vmatpush3.msk.msra.mxu0 %vm1254_vm0, %v11276_v21  ;;  %v19474_v26 = vld [vmem:[#allocation21_spill] sm:$0xff]  ;;  %v11961_v21 = vpop.f32.mrf.mxu0  ;;  %v3495_v10 = vpop.f32.mrf.mxu1  ;;  %v19481_v37 = vcombine.low %v19479_v16, %v19480_v30  ;;  %v19491_v16 = vld [vmem:[#allocation55_spill] sm:$0xff] }
 0x19a   : > { %12250 = vmatprep.mubr.msk.f32.mxu1 %vm12715_vm1, %v18923_v33  ;;  %12261 = vmatprep.mubr.msk.f32.mxu0 %vm12715_vm1, %v18923_v33  ;;  %v19476_v5 = vcombine.low %v19474_v26, %v19475_v36  ;;  %v15874_v47 = vadd.f32 %v3495_v10, %v3150_v51  ;;  %v19485_v26 = vld [vmem:[#allocation121_spill] sm:$0xff]  ;;  %v19488_v21 = vcombine.low %v19486_v43, %v19487_v60 }
 0x19b   : > { %v3045_v22 = vpop.f32.mrf.mxu0 }
 0x19c   : > { %12262 = vmatmul.mubr.msk.f32.gmra.mxu0 %vm1203_vm6, %v19476_v5  ;;  %v3153_v53 = vadd.f32 %v3045_v22, %v19478_v0 }
 0x19d   : > { %12251 = vmatmul.mubr.msk.f32.gmra.mxu1 %vm1203_vm6, %v4483_v18  ;;  %12264 = vmatprep.mubr.msk.f32.mxu0 %vm12715_vm1, %v18923_v33  ;;  %v12032_v18 = vpop.f32.mrf.mxu1  ;;  %v11964_v45 = vpop.f32.mrf.mxu0 }
 0x19e   : > { %12253 = vmatprep.mubr.msk.f32.mxu1 %vm12715_vm1, %v18923_v33 }
 0x19f   : > { %v3500_v28 = vpop.f32.mrf.mxu1  ;;  %v3050_v42 = vpop.f32.mrf.mxu0 }
 0x1a0   : > { %12265 = vmatmul.mubr.msk.f32.gmra.mxu0 %vm1203_vm6, %v4779_v2  ;;  %v15886_v51 = vadd.f32 %v3500_v28, %v3151_v46  ;;  %v4781_v2 = vcombine.low %v19408_v52, %v19410_v41  ;;  %v3154_v36 = vadd.f32 %v3050_v42, %v19485_v26  ;;  %v19489_v41 = vld [vmem:[#allocation190_spill] sm:$0xff]  ;;  %v19490_v28 = vld [vmem:[#allocation44_spill] sm:$0xff]  ;;  %v19497_v26 = vld [vmem:[#allocation221_spill] sm:$0xff] }
 0x1a1   : > { %12254 = vmatmul.mubr.msk.f32.gmra.mxu1 %vm1203_vm6, %v4491_v3  ;;  %12267 = vmatprep.mubr.msk.f32.mxu0 %vm12715_vm1, %v18923_v33  ;;  %v19483_v3 = vld [vmem:[#allocation47_spill] sm:$0xff]  ;;  %v12035_v57 = vpop.f32.mrf.mxu1  ;;  %v11967_v46 = vpop.f32.mrf.mxu0  ;;  %v19492_v30 = vcombine.low %v19490_v28, %v19491_v16 }
 0x1a2   : > { %12335 = vmatprep.mubr.msk.f32.mxu1 %vm12715_vm1, %v18923_v33  ;;  %v19484_v34 = vcombine.low %v19482_v49, %v19483_v3  ;;  %v19494_v3 = vld [vmem:[#allocation59_spill] sm:$0xff] }
 0x1a3   : > { %v3505_v5 = vpop.f32.mrf.mxu1  ;;  %v3055_v22 = vpop.f32.mrf.mxu0  ;;  %v19502_v16 = vld [vmem:[#allocation71_spill] sm:$0xff] }
 0x1a4   : > { %12268 = vmatmul.mubr.msk.f32.gmra.mxu0 %vm1203_vm6, %v19484_v34  ;;  %v15903_v10 = vadd.f32 %v3505_v5, %v3152_v6  ;;  %v3155_v18 = vadd.f32 %v3055_v22, %v19489_v41  ;;  %v19493_v6 = vld [vmem:[#allocation74_spill] sm:$0xff]  ;;  %v19495_v34 = vld [vmem:[#allocation72_spill] sm:$0xff]  ;;  %v19501_v41 = vld [vmem:[#allocation133_spill] sm:$0xff] }
 0x1a5   : > { %12336 = vmatmul.mubr.msk.f32.vlgmr.msra.gmra.mxu1 %vm1203_vm6, %v19481_v37  ;;  %12270 = vmatprep.mubr.msk.f32.mxu0 %vm12715_vm1, %v18923_v33  ;;  %v12038_v52 = vpop.f32.mrf.mxu1  ;;  %v11970_v0 = vpop.f32.mrf.mxu0  ;;  %v4783_v37 = vcombine.low %v19493_v6, %v19416_v55  ;;  %v19498_v55 = vld [vmem:[#allocation56_spill] sm:$0xff] }
 0x1a6   : > { %12338 = vmatprep.mubr.msk.f32.mxu1 %vm12715_vm1, %v18923_v33 }
 0x1a7   : > { %v3510_v45 = vpop.f32.mrf.mxu1  ;;  %v3060_v49 = vpop.f32.mrf.mxu0 }
 0x1a8   : > { %12271 = vmatmul.mubr.msk.f32.gmra.mxu0 %vm1203_vm6, %v4781_v2  ;;  %v15917_v42 = vadd.f32 %v3510_v45, %v3153_v53  ;;  %v19496_v2 = vcombine.low %v19494_v3, %v19495_v34  ;;  %v3156_v46 = vadd.f32 %v3060_v49, %v19497_v26  ;;  %v19499_v53 = vld [vmem:[#allocation67_spill] sm:$0xff]  ;;  %v19506_v3 = vld [vmem:[#allocation98_spill] sm:$0xff] }
 0x1a9   : > { %12339 = vmatmul.mubr.msk.f32.gmra.mxu1 %vm1203_vm6, %v19488_v21  ;;  %12273 = vmatprep.mubr.msk.f32.mxu0 %vm12715_vm1, %v18923_v33  ;;  %v12041_v57 = vpop.f32.mrf.mxu1  ;;  %v11973_v5 = vpop.f32.mrf.mxu0  ;;  %v19500_v60 = vcombine.low %v19498_v55, %v19499_v53  ;;  %v19509_v55 = vld [vmem:[#allocation83_spill] sm:$0xff] }
 0x1aa   : > { %12341 = vmatprep.mubr.msk.f32.mxu1 %vm12715_vm1, %v18923_v33  ;;  %v19508_v57 = vld [vmem:[#allocation176_spill] sm:$0xff] }
 0x1ab   : > { %v3515_v43 = vpop.f32.mrf.mxu1  ;;  %v3065_v22 = vpop.f32.mrf.mxu0 }
 0x1ac   : > { %12274 = vmatmul.mubr.msk.f32.gmra.mxu0 %vm1203_vm6, %v19496_v2  ;;  %v15932_v21 = vadd.f32 %v3515_v43, %v3154_v36  ;;  %v3157_v0 = vadd.f32 %v3065_v22, %v19501_v41 }
 0x1ad   : > { %12342 = vmatmul.mubr.msk.f32.gmra.mxu1 %vm1203_vm6, %v19492_v30  ;;  %12276 = vmatprep.mubr.msk.f32.mxu0 %vm12715_vm1, %v18923_v33  ;;  %v12044_v52 = vpop.f32.mrf.mxu1  ;;  %v11976_v45 = vpop.f32.mrf.mxu0  ;;  %v19503_v30 = vld [vmem:[#allocation82_spill] sm:$0xff] }
 0x1ae   : > { %12344 = vmatprep.mubr.msk.f32.mxu1 %vm12715_vm1, %v18923_v33  ;;  %v19504_v6 = vcombine.low %v19502_v16, %v19503_v30  ;;  %v19513_v45 = vld [vmem:[#allocation101_spill] sm:$0xff] }
 0x1af   : > { %v3520_v28 = vpop.f32.mrf.mxu1  ;;  %v3070_v49 = vpop.f32.mrf.mxu0 }
 0x1b0   : > { %12277 = vmatmul.mubr.msk.f32.gmra.mxu0 %vm1203_vm6, %v4783_v37  ;;  %v15944_v36 = vadd.f32 %v3520_v28, %v3155_v18  ;;  %v19505_v37 = vld [vmem:[#allocation86_spill] sm:$0xff]  ;;  %v3158_v26 = vadd.f32 %v3070_v49, %v19508_v57 }
 0x1b1   : > { %12345 = vmatmul.mubr.msk.f32.gmra.mxu1 %vm1203_vm6, %v19500_v60  ;;  %12279 = vmatprep.mubr.msk.f32.mxu0 %vm12715_vm1, %v18923_v33  ;;  %v19507_v34 = vcombine.low %v19505_v37, %v19506_v3  ;;  %v12047_v2 = vpop.f32.mrf.mxu1  ;;  %v11979_v5 = vpop.f32.mrf.mxu0  ;;  %v19510_v18 = vld [vmem:[#allocation90_spill] sm:$0xff] }
 0x1b2   : > { %12347 = vmatprep.mubr.msk.f32.mxu1 %vm12715_vm1, %v18923_v33  ;;  %v19511_v53 = vcombine.low %v19509_v55, %v19510_v18  ;;  %v19512_v60 = vld [vmem:[#allocation122_spill] sm:$0xff] }
 0x1b3   : > { %v3525_v43 = vpop.f32.mrf.mxu1  ;;  %v4786_v22 = vcombine.low %v19422_v24, %v19512_v60  ;;  %v3075_v41 = vpop.f32.mrf.mxu0  ;;  %v19514_v28 = vld [vmem:[#allocation110_spill] sm:$0xff]  ;;  %v19517_v24 = vld [vmem:[#allocation95_spill] sm:$0xff]  ;;  %v19521_v60 = vld [vmem:[#allocation116_spill] sm:$0xff] }
 0x1b4   : > { %12280 = vmatmul.mubr.msk.f32.gmra.mxu0 %vm1203_vm6, %v19507_v34  ;;  %v15961_v52 = vadd.f32 %v3525_v43, %v3156_v46  ;;  %v19515_v16 = vcombine.low %v19513_v45, %v19514_v28  ;;  %v19518_v46 = vld [vmem:[#allocation106_spill] sm:$0xff]  ;;  %v19524_v28 = vld [vmem:[#allocation137_spill] sm:$0xff] }
 0x1b5   : > { %12348 = vmatmul.mubr.msk.f32.gmra.mxu1 %vm1203_vm6, %v19504_v6  ;;  %12282 = vmatprep.mubr.msk.f32.mxu0 %vm12715_vm1, %v18923_v33  ;;  %v12050_v30 = vpop.f32.mrf.mxu1  ;;  %v19516_v6 = vld [vmem:[#allocation172_spill] sm:$0xff]  ;;  %v11982_v37 = vpop.f32.mrf.mxu0  ;;  %v19519_v34 = vcombine.low %v19517_v24, %v19518_v46  ;;  %v19528_v46 = vld [vmem:[#allocation131_spill] sm:$0xff] }
 0x1b6   : > { %12350 = vmatprep.mubr.msk.f32.mxu1 %vm12715_vm1, %v18923_v33  ;;  %v3159_v49 = vadd.f32 %v3075_v41, %v19516_v6  ;;  %v19526_v6 = vld [vmem:[#allocation180_spill] sm:$0xff] }
 0x1b7   : > { %v3530_v3 = vpop.f32.mrf.mxu1  ;;  %v3080_v57 = vpop.f32.mrf.mxu0  ;;  %v19527_v24 = vld [vmem:[#allocation120_spill] sm:$0xff] }
 0x1b8   : > { %12283 = vmatmul.mubr.msk.f32.gmra.mxu0 %vm1203_vm6, %v19515_v16  ;;  %v15976_v2 = vadd.f32 %v3530_v3, %v3157_v0  ;;  %v3160_v43 = vadd.f32 %v3080_v57, %v15466_v25  ;;  %v4788_v25 = vcombine.low %v19427_v14, %v19429_v61 }
 0x1b9   : > { %12351 = vmatmul.mubr.msk.f32.gmra.mxu1 %vm1203_vm6, %v19511_v53  ;;  %12285 = vmatprep.mubr.msk.f32.mxu0 %vm12715_vm1, %v18923_v33  ;;  %v12053_v5 = vpop.f32.mrf.mxu1  ;;  %v11985_v55 = vpop.f32.mrf.mxu0  ;;  %v19520_v53 = vld [vmem:[#allocation108_spill] sm:$0xff] }
 0x1ba   : > { %12353 = vmatprep.mubr.msk.f32.mxu1 %vm12715_vm1, %v18923_v33  ;;  %v19522_v41 = vcombine.low %v19520_v53, %v19521_v60  ;;  %v19530_v53 = vld [vmem:[#allocation135_spill] sm:$0xff]  ;;  %v19531_v60 = vld [vmem:[#allocation145_spill] sm:$0xff] }
 0x1bb   : > { %v3535_v18 = vpop.f32.mrf.mxu1  ;;  %v3085_v45 = vpop.f32.mrf.mxu0 }
 0x1bc   : > { %12286 = vmatmul.mubr.msk.f32.gmra.mxu0 %vm1203_vm6, %v4786_v22  ;;  %v15988_v0 = vadd.f32 %v3535_v18, %v3158_v26  ;;  %v19523_v22 = vld [vmem:[#allocation125_spill] sm:$0xff]  ;;  %v3161_v37 = vadd.f32 %v3085_v45, %v19526_v6 }
 0x1bd   : > { %12354 = vmatmul.mubr.msk.f32.gmra.mxu1 %vm1203_vm6, %v19519_v34  ;;  %12288 = vmatprep.mubr.msk.f32.mxu0 %vm12715_vm1, %v18923_v33  ;;  %v19525_v16 = vcombine.low %v19523_v22, %v19524_v28  ;;  %v12056_v30 = vpop.f32.mrf.mxu1  ;;  %v11988_v26 = vpop.f32.mrf.mxu0  ;;  %v19529_v34 = vcombine.low %v19527_v24, %v19528_v46 }
 0x1be   : > { %12356 = vmatprep.mubr.msk.f32.mxu1 %vm12715_vm1, %v18923_v33 }
 0x1bf   : > { %v3540_v3 = vpop.f32.mrf.mxu1  ;;  %v3090_v5 = vpop.f32.mrf.mxu0 }
 0x1c0   : > { %12289 = vmatmul.mubr.msk.f32.gmra.mxu0 %vm1203_vm6, %v19525_v16  ;;  %v16005_v57 = vadd.f32 %v3540_v3, %v3159_v49  ;;  %v3162_v61 = vadd.f32 %v3090_v5, %v15531_v40  ;;  %v19533_v49 = vld [vmem:[#allocation165_spill] sm:$0xff] }
 0x1c1   : > { %12357 = vmatmul.mubr.msk.f32.gmra.mxu1 %vm1203_vm6, %v19522_v41  ;;  %12291 = vmatprep.mubr.msk.f32.mxu0 %vm12715_vm1, %v18923_v33  ;;  %v12059_v14 = vpop.f32.mrf.mxu1  ;;  %v11991_v55 = vpop.f32.mrf.mxu0  ;;  %v19532_v41 = vcombine.low %v19530_v53, %v19531_v60  ;;  %v4790_v45 = vcombine.low %v19533_v49, %v19434_v13  ;;  %v19534_v16 = vld [vmem:[#allocation149_spill] sm:$0xff]  ;;  %v19537_v13 = vld [vmem:[#allocation146_spill] sm:$0xff]  ;;  %v19541_v53 = vld [vmem:[#allocation171_spill] sm:$0xff] }
 0x1c2   : > { %12359 = vmatprep.mubr.msk.f32.mxu1 %vm12715_vm1, %v18923_v33  ;;  %v19543_v49 = vld [vmem:[#allocation175_spill] sm:$0xff] }
 0x1c3   : > { %v3545_v18 = vpop.f32.mrf.mxu1  ;;  %v3095_v28 = vpop.f32.mrf.mxu0 }
 0x1c4   : > { %12292 = vmatmul.mubr.msk.f32.gmra.mxu0 %vm1203_vm6, %v4788_v25  ;;  %v16019_v22 = vadd.f32 %v3545_v18, %v3160_v43  ;;  %v19535_v25 = vld [vmem:[#allocation163_spill] sm:$0xff]  ;;  %v3163_v6 = vadd.f32 %v3095_v28, %v15553_v23  ;;  %v19538_v43 = vld [vmem:[#allocation154_spill] sm:$0xff] }
 0x1c5   : > { %12360 = vmatmul.mubr.msk.f32.gmra.mxu1 %vm1203_vm6, %v19529_v34  ;;  %12294 = vmatprep.mubr.msk.f32.mxu0 %vm12715_vm1, %v18923_v33  ;;  %v19536_v30 = vcombine.low %v19534_v16, %v19535_v25  ;;  %v12062_v40 = vpop.f32.mrf.mxu1  ;;  %v11994_v26 = vpop.f32.mrf.mxu0  ;;  %v19539_v24 = vcombine.low %v19537_v13, %v19538_v43  ;;  %v19540_v18 = vld [vmem:[#allocation159_spill] sm:$0xff] }
 0x1c6   : > { %12362 = vmatprep.mubr.msk.f32.mxu1 %vm12715_vm1, %v18923_v33  ;;  %v19542_v60 = vcombine.low %v19540_v18, %v19541_v53  ;;  %v19547_v40 = vld [vmem:[#allocation184_spill] sm:$0xff] }
 0x1c7   : > { %v3550_v3 = vpop.f32.mrf.mxu1  ;;  %v3100_v34 = vpop.f32.mrf.mxu0  ;;  %v282_v53 = vld [vmem:[%s12783_s28 + $0xf0] sm:$0xff] }
 0x1c8   : > { %12295 = vmatmul.mubr.msk.f32.gmra.mxu0 %vm1203_vm6, %v19536_v30  ;;  %v16034_v46 = vadd.f32 %v3550_v3, %v3161_v37  ;;  %v3164_v23 = vadd.f32 %v3100_v34, %v15582_v48  ;;  %v19549_v3 = vld [vmem:[#allocation213_spill] sm:$0xff]  ;;  %v19550_v34 = vld [vmem:[#allocation191_spill] sm:$0xff] }
 0x1c9   : > { %12363 = vmatmul.mubr.msk.f32.gmra.mxu1 %vm1203_vm6, %v19532_v41  ;;  %12297 = vmatprep.mubr.msk.f32.mxu0 %vm12715_vm1, %v18923_v33  ;;  %v12065_v5 = vpop.f32.mrf.mxu1  ;;  %v11997_v14 = vpop.f32.mrf.mxu0  ;;  %v4793_v13 = vcombine.low %v19445_v63, %v19549_v3 }
 0x1ca   : > { %12365 = vmatprep.mubr.msk.f32.mxu1 %vm12715_vm1, %v18923_v33  ;;  %v19551_v5 = vld [vmem:[#allocation198_spill] sm:$0xff] }
 0x1cb   : > { %v3555_v55 = vpop.f32.mrf.mxu1  ;;  %v3105_v41 = vpop.f32.mrf.mxu0  ;;  %v19552_v14 = vcombine.low %v19550_v34, %v19551_v5 }
 0x1cc   : > { %12298 = vmatmul.mubr.msk.f32.gmra.mxu0 %vm1203_vm6, %v4790_v45  ;;  %v16046_v37 = vadd.f32 %v3555_v55, %v3162_v61  ;;  %v19544_v45 = vld [vmem:[#allocation188_spill] sm:$0xff]  ;;  %v3165_v16 = vadd.f32 %v3105_v41, %v15606_v20  ;;  %v19546_v61 = vld [vmem:[#allocation173_spill] sm:$0xff] }
 0x1cd   : > { %12366 = vmatmul.mubr.msk.f32.gmra.mxu1 %vm1203_vm6, %v19539_v24  ;;  %12300 = vmatprep.mubr.msk.f32.mxu0 %vm12715_vm1, %v18923_v33  ;;  %v19545_v28 = vcombine.low %v19543_v49, %v19544_v45  ;;  %v12068_v48 = vpop.f32.mrf.mxu1  ;;  %v12000_v25 = vpop.f32.mrf.mxu0  ;;  %v19548_v26 = vcombine.low %v19546_v61, %v19547_v40  ;;  %v19556_v61 = vld [vmem:[#allocation199_spill] sm:$0xff]  ;;  %v19557_v40 = vld [vmem:[#allocation209_spill] sm:$0xff] }
 0x1ce   : > { %12368 = vmatprep.mubr.msk.f32.mxu1 %vm12715_vm1, %v18923_v33  ;;  %v4742_v48 = vcombine.high %v282_v53, %v282_v53 }
 0x1cf   : > { %v3560_v30 = vpop.f32.mrf.mxu1  ;;  %v3110_v24 = vpop.f32.mrf.mxu0 }
 0x1d0   : > { %12301 = vmatmul.mubr.msk.f32.gmra.mxu0 %vm1203_vm6, %v19545_v28  ;;  %v16063_v43 = vadd.f32 %v3560_v30, %v3163_v6  ;;  %v3166_v55 = vadd.f32 %v3110_v24, %v15636_v15  ;;  %v19553_v6 = vld [vmem:[#allocation185_spill] sm:$0xff]  ;;  %v19560_v24 = vld [vmem:[#allocation226_spill] sm:$0xff] }
 0x1d1   : > { %12369 = vmatmul.mubr.msk.f32.gmra.mxu1 %vm1203_vm6, %v19542_v60  ;;  %12303 = vmatprep.mubr.msk.f32.mxu0 %vm12715_vm1, %v18923_v33  ;;  %v12071_v20 = vpop.f32.mrf.mxu1  ;;  %v12003_v18 = vpop.f32.mrf.mxu0  ;;  %v19554_v60 = vld [vmem:[#allocation197_spill] sm:$0xff] }
 0x1d2   : > { %12371 = vmatprep.mubr.msk.f32.mxu1 %vm12715_vm1, %v18923_v33  ;;  %v19555_v41 = vcombine.low %v19553_v6, %v19554_v60  ;;  %v19562_v20 = vld [vmem:[#allocation257_spill] sm:$0xff]  ;;  %v19563_v60 = vld [vmem:[#allocation210_spill] sm:$0xff] }
 0x1d3   : > { %v3565_v63 = vpop.f32.mrf.mxu1  ;;  %v3115_v45 = vpop.f32.mrf.mxu0  ;;  %v4798_v18 = vcombine.low %v19459_v38, %v19562_v20 }
 0x1d4   : > { %12304 = vmatmul.mubr.msk.f32.gmra.mxu0 %vm1203_vm6, %v19552_v14  ;;  %v16079_v49 = vadd.f32 %v3565_v63, %v3164_v23  ;;  %v3167_v28 = vadd.f32 %v3115_v45, %v15659_v32  ;;  %v19558_v23 = vcombine.low %v19556_v61, %v19557_v40  ;;  %v4795_v32 = vcombine.low %v19456_v17, %v19458_v4  ;;  %v283_v17 = vld [vmem:[%s12783_s28 + $0xf8] sm:$0xff] }
 0x1d5   : > { %12372 = vmatmul.mubr.msk.f32.gmra.mxu1 %vm1203_vm6, %v19548_v26  ;;  %12306 = vmatprep.mubr.msk.f32.mxu0 %vm12715_vm1, %v18923_v33  ;;  %v12074_v15 = vpop.f32.mrf.mxu1  ;;  %v12006_v25 = vpop.f32.mrf.mxu0  ;;  %v16107_v63 = vrot.slane %v4742_v48, %v12792_v9  ;;  %v16115_v4 = vrot.slane %v282_v53, %v12792_v9  ;;  %v16133_v61 = vrot.slane %v283_v17, %v12792_v9 }
 0x1d6   : > { %12374 = vmatprep.mubr.msk.f32.mxu1 %vm12715_vm1, %v18923_v33 }
 0x1d7   : > { %v3570_v30 = vpop.f32.mrf.mxu1  ;;  %v3120_v3 = vpop.f32.mrf.mxu0  ;;  %v4757_v53 = vcombine.high %v16115_v4, %v16115_v4  ;;  %19566 = vst [vmem:[#allocation202_spill] sm:$0xff] %v16133_v61 }
 0x1d8   : > { %12307 = vmatmul.mubr.msk.f32.gmra.mxu0 %vm1203_vm6, %v4793_v13  ;;  %v16091_v26 = vadd.f32 %v3570_v30, %v3165_v16  ;;  %v19559_v13 = vld [vmem:[#allocation216_spill] sm:$0xff]  ;;  %v3168_v14 = vadd.f32 %v3120_v3, %v15684_v8  ;;  %v4805_v30 = vrot.slane %v4798_v18, %v12792_v9  ;;  %v19568_v3 = vld [vmem:[#allocation231_spill] sm:$0xff]  ;;  %v4807_v18 = vcombine.low %v15415_v1, %v16115_v4 }
 0x1d9   : > { %12375 = vmatmul.mubr.msk.f32.gmra.mxu1 %vm1203_vm6, %v19555_v41  ;;  %12309 = vmatprep.mubr.msk.f32.mxu0 %vm12715_vm1, %v18923_v33  ;;  %v19561_v34 = vcombine.low %v19559_v13, %v19560_v24  ;;  %v12077_v5 = vpop.f32.mrf.mxu1  ;;  %v12009_v16 = vpop.f32.mrf.mxu0  ;;  %v19564_v41 = vld [vmem:[#allocation218_spill] sm:$0xff] }
 0x1da   : > { %12377 = vmatprep.mubr.msk.f32.mxu1 %vm12715_vm1, %v18923_v33  ;;  %v19565_v45 = vcombine.low %v19563_v60, %v19564_v41  ;;  %v19570_v13 = vld [vmem:[#allocation246_spill] sm:$0xff]  ;;  %v19571_v5 = vld [vmem:[#allocation237_spill] sm:$0xff]  ;;  %v19572_v16 = vld [vmem:[#allocation243_spill] sm:$0xff]  ;;  %v4816_v41 = vcombine.low %v4757_v53, %v16107_v63 }
 0x1db   : > { %v3575_v6 = vpop.f32.mrf.mxu1  ;;  %v3125_v15 = vpop.f32.mrf.mxu0  ;;  %v4797_v24 = vcombine.low %v19570_v13, %v19466_v7  ;;  %v19573_v20 = vcombine.low %v19571_v5, %v19572_v16 }
 0x1dc   : > { %12310 = vmatmul.mubr.msk.f32.gmra.mxu0 %vm1203_vm6, %v19561_v34  ;;  %v16117_v8 = vadd.f32 %v3575_v6, %v3166_v55  ;;  %v3169_v48 = vadd.f32 %v3125_v15, %v15713_v29  ;;  %v16130_v55 = vcombine.high %v16107_v63, %v16107_v63  ;;  %v4759_v15 = vcombine.high %v283_v17, %v283_v17 }
 0x1dd   : > { %12378 = vmatmul.mubr.msk.f32.gmra.mxu1 %vm1203_vm6, %v19558_v23  ;;  %12312 = vmatprep.mubr.msk.f32.mxu0 %vm12715_vm1, %v18923_v33  ;;  %v12080_v38 = vpop.f32.mrf.mxu1  ;;  %v12012_v25 = vpop.f32.mrf.mxu0  ;;  %v19567_v23 = vld [vmem:[#allocation222_spill] sm:$0xff]  ;;  %v4814_v17 = vrot.slane %v4807_v18, %v12792_v9  ;;  %v5156_v18 = vcombine.low %v15728_v19, %v15736_v54 }
 0x1de   : > { %12380 = vmatprep.mubr.msk.f32.mxu1 %vm12715_vm1, %v18923_v33  ;;  %v19569_v29 = vcombine.low %v19567_v23, %v19568_v3  ;;  %v19574_v25 = vld [vmem:[#allocation234_spill] sm:$0xff]  ;;  %v5112_v3 = vrot.slane %v4757_v53, 7  ;;  %v5118_v13 = vrot.slane %v16130_v55, 7  ;;  %v5121_v53 = vrot.slane %v16133_v61, 7 }
 0x1df   : > { %v3580_v40 = vpop.f32.mrf.mxu1  ;;  %v4815_v19 = vcombine.low %v15827_v62, %v4814_v17  ;;  %v5172_v62 = vcombine.low %v15408_v35, %v15781_v50 }
 0x1e0   : > { %12313 = vmatmul.mubr.msk.f32.gmra.mxu0 %vm1203_vm6, %v4795_v32  ;;  %v16141_v34 = vadd.f32 %v3580_v40, %v3167_v28  ;;  %v3130_v32 = vpop.f32.mrf.mxu0  ;;  %v4806_v28 = vcombine.low %v4805_v30, %v15821_v12  ;;  %v19575_v40 = vld [vmem:[#allocation241_spill] sm:$0xff]  ;;  %v5123_v54 = vrot.slane %v5121_v53, 2 }
 0x1e1   : > { %12381 = vmatmul.mubr.msk.f32.gmra.mxu1 %vm1203_vm6, %v19565_v45  ;;  %12315 = vmatprep.mubr.msk.f32.mxu0 %vm12715_vm1, %v18923_v33  ;;  %v12083_v6 = vpop.f32.mrf.mxu1  ;;  %v3170_v60 = vadd.f32 %v3130_v32, %v15760_v58  ;;  %v4817_v45 = vcombine.low %v16130_v55, %v16133_v61  ;;  %v19576_v23 = vcombine.low %v19574_v25, %v19575_v40  ;;  %v11248_v58 = vrot.slane %v16115_v4, 9  ;;  %v19578_v25 = vld [vmem:[#allocation249_spill] sm:$0xff] }
 0x1e2   : > { %12383 = vmatprep.mubr.msk.f32.mxu1 %vm12715_vm1, %v18923_v33  ;;  %v12015_v7 = vpop.f32.mrf.mxu0  ;;  %v16173_v32 = vcombine.high %v16133_v61, %v16133_v61  ;;  %v16184_v6 = vrot.slane %v4759_v15, %v12792_v9 }
 0x1e4   : > { %12316 = vmatmul.mubr.msk.f32.gmra.mxu0 %vm1203_vm6, %v19573_v20  ;;  %v3585_v38 = vpop.f32.mrf.mxu1  ;;  %v3135_v30 = vpop.f32.mrf.mxu0  ;;  %v4831_v20 = vrot.slane %v4817_v45, %v12792_v9  ;;  %v5124_v15 = vrot.slane %v16173_v32, 7  ;;  %v4833_v61 = vcombine.low %v16173_v32, %v16184_v6 }
 0x1e5   : > { %12384 = vmatmul.mubr.msk.f32.gmra.mxu1 %vm1203_vm6, %v19569_v29  ;;  %12318 = vmatprep.mubr.msk.f32.mxu0 %vm12715_vm1, %v18923_v33  ;;  %v5115_v29 = vrot.slane %v16107_v63, 7  ;;  %v16165_v12 = vadd.f32 %v3585_v38, %v3168_v14  ;;  %v3171_v16 = vadd.f32 %v3135_v30, %v15798_v27  ;;  %v19577_v38 = vld [vmem:[#allocation242_spill] sm:$0xff]  ;;  %v5113_v27 = vsel %vm12836_vm9, %v11248_v58, %v5112_v3 }
 0x1e6   : > { %12386 = vmatprep.mubr.msk.f32.mxu1 %vm12715_vm1, %v18923_v33  ;;  %v12086_v5 = vpop.f32.mrf.mxu1  ;;  %v12018_v14 = vpop.f32.mrf.mxu0  ;;  %v19579_v40 = vcombine.low %v19577_v38, %v19578_v25  ;;  %v5170_v25 = vrot.slane %v5156_v18, %v12792_v9  ;;  %v5173_v17 = vcombine.low %v15785_v31, %v5113_v27 }
 0x1e7   : > { %v5117_v30 = vrot.slane %v5115_v29, 2 }
 0x1e8   : > { %12319 = vmatmul.mubr.msk.f32.gmra.mxu0 %vm1203_vm6, %v4797_v24  ;;  %v4824_v24 = vrot.slane %v4816_v41, %v12792_v9  ;;  %v5120_v41 = vrot.slane %v5118_v13, 2 }
 0x1e9   : > { %12387 = vmatmul.mubr.msk.f32.gmra.mxu1 %vm1203_vm6, %v19576_v23  ;;  %12321 = vmatprep.mubr.msk.f32.mxu0 %vm12715_vm1, %v18923_v33  ;;  %v3590_v7 = vpop.f32.mrf.mxu1  ;;  %v5114_v23 = vrot.slane %v5112_v3, 2 }
 0x1ea   : > { %12389 = vmatprep.mubr.msk.f32.mxu1 %vm12715_vm1, %v18923_v33  ;;  %v16192_v5 = vadd.f32 %v3590_v7, %v3169_v48  ;;  %v3140_v45 = vpop.f32.mrf.mxu0  ;;  %v19580_v48 = vld [vmem:[#allocation259_spill] sm:$0xff]  ;;  %v4832_v7 = vcombine.low %v4824_v24, %v4831_v20  ;;  %v5119_v24 = vsel %vm12836_vm9, %v5117_v30, %v5118_v13  ;;  %v5122_v35 = vsel %vm12836_vm9, %v5120_v41, %v5121_v53  ;;  %v19585_v41 = vld [vmem:[#allocation256_spill] sm:$0xff] }
 0x1eb   : > { %v12089_v14 = vpop.f32.mrf.mxu1  ;;  %v3172_v38 = vadd.f32 %v3140_v45, %v15829_v44  ;;  %v19581_v3 = vcombine.low %v19580_v48, %v19452_v39  ;;  %v19583_v44 = vld [vmem:[#allocation254_spill] sm:$0xff]  ;;  %v5116_v39 = vsel %vm12836_vm9, %v5114_v23, %v5115_v29  ;;  %v5125_v20 = vsel %vm12836_vm9, %v5123_v54, %v5124_v15 }
 0x1ec   : > { %12322 = vmatmul.mubr.msk.f32.gmra.mxu0 %vm1203_vm6, %v4806_v28  ;;  %v12021_v28 = vpop.f32.mrf.mxu0  ;;  %v19582_v14 = vld [vmem:[#allocation250_spill] sm:$0xff]  ;;  %v16231_v29 = vcombine.high %v16184_v6, %v16184_v6  ;;  %v5127_v13 = vrot.slane %v16184_v6, 7  ;;  %v5180_v23 = vrot.slane %v5172_v62, %v12792_v9  ;;  %v4840_v48 = vrot.slane %v4833_v61, %v12792_v9 }
 0x1ed   : > { %12390 = vmatmul.mubr.msk.f32.gmra.mxu1 %vm1203_vm6, %v19579_v40  ;;  %12324 = vmatprep.mubr.msk.f32.mxu0 %vm12715_vm1, %v18923_v33  ;;  %v5163_v58 = vrot.slane %v19581_v3, %v12792_v9  ;;  %v19584_v45 = vcombine.low %v19582_v14, %v19583_v44  ;;  %v5187_v3 = vrot.slane %v5173_v17, %v12792_v9 }
 0x1ee   : > { %12392 = vmatprep.mubr.msk.f32.mxu1 %vm12715_vm1, %v18923_v33  ;;  %v3145_v31 = vpop.f32.mrf.mxu0  ;;  %v5189_v28 = vcombine.low %v5116_v39, %v5119_v24  ;;  %v5130_v62 = vrot.slane %v16231_v29, 7 }
 0x1ef   : > { %v3173_v53 = vadd.f32 %v3145_v31, %v15846_v56  ;;  %v5171_v27 = vcombine.low %v5163_v58, %v5170_v25  ;;  %v5126_v58 = vrot.slane %v5124_v15, 2  ;;  %v5129_v25 = vrot.slane %v5127_v13, 2 }
 0x1f0   : > { %12325 = vmatmul.mubr.msk.f32.gmra.mxu0 %vm1203_vm6, %v4815_v19  ;;  %v19586_v19 = vld [vmem:[#allocation258_spill] sm:$0xff] }
 0x1f1   : > { %v3595_v40 = vpop.f32.mrf.mxu1  ;;  %12393 = vmatmul.mubr.msk.f32.gmra.mxu1 %vm1203_vm6, %v19584_v45  ;;  %12327 = vmatprep.mubr.msk.f32.mxu0 %vm12715_vm1, %v18923_v33  ;;  %v19587_v54 = vcombine.low %v19585_v41, %v19586_v19 }
 0x1f2   : > { %v16222_v50 = vadd.f32 %v3595_v40, %v3170_v60  ;;  %12395 = vmatprep.mubr.msk.f32.mxu1 %vm12715_vm1, %v18923_v33  ;;  %v12024_v60 = vpop.f32.mrf.mxu0  ;;  %v5190_v40 = vcombine.low %v5122_v35, %v5125_v20  ;;  %v5131_v35 = vsel %vm12836_vm9, %v5129_v25, %v5130_v62 }
 0x1f3   : > { %v12092_v18 = vpop.f32.mrf.mxu1 }
 0x1f4   : > { %v4199_v14 = vpop.f32.mrf.mxu0  ;;  %12328 = vmatmul.mubr.msk.f32.gmra.mxu0 %vm1203_vm6, %v4832_v7  ;;  %v5197_v7 = vrot.slane %v5189_v28, %v12792_v9  ;;  %v5204_v39 = vrot.slane %v5190_v40, %v12792_v9  ;;  %v19590_v28 = vld [vmem:[#allocation262_spill] sm:$0xff] }
 0x1f5   : > { %v3600_v30 = vpop.f32.mrf.mxu1  ;;  %12396 = vmatmul.mubr.msk.f32.gmra.mxu1 %vm1203_vm6, %v19587_v54  ;;  %v4323_v45 = vadd.f32 %v4199_v14, %v15862_v11  ;;  %12330 = vmatprep.mubr.msk.f32.mxu0 %vm12715_vm1, %v18923_v33  ;;  %v5128_v11 = vsel %vm12836_vm9, %v5126_v58, %v5127_v13 }
 0x1f6   : > { %v16244_v56 = vadd.f32 %v3600_v30, %v3171_v16  ;;  %12398 = vmatprep.mubr.msk.f32.mxu1 %vm12715_vm1, %v18923_v33  ;;  %v12106_v61 = vpop.f32.mrf.mxu0  ;;  %v5188_v16 = vcombine.low %v5180_v23, %v5187_v3  ;;  %v5205_v60 = vcombine.low %v5197_v7, %v5204_v39  ;;  %v19589_v3 = vld [vmem:[#allocation261_spill] sm:$0xff] }
 0x1f7   : > { %v12095_v44 = vpop.f32.mrf.mxu1  ;;  %v19591_v40 = vcombine.low %v19589_v3, %v19590_v28 }
 0x1f8   : > { %v4204_v15 = vpop.f32.mrf.mxu0  ;;  %12331 = vmatmul.mubr.msk.f32.gmra.mxu0 %vm1203_vm6, %v4840_v48 }
 0x1f9   : > { %v3605_v17 = vpop.f32.mrf.mxu1  ;;  %12399 = vmatmul.mubr.msk.f32.gmra.mxu1 %vm1203_vm6, %v5171_v27  ;;  %v4324_v20 = vadd.f32 %v4204_v15, %v15874_v47  ;;  %12412 = vmatprep.mubr.msk.f32.mxu0 %vm12715_vm1, %v18923_v33  ;;  %v5206_v27 = vcombine.low %v5128_v11, %v5131_v35  ;;  %v19593_v15 = vld [vmem:[#allocation265_spill] sm:$0xff]  ;;  %v19594_v11 = vld [vmem:[#allocation266_spill] sm:$0xff] }
 0x1fa   : > { %v16256_v24 = vadd.f32 %v3605_v17, %v3172_v38  ;;  %12401 = vmatprep.mubr.msk.f32.mxu1 %vm12715_vm1, %v18923_v33  ;;  %v12109_v38 = vpop.f32.mrf.mxu0  ;;  %v19595_v35 = vcombine.low %v19593_v15, %v19594_v11 }
 0x1fb   : > { %v12098_v31 = vpop.f32.mrf.mxu1 }
 0x1fc   : > { %v4209_v30 = vpop.f32.mrf.mxu0  ;;  %12413 = vmatmul.mubr.msk.f32.vlgmr.msra.gmra.mxu0 %vm1203_vm6, %v19588_v59 }
 0x1fd   : > { %v3610_v18 = vpop.f32.mrf.mxu1  ;;  %12402 = vmatmul.mubr.msk.f32.gmra.mxu1 %vm1203_vm6, %v5188_v16  ;;  %v4325_v47 = vadd.f32 %v4209_v30, %v15886_v51  ;;  %12415 = vmatprep.mubr.msk.f32.mxu0 %vm12715_vm1, %v18923_v33 }
 0x1fe   : > { %v16269_v23 = vadd.f32 %v3610_v18, %v3173_v53  ;;  %12404 = vmatprep.mubr.msk.f32.mxu1 %vm12715_vm1, %v18923_v33  ;;  %v12112_v41 = vpop.f32.mrf.mxu0  ;;  %v5213_v53 = vrot.slane %v5206_v27, %v12792_v9  ;;  %v19596_v27 = vld [vmem:[#allocation103_spill] sm:$0xff] }
 0x1ff   : > { %v12101_v13 = vpop.f32.mrf.mxu1 }
 0x200   : > { %v4214_v48 = vpop.f32.mrf.mxu0  ;;  %12416 = vmatmul.mubr.msk.f32.gmra.mxu0 %vm1203_vm6, %v19591_v40 }
 0x201   : > { %v4591_v19 = vpop.f32.mrf.mxu1  ;;  %12405 = vmatmul.mubr.msk.f32.gmra.mxu1 %vm1203_vm6, %v5205_v60  ;;  %v4326_v14 = vadd.f32 %v4214_v48, %v15903_v10  ;;  %12418 = vmatprep.mubr.msk.f32.mxu0 %vm12715_vm1, %v18923_v33 }
 0x202   : > { %v16280_v54 = vadd.f32 %v4591_v19, %v4323_v45  ;;  %12407 = vmatprep.mubr.msk.f32.mxu1 %vm12715_vm1, %v18923_v33  ;;  %v12115_v58 = vpop.f32.mrf.mxu0  ;;  %v19592_v45 = vld [vmem:[#allocation69_spill] sm:$0xff] }
 0x203   : > { %v12183_v51 = vpop.f32.mrf.mxu1  ;;  %v19597_v19 = vld [vmem:[#allocation45_spill] sm:$0xff]  ;;  %v19600_v58 = vld [vmem:[#allocation64_spill] sm:$0xff] }
 0x204   : > { %v4219_v44 = vpop.f32.mrf.mxu0  ;;  %12419 = vmatmul.mubr.msk.f32.gmra.mxu0 %vm1203_vm6, %v19592_v45 }
 0x205   : > { %v4596_v25 = vpop.f32.mrf.mxu1  ;;  %12408 = vmatmul.mubr.msk.f32.gmra.mxu1 %vm1203_vm6, %v5213_v53  ;;  %v4327_v17 = vadd.f32 %v4219_v44, %v15917_v42  ;;  %12421 = vmatprep.mubr.msk.f32.mxu0 %vm12715_vm1, %v18923_v33  ;;  %v19598_v53 = vld [vmem:[#allocation54_spill] sm:$0xff] }
 0x206   : > { %v16292_v62 = vadd.f32 %v4596_v25, %v4324_v20  ;;  %v12118_v10 = vpop.f32.mrf.mxu0  ;;  %v19599_v48 = vcombine.low %v19597_v19, %v19598_v53  ;;  %v19601_v25 = vld [vmem:[#allocation53_spill] sm:$0xff] }
 0x207   : > { %v12186_v61 = vpop.f32.mrf.mxu1  ;;  %v19602_v44 = vcombine.low %v19600_v58, %v19601_v25 }
 0x208   : > { %v4224_v39 = vpop.f32.mrf.mxu0  ;;  %12422 = vmatmul.mubr.msk.f32.gmra.mxu0 %vm1203_vm6, %v19595_v35 }
 0x209   : > { %v4601_v16 = vpop.f32.mrf.mxu1  ;;  %v4328_v20 = vadd.f32 %v4224_v39, %v15932_v21  ;;  %12424 = vmatprep.mubr.msk.f32.mxu0 %vm12715_vm1, %v18923_v33  ;;  %v19603_v39 = vld [vmem:[#allocation81_spill] sm:$0xff] }
 0x20a   : > { %v16299_v7 = vadd.f32 %v4601_v16, %v4325_v47  ;;  %v12121_v42 = vpop.f32.mrf.mxu0 }
 0x20b   : > { %v12189_v31 = vpop.f32.mrf.mxu1  ;;  %v19604_v42 = vld [vmem:[#allocation70_spill] sm:$0xff] }
 0x20c   : > { %v4229_v60 = vpop.f32.mrf.mxu0  ;;  %12425 = vmatmul.mubr.msk.f32.gmra.mxu0 %vm1203_vm6, %v19596_v27 }
 0x20d   : > { %v4606_v38 = vpop.f32.mrf.mxu1  ;;  %v4329_v59 = vadd.f32 %v4229_v60, %v15944_v36  ;;  %12427 = vmatprep.mubr.msk.f32.mxu0 %vm12715_vm1, %v18923_v33 }
 0x20e   : > { %v16308_v18 = vadd.f32 %v4606_v38, %v4326_v14  ;;  %v12124_v13 = vpop.f32.mrf.mxu0  ;;  %v19605_v38 = vld [vmem:[#allocation65_spill] sm:$0xff] }
 0x20f   : > { %v12192_v30 = vpop.f32.mrf.mxu1  ;;  %v19606_v60 = vcombine.low %v19604_v42, %v19605_v38 }
 0x210   : > { %v4234_v41 = vpop.f32.mrf.mxu0  ;;  %12428 = vmatmul.mubr.msk.f32.gmra.mxu0 %vm1203_vm6, %v19599_v48 }
 0x211   : > { %v4611_v47 = vpop.f32.mrf.mxu1  ;;  %v4330_v28 = vadd.f32 %v4234_v41, %v15961_v52  ;;  %12430 = vmatprep.mubr.msk.f32.mxu0 %vm12715_vm1, %v18923_v33  ;;  %v19607_v41 = vld [vmem:[#allocation155_spill] sm:$0xff] }
 0x212   : > { %v16315_v21 = vadd.f32 %v4611_v47, %v4327_v17  ;;  %v12127_v36 = vpop.f32.mrf.mxu0 }
 0x213   : > { %v12195_v3 = vpop.f32.mrf.mxu1  ;;  %v19608_v36 = vld [vmem:[#allocation94_spill] sm:$0xff] }
 0x214   : > { %v4239_v14 = vpop.f32.mrf.mxu0  ;;  %12431 = vmatmul.mubr.msk.f32.gmra.mxu0 %vm1203_vm6, %v19602_v44 }
 0x215   : > { %v4616_v40 = vpop.f32.mrf.mxu1  ;;  %v4331_v61 = vadd.f32 %v4239_v14, %v15976_v2  ;;  %12433 = vmatprep.mubr.msk.f32.mxu0 %vm12715_vm1, %v18923_v33 }
 0x216   : > { %v16324_v51 = vadd.f32 %v4616_v40, %v4328_v20  ;;  %v12130_v52 = vpop.f32.mrf.mxu0  ;;  %v19609_v40 = vld [vmem:[#allocation96_spill] sm:$0xff] }
 0x217   : > { %v12198_v45 = vpop.f32.mrf.mxu1  ;;  %v19610_v14 = vcombine.low %v19608_v36, %v19609_v40  ;;  %v19611_v52 = vld [vmem:[#allocation115_spill] sm:$0xff] }
 0x218   : > { %v4244_v16 = vpop.f32.mrf.mxu0  ;;  %12434 = vmatmul.mubr.msk.f32.gmra.mxu0 %vm1203_vm6, %v19603_v39 }
 0x219   : > { %v4621_v17 = vpop.f32.mrf.mxu1  ;;  %v4332_v11 = vadd.f32 %v4244_v16, %v15988_v0  ;;  %12436 = vmatprep.mubr.msk.f32.mxu0 %vm12715_vm1, %v18923_v33 }
 0x21a   : > { %v16333_v10 = vadd.f32 %v4621_v17, %v4329_v59  ;;  %v12133_v35 = vpop.f32.mrf.mxu0 }
 0x21b   : > { %v12201_v15 = vpop.f32.mrf.mxu1  ;;  %v19612_v35 = vld [vmem:[#allocation61_spill] sm:$0xff] }
 0x21c   : > { %v4249_v20 = vpop.f32.mrf.mxu0  ;;  %12437 = vmatmul.mubr.msk.f32.gmra.mxu0 %vm1203_vm6, %v19606_v60 }
 0x21d   : > { %v4626_v31 = vpop.f32.mrf.mxu1  ;;  %v4333_v30 = vadd.f32 %v4249_v20, %v16005_v57  ;;  %12439 = vmatprep.mubr.msk.f32.mxu0 %vm12715_vm1, %v18923_v33 }
 0x21e   : > { %v16340_v2 = vadd.f32 %v4626_v31, %v4330_v28  ;;  %v12136_v0 = vpop.f32.mrf.mxu0  ;;  %v19613_v31 = vld [vmem:[#allocation134_spill] sm:$0xff] }
 0x21f   : > { %v12204_v27 = vpop.f32.mrf.mxu1  ;;  %v19614_v20 = vcombine.low %v19612_v35, %v19613_v31  ;;  %v19615_v0 = vld [vmem:[#allocation118_spill] sm:$0xff]  ;;  %v19622_v35 = vld [vmem:[#allocation141_spill] sm:$0xff] }
 0x220   : > { %v4254_v47 = vpop.f32.mrf.mxu0  ;;  %12440 = vmatmul.mubr.msk.f32.gmra.mxu0 %vm1203_vm6, %v19607_v41 }
 0x221   : > { %v4631_v59 = vpop.f32.mrf.mxu1  ;;  %v4334_v53 = vadd.f32 %v4254_v47, %v16019_v22  ;;  %12442 = vmatprep.mubr.msk.f32.mxu0 %vm12715_vm1, %v18923_v33 }
 0x222   : > { %v16349_v13 = vadd.f32 %v4631_v59, %v4331_v61  ;;  %v12139_v48 = vpop.f32.mrf.mxu0  ;;  %v19616_v59 = vld [vmem:[#allocation129_spill] sm:$0xff] }
 0x223   : > { %v12207_v19 = vpop.f32.mrf.mxu1  ;;  %v19617_v47 = vcombine.low %v19615_v0, %v19616_v59 }
 0x224   : > { %v4259_v28 = vpop.f32.mrf.mxu0  ;;  %12443 = vmatmul.mubr.msk.f32.gmra.mxu0 %vm1203_vm6, %v19610_v14 }
 0x225   : > { %v4636_v3 = vpop.f32.mrf.mxu1  ;;  %v4335_v25 = vadd.f32 %v4259_v28, %v16034_v46  ;;  %12445 = vmatprep.mubr.msk.f32.mxu0 %vm12715_vm1, %v18923_v33  ;;  %v19618_v28 = vld [vmem:[#allocation117_spill] sm:$0xff] }
 0x226   : > { %v16356_v57 = vadd.f32 %v4636_v3, %v4332_v11  ;;  %v12142_v22 = vpop.f32.mrf.mxu0 }
 0x227   : > { %v12210_v58 = vpop.f32.mrf.mxu1 }
 0x228   : > { %v4264_v61 = vpop.f32.mrf.mxu0  ;;  %12446 = vmatmul.mubr.msk.f32.gmra.mxu0 %vm1203_vm6, %v19611_v52 }
 0x229   : > { %v4641_v44 = vpop.f32.mrf.mxu1  ;;  %v4336_v16 = vadd.f32 %v4264_v61, %v16046_v37  ;;  %12448 = vmatprep.mubr.msk.f32.mxu0 %vm12715_vm1, %v18923_v33  ;;  %v19620_v61 = vld [vmem:[#allocation89_spill] sm:$0xff] }
 0x22a   : > { %v16365_v45 = vadd.f32 %v4641_v44, %v4333_v30  ;;  %v12145_v39 = vpop.f32.mrf.mxu0  ;;  %v19619_v44 = vld [vmem:[#allocation132_spill] sm:$0xff] }
 0x22b   : > { %v12213_v17 = vpop.f32.mrf.mxu1 }
 0x22c   : > { %v4269_v11 = vpop.f32.mrf.mxu0  ;;  %12449 = vmatmul.mubr.msk.f32.gmra.mxu0 %vm1203_vm6, %v19614_v20 }
 0x22d   : > { %v4646_v15 = vpop.f32.mrf.mxu1  ;;  %v4337_v38 = vadd.f32 %v4269_v11, %v16063_v43  ;;  %12451 = vmatprep.mubr.msk.f32.mxu0 %vm12715_vm1, %v18923_v33 }
 0x22e   : > { %v16372_v46 = vadd.f32 %v4646_v15, %v4334_v53  ;;  %v12148_v37 = vpop.f32.mrf.mxu0 }
 0x22f   : > { %v12216_v42 = vpop.f32.mrf.mxu1 }
 0x230   : > { %v4274_v30 = vpop.f32.mrf.mxu0  ;;  %12452 = vmatmul.mubr.msk.f32.gmra.mxu0 %vm1203_vm6, %v19617_v47 }
 0x231   : > { %v4651_v60 = vpop.f32.mrf.mxu1  ;;  %v4338_v19 = vadd.f32 %v4274_v30, %v16079_v49  ;;  %12454 = vmatprep.mubr.msk.f32.mxu0 %vm12715_vm1, %v18923_v33  ;;  %v7219_v49 = vld [vmem:[%s18518_s2 + $0x8] sm:$0x3]  ;;  %v19624_v30 = vld [vmem:[#allocation92_spill] sm:$0xff] }
 0x232   : > { %v16381_v27 = vadd.f32 %v4651_v60, %v4335_v25  ;;  %v12151_v43 = vpop.f32.mrf.mxu0  ;;  %12487 = vmatprep.subr.msk.mxu1 %vm7376_vm10, %v7219_v49  ;;  %v19623_v60 = vld [vmem:[#allocation143_spill] sm:$0xff] }
 0x233   : > { %v12219_v41 = vpop.f32.mrf.mxu1  ;;  %12488 = vmatpush3.msk.msra.mxu1 %vm7376_vm10, %v7219_v49  ;;  %v19625_v0 = vcombine.low %v19623_v60, %v19624_v30  ;;  %v19634_v60 = vld [vmem:[#allocation181_spill] sm:$0xff] }
 0x234   : > { %v4279_v3 = vpop.f32.mrf.mxu0  ;;  %12455 = vmatmul.mubr.msk.f32.gmra.mxu0 %vm1203_vm6, %v19618_v28 }
 0x235   : > { %v4656_v53 = vpop.f32.mrf.mxu1  ;;  %v4339_v40 = vadd.f32 %v4279_v3, %v16091_v26  ;;  %12457 = vmatprep.mubr.msk.f32.mxu0 %vm12715_vm1, %v18923_v33  ;;  %v19621_v26 = vcombine.low %v19619_v44, %v19620_v61 }
 0x236   : > { %v16390_v48 = vadd.f32 %v4656_v53, %v4336_v16  ;;  %v12154_v14 = vpop.f32.mrf.mxu0  ;;  %v19626_v53 = vld [vmem:[#allocation14_spill] sm:$0xff] }
 0x237   : > { %v12222_v36 = vpop.f32.mrf.mxu1 }
 0x238   : > { %v4284_v22 = vpop.f32.mrf.mxu0  ;;  %12458 = vmatmul.mubr.msk.f32.gmra.mxu0 %vm1203_vm6, %v19621_v26 }
 0x239   : > { %v4661_v58 = vpop.f32.mrf.mxu1  ;;  %v4340_v17 = vadd.f32 %v4284_v22, %v16117_v8  ;;  %12460 = vmatprep.mubr.msk.f32.mxu0 %vm12715_vm1, %v18923_v33  ;;  %v19628_v22 = vld [vmem:[#allocation160_spill] sm:$0xff] }
 0x23a   : > { %v16402_v25 = vadd.f32 %v4661_v58, %v4337_v38  ;;  %v12157_v16 = vpop.f32.mrf.mxu0  ;;  %v19627_v58 = vld [vmem:[#allocation91_spill] sm:$0xff] }
 0x23b   : > { %v12225_v52 = vpop.f32.mrf.mxu1  ;;  %v19629_v44 = vcombine.low %v19627_v58, %v19628_v22 }
 0x23c   : > { %v4289_v11 = vpop.f32.mrf.mxu0  ;;  %12461 = vmatmul.mubr.msk.f32.gmra.mxu0 %vm1203_vm6, %v19622_v35  ;;  %v5505_v35 = vcombine.low %v16107_v63, %v16130_v55 }
 0x23d   : > { %v4666_v39 = vpop.f32.mrf.mxu1  ;;  %v4341_v20 = vadd.f32 %v4289_v11, %v16141_v34  ;;  %12463 = vmatprep.mubr.msk.f32.mxu0 %vm12715_vm1, %v18923_v33 }
 0x23e   : > { %v16411_v15 = vadd.f32 %v4666_v39, %v4338_v19  ;;  %v12160_v42 = vpop.f32.mrf.mxu0  ;;  %v19631_v39 = vld [vmem:[#allocation156_spill] sm:$0xff]  ;;  %v5513_v63 = vrot.slane %v5505_v35, %v12792_v9 }
 0x23f   : > { %v12228_v31 = vpop.f32.mrf.mxu1 }
 0x240   : > { %v4294_v37 = vpop.f32.mrf.mxu0  ;;  %12464 = vmatmul.mubr.msk.f32.gmra.mxu0 %vm1203_vm6, %v19625_v0 }
 0x241   : > { %v4671_v38 = vpop.f32.mrf.mxu1  ;;  %v4342_v47 = vadd.f32 %v4294_v37, %v16165_v12  ;;  %12466 = vmatprep.mubr.msk.f32.mxu0 %vm12715_vm1, %v18923_v33  ;;  %v11277_v12 = vcombine.high %v15415_v1, %v16115_v4  ;;  %v19630_v4 = vld [vmem:[#allocation161_spill] sm:$0xff] }
 0x242   : > { %v16418_v8 = vadd.f32 %v4671_v38, %v4339_v40  ;;  %v12163_v34 = vpop.f32.mrf.mxu0  ;;  %v19632_v11 = vcombine.low %v19630_v4, %v19631_v39 }
 0x243   : > { %v12231_v59 = vpop.f32.mrf.mxu1 }
 0x244   : > { %v4299_v43 = vpop.f32.mrf.mxu0  ;;  %12467 = vmatmul.mubr.msk.f32.gmra.mxu0 %vm1203_vm6, %v19626_v53 }
 0x245   : > { %v4676_v41 = vpop.f32.mrf.mxu1  ;;  %v4343_v28 = vadd.f32 %v4299_v43, %v16192_v5  ;;  %12469 = vmatprep.mubr.msk.f32.mxu0 %vm12715_vm1, %v18923_v33 }
 0x246   : > { %v16427_v19 = vadd.f32 %v4676_v41, %v4340_v17  ;;  %v12166_v36 = vpop.f32.mrf.mxu0  ;;  %v5503_v17 = vrot.slane %v11277_v12, %v12792_v9 }
 0x247   : > { %v12234_v3 = vpop.f32.mrf.mxu1 }
 0x248   : > { %v4304_v14 = vpop.f32.mrf.mxu0  ;;  %12470 = vmatmul.mubr.msk.f32.gmra.mxu0 %vm1203_vm6, %v19629_v44  ;;  %v5504_v30 = vcombine.low %v19634_v60, %v5503_v17 }
 0x249   : > { %v4681_v40 = vpop.f32.mrf.mxu1  ;;  %v4344_v26 = vadd.f32 %v4304_v14, %v16222_v50  ;;  %12472 = vmatprep.mubr.msk.f32.mxu0 %vm12715_vm1, %v18923_v33  ;;  %v19633_v50 = vld [vmem:[#allocation202_spill] sm:$0xff] }
 0x24a   : > { %v16436_v49 = vadd.f32 %v4681_v40, %v4341_v20  ;;  %v12169_v5 = vpop.f32.mrf.mxu0  ;;  %v5506_v31 = vcombine.low %v19633_v50, %v16173_v32 }
 0x24b   : > { %v12237_v61 = vpop.f32.mrf.mxu1 }
 0x24c   : > { %v4309_v1 = vpop.f32.mrf.mxu0  ;;  %12473 = vmatmul.mubr.msk.f32.gmra.mxu0 %vm1203_vm6, %v19632_v11  ;;  %v5520_v55 = vrot.slane %v5506_v31, %v12792_v9 }
 0x24d   : > { %v4686_v52 = vpop.f32.mrf.mxu1  ;;  %v4345_v42 = vadd.f32 %v4309_v1, %v16244_v56  ;;  %12475 = vmatprep.mubr.msk.f32.mxu0 %vm12715_vm1, %v18923_v33 }
 0x24e   : > { %v16446_v16 = vadd.f32 %v4686_v52, %v4342_v47  ;;  %v12172_v38 = vpop.f32.mrf.mxu0  ;;  %v19635_v47 = vld [vmem:[#allocation167_spill] sm:$0xff]  ;;  %v5521_v3 = vcombine.low %v5513_v63, %v5520_v55 }
 0x24f   : > { %v12240_v20 = vpop.f32.mrf.mxu1 }
 0x250   : > { %v4314_v59 = vpop.f32.mrf.mxu0  ;;  %12476 = vmatmul.mubr.msk.f32.gmra.mxu0 %vm1203_vm6, %v19635_v47 }
 0x251   : > { %v4691_v37 = vpop.f32.mrf.mxu1  ;;  %v4346_v56 = vadd.f32 %v4314_v59, %v16256_v24  ;;  %12478 = vmatprep.mubr.msk.f32.mxu0 %vm12715_vm1, %v18923_v33 }
 0x252   : > { %v16460_v0 = vadd.f32 %v4691_v37, %v4343_v28  ;;  %v12175_v34 = vpop.f32.mrf.mxu0  ;;  %v5522_v28 = vcombine.low %v16184_v6, %v16231_v29 }
 0x253   : > { %v12243_v32 = vpop.f32.mrf.mxu1 }
 0x254   : > { %v4319_v53 = vpop.f32.mrf.mxu0  ;;  %12479 = vmatmul.mubr.msk.f32.gmra.mxu0 %vm1203_vm6, %v5504_v30  ;;  %v5529_v22 = vrot.slane %v5522_v28, %v12792_v9 }
 0x255   : > { %v4696_v41 = vpop.f32.mrf.mxu1  ;;  %v4347_v40 = vadd.f32 %v4319_v53, %v16269_v23  ;;  %12481 = vmatprep.mubr.msk.f32.mxu0 %vm12715_vm1, %v18923_v33 }
 0x256   : > { %v16469_v43 = vadd.f32 %v4696_v41, %v4344_v26  ;;  %v12178_v24 = vpop.f32.mrf.mxu0 }
 0x257   : > { %v12246_v36 = vpop.f32.mrf.mxu1 }
 0x258   : > { %v4960_v58 = vpop.f32.mrf.mxu0  ;;  %12482 = vmatmul.mubr.msk.f32.gmra.mxu0 %vm1203_vm6, %v5521_v3 }
 0x259   : > { %v4701_v12 = vpop.f32.mrf.mxu1  ;;  %v5084_v61 = vadd.f32 %v4960_v58, %v16280_v54  ;;  %12484 = vmatprep.mubr.msk.f32.mxu0 %vm12715_vm1, %v18923_v33 }
 0x25a   : > { %v16477_v14 = vadd.f32 %v4701_v12, %v4345_v42  ;;  %v12260_v6 = vpop.f32.mrf.mxu0 }
 0x25b   : > { %v12249_v44 = vpop.f32.mrf.mxu1 }
 0x25c   : > { %v4965_v26 = vpop.f32.mrf.mxu0  ;;  %12485 = vmatmul.mubr.msk.f32.gmra.mxu0 %vm1203_vm6, %v5529_v22 }
 0x25d   : > { %v4706_v29 = vpop.f32.mrf.mxu1  ;;  %v5085_v52 = vadd.f32 %v4965_v26, %v16292_v62 }
 0x25e   : > { %v16484_v23 = vadd.f32 %v4706_v29, %v4346_v56  ;;  %v12263_v17 = vpop.f32.mrf.mxu0 }
 0x25f   : > { %v12252_v5 = vpop.f32.mrf.mxu1 }
 0x260   : > { %v4970_v39 = vpop.f32.mrf.mxu0 }
 0x261   : > { %v4711_v1 = vpop.f32.mrf.mxu1  ;;  %v5086_v54 = vadd.f32 %v4970_v39, %v16299_v7 }
 0x262   : > { %v16488_v4 = vadd.f32 %v4711_v1, %v4347_v40  ;;  %v12266_v35 = vpop.f32.mrf.mxu0 }
 0x263   : > { %v12255_v11 = vpop.f32.mrf.mxu1 }
 0x264   : > { %v4975_v31 = vpop.f32.mrf.mxu0 }
 0x265   : > { %v5333_v33 = vpop.f32.mrf.mxu1  ;;  %v5087_v42 = vadd.f32 %v4975_v31, %v16308_v18 }
 0x266   : > { %v16491_v50 = vadd.f32 %v5333_v33, %v5084_v61  ;;  %v12269_v38 = vpop.f32.mrf.mxu0 }
 0x267   : > { %v12337_v20 = vpop.f32.mrf.mxu1 }
 0x268   : > { %v4980_v62 = vpop.f32.mrf.mxu0 }
 0x269   : > { %v5338_v37 = vpop.f32.mrf.mxu1  ;;  %v5088_v59 = vadd.f32 %v4980_v62, %v16315_v21 }
 0x26a   : > { %v16494_v60 = vadd.f32 %v5338_v37, %v5085_v52  ;;  %v12272_v47 = vpop.f32.mrf.mxu0 }
 0x26b   : > { %v12340_v30 = vpop.f32.mrf.mxu1 }
 0x26c   : > { %v4985_v7 = vpop.f32.mrf.mxu0 }
 0x26d   : > { %v5343_v63 = vpop.f32.mrf.mxu1  ;;  %v5089_v56 = vadd.f32 %v4985_v7, %v16324_v51 }
 0x26e   : > { %v16497_v55 = vadd.f32 %v5343_v63, %v5086_v54  ;;  %v12275_v34 = vpop.f32.mrf.mxu0 }
 0x26f   : > { %v12343_v32 = vpop.f32.mrf.mxu1 }
 0x270   : > { %v4990_v18 = vpop.f32.mrf.mxu0 }
 0x271   : > { %v5348_v41 = vpop.f32.mrf.mxu1  ;;  %v5090_v28 = vadd.f32 %v4990_v18, %v16333_v10 }
 0x272   : > { %v16500_v53 = vadd.f32 %v5348_v41, %v5087_v42  ;;  %v12278_v36 = vpop.f32.mrf.mxu0 }
 0x273   : > { %v12346_v3 = vpop.f32.mrf.mxu1 }
 0x274   : > { %v4995_v21 = vpop.f32.mrf.mxu0 }
 0x275   : > { %v5353_v40 = vpop.f32.mrf.mxu1  ;;  %v5091_v58 = vadd.f32 %v4995_v21, %v16340_v2 }
 0x276   : > { %v16503_v24 = vadd.f32 %v5353_v40, %v5088_v59  ;;  %v12281_v22 = vpop.f32.mrf.mxu0 }
 0x277   : > { %v12349_v12 = vpop.f32.mrf.mxu1 }
 0x278   : > { %v5000_v51 = vpop.f32.mrf.mxu0 }
 0x279   : > { %v5358_v44 = vpop.f32.mrf.mxu1  ;;  %v5092_v29 = vadd.f32 %v5000_v51, %v16349_v13 }
 0x27a   : > { %v16506_v61 = vadd.f32 %v5358_v44, %v5089_v56  ;;  %v12284_v26 = vpop.f32.mrf.mxu0 }
 0x27b   : > { %v12352_v6 = vpop.f32.mrf.mxu1 }
 0x27c   : > { %v5005_v10 = vpop.f32.mrf.mxu0 }
 0x27d   : > { %v5363_v5 = vpop.f32.mrf.mxu1  ;;  %v5093_v1 = vadd.f32 %v5005_v10, %v16356_v57 }
 0x27e   : > { %v16509_v52 = vadd.f32 %v5363_v5, %v5090_v28  ;;  %v12287_v39 = vpop.f32.mrf.mxu0 }
 0x27f   : > { %v12355_v17 = vpop.f32.mrf.mxu1 }
 0x280   : > { %v5010_v2 = vpop.f32.mrf.mxu0 }
 0x281   : > { %v5368_v11 = vpop.f32.mrf.mxu1  ;;  %v5094_v33 = vadd.f32 %v5010_v2, %v16365_v45 }
 0x282   : > { %v16512_v54 = vadd.f32 %v5368_v11, %v5091_v58  ;;  %v12290_v31 = vpop.f32.mrf.mxu0 }
 0x283   : > { %v12358_v35 = vpop.f32.mrf.mxu1 }
 0x284   : > { %v5015_v13 = vpop.f32.mrf.mxu0 }
 0x285   : > { %v5373_v20 = vpop.f32.mrf.mxu1  ;;  %v5095_v37 = vadd.f32 %v5015_v13, %v16372_v46  ;;  %v7218_v46 = vld [vmem:[%s18518_s2] sm:$0xff] }
 0x286   : > { %v16515_v42 = vadd.f32 %v5373_v20, %v5092_v29  ;;  %v12293_v62 = vpop.f32.mrf.mxu0  ;;  %12489 = vmatprep.subr.mxu1 %v7218_v46 }
 0x287   : > { %v12361_v38 = vpop.f32.mrf.mxu1  ;;  %12490 = vmatpush3.msra.mxu1 %v7218_v46 }
 0x288   : > { %v5020_v57 = vpop.f32.mrf.mxu0 }
 0x289   : > { %v5378_v30 = vpop.f32.mrf.mxu1  ;;  %v5096_v63 = vadd.f32 %v5020_v57, %v16381_v27 }
 0x28a   : > { %v16518_v59 = vadd.f32 %v5378_v30, %v5093_v1  ;;  %v12296_v7 = vpop.f32.mrf.mxu0 }
 0x28b   : > { %v12364_v47 = vpop.f32.mrf.mxu1 }
 0x28c   : > { %v5025_v45 = vpop.f32.mrf.mxu0 }
 0x28d   : > { %v5383_v32 = vpop.f32.mrf.mxu1  ;;  %v5097_v41 = vadd.f32 %v5025_v45, %v16390_v48 }
 0x28e   : > { %v16521_v56 = vadd.f32 %v5383_v32, %v5094_v33  ;;  %v12299_v18 = vpop.f32.mrf.mxu0 }
 0x28f   : > { %v12367_v34 = vpop.f32.mrf.mxu1 }
 0x290   : > { %v5030_v36 = vpop.f32.mrf.mxu0 }
 0x291   : > { %v5388_v3 = vpop.f32.mrf.mxu1  ;;  %v5098_v40 = vadd.f32 %v5030_v36, %v16402_v25 }
 0x292   : > { %v16527_v28 = vadd.f32 %v5388_v3, %v5095_v37  ;;  %v12302_v21 = vpop.f32.mrf.mxu0 }
 0x293   : > { %v12370_v27 = vpop.f32.mrf.mxu1 }
 0x294   : > { %v5035_v22 = vpop.f32.mrf.mxu0 }
 0x295   : > { %v5393_v12 = vpop.f32.mrf.mxu1  ;;  %v5099_v44 = vadd.f32 %v5035_v22, %v16411_v15 }
 0x296   : > { %v16530_v58 = vadd.f32 %v5393_v12, %v5096_v63  ;;  %v12305_v51 = vpop.f32.mrf.mxu0 }
 0x297   : > { %v12373_v48 = vpop.f32.mrf.mxu1 }
 0x298   : > { %v5040_v26 = vpop.f32.mrf.mxu0 }
 0x299   : > { %v5398_v6 = vpop.f32.mrf.mxu1  ;;  %v5100_v10 = vadd.f32 %v5040_v26, %v16418_v8 }
 0x29a   : > { %v16533_v29 = vadd.f32 %v5398_v6, %v5097_v41  ;;  %v12308_v17 = vpop.f32.mrf.mxu0 }
 0x29b   : > { %v12376_v5 = vpop.f32.mrf.mxu1 }
 0x29c   : > { %v5045_v25 = vpop.f32.mrf.mxu0 }
 0x29d   : > { %v5403_v1 = vpop.f32.mrf.mxu1  ;;  %v5101_v2 = vadd.f32 %v5045_v25, %v16427_v19 }
 0x29e   : > { %v16536_v39 = vadd.f32 %v5403_v1, %v5098_v40  ;;  %v12311_v35 = vpop.f32.mrf.mxu0 }
 0x29f   : > { %v12379_v11 = vpop.f32.mrf.mxu1 }
 0x2a0   : > { %v5050_v15 = vpop.f32.mrf.mxu0 }
 0x2a1   : > { %v5408_v33 = vpop.f32.mrf.mxu1  ;;  %v5102_v13 = vadd.f32 %v5050_v15, %v16436_v49 }
 0x2a2   : > { %v16539_v31 = vadd.f32 %v5408_v33, %v5099_v44  ;;  %v12314_v38 = vpop.f32.mrf.mxu0 }
 0x2a3   : > { %v12382_v20 = vpop.f32.mrf.mxu1 }
 0x2a4   : > { %v5055_v8 = vpop.f32.mrf.mxu0 }
 0x2a5   : > { %v5413_v37 = vpop.f32.mrf.mxu1  ;;  %v5103_v57 = vadd.f32 %v5055_v8, %v16446_v16 }
 0x2a6   : > { %v16542_v62 = vadd.f32 %v5413_v37, %v5100_v10  ;;  %v12317_v47 = vpop.f32.mrf.mxu0 }
 0x2a7   : > { %v12385_v30 = vpop.f32.mrf.mxu1 }
 0x2a8   : > { %v5060_v19 = vpop.f32.mrf.mxu0 }
 0x2a9   : > { %v5418_v63 = vpop.f32.mrf.mxu1  ;;  %v5104_v45 = vadd.f32 %v5060_v19, %v16460_v0 }
 0x2aa   : > { %v16545_v7 = vadd.f32 %v5418_v63, %v5101_v2  ;;  %v12320_v34 = vpop.f32.mrf.mxu0 }
 0x2ab   : > { %v12388_v32 = vpop.f32.mrf.mxu1 }
 0x2ac   : > { %v5065_v49 = vpop.f32.mrf.mxu0 }
 0x2ad   : > { %v5423_v41 = vpop.f32.mrf.mxu1  ;;  %v5105_v3 = vadd.f32 %v5065_v49, %v16469_v43 }
 0x2ae   : > { %v16548_v18 = vadd.f32 %v5423_v41, %v5102_v13  ;;  %v12323_v36 = vpop.f32.mrf.mxu0 }
 0x2af   : > { %v12391_v46 = vpop.f32.mrf.mxu1 }
 0x2b0   : > { %v5070_v16 = vpop.f32.mrf.mxu0 }
 0x2b1   : > { %v5428_v27 = vpop.f32.mrf.mxu1  ;;  %v5106_v12 = vadd.f32 %v5070_v16, %v16477_v14 }
 0x2b2   : > { %v16551_v40 = vadd.f32 %v5428_v27, %v5103_v57  ;;  %v12326_v22 = vpop.f32.mrf.mxu0 }
 0x2b3   : > { %v12394_v21 = vpop.f32.mrf.mxu1 }
 0x2b4   : > { %v5075_v0 = vpop.f32.mrf.mxu0 }
 0x2b5   : > { %v5433_v48 = vpop.f32.mrf.mxu1  ;;  %v5107_v6 = vadd.f32 %v5075_v0, %v16484_v23  ;;  %v19640_v0 = vld [vmem:[#allocation2_spill] sm:$0xff] }
 0x2b6   : > { %v16554_v44 = vadd.f32 %v5433_v48, %v5104_v45  ;;  %v12329_v26 = vpop.f32.mrf.mxu0 }
 0x2b7   : > { %v12397_v51 = vpop.f32.mrf.mxu1 }
 0x2b8   : > { %v5080_v43 = vpop.f32.mrf.mxu0  ;;  %v16576_v51 = vsub.s32 0, %v19640_v0 }
 0x2b9   : > { %v5438_v5 = vpop.f32.mrf.mxu1  ;;  %v5108_v1 = vadd.f32 %v5080_v43, %v16488_v4 }
 0x2ba   : > { %v16557_v10 = vadd.f32 %v5438_v5, %v5105_v3  ;;  %v12332_v25 = vpop.f32.mrf.mxu0 }
 0x2bb   : > { %v12400_v17 = vpop.f32.mrf.mxu1 }
 0x2bc   : > { %19636 = vst [vmem:[#allocation193_spill] sm:$0xff] %v16557_v10  ;;  %v5629_v14 = vpop.f32.mrf.mxu0 }
 0x2bd   : > { %v5443_v11 = vpop.f32.mrf.mxu1  ;;  %v5753_v33 = vadd.f32 %v5629_v14, %v16491_v50 }
 0x2be   : > { %v16560_v2 = vadd.f32 %v5443_v11, %v5106_v12  ;;  %v12414_v15 = vpop.f32.mrf.mxu0 }
 0x2bf   : > { %v12403_v35 = vpop.f32.mrf.mxu1  ;;  %v5803_v13 = vcombine.high %v5753_v33, %v5753_v33  ;;  %v5810_v4 = vrot.slane %v5753_v33, %v12792_v9 }
 0x2c0   : > { %19637 = vst [vmem:[#allocation194_spill] sm:$0xff] %v16560_v2  ;;  %v5634_v38 = vpop.f32.mrf.mxu0 }
 0x2c1   : > { %v5448_v20 = vpop.f32.mrf.mxu1  ;;  %v5754_v8 = vadd.f32 %v5634_v38, %v16494_v60  ;;  %v5817_v63 = vrot.slane %v5803_v13, %v12792_v9  ;;  %v5818_v49 = vcombine.high %v5810_v4, %v5810_v4 }
 0x2c2   : > { %v16563_v23 = vadd.f32 %v5448_v20, %v5107_v6  ;;  %v12417_v30 = vpop.f32.mrf.mxu0 }
 0x2c3   : > { %v12406_v37 = vpop.f32.mrf.mxu1  ;;  %v5820_v57 = vcombine.high %v5754_v8, %v5754_v8  ;;  %v5819_v36 = vcombine.high %v5817_v63, %v5817_v63  ;;  %v5827_v27 = vrot.slane %v5754_v8, %v12792_v9 }
 0x2c4   : > { %19638 = vst [vmem:[#allocation211_spill] sm:$0xff] %v16563_v23  ;;  %v5639_v32 = vpop.f32.mrf.mxu0 }
 0x2c5   : > { %v5453_v47 = vpop.f32.mrf.mxu1  ;;  %v5834_v50 = vrot.slane %v5820_v57, %v12792_v9  ;;  %v5755_v45 = vadd.f32 %v5639_v32, %v16497_v55 }
 0x2c6   : > { %v16568_v19 = vadd.f32 %v5453_v47, %v5108_v1  ;;  %v12420_v41 = vpop.f32.mrf.mxu0  ;;  %v5835_v1 = vcombine.high %v5827_v27, %v5827_v27 }
 0x2c7   : > { %v12409_v34 = vpop.f32.mrf.mxu1  ;;  %v5836_v46 = vcombine.high %v5834_v50, %v5834_v50  ;;  %v5837_v3 = vcombine.high %v5755_v45, %v5755_v45  ;;  %v5844_v60 = vrot.slane %v5755_v45, %v12792_v9 }
 0x2c8   : > { %19639 = vst [vmem:[#allocation206_spill] sm:$0xff] %v16568_v19  ;;  %v5644_v16 = vpop.f32.mrf.mxu0 }
 0x2c9   : > { %v6317_v21 = vmax.f32 %v5810_v4, %v5836_v46  ;;  %v5851_v12 = vrot.slane %v5837_v3, %v12792_v9  ;;  %v5852_v22 = vcombine.high %v5844_v60, %v5844_v60  ;;  %v6318_v48 = vmax.f32 %v5818_v49, %v5844_v60 }
 0x2ca   : > { %v5756_v55 = vadd.f32 %v5644_v16, %v16500_v53  ;;  %v12423_v6 = vpop.f32.mrf.mxu0 }
 0x2cb   : > { %v11304_v26 = vrot.slane %v6317_v21, 9  ;;  %v5853_v5 = vcombine.high %v5851_v12, %v5851_v12  ;;  %v6319_v43 = vmax.f32 %v5817_v63, %v5852_v22  ;;  %v6320_v17 = vmax.f32 %v5819_v36, %v5851_v12  ;;  %v16606_v12 = vld [vmem:[%s18518_s2 + $0x18] sm:$0x3] }
 0x2cc   : > { %v11305_v25 = vrot.slane %v6318_v48, 9  ;;  %v5861_v11 = vrot.slane %v5756_v55, %v12792_v9  ;;  %v5649_v14 = vpop.f32.mrf.mxu0  ;;  %v5854_v57 = vcombine.high %v5756_v55, %v5756_v55  ;;  %19641 = vst [vmem:[#allocation80_spill] sm:$0xff] %v16606_v12  ;;  %12497 = vmatprep.subr.msk.mxu1 %vm7376_vm10, %v16606_v12 }
 0x2cd   : > { %v16580_v35 = vmax.f32 %v6317_v21, %v11304_v26  ;;  %v6321_v33 = vmax.f32 %v5827_v27, %v5853_v5  ;;  %v11306_v15 = vrot.slane %v6319_v43, 9  ;;  %v11307_v20 = vrot.slane %v6320_v17, 9 }
 0x2ce   : > { %v16582_v13 = vmax.f32 %v6318_v48, %v11305_v25  ;;  %v5869_v38 = vcombine.high %v5861_v11, %v5861_v11  ;;  %v6322_v53 = vmax.f32 %v5835_v1, %v5861_v11  ;;  %v12426_v37 = vpop.f32.mrf.mxu0  ;;  %v5868_v16 = vrot.slane %v5854_v57, %v12792_v9 }
 0x2cf   : > { %v6716_v8 = vrot.slane %v16580_v35, %v16576_v51  ;;  %v11308_v30 = vrot.slane %v6321_v33, 9  ;;  %v16586_v4 = vmax.f32 %v6319_v43, %v11306_v15  ;;  %v16588_v47 = vmax.f32 %v6320_v17, %v11307_v20 }
 0x2d0   : > { %v6720_v63 = vrot.slane %v16582_v13, %v16576_v51  ;;  %v5654_v32 = vpop.f32.mrf.mxu0  ;;  %v6323_v41 = vmax.f32 %v5834_v50, %v5869_v38  ;;  %v11309_v3 = vrot.slane %v6322_v53, 9  ;;  %v5757_v48 = vadd.f32 %v5649_v14, %v16503_v24  ;;  %v16620_v24 = vld [vmem:[%s18521_s5 + $0x4] ss:$0 sm:$0xff] }
 0x2d1   : > { %v16592_v45 = vmax.f32 %v6321_v33, %v11308_v30  ;;  %v6724_v34 = vrot.slane %v16586_v4, %v16576_v51  ;;  %v6728_v49 = vrot.slane %v16588_v47, %v16576_v51  ;;  %v5758_v55 = vadd.f32 %v5654_v32, %v16506_v61 }
 0x2d2   : > { %v6910_v46 = vsel %vm6909_vm11, %v6720_v63, %v6716_v8  ;;  %v12429_v60 = vpop.f32.mrf.mxu0  ;;  %v11310_v21 = vrot.slane %v6323_v41, 9  ;;  %v6567_v22 = vmax.f32 %v6322_v53, %v11309_v3  ;;  %v5871_v1 = vcombine.high %v5757_v48, %v5757_v48 }
 0x2d3   : > { %v6732_v36 = vrot.slane %v16592_v45, %v16576_v51  ;;  %v6911_v27 = vsel %vm1488_vm3, %v6724_v34, %v6910_v46  ;;  %v5878_v25 = vrot.slane %v5757_v48, %v12792_v9  ;;  %v5888_v14 = vcombine.high %v5758_v55, %v5758_v55 }
 0x2d4   : > { %v6913_v50 = vsel %vm6912_vm12, %v6728_v49, %v6911_v27  ;;  %v5659_v6 = vpop.f32.mrf.mxu0  ;;  %v6568_v26 = vmax.f32 %v6323_v41, %v11310_v21  ;;  %v6736_v17 = vrot.slane %v6567_v22, %v16576_v51  ;;  %v5895_v33 = vrot.slane %v5758_v55, %v12792_v9 }
 0x2d5   : > { %v6914_v5 = vsel %vm1490_vm5, %v6732_v36, %v6913_v50  ;;  %v5759_v43 = vadd.f32 %v5659_v6, %v16509_v52  ;;  %v5870_v15 = vcombine.high %v5868_v16, %v5868_v16  ;;  %v5885_v52 = vrot.slane %v5871_v1, %v12792_v9 }
 0x2d6   : > { %v12432_v11 = vpop.f32.mrf.mxu0  ;;  %v6740_v61 = vrot.slane %v6568_v26, %v16576_v51  ;;  %v6916_v20 = vsel %vm6915_vm13, %v6736_v17, %v6914_v5  ;;  %v5902_v8 = vrot.slane %v5888_v14, %v12792_v9  ;;  %v5903_v30 = vcombine.high %v5895_v33, %v5895_v33 }
 0x2d7   : > { %v5905_v38 = vcombine.high %v5759_v43, %v5759_v43  ;;  %v5912_v57 = vrot.slane %v5759_v43, %v12792_v9  ;;  %v5886_v32 = vcombine.high %v5878_v25, %v5878_v25  ;;  %v5887_v21 = vcombine.high %v5885_v52, %v5885_v52 }
 0x2d8   : > { %v5664_v53 = vpop.f32.mrf.mxu0  ;;  %v6917_v37 = vsel %vm1492_vm7, %v6740_v61, %v6916_v20  ;;  %v5904_v46 = vcombine.high %v5902_v8, %v5902_v8  ;;  %v6324_v3 = vmax.f32 %v5868_v16, %v5903_v30  ;;  %v6325_v60 = vmax.f32 %v5870_v15, %v5902_v8 }
 0x2d9   : > { %v16630_v63 = vmul.f32 %v16620_v24, %v6917_v37  ;;  %v5919_v34 = vrot.slane %v5905_v38, %v12792_v9  ;;  %v5760_v41 = vadd.f32 %v5664_v53, %v16512_v54  ;;  %v5920_v36 = vcombine.high %v5912_v57, %v5912_v57 }
 0x2da   : > { %v12435_v49 = vpop.f32.mrf.mxu0  ;;  %v6327_v48 = vmax.f32 %v5886_v32, %v5912_v57  ;;  %v6326_v6 = vmax.f32 %v5878_v25, %v5904_v46  ;;  %v11311_v5 = vrot.slane %v6324_v3, 9  ;;  %v11312_v43 = vrot.slane %v6325_v60, 9 }
 0x2db   : > { %v6975_v27 = vcombine.high %v16630_v63, %v16630_v63  ;;  %v5921_v50 = vcombine.high %v5919_v34, %v5919_v34  ;;  %v6328_v17 = vmax.f32 %v5885_v52, %v5920_v36  ;;  %v6329_v54 = vmax.f32 %v5887_v21, %v5919_v34 }
 0x2dc   : > { %v5669_v55 = vpop.f32.mrf.mxu0  ;;  %v11313_v16 = vrot.slane %v6326_v6, 9  ;;  %v16639_v14 = vmax.f32 %v6324_v3, %v11311_v5  ;;  %v16641_v15 = vmax.f32 %v6325_v60, %v11312_v43  ;;  %v11314_v20 = vrot.slane %v6327_v48, 9 }
 0x2dd   : > { %v16637_v1 = vrot.slane %v6975_v27, %v12792_v9  ;;  %v6330_v11 = vmax.f32 %v5895_v33, %v5921_v50  ;;  %v11315_v53 = vrot.slane %v6328_v17, 9  ;;  %v11316_v37 = vrot.slane %v6329_v54, 9 }
 0x2de   : > { %v12438_v61 = vpop.f32.mrf.mxu0  ;;  %vm6616_vm14 = vcmp.gt.f32.partialorder %v6567_v22, 0.0  ;;  %vm6617_vm15 = vcmp.gt.f32.partialorder %v6568_v26, 0.0  ;;  %v16646_v8 = vmax.f32 %v6326_v6, %v11313_v16  ;;  %v6744_v33 = vrot.slane %v16639_v14, %v16576_v51 }
 0x2df   : > { %v6991_v38 = vcombine.high %v16637_v1, %v16637_v1  ;;  %v7096_v25 = vrot.slane %v16637_v1, 1  ;;  %v6748_v32 = vrot.slane %v16641_v15, %v16576_v51  ;;  %v11317_v34 = vrot.slane %v6330_v11, 9 }
 0x2e0   : > { %v5674_v52 = vpop.f32.mrf.mxu0  ;;  %v6752_v46 = vrot.slane %v16646_v8, %v16576_v51  ;;  %v16659_v60 = vmax.f32 %v6327_v48, %v11314_v20  ;;  %v6573_v36 = vmax.f32 %v6328_v17, %v11315_v53  ;;  %v16661_v27 = vmax.f32 %v6329_v54, %v11316_v37 }
 0x2e1   : > { %v16650_v30 = vsel %vm6616_vm14, %v6567_v22, %v7096_v25  ;;  %v16652_v57 = vsel %vm6617_vm15, %v6568_v26, %v6991_v38  ;;  %v6918_v3 = vsel %vm6909_vm11, %v6748_v32, %v6744_v33  ;;  %v16663_v22 = vmax.f32 %v6330_v11, %v11317_v34 }
 0x2e2   : > { %19642 = vst [vmem:[#allocation84_spill] sm:$0xff] %v16652_v57  ;;  %v12441_v49 = vpop.f32.mrf.mxu0  ;;  %v6919_v26 = vsel %vm1488_vm3, %v6752_v46, %v6918_v3  ;;  %v5922_v50 = vcombine.high %v5760_v41, %v5760_v41  ;;  %v6756_v6 = vrot.slane %v16659_v60, %v16576_v51  ;;  %v6760_v43 = vrot.slane %v6573_v36, %v16576_v51 }
 0x2e3   : > { %v6764_v61 = vrot.slane %v16661_v27, %v16576_v51  ;;  %v6768_v48 = vrot.slane %v16663_v22, %v16576_v51  ;;  %v5929_v17 = vrot.slane %v5760_v41, %v12792_v9  ;;  %v5761_v11 = vadd.f32 %v5669_v55, %v16515_v42 }
 0x2e4   : > { %v5679_v21 = vpop.f32.mrf.mxu0  ;;  %v6920_v54 = vsel %vm6912_vm12, %v6756_v6, %v6919_v26  ;;  %v5936_v38 = vrot.slane %v5922_v50, %v12792_v9  ;;  %v5762_v25 = vadd.f32 %v5674_v52, %v16518_v59  ;;  %vm6620_vm0 = vcmp.gt.f32.partialorder %v16646_v8, 0.0 }
 0x2e5   : > { %v6921_v20 = vsel %vm1490_vm5, %v6760_v43, %v6920_v54  ;;  %vm6622_vm1 = vcmp.gt.f32.partialorder %v6573_v36, 0.0  ;;  %v5939_v37 = vcombine.high %v5761_v11, %v5761_v11  ;;  %vm6621_vm2 = vcmp.gt.f32.partialorder %v16659_v60, 0.0 }
 0x2e6   : > { %v12444_v5 = vpop.f32.mrf.mxu0  ;;  %v6922_v53 = vsel %vm6915_vm13, %v6764_v61, %v6921_v20  ;;  %vm6623_vm4 = vcmp.gt.f32.partialorder %v16661_v27, 0.0  ;;  %v5937_v41 = vcombine.high %v5929_v17, %v5929_v17  ;;  %v5956_v55 = vcombine.high %v5762_v25, %v5762_v25 }
 0x2e7   : > { %v6923_v42 = vsel %vm1492_vm7, %v6768_v48, %v6922_v53  ;;  %v5963_v32 = vrot.slane %v5762_v25, %v12792_v9  ;;  %vm6624_vm6 = vcmp.gt.f32.partialorder %v16663_v22, 0.0  ;;  %v5953_v52 = vrot.slane %v5939_v37, %v12792_v9 }
 0x2e8   : > { %v5684_v16 = vpop.f32.mrf.mxu0  ;;  %v6962_v59 = vmul.f32 %v16620_v24, %v6923_v42  ;;  %v5763_v34 = vadd.f32 %v5679_v21, %v16521_v56  ;;  %v5938_v46 = vcombine.high %v5936_v38, %v5936_v38  ;;  %v5970_v3 = vrot.slane %v5956_v55, %v12792_v9 }
 0x2e9   : > { %v5971_v26 = vcombine.high %v5963_v32, %v5963_v32  ;;  %v6332_v50 = vmax.f32 %v5937_v41, %v5963_v32  ;;  %v5946_v43 = vrot.slane %v5761_v11, %v12792_v9  ;;  %v5955_v61 = vcombine.high %v5953_v52, %v5953_v52 }
 0x2ea   : > { %v12447_v33 = vpop.f32.mrf.mxu0  ;;  %v6992_v6 = vcombine.high %v6962_v59, %v6962_v59  ;;  %v16691_v5 = vrot.slane %v6962_v59, %v12792_v9  ;;  %v5972_v54 = vcombine.high %v5970_v3, %v5970_v3  ;;  %v6334_v25 = vmax.f32 %v5938_v46, %v5970_v3 }
 0x2eb   : > { %v6333_v20 = vmax.f32 %v5936_v38, %v5971_v26  ;;  %v11319_v53 = vrot.slane %v6332_v50, 9  ;;  %v6331_v37 = vmax.f32 %v5929_v17, %v5955_v61  ;;  %v5973_v33 = vcombine.high %v5763_v34, %v5763_v34 }
 0x2ec   : > { %v5689_v49 = vpop.f32.mrf.mxu0  ;;  %v7006_v56 = vrot.slane %v6992_v6, %v12792_v9  ;;  %v7007_v21 = vcombine.high %v16691_v5, %v16691_v5  ;;  %v6335_v41 = vmax.f32 %v5946_v43, %v5972_v54  ;;  %v11321_v32 = vrot.slane %v6334_v25, 9 }
 0x2ed   : > { %v11320_v55 = vrot.slane %v6333_v20, 9  ;;  %v5980_v59 = vrot.slane %v5763_v34, %v12792_v9  ;;  %v11318_v17 = vrot.slane %v6331_v37, 9  ;;  %v16706_v6 = vmax.f32 %v6332_v50, %v11319_v53 }
 0x2ee   : > { %v12450_v48 = vpop.f32.mrf.mxu0  ;;  %v7008_v11 = vcombine.high %v7006_v56, %v7006_v56  ;;  %v7098_v0 = vrot.slane %v7007_v21, 1  ;;  %v16701_v38 = vsel %vm6620_vm0, %v16646_v8, %v7007_v21  ;;  %v16704_v3 = vsel %vm6622_vm1, %v6573_v36, %v7006_v56 }
 0x2ef   : > { %v7099_v48 = vrot.slane %v7006_v56, 1  ;;  %v11322_v26 = vrot.slane %v6335_v41, 9  ;;  %v16719_v54 = vmax.f32 %v6333_v20, %v11320_v55  ;;  %v16731_v56 = vmax.f32 %v6334_v25, %v11321_v32 }
 0x2f0   : > { %v5694_v42 = vpop.f32.mrf.mxu0  ;;  %v16711_v34 = vsel %vm6621_vm2, %v16659_v60, %v7098_v0  ;;  %v7177_v8 = vsel %vm6624_vm6, %v16663_v22, %v7008_v11  ;;  %v16729_v0 = vmax.f32 %v6331_v37, %v11318_v17  ;;  %v5988_v60 = vcombine.high %v5980_v59, %v5980_v59 }
 0x2f1   : > { %v7176_v61 = vsel %vm6623_vm4, %v16661_v27, %v7099_v48  ;;  %v16727_v53 = vrot.slane %v7177_v8, %v16576_v51  ;;  %v16733_v27 = vmax.f32 %v6335_v41, %v11322_v26  ;;  %v5764_v21 = vadd.f32 %v5684_v16, %v16527_v28 }
 0x2f2   : > { %v12453_v46 = vpop.f32.mrf.mxu0  ;;  %v16724_v50 = vrot.slane %v7176_v61, %v16576_v51  ;;  %v5954_v55 = vcombine.high %v5946_v43, %v5946_v43  ;;  %v6772_v11 = vrot.slane %v16729_v0, %v16576_v51  ;;  %v6776_v37 = vrot.slane %v16706_v6, %v16576_v51 }
 0x2f3   : > { %19644 = vst [vmem:[#allocation87_spill] sm:$0xff] %v16727_v53  ;;  %v6780_v25 = vrot.slane %v16719_v54, %v16576_v51  ;;  %v5987_v41 = vrot.slane %v5973_v33, %v12792_v9  ;;  %v6784_v28 = vrot.slane %v16731_v56, %v16576_v51  ;;  %v6788_v16 = vrot.slane %v16733_v27, %v16576_v51 }
 0x2f4   : > { %v16721_v36 = vpop.f32.mrf.mxu0  ;;  %19643 = vst [vmem:[#allocation85_spill] sm:$0xff] %v16724_v50  ;;  %v16739_v20 = vsel %vm6909_vm11, %v16727_v53, %v16724_v50  ;;  %v6336_v43 = vmax.f32 %v5954_v55, %v5980_v59  ;;  %v6337_v48 = vmax.f32 %v5953_v52, %v5988_v60  ;;  %v6924_v46 = vsel %vm6909_vm11, %v6776_v37, %v6772_v11 }
 0x2f5   : > { %19645 = vst [vmem:[#allocation230_spill] sm:$0xff] %v16739_v20  ;;  %v5990_v17 = vcombine.high %v5764_v21, %v5764_v21  ;;  %v5997_v26 = vrot.slane %v5764_v21, %v12792_v9  ;;  %v5765_v61 = vadd.f32 %v5689_v49, %v16530_v58  ;;  %v6925_v33 = vsel %vm1488_vm3, %v6780_v25, %v6924_v46 }
 0x2f6   : > { %v12456_v22 = vpop.f32.mrf.mxu0  ;;  %v11324_v53 = vrot.slane %v6337_v48, 9  ;;  %v5766_v20 = vadd.f32 %v5694_v42, %v16533_v29  ;;  %v16761_v19 = vrot.slane %v16630_v63, %v12792_v9  ;;  %v6926_v52 = vsel %vm6912_vm12, %v6784_v28, %v6925_v33 }
 0x2f7   : > { %v11323_v22 = vrot.slane %v6336_v43, 9  ;;  %v6004_v59 = vrot.slane %v5990_v17, %v12792_v9  ;;  %v6007_v60 = vcombine.high %v5765_v61, %v5765_v61  ;;  %v6927_v49 = vsel %vm1490_vm5, %v6788_v16, %v6926_v52 }
 0x2f8   : > { %v16748_v32 = vpop.f32.mrf.mxu0  ;;  %v16769_v58 = vmax.f32 %v6337_v48, %v11324_v53  ;;  %v6014_v11 = vrot.slane %v5765_v61, %v12792_v9  ;;  %v5989_v29 = vcombine.high %v5987_v41, %v5987_v41  ;;  %v6024_v63 = vcombine.high %v5766_v20, %v5766_v20 }
 0x2f9   : > { %v16767_v21 = vmax.f32 %v6336_v43, %v11323_v22  ;;  %v6021_v42 = vrot.slane %v6007_v60, %v12792_v9  ;;  %v6031_v37 = vrot.slane %v5766_v20, %v12792_v9  ;;  %vm6625_vm8 = vcmp.gt.f32.partialorder %v16729_v0, 0.0 }
 0x2fa   : > { %v12459_v8 = vpop.f32.mrf.mxu0  ;;  %v6796_v53 = vrot.slane %v16769_v58, %v16576_v51  ;;  %v6005_v43 = vcombine.high %v5997_v26, %v5997_v26  ;;  %vm6626_vm9 = vcmp.gt.f32.partialorder %v16706_v6, 0.0  ;;  %v6022_v16 = vcombine.high %v6014_v11, %v6014_v11 }
 0x2fb   : > { %v6792_v28 = vrot.slane %v16767_v21, %v16576_v51  ;;  %v6023_v48 = vcombine.high %v6021_v42, %v6021_v42  ;;  %v6339_v46 = vmax.f32 %v5989_v29, %v6021_v42  ;;  %v6038_v17 = vrot.slane %v6024_v63, %v12792_v9 }
 0x2fc   : > { %v16765_v55 = vpop.f32.mrf.mxu0  ;;  %vm6627_vm14 = vcmp.gt.f32.partialorder %v16719_v54, 0.0  ;;  %v6006_v8 = vcombine.high %v6004_v59, %v6004_v59  ;;  %v6039_v33 = vcombine.high %v6031_v37, %v6031_v37  ;;  %v6341_v22 = vmax.f32 %v6005_v43, %v6031_v37 }
 0x2fd   : > { %v6928_v20 = vsel %vm6915_vm13, %v6792_v28, %v6927_v49  ;;  %v6338_v60 = vmax.f32 %v5987_v41, %v6022_v16  ;;  %v11326_v23 = vrot.slane %v6339_v46, 9  ;;  %v6040_v29 = vcombine.high %v6038_v17, %v6038_v17 }
 0x2fe   : > { %v12462_v25 = vpop.f32.mrf.mxu0  ;;  %v6929_v52 = vsel %vm1492_vm7, %v6796_v53, %v6928_v20  ;;  %v6342_v42 = vmax.f32 %v6004_v59, %v6039_v33  ;;  %v6343_v63 = vmax.f32 %v6006_v8, %v6038_v17  ;;  %vm6628_vm15 = vcmp.gt.f32.partialorder %v16731_v56, 0.0 }
 0x2ff   : > { %v6340_v25 = vmax.f32 %v5997_v26, %v6023_v48  ;;  %v6963_v2 = vmul.f32 %v16620_v24, %v6929_v52  ;;  %v11325_v50 = vrot.slane %v6338_v60, 9  ;;  %v16789_v10 = vmax.f32 %v6339_v46, %v11326_v23 }
 0x300   : > { %v16782_v61 = vpop.f32.mrf.mxu0  ;;  %vm6629_vm0 = vcmp.gt.f32.partialorder %v16733_v27, 0.0  ;;  %v6344_v26 = vmax.f32 %v6014_v11, %v6040_v29  ;;  %vm6630_vm1 = vcmp.gt.f32.partialorder %v16767_v21, 0.0  ;;  %vm6631_vm2 = vcmp.gt.f32.partialorder %v16769_v58, 0.0 }
 0x301   : > { %v11327_v57 = vrot.slane %v6340_v25, 9  ;;  %v7009_v37 = vcombine.high %v6963_v2, %v6963_v2  ;;  %v7016_v41 = vrot.slane %v6963_v2, %v12792_v9  ;;  %vm6611_vm4 = vcmp.gt.f32.partialorder %v16580_v35, 0.0 }
 0x302   : > { %v12465_v12 = vpop.f32.mrf.mxu0  ;;  %v6990_v16 = vcombine.high %v16761_v19, %v16761_v19  ;;  %vm6612_vm6 = vcmp.gt.f32.partialorder %v16582_v13, 0.0  ;;  %v7094_v29 = vrot.slane %v16761_v19, 1 }
 0x303   : > { %v16797_v12 = vmax.f32 %v6338_v60, %v11325_v50  ;;  %v16799_v59 = vmax.f32 %v6340_v25, %v11327_v57  ;;  %v7023_v23 = vrot.slane %v7009_v37, %v12792_v9  ;;  %v7024_v53 = vcombine.high %v7016_v41, %v7016_v41 }
 0x304   : > { %v16791_v49 = vpop.f32.mrf.mxu0  ;;  %v7100_v43 = vrot.slane %v7016_v41, 1  ;;  %v16806_v2 = vsel %vm6625_vm8, %v16729_v0, %v7016_v41  ;;  %v6804_v50 = vrot.slane %v16789_v10, %v16576_v51  ;;  %v11328_v57 = vrot.slane %v6341_v22, 9 }
 0x305   : > { %v6800_v11 = vrot.slane %v16797_v12, %v16576_v51  ;;  %v7025_v46 = vcombine.high %v7023_v23, %v7023_v23  ;;  %v7101_v17 = vrot.slane %v7024_v53, 1  ;;  %v7102_v20 = vrot.slane %v7023_v23, 1 }
 0x306   : > { %v12468_v28 = vpop.f32.mrf.mxu0  ;;  %v16819_v0 = vsel %vm6626_vm9, %v16706_v6, %v7100_v43  ;;  %v16824_v8 = vsel %vm6627_vm14, %v16719_v54, %v7024_v53  ;;  %v16829_v33 = vsel %vm6629_vm0, %v16733_v27, %v7023_v23  ;;  %v6808_v52 = vrot.slane %v16799_v59, %v16576_v51 }
 0x307   : > { %v11329_v60 = vrot.slane %v6342_v42, 9  ;;  %v16837_v6 = vsel %vm6628_vm15, %v16731_v56, %v7101_v17  ;;  %v7183_v54 = vsel %vm6630_vm1, %v16767_v21, %v7102_v20  ;;  %v7184_v27 = vsel %vm6631_vm2, %v16769_v58, %v7025_v46 }
 0x308   : > { %v16814_v48 = vpop.f32.mrf.mxu0  ;;  %vm6613_vm8 = vcmp.gt.f32.partialorder %v16586_v4, 0.0  ;;  %v16848_v37 = vrot.slane %v7183_v54, %v16576_v51  ;;  %v16851_v41 = vrot.slane %v7184_v27, %v16576_v51  ;;  %v6930_v28 = vsel %vm6909_vm11, %v6804_v50, %v6800_v11 }
 0x309   : > { %v11330_v23 = vrot.slane %v6343_v63, 9  ;;  %v11331_v21 = vrot.slane %v6344_v26, 9  ;;  %v16856_v53 = vmax.f32 %v6341_v22, %v11328_v57  ;;  %v16863_v43 = vmax.f32 %v6342_v42, %v11329_v60 }
 0x30a   : > { %v12471_v25 = vpop.f32.mrf.mxu0  ;;  %v16861_v58 = vsel %vm6909_vm11, %v16851_v41, %v16848_v37  ;;  %v6931_v46 = vsel %vm1488_vm3, %v6808_v52, %v6930_v28  ;;  %v7095_v17 = vrot.slane %v6990_v16, 1  ;;  %vm6614_vm9 = vcmp.gt.f32.partialorder %v16588_v47, 0.0 }
 0x30b   : > { %19646 = vst [vmem:[#allocation223_spill] sm:$0xff] %v16861_v58  ;;  %v16867_v25 = vmax.f32 %v6343_v63, %v11330_v23  ;;  %v16869_v11 = vmax.f32 %v6344_v26, %v11331_v21  ;;  %v6812_v22 = vrot.slane %v16856_v53, %v16576_v51  ;;  %vm6615_vm14 = vcmp.gt.f32.partialorder %v16592_v45, 0.0 }
 0x30c   : > { %v16853_v56 = vpop.f32.mrf.mxu0  ;;  %v6816_v50 = vrot.slane %v16863_v43, %v16576_v51  ;;  %v7097_v42 = vrot.slane %v16691_v5, 1  ;;  %v7164_v57 = vsel %vm6611_vm4, %v16580_v35, %v16761_v19  ;;  %vm6618_vm15 = vcmp.gt.f32.partialorder %v16639_v14, 0.0 }
 0x30d   : > { %vm6619_vm0 = vcmp.gt.f32.partialorder %v16641_v15, 0.0  ;;  %v6820_v63 = vrot.slane %v16867_v25, %v16576_v51  ;;  %v6824_v26 = vrot.slane %v16869_v11, %v16576_v51  ;;  %v6932_v60 = vsel %vm6912_vm12, %v6812_v22, %v6931_v46 }
 0x30e   : > { %v12474_v20 = vpop.f32.mrf.mxu0  ;;  %v7165_v54 = vsel %vm6612_vm6, %v16582_v13, %v7094_v29  ;;  %v7166_v19 = vsel %vm6613_vm8, %v16586_v4, %v6990_v16  ;;  %v7167_v35 = vsel %vm6614_vm9, %v16588_v47, %v7095_v17  ;;  %vm7351_vm1 = vcmask 1047559  }
 0x30f   : > { %vm6633_vm2 = vcmp.gt.f32.partialorder %v16789_v10, 0.0  ;;  %v6933_v28 = vsel %vm1490_vm5, %v6816_v50, %v6932_v60  ;;  %v7168_v23 = vsel %vm6615_vm14, %v16592_v45, %v16637_v1  ;;  %v7171_v13 = vsel %vm6618_vm15, %v16639_v14, %v16691_v5 }
 0x310   : > { %v16881_v52 = vpop.f32.mrf.mxu0  ;;  %v7172_v4 = vsel %vm6619_vm0, %v16641_v15, %v7097_v42  ;;  %vm7367_vm4 = vcmask 80896   ;;  %vm6634_vm6 = vcmp.gt.f32.partialorder %v16799_v59, 0.0  ;;  %vm6636_vm8 = vcmp.gt.f32.partialorder %v16863_v43, 0.0 }
 0x311   : > { %v6934_v47 = vsel %vm6915_vm13, %v6820_v63, %v6933_v28  ;;  %v7248_v16 = vrot.slane %v7164_v57, %v16576_v51  ;;  %v16913_v29 = vrot.slane %v7165_v54, %v16576_v51  ;;  %v16916_v21 = vrot.slane %v7166_v19, %v16576_v51 }
 0x312   : > { %v12477_v27 = vpop.f32.mrf.mxu0  ;;  %vm6635_vm9 = vcmp.gt.f32.partialorder %v16856_v53, 0.0  ;;  %vm6637_vm14 = vcmp.gt.f32.partialorder %v16867_v25, 0.0  ;;  %v6935_v1 = vsel %vm1492_vm7, %v6824_v26, %v6934_v47  ;;  %v16924_v14 = vrot.slane %v7167_v35, %v16576_v51 }
 0x313   : > { %v16927_v15 = vrot.slane %v7168_v23, %v16576_v51  ;;  %v6964_v5 = vmul.f32 %v16620_v24, %v6935_v1  ;;  %v16931_v46 = vrot.slane %v7171_v13, %v16576_v51  ;;  %v16934_v17 = vrot.slane %v7172_v4, %v16576_v51 }
 0x314   : > { %v16918_v45 = vpop.f32.mrf.mxu0  ;;  %v7345_v20 = vsel %vm6909_vm11, %v16913_v29, %v7248_v16  ;;  %v5767_v42 = vadd.f32 %v16721_v36, %v16536_v39  ;;  %v5768_v57 = vadd.f32 %v16748_v32, %v16539_v31  ;;  %v5769_v63 = vadd.f32 %v16765_v55, %v16542_v62 }
 0x315   : > { %19647 = vst [vmem:[#allocation88_spill] sm:$0xff] %v16931_v46  ;;  %v7346_v50 = vsel %vm1488_vm3, %v16916_v21, %v7345_v20  ;;  %v7026_v26 = vcombine.high %v6964_v5, %v6964_v5  ;;  %v16947_v60 = vrot.slane %v6964_v5, %v12792_v9  ;;  %v16953_v19 = vadd.f32 %v16782_v61, %v16545_v7 }
 0x316   : > { %v12480_v22 = vpop.f32.mrf.mxu0  ;;  %v7347_v54 = vsel %vm6912_vm12, %v16924_v14, %v7346_v50  ;;  %vm6638_vm15 = vcmp.gt.f32.partialorder %v16869_v11, 0.0  ;;  %v16960_v39 = vrot.slane %v16701_v38, %v16576_v51  ;;  %v6041_v62 = vcombine.high %v5767_v42, %v5767_v42 }
 0x317   : > { %v7348_v31 = vsel %vm1490_vm5, %v16927_v15, %v7347_v54  ;;  %v7040_v36 = vrot.slane %v7026_v26, %v12792_v9  ;;  %v7041_v32 = vcombine.high %v16947_v60, %v16947_v60  ;;  %v7103_v7 = vrot.slane %v16947_v60, 1 }
 0x318   : > { %v16955_v35 = vpop.f32.mrf.mxu0  ;;  %v7349_v55 = vsel %vm6915_vm13, %v16931_v46, %v7348_v31  ;;  %v6048_v38 = vrot.slane %v5767_v42, %v12792_v9  ;;  %v6055_v28 = vrot.slane %v6041_v62, %v12792_v9  ;;  %v6058_v23 = vcombine.high %v5768_v57, %v5768_v57 }
 0x319   : > { %v7350_v27 = vsel %vm1492_vm7, %v16934_v17, %v7349_v55  ;;  %v7042_v13 = vcombine.high %v7040_v36, %v7040_v36  ;;  %v7104_v4 = vrot.slane %v7041_v32, 1  ;;  %v7105_v47 = vrot.slane %v7040_v36, 1 }
 0x31a   : > { %v12483_v61 = vpop.f32.mrf.mxu0  ;;  %v16977_v16 = vsel %vm6633_vm2, %v16789_v10, %v7103_v7  ;;  %v16984_v5 = vsel %vm6634_vm6, %v16799_v59, %v7041_v32  ;;  %v16989_v20 = vsel %vm6636_vm8, %v16863_v43, %v7040_v36  ;;  %v7352_v22 = vsel %vm7351_vm1, %v16960_v39, %v7350_v27 }
 0x31b   : > { %v6065_v50 = vrot.slane %v5768_v57, %v12792_v9  ;;  %v16997_v10 = vsel %vm6635_vm9, %v16856_v53, %v7104_v4  ;;  %v7190_v59 = vsel %vm6637_vm14, %v16867_v25, %v7105_v47  ;;  %v7191_v42 = vsel %vm6638_vm15, %v16869_v11, %v7042_v13  ;;  %12491 = vmatprep.mubr.msk.f32.mxu1 %vm7367_vm4, %v7352_v22 }
 0x31c   : > { %v16979_v1 = vpop.f32.mrf.mxu0  ;;  %v17007_v26 = vrot.slane %v7190_v59, %v16576_v51  ;;  %v17010_v57 = vrot.slane %v7191_v42, %v16576_v51  ;;  %v6056_v54 = vcombine.high %v6048_v38, %v6048_v38  ;;  %v6057_v53 = vcombine.high %v6055_v28, %v6055_v28 }
 0x31d   : > { %v6072_v31 = vrot.slane %v6058_v23, %v12792_v9  ;;  %v6075_v62 = vcombine.high %v5769_v63, %v5769_v63  ;;  %v6073_v11 = vcombine.high %v6065_v50, %v6065_v50  ;;  %v6082_v36 = vrot.slane %v5769_v63, %v12792_v9 }
 0x31e   : > { %v12486_v43 = vpop.f32.mrf.mxu0  ;;  %19648 = vst [vmem:[#allocation97_spill] sm:$0xff] %v17010_v57  ;;  %v17016_v25 = vsel %vm6909_vm11, %v17010_v57, %v17007_v26  ;;  %v6099_v32 = vrot.slane %v16953_v19, %v12792_v9  ;;  %v17024_v61 = vadd.f32 %v16791_v49, %v16548_v18  ;;  %v5772_v27 = vadd.f32 %v16814_v48, %v16551_v40 }
 0x31f   : > { %19649 = vst [vmem:[#allocation99_spill] sm:$0xff] %v17016_v25  ;;  %v6074_v7 = vcombine.high %v6072_v31, %v6072_v31  ;;  %v6089_v55 = vrot.slane %v6075_v62, %v12792_v9  ;;  %v6090_v23 = vcombine.high %v6082_v36, %v6082_v36  ;;  %v6346_v13 = vmax.f32 %v6056_v54, %v6082_v36 }
 0x320   : > { %v6107_v4 = vcombine.high %v6099_v32, %v6099_v32  ;;  %v6350_v63 = vmax.f32 %v6073_v11, %v6099_v32  ;;  %v17030_v42 = vrot.slane %v16650_v30, %v16576_v51  ;;  %v6092_v48 = vcombine.high %v16953_v19, %v16953_v19 }
 0x321   : > { %v6345_v47 = vmax.f32 %v6048_v38, %v6074_v7  ;;  %v6091_v22 = vcombine.high %v6089_v55, %v6089_v55  ;;  %v6348_v59 = vmax.f32 %v6057_v53, %v6089_v55  ;;  %v6347_v43 = vmax.f32 %v6055_v28, %v6090_v23 }
 0x322   : > { %v11333_v62 = vrot.slane %v6346_v13, 9  ;;  %v6351_v25 = vmax.f32 %v6072_v31, %v6107_v4  ;;  %v11337_v46 = vrot.slane %v6350_v63, 9  ;;  %v17038_v54 = vrot.slane %v16704_v3, %v16576_v51 }
 0x323   : > { %v11332_v58 = vrot.slane %v6345_v47, 9  ;;  %v6349_v18 = vmax.f32 %v6065_v50, %v6091_v22  ;;  %v11335_v49 = vrot.slane %v6348_v59, 9  ;;  %v11334_v57 = vrot.slane %v6347_v43, 9 }
 0x324   : > { %v17032_v40 = vmax.f32 %v6346_v13, %v11333_v62  ;;  %v11338_v38 = vrot.slane %v6351_v25, 9  ;;  %19650 = vst [vmem:[#allocation100_spill] sm:$0xff] %v17038_v54  ;;  %v17048_v11 = vmax.f32 %v6350_v63, %v11337_v46  ;;  %v17054_v19 = vrot.slane %v16711_v34, %v16576_v51 }
 0x325   : > { %v17040_v30 = vmax.f32 %v6345_v47, %v11332_v58  ;;  %v11336_v28 = vrot.slane %v6349_v18, 9  ;;  %v17042_v53 = vmax.f32 %v6348_v59, %v11335_v49  ;;  %v17044_v31 = vmax.f32 %v6347_v43, %v11334_v57 }
 0x326   : > { %v6832_v50 = vrot.slane %v17032_v40, %v16576_v51  ;;  %v17050_v36 = vmax.f32 %v6351_v25, %v11338_v38  ;;  %v17058_v3 = vrot.slane %v16806_v2, %v16576_v51  ;;  %vm6632_vm0 = vcmp.gt.f32.partialorder %v16797_v12, 0.0 }
 0x327   : > { %v6828_v58 = vrot.slane %v17040_v30, %v16576_v51  ;;  %v6594_v57 = vmax.f32 %v6349_v18, %v11336_v28  ;;  %v6836_v46 = vrot.slane %v17044_v31, %v16576_v51  ;;  %v6840_v25 = vrot.slane %v17042_v53, %v16576_v51 }
 0x328   : > { %19651 = vst [vmem:[#allocation102_spill] sm:$0xff] %v17058_v3  ;;  %v6106_v32 = vrot.slane %v6092_v48, %v12792_v9  ;;  %v17070_v34 = vrot.slane %v16819_v0, %v16576_v51  ;;  %v17074_v2 = vrot.slane %v16824_v8, %v16576_v51  ;;  %v17080_v23 = vrot.slane %v16837_v6, %v16576_v51 }
 0x329   : > { %v6844_v7 = vrot.slane %v6594_v57, %v16576_v51  ;;  %v6936_v55 = vsel %vm6909_vm11, %v6832_v50, %v6828_v58  ;;  %v6848_v4 = vrot.slane %v17048_v11, %v16576_v51  ;;  %v6852_v0 = vrot.slane %v17050_v36, %v16576_v51 }
 0x32a   : > { %v6937_v13 = vsel %vm1488_vm3, %v6836_v46, %v6936_v55  ;;  %v17089_v8 = vrot.slane %v16829_v33, %v16576_v51  ;;  %v6126_v22 = vcombine.high %v5772_v27, %v5772_v27  ;;  %v6133_v59 = vrot.slane %v5772_v27, %v12792_v9  ;;  %v19652_v55 = vld [vmem:[#allocation193_spill] sm:$0xff] }
 0x32b   : > { %v6938_v47 = vsel %vm6912_vm12, %v6840_v25, %v6937_v13  ;;  %v6108_v63 = vcombine.high %v6106_v32, %v6106_v32  ;;  %v6109_v43 = vcombine.high %v17024_v61, %v17024_v61  ;;  %v7185_v62 = vsel %vm6632_vm0, %v16797_v12, %v16947_v60 }
 0x32c   : > { %v6939_v6 = vsel %vm1490_vm5, %v6844_v7, %v6938_v47  ;;  %v6140_v33 = vrot.slane %v6126_v22, %v12792_v9  ;;  %v6141_v49 = vcombine.high %v6133_v59, %v6133_v59  ;;  %v7353_v27 = vsel %vm6909_vm11, %v17038_v54, %v17054_v19 }
 0x32d   : > { %v6940_v18 = vsel %vm6915_vm13, %v6848_v4, %v6939_v6  ;;  %vm6643_vm2 = vcmp.gt.f32.partialorder %v6594_v57, 0.0  ;;  %v6116_v38 = vrot.slane %v17024_v61, %v12792_v9  ;;  %v7354_v28 = vsel %vm1488_vm3, %v17058_v3, %v7353_v27  ;;  %v19659_v3 = vld [vmem:[#allocation80_spill] sm:$0xff] }
 0x32e   : > { %v6941_v48 = vsel %vm1492_vm7, %v6852_v0, %v6940_v18  ;;  %v6142_v60 = vcombine.high %v6140_v33, %v6140_v33  ;;  %v6352_v50 = vmax.f32 %v6106_v32, %v6141_v49  ;;  %v6353_v58 = vmax.f32 %v6108_v63, %v6140_v33 }
 0x32f   : > { %v17111_v12 = vmul.f32 %v16620_v24, %v6941_v48  ;;  %v6123_v46 = vrot.slane %v6109_v43, %v12792_v9  ;;  %v7355_v25 = vsel %vm6912_vm12, %v17070_v34, %v7354_v28  ;;  %v5773_v7 = vadd.f32 %v16853_v56, %v16554_v44 }
 0x330   : > { %v5774_v61 = vadd.f32 %v16881_v52, %v19652_v55  ;;  %v6354_v4 = vmax.f32 %v6116_v38, %v6142_v60  ;;  %v11339_v0 = vrot.slane %v6352_v50, 9  ;;  %v11340_v47 = vrot.slane %v6353_v58, 9 }
 0x331   : > { %v7043_v13 = vcombine.high %v17111_v12, %v17111_v12  ;;  %v6124_v22 = vcombine.high %v6116_v38, %v6116_v38  ;;  %v7356_v32 = vsel %vm1490_vm5, %v17074_v2, %v7355_v25  ;;  %v6143_v63 = vcombine.high %v5773_v7, %v5773_v7 }
 0x332   : > { %v6150_v6 = vrot.slane %v5773_v7, %v12792_v9  ;;  %v11341_v44 = vrot.slane %v6354_v4, 9  ;;  %v17128_v56 = vmax.f32 %v6352_v50, %v11339_v0  ;;  %v17130_v52 = vmax.f32 %v6353_v58, %v11340_v47  ;;  %v19656_v50 = vld [vmem:[#allocation84_spill] sm:$0xff] }
 0x333   : > { %v17126_v43 = vrot.slane %v7043_v13, %v12792_v9  ;;  %v17133_v18 = vrot.slane %v7185_v62, %v16576_v51  ;;  %v7357_v33 = vsel %vm6915_vm13, %v17080_v23, %v7356_v32  ;;  %v6157_v49 = vrot.slane %v6143_v63, %v12792_v9  ;;  %v11360_v32 = vld [vmem:[%s18518_s2 + $0x10] sm:$0xff] }
 0x334   : > { %19654 = vst [vmem:[#allocation233_spill] sm:$0xff] %v17130_v52  ;;  %v6355_v27 = vmax.f32 %v6124_v22, %v6150_v6  ;;  %v17143_v28 = vmax.f32 %v6354_v4, %v11341_v44  ;;  %v6158_v60 = vcombine.high %v6150_v6, %v6150_v6  ;;  %vm6644_vm6 = vcmp.gt.f32.partialorder %v17048_v11, 0.0 }
 0x335   : > { %19653 = vst [vmem:[#allocation109_spill] sm:$0xff] %v17126_v43  ;;  %19655 = vst [vmem:[#allocation111_spill] sm:$0xff] %v17133_v18  ;;  %v7108_v48 = vrot.slane %v17126_v43, 1  ;;  %v17141_v38 = vsel %vm6643_vm2, %v6594_v57, %v17126_v43  ;;  %v6856_v62 = vrot.slane %v17128_v56, %v16576_v51  ;;  %v6860_v25 = vrot.slane %v17130_v52, %v16576_v51 }
 0x336   : > { %v6125_v55 = vcombine.high %v6123_v46, %v6123_v46  ;;  %v6864_v57 = vrot.slane %v17143_v28, %v16576_v51  ;;  %v7358_v13 = vsel %vm1492_vm7, %v17089_v8, %v7357_v33  ;;  %v6159_v47 = vcombine.high %v6157_v49, %v6157_v49  ;;  %v19657_v33 = vld [vmem:[#allocation85_spill] sm:$0xff] }
 0x337   : > { %v17153_v7 = vsel %vm6644_vm6, %v17048_v11, %v7108_v48  ;;  %v6942_v4 = vsel %vm6909_vm11, %v6860_v25, %v6856_v62  ;;  %v7359_v0 = vsel %vm7351_vm1, %v17133_v18, %v7358_v13  ;;  %v6160_v22 = vcombine.high %v5774_v61, %v5774_v61  ;;  %v19658_v13 = vld [vmem:[#allocation194_spill] sm:$0xff] }
 0x338   : > { %12492 = vmatmul.mubr.msk.f32.vlgmr.msra.gmra.mxu1 %vm7367_vm4, %v7359_v0  ;;  %v6356_v11 = vmax.f32 %v6123_v46, %v6158_v60  ;;  %v6357_v63 = vmax.f32 %v6125_v55, %v6157_v49  ;;  %v11342_v6 = vrot.slane %v6355_v27, 9  ;;  %v6943_v44 = vsel %vm1488_vm3, %v6864_v57, %v6942_v4  ;;  %v17183_v46 = vld [vmem:[%s18518_s2 + $0x28] sm:$0x3] }
 0x339   : > { %v17170_v48 = vsel %vm6909_vm11, %v19657_v33, %v17038_v54  ;;  %v17174_v62 = vrot.slane %v16977_v16, %v16576_v51  ;;  %v6358_v25 = vmax.f32 %v6133_v59, %v6159_v47  ;;  %v5775_v58 = vadd.f32 %v16918_v45, %v19658_v13  ;;  %12498 = vmatpush3.msk.msra.mxu1 %vm7376_vm10, %v19659_v3  ;;  %v19660_v57 = vld [vmem:[#allocation211_spill] sm:$0xff] }
 0x33a   : > { %v11343_v49 = vrot.slane %v6356_v11, 9  ;;  %v11344_v60 = vrot.slane %v6357_v63, 9  ;;  %v17185_v55 = vmax.f32 %v6355_v27, %v11342_v6  ;;  %v5776_v16 = vadd.f32 %v16955_v35, %v19660_v57  ;;  %12499 = vmatprep.subr.mxu1 %v11360_v32 }
 0x33b   : > { %v11345_v59 = vrot.slane %v6358_v25, 9  ;;  %v6167_v4 = vrot.slane %v5774_v61, %v12792_v9  ;;  %v6174_v45 = vrot.slane %v6160_v22, %v12792_v9  ;;  %v6177_v0 = vcombine.high %v5775_v58, %v5775_v58  ;;  %12500 = vmatpush3.msra.mxu1 %v11360_v32 }
 0x33c   : > { %v17193_v3 = vrot.slane %v16984_v5, %v16576_v51  ;;  %v6601_v47 = vmax.f32 %v6356_v11, %v11343_v49  ;;  %v17195_v13 = vmax.f32 %v6357_v63, %v11344_v60  ;;  %v6868_v27 = vrot.slane %v17185_v55, %v16576_v51  ;;  %12507 = vmatprep.subr.msk.mxu1 %vm7376_vm10, %v17183_v46 }
 0x33d   : > { %v17203_v35 = vrot.slane %v16997_v10, %v16576_v51  ;;  %v17205_v61 = vmax.f32 %v6358_v25, %v11345_v59  ;;  %v17208_v22 = vrot.slane %v6177_v0, %v12792_v9  ;;  %v6194_v5 = vcombine.high %v5776_v16, %v5776_v16 }
 0x33e   : > { %19661 = vst [vmem:[#allocation113_spill] sm:$0xff] %v17195_v13  ;;  %v17212_v32 = vrot.slane %v16989_v20, %v16576_v51  ;;  %v7802_v11 = vsel %vm6909_vm11, %v17089_v8, %v17080_v23  ;;  %v6872_v63 = vrot.slane %v6601_v47, %v16576_v51  ;;  %v6876_v10 = vrot.slane %v17195_v13, %v16576_v51 }
 0x33f   : > { %19662 = vst [vmem:[#allocation114_spill] sm:$0xff] %v17205_v61  ;;  %v6880_v6 = vrot.slane %v17205_v61, %v16576_v51  ;;  %v6944_v25 = vsel %vm6912_vm12, %v6868_v27, %v6943_v44  ;;  %v6175_v49 = vcombine.high %v6167_v4, %v6167_v4  ;;  %v6176_v60 = vcombine.high %v6174_v45, %v6174_v45  ;;  %v19663_v61 = vld [vmem:[#allocation206_spill] sm:$0xff] }
 0x340   : > { %vm6648_vm8 = vcmp.gt.f32.partialorder %v17143_v28, 0.0  ;;  %v6945_v20 = vsel %vm1490_vm5, %v6872_v63, %v6944_v25  ;;  %v6193_v57 = vcombine.high %v17208_v22, %v17208_v22  ;;  %v6201_v59 = vrot.slane %v5776_v16, %v12792_v9 }
 0x341   : > { %v6208_v0 = vrot.slane %v6194_v5, %v12792_v9  ;;  %v6946_v33 = vsel %vm6915_vm13, %v6876_v10, %v6945_v20  ;;  %v6184_v13 = vrot.slane %v5775_v58, %v12792_v9  ;;  %v5777_v44 = vadd.f32 %v16979_v1, %v19663_v61 }
 0x342   : > { %v17236_v27 = vsel %vm6909_vm11, %v17193_v3, %v17174_v62  ;;  %v6947_v63 = vsel %vm1492_vm7, %v6880_v6, %v6946_v33  ;;  %v6359_v25 = vmax.f32 %v6167_v4, %v6193_v57  ;;  %v6209_v52 = vcombine.high %v6201_v59, %v6201_v59 }
 0x343   : > { %v6210_v43 = vcombine.high %v6208_v0, %v6208_v0  ;;  %v6966_v16 = vmul.f32 %v16620_v24, %v6947_v63  ;;  %v6360_v5 = vmax.f32 %v6175_v49, %v6201_v59  ;;  %v6362_v54 = vmax.f32 %v6176_v60, %v6208_v0 }
 0x344   : > { %v7050_v58 = vrot.slane %v17111_v12, %v12792_v9  ;;  %vm6639_vm9 = vcmp.gt.f32.partialorder %v17040_v30, 0.0  ;;  %v11346_v1 = vrot.slane %v6359_v25, 9  ;;  %v6361_v61 = vmax.f32 %v6174_v45, %v6209_v52 }
 0x345   : > { %v6363_v10 = vmax.f32 %v6184_v13, %v6210_v43  ;;  %v6217_v20 = vrot.slane %v5777_v44, %v12792_v9  ;;  %vm6641_vm14 = vcmp.gt.f32.partialorder %v17044_v31, 0.0  ;;  %v7060_v33 = vcombine.high %v6966_v16, %v6966_v16 }
 0x346   : > { %v17246_v4 = vrot.slane %v6966_v16, %v12792_v9  ;;  %v11347_v6 = vrot.slane %v6360_v5, 9  ;;  %v11349_v24 = vrot.slane %v6362_v54, 9  ;;  %vm6640_vm15 = vcmp.gt.f32.partialorder %v17032_v40, 0.0 }
 0x347   : > { %vm6642_vm0 = vcmp.gt.f32.partialorder %v17042_v53, 0.0  ;;  %vm6650_vm2 = vcmp.gt.f32.partialorder %v6601_v47, 0.0  ;;  %v17250_v12 = vmax.f32 %v6359_v25, %v11346_v1  ;;  %v11348_v49 = vrot.slane %v6361_v61, 9 }
 0x348   : > { %v11350_v52 = vrot.slane %v6363_v10, 9  ;;  %v17253_v43 = vrot.slane %v7060_v33, %v12792_v9  ;;  %v7075_v45 = vcombine.high %v17246_v4, %v17246_v4  ;;  %v17257_v60 = vmax.f32 %v6360_v5, %v11347_v6 }
 0x349   : > { %v17259_v57 = vmax.f32 %v6362_v54, %v11349_v24  ;;  %v17261_v59 = vmax.f32 %v6361_v61, %v11348_v49  ;;  %v6218_v44 = vcombine.high %v6217_v20, %v6217_v20  ;;  %v7058_v63 = vcombine.high %v7050_v58, %v7050_v58 }
 0x34a   : > { %v17263_v0 = vmax.f32 %v6363_v10, %v11350_v52  ;;  %v7110_v25 = vrot.slane %v7075_v45, 1  ;;  %v7201_v16 = vsel %vm6648_vm8, %v17143_v28, %v7075_v45  ;;  %v17269_v1 = vsel %vm6650_vm2, %v6601_v47, %v17253_v43 }
 0x34b   : > { %19664 = vst [vmem:[#allocation123_spill] sm:$0xff] %v17259_v57  ;;  %v6884_v5 = vrot.slane %v17250_v12, %v16576_v51  ;;  %v17275_v54 = vrot.slane %v17141_v38, %v16576_v51  ;;  %v17279_v61 = vsel %vm1488_vm3, %v17133_v18, %v7802_v11  ;;  %vm6649_vm6 = vcmp.gt.f32.partialorder %v17185_v55, 0.0 }
 0x34c   : > { %v6192_v10 = vcombine.high %v6184_v13, %v6184_v13  ;;  %v7202_v33 = vsel %vm6649_vm6, %v17185_v55, %v7110_v25  ;;  %v6888_v28 = vrot.slane %v17257_v60, %v16576_v51  ;;  %v6892_v47 = vrot.slane %v17261_v59, %v16576_v51 }
 0x34d   : > { %v6896_v6 = vrot.slane %v17259_v57, %v16576_v51  ;;  %v17291_v38 = vrot.slane %v17153_v7, %v16576_v51  ;;  %v6900_v11 = vrot.slane %v17263_v0, %v16576_v51  ;;  %v6365_v13 = vmax.f32 %v17208_v22, %v6218_v44 }
 0x34e   : > { %v6364_v24 = vmax.f32 %v6192_v10, %v6217_v20  ;;  %v6948_v55 = vsel %vm6909_vm11, %v6888_v28, %v6884_v5  ;;  %v7106_v49 = vrot.slane %v7050_v58, 1  ;;  %v7107_v52 = vrot.slane %v7058_v63, 1 }
 0x34f   : > { %v7192_v45 = vsel %vm6639_vm9, %v17040_v30, %v7050_v58  ;;  %v6949_v25 = vsel %vm1488_vm3, %v6892_v47, %v6948_v55  ;;  %v11352_v18 = vrot.slane %v6365_v13, 9  ;;  %v7194_v7 = vsel %vm6641_vm14, %v17044_v31, %v7058_v63 }
 0x350   : > { %v11351_v57 = vrot.slane %v6364_v24, 9  ;;  %v17305_v20 = vrot.slane %v7201_v16, %v16576_v51  ;;  %v6950_v22 = vsel %vm6912_vm12, %v6896_v6, %v6949_v25  ;;  %v7193_v44 = vsel %vm6640_vm15, %v17032_v40, %v7106_v49  ;;  %v12705_v25 = vld [vmem:[%s18521_s5 + $0x4] ss:$0 sm:$0xff] }
 0x351   : > { %v7195_v30 = vsel %vm6642_vm0, %v17042_v53, %v7107_v52  ;;  %v17316_v5 = vmax.f32 %v6365_v13, %v11352_v18  ;;  %v6951_v10 = vsel %vm1490_vm5, %v6900_v11, %v6950_v22  ;;  %v17320_v31 = vrot.slane %v7192_v45, %v16576_v51 }
 0x352   : > { %v17314_v58 = vmax.f32 %v6364_v24, %v11351_v57  ;;  %v17323_v63 = vrot.slane %v7202_v33, %v16576_v51  ;;  %v17326_v16 = vrot.slane %v7193_v44, %v16576_v51  ;;  %v7361_v40 = vsel %vm1488_vm3, %v17203_v35, %v17236_v27 }
 0x353   : > { %v7497_v53 = vsel %vm6909_vm11, %v16916_v21, %v16913_v29  ;;  %v6908_v57 = vrot.slane %v17316_v5, %v16576_v51  ;;  %v17339_v33 = vrot.slane %v7194_v7, %v16576_v51  ;;  %v17342_v28 = vrot.slane %v7195_v30, %v16576_v51 }
 0x354   : > { %v6904_v18 = vrot.slane %v17314_v58, %v16576_v51  ;;  %v7362_v47 = vsel %vm6912_vm12, %v17212_v32, %v7361_v40  ;;  %v7498_v27 = vsel %vm1488_vm3, %v16924_v14, %v7497_v53  ;;  %v7505_v29 = vsel %vm1488_vm3, %v17070_v34, %v17170_v48 }
 0x355   : > { %v7511_v6 = vsel %vm6909_vm11, %v17203_v35, %v17193_v3  ;;  %v7363_v24 = vsel %vm1490_vm5, %v17320_v31, %v7362_v47  ;;  %v7499_v13 = vsel %vm6912_vm12, %v16927_v15, %v7498_v27  ;;  %v7506_v55 = vsel %vm6912_vm12, %v17074_v2, %v7505_v29 }
 0x356   : > { %v6952_v11 = vsel %vm6915_vm13, %v6904_v18, %v6951_v10  ;;  %vm6658_vm8 = vcmp.gt.f32.partialorder %v17314_v58, 0.0  ;;  %v7364_v48 = vsel %vm6915_vm13, %v17326_v16, %v7363_v24  ;;  %v7500_v52 = vsel %vm1490_vm5, %v17030_v42, %v7499_v13  ;;  %v19665_v24 = vld [vmem:[#allocation230_spill] sm:$0xff] }
 0x357   : > { %v6953_v49 = vsel %vm1492_vm7, %v6908_v57, %v6952_v11  ;;  %v7507_v45 = vsel %vm1490_vm5, %v17080_v23, %v7506_v55  ;;  %v7365_v22 = vsel %vm1492_vm7, %v17339_v33, %v7364_v48  ;;  %v7501_v44 = vsel %vm6915_vm13, %v16934_v17, %v7500_v52 }
 0x358   : > { %v17372_v7 = vmul.f32 %v12705_v25, %v6953_v49  ;;  %v7508_v30 = vsel %vm6915_vm13, %v17089_v8, %v7507_v45  ;;  %vm6646_vm9 = vcmp.gt.f32.partialorder %v17128_v56, 0.0  ;;  %v7366_v10 = vsel %vm7351_vm1, %v17342_v28, %v7365_v22 }
 0x359   : > { %v7502_v40 = vsel %vm1492_vm7, %v16960_v39, %v7501_v44  ;;  %v7509_v53 = vsel %vm1492_vm7, %v16848_v37, %v7508_v30  ;;  %v7512_v18 = vsel %vm1488_vm3, %v17212_v32, %v7511_v6  ;;  %vm6645_vm14 = vcmp.gt.f32.partialorder %v17050_v36, 0.0  ;;  %12494 = vmatprep.mubr.msk.f32.mxu1 %vm7367_vm4, %v7366_v10  ;;  %v11367_v30 = vld [vmem:[%s18518_s2 + $0x20] sm:$0xff] }
 0x35a   : > { %v7077_v57 = vcombine.high %v17372_v7, %v17372_v7  ;;  %v7503_v47 = vsel %vm7351_vm1, %v17054_v19, %v7502_v40  ;;  %v7510_v27 = vsel %vm7351_vm1, %v17174_v62, %v7509_v53  ;;  %v7513_v29 = vsel %vm6912_vm12, %v17007_v26, %v7512_v18  ;;  %12495 = vmatmul.mubr.msk.f32.gmra.mxu1 %vm7367_vm4, %v17275_v54 }
 0x35b   : > { %v7514_v6 = vsel %vm1490_vm5, %v17326_v16, %v7513_v29  ;;  %v7646_v11 = vsel %vm6909_vm11, %v16924_v14, %v16916_v21  ;;  %v7654_v13 = vsel %vm1488_vm3, %v17074_v2, %v19665_v24  ;;  %v7660_v55 = vsel %vm6909_vm11, %v17212_v32, %v17203_v35  ;;  %12501 = vmatprep.mubr.msk.f32.mxu1 %vm7367_vm4, %v7503_v47 }
 0x35c   : > { %v17413_v49 = vrot.slane %v7077_v57, %v12792_v9  ;;  %v7515_v48 = vsel %vm6915_vm13, %v17339_v33, %v7514_v6  ;;  %v7647_v52 = vsel %vm1488_vm3, %v16927_v15, %v7646_v11  ;;  %v7655_v21 = vsel %vm6912_vm12, %v17080_v23, %v7654_v13  ;;  %v19667_v57 = vld [vmem:[#allocation97_spill] sm:$0xff] }
 0x35d   : > { %v7516_v14 = vsel %vm1492_vm7, %v17342_v28, %v7515_v48  ;;  %v7648_v45 = vsel %vm6912_vm12, %v17030_v42, %v7647_v52  ;;  %v7656_v25 = vsel %vm1490_vm5, %v17089_v8, %v7655_v21  ;;  %v7661_v22 = vsel %vm1488_vm3, %v17007_v26, %v7660_v55  ;;  %v11375_v6 = vld [vmem:[%s18518_s2 + $0x38] sm:$0x3]  ;;  %v19670_v52 = vld [vmem:[#allocation88_spill] sm:$0xff] }
 0x35e   : > { %v7114_v44 = vrot.slane %v17413_v49, 1  ;;  %v7517_v15 = vsel %vm7351_vm1, %v17275_v54, %v7516_v14  ;;  %v19666_v10 = vrot.slane %v19656_v50, %v16576_v51  ;;  %v7657_v40 = vsel %vm6915_vm13, %v16848_v37, %v7656_v25  ;;  %12502 = vmatmul.mubr.msk.f32.vlgmr.msra.gmra.mxu1 %vm7367_vm4, %v7510_v27 }
 0x35f   : > { %v7658_v18 = vsel %vm1492_vm7, %v16851_v41, %v7657_v40  ;;  %v7662_v47 = vsel %vm6912_vm12, %v19667_v57, %v7661_v22  ;;  %v17451_v29 = vsel %vm1488_vm3, %v17320_v31, %v7660_v55  ;;  %12508 = vmatpush3.msk.msra.mxu1 %vm7376_vm10, %v17183_v46  ;;  %12504 = vmatprep.mubr.msk.f32.mxu1 %vm7367_vm4, %v7517_v15  ;;  %v7109_v24 = vrot.slane %v17246_v4, 1  ;;  %v19669_v55 = vld [vmem:[#allocation109_spill] sm:$0xff] }
 0x360   : > { %v7649_v42 = vsel %vm1490_vm5, %v19666_v10, %v7648_v45  ;;  %v17456_v50 = vsel %vm6658_vm8, %v17314_v58, %v7114_v44  ;;  %v7659_v11 = vsel %vm7351_vm1, %v17193_v3, %v7658_v18  ;;  %12509 = vmatprep.subr.mxu1 %v11367_v30  ;;  %v19668_v58 = vld [vmem:[#allocation100_spill] sm:$0xff]  ;;  %v7663_v46 = vsel %vm1490_vm5, %v17339_v33, %v7662_v47  ;;  %v19671_v44 = vld [vmem:[#allocation233_spill] sm:$0xff] }
 0x361   : > { %v7650_v53 = vsel %vm6915_vm13, %v16960_v39, %v7649_v42  ;;  %v7059_v48 = vcombine.high %v19669_v55, %v19669_v55  ;;  %v7795_v21 = vsel %vm6909_vm11, %v16934_v17, %v19670_v52  ;;  %12510 = vmatpush3.msra.mxu1 %v11367_v30  ;;  %v7664_v14 = vsel %vm6915_vm13, %v17342_v28, %v7663_v46  ;;  %v19672_v10 = vld [vmem:[#allocation113_spill] sm:$0xff] }
 0x362   : > { %v7651_v27 = vsel %vm1492_vm7, %v17054_v19, %v7650_v53  ;;  %v7796_v45 = vsel %vm1488_vm3, %v16960_v39, %v7795_v21  ;;  %v7804_v25 = vsel %vm6912_vm12, %v17174_v62, %v17279_v61  ;;  %v7199_v22 = vsel %vm6646_vm9, %v17128_v56, %v17246_v4  ;;  %12505 = vmatmul.mubr.msk.f32.gmra.mxu1 %vm7367_vm4, %v17291_v38 }
 0x363   : > { %v7652_v13 = vsel %vm7351_vm1, %v19668_v58, %v7651_v27  ;;  %vm6647_vm15 = vcmp.gt.f32.partialorder %v19671_v44, 0.0  ;;  %12517 = vmatprep.subr.msk.mxu1 %vm7376_vm10, %v11375_v6  ;;  %v7665_v15 = vsel %vm1492_vm7, %v17275_v54, %v7664_v14  ;;  %v7198_v30 = vsel %vm6645_vm14, %v17050_v36, %v7059_v48  ;;  %v19673_v36 = vld [vmem:[#allocation102_spill] sm:$0xff] }
 0x364   : > { %v7797_v61 = vsel %vm6912_vm12, %v17054_v19, %v7796_v45  ;;  %vm6651_vm0 = vcmp.gt.f32.partialorder %v19672_v10, 0.0  ;;  %12511 = vmatprep.mubr.msk.f32.mxu1 %vm7367_vm4, %v7652_v13  ;;  %v7666_v56 = vsel %vm7351_vm1, %v17291_v38, %v7665_v15  ;;  %v17505_v4 = vrot.slane %v7198_v30, %v16576_v51  ;;  %v11374_v13 = vld [vmem:[%s18518_s2 + $0x30] sm:$0xff] }
 0x365   : > { %v7798_v42 = vsel %vm1490_vm5, %v19668_v58, %v7797_v61  ;;  %v7805_v40 = vsel %vm1490_vm5, %v17193_v3, %v7804_v25  ;;  %v7200_v47 = vsel %vm6647_vm15, %v19671_v44, %v7109_v24  ;;  %v17517_v27 = vrot.slane %v7199_v22, %v16576_v51 }
 0x366   : > { %v7799_v53 = vsel %vm6915_vm13, %v19673_v36, %v7798_v42  ;;  %v7806_v18 = vsel %vm6915_vm13, %v17203_v35, %v7805_v40  ;;  %v17527_v48 = vrot.slane %v7200_v47, %v16576_v51  ;;  %v7809_v24 = vsel %vm6909_vm11, %v17339_v33, %v17326_v16  ;;  %12512 = vmatmul.mubr.msk.f32.vlgmr.msra.gmra.mxu1 %vm7367_vm4, %v7659_v11  ;;  %v11382_v11 = vld [vmem:[%s18518_s2 + $0x48] sm:$0x3] }
 0x367   : > { %v7800_v46 = vsel %vm1492_vm7, %v17070_v34, %v7799_v53  ;;  %v7807_v55 = vsel %vm1492_vm7, %v17212_v32, %v7806_v18  ;;  %v7810_v14 = vsel %vm1488_vm3, %v17342_v28, %v7809_v24  ;;  %v7924_v45 = vsel %vm6909_vm11, %v16960_v39, %v16934_v17  ;;  %12518 = vmatpush3.msk.msra.mxu1 %vm7376_vm10, %v11375_v6  ;;  %v19675_v18 = vld [vmem:[#allocation114_spill] sm:$0xff] }
 0x368   : > { %v7801_v52 = vsel %vm7351_vm1, %v17074_v2, %v7800_v46  ;;  %v7808_v21 = vsel %vm7351_vm1, %v17320_v31, %v7807_v55  ;;  %12514 = vmatprep.mubr.msk.f32.mxu1 %vm7367_vm4, %v7666_v56  ;;  %v7811_v25 = vsel %vm6912_vm12, %v17275_v54, %v7810_v14  ;;  %v7925_v31 = vsel %vm1488_vm3, %v17054_v19, %v7924_v45  ;;  %v19674_v56 = vld [vmem:[#allocation85_spill] sm:$0xff] }
 0x369   : > { %v7931_v22 = vsel %vm6909_vm11, %v16848_v37, %v17089_v8  ;;  %v7111_v17 = vrot.slane %v17253_v43, 1  ;;  %12519 = vmatprep.subr.mxu1 %v11374_v13  ;;  %v7812_v6 = vsel %vm1490_vm5, %v17517_v27, %v7811_v25  ;;  %v7926_v44 = vsel %vm6912_vm12, %v19668_v58, %v7925_v31 }
 0x36a   : > { %v7932_v15 = vsel %vm1488_vm3, %v17174_v62, %v7931_v22  ;;  %v7938_v30 = vsel %vm6909_vm11, %v17342_v28, %v17339_v33  ;;  %12520 = vmatpush3.msra.mxu1 %v11374_v13  ;;  %v7813_v61 = vsel %vm6915_vm13, %v17527_v48, %v7812_v6  ;;  %v7927_v42 = vsel %vm1490_vm5, %v19674_v56, %v7926_v44  ;;  %v11381_v6 = vld [vmem:[%s18518_s2 + $0x40] sm:$0xff] }
 0x36b   : > { %v7933_v40 = vsel %vm6912_vm12, %v17193_v3, %v7932_v15  ;;  %v7939_v53 = vsel %vm1488_vm3, %v17275_v54, %v7938_v30  ;;  %vm6652_vm2 = vcmp.gt.f32.partialorder %v19675_v18, 0.0  ;;  %12515 = vmatmul.mubr.msk.f32.gmra.mxu1 %vm7367_vm4, %v17505_v4  ;;  %12527 = vmatprep.subr.msk.mxu1 %vm7376_vm10, %v11382_v11  ;;  %v7814_v47 = vsel %vm1492_vm7, %v17305_v20, %v7813_v61  ;;  %v19676_v61 = vld [vmem:[#allocation223_spill] sm:$0xff] }
 0x36c   : > { %v7928_v13 = vsel %vm6915_vm13, %v17070_v34, %v7927_v42  ;;  %v7934_v46 = vsel %vm1490_vm5, %v17203_v35, %v7933_v40  ;;  %12521 = vmatprep.mubr.msk.f32.mxu1 %vm7367_vm4, %v7801_v52  ;;  %v7815_v55 = vsel %vm7351_vm1, %v17323_v63, %v7814_v47  ;;  %v7940_v45 = vsel %vm6912_vm12, %v17291_v38, %v7939_v53 }
 0x36d   : > { %v7929_v24 = vsel %vm1492_vm7, %v17074_v2, %v7928_v13  ;;  %v7935_v14 = vsel %vm6915_vm13, %v17212_v32, %v7934_v46  ;;  %v17593_v25 = vrot.slane %v17269_v1, %v16576_v51  ;;  %v7941_v52 = vsel %vm1490_vm5, %v17527_v48, %v7940_v45 }
 0x36e   : > { %v7936_v31 = vsel %vm1492_vm7, %v17007_v26, %v7935_v14  ;;  %v7204_v22 = vsel %vm6651_vm0, %v19672_v10, %v7111_v17  ;;  %v7930_v44 = vsel %vm7351_vm1, %v17080_v23, %v7929_v24  ;;  %v7942_v15 = vsel %vm6915_vm13, %v17305_v20, %v7941_v52 }
 0x36f   : > { %v7937_v1 = vsel %vm7351_vm1, %v17326_v16, %v7936_v31  ;;  %v8053_v30 = vsel %vm6909_vm11, %v17054_v19, %v16960_v39  ;;  %12522 = vmatmul.mubr.msk.f32.vlgmr.msra.gmra.mxu1 %vm7367_vm4, %v7808_v21  ;;  %v7943_v10 = vsel %vm1492_vm7, %v17323_v63, %v7942_v15  ;;  %v8061_v42 = vsel %vm1488_vm3, %v17193_v3, %v19676_v61  ;;  %v11389_v39 = vld [vmem:[%s18518_s2 + $0x58] sm:$0x3] }
 0x370   : > { %v8054_v17 = vsel %vm1488_vm3, %v19668_v58, %v8053_v30  ;;  %v8067_v40 = vsel %vm6909_vm11, %v17275_v54, %v17342_v28  ;;  %vm6653_vm6 = vcmp.gt.f32.partialorder %v17250_v12, 0.0  ;;  %12528 = vmatpush3.msk.msra.mxu1 %vm7376_vm10, %v11382_v11  ;;  %12524 = vmatprep.mubr.msk.f32.mxu1 %vm7367_vm4, %v7815_v55  ;;  %v7944_v19 = vsel %vm7351_vm1, %v17593_v25, %v7943_v10  ;;  %v19677_v11 = vld [vmem:[#allocation87_spill] sm:$0xff]  ;;  %v11388_v10 = vld [vmem:[%s18518_s2 + $0x50] sm:$0xff] }
 0x371   : > { %v8055_v58 = vsel %vm6912_vm12, %v19674_v56, %v8054_v17  ;;  %v8062_v21 = vsel %vm6912_vm12, %v17203_v35, %v8061_v42  ;;  %vm6654_vm8 = vcmp.gt.f32.partialorder %v17257_v60, 0.0  ;;  %vm6655_vm9 = vcmp.gt.f32.partialorder %v17261_v59, 0.0  ;;  %12529 = vmatprep.subr.mxu1 %v11381_v6 }
 0x372   : > { %v8056_v53 = vsel %vm1490_vm5, %v19677_v11, %v8055_v58  ;;  %v8063_v47 = vsel %vm1490_vm5, %v17212_v32, %v8062_v21  ;;  %v8068_v13 = vsel %vm1488_vm3, %v17291_v38, %v8067_v40  ;;  %v7076_v56 = vcombine.high %v17253_v43, %v17253_v43  ;;  %12530 = vmatpush3.msra.mxu1 %v11381_v6 }
 0x373   : > { %v8057_v46 = vsel %vm6915_vm13, %v17074_v2, %v8056_v53  ;;  %v8064_v55 = vsel %vm6915_vm13, %v17007_v26, %v8063_v47  ;;  %v8069_v24 = vsel %vm6912_vm12, %v17505_v4, %v8068_v13  ;;  %v8202_v14 = vsel %vm6909_vm11, %v17070_v34, %v19673_v36  ;;  %12525 = vmatmul.mubr.msk.f32.gmra.mxu1 %vm7367_vm4, %v17593_v25 }
 0x374   : > { %vm6657_vm14 = vcmp.gt.f32.partialorder %v17263_v0, 0.0  ;;  %12537 = vmatprep.subr.msk.mxu1 %vm7376_vm10, %v11389_v39  ;;  %v8058_v43 = vsel %vm1492_vm7, %v17080_v23, %v8057_v46  ;;  %v8065_v45 = vsel %vm1492_vm7, %v19667_v57, %v8064_v55  ;;  %v8070_v31 = vsel %vm1490_vm5, %v17305_v20, %v8069_v24  ;;  %12531 = vmatprep.mubr.msk.f32.mxu1 %vm7367_vm4, %v7930_v44 }
 0x375   : > { %v17668_v36 = vrot.slane %v7204_v22, %v16576_v51  ;;  %v8066_v52 = vsel %vm7351_vm1, %v17339_v33, %v8065_v45  ;;  %v8071_v6 = vsel %vm6915_vm13, %v17323_v63, %v8070_v31  ;;  %v7205_v15 = vsel %vm6652_vm2, %v19675_v18, %v7076_v56 }
 0x376   : > { %v8059_v57 = vsel %vm7351_vm1, %v17089_v8, %v8058_v43  ;;  %v8072_v30 = vsel %vm1492_vm7, %v17593_v25, %v8071_v6  ;;  %v8203_v22 = vsel %vm1488_vm3, %v17074_v2, %v8202_v14  ;;  %v8210_v44 = vsel %vm6912_vm12, %v17326_v16, %v17451_v29 }
 0x377   : > { %v8073_v18 = vsel %vm7351_vm1, %v17668_v36, %v8072_v30  ;;  %v8204_v17 = vsel %vm6912_vm12, %v17080_v23, %v8203_v22  ;;  %v8211_v61 = vsel %vm1490_vm5, %v17339_v33, %v8210_v44  ;;  %v7084_v42 = vrot.slane %v17372_v7, %v12792_v9  ;;  %12532 = vmatmul.mubr.msk.f32.vlgmr.msra.gmra.mxu1 %vm7367_vm4, %v7937_v1  ;;  %v11396_v9 = vld [vmem:[%s18518_s2 + $0x68] sm:$0x3] }
 0x378   : > { %v8205_v29 = vsel %vm1490_vm5, %v17089_v8, %v8204_v17  ;;  %v8212_v40 = vsel %vm6915_vm13, %v17342_v28, %v8211_v61  ;;  %v8215_v58 = vsel %vm6909_vm11, %v17305_v20, %v17527_v48  ;;  %v7210_v21 = vsel %vm6657_vm14, %v17263_v0, %v17413_v49  ;;  %12538 = vmatpush3.msk.msra.mxu1 %vm7376_vm10, %v11389_v39  ;;  %v19678_v7 = vld [vmem:[#allocation111_spill] sm:$0xff] }
 0x379   : > { %12534 = vmatprep.mubr.msk.f32.mxu1 %vm7367_vm4, %v7944_v19  ;;  %v8206_v1 = vsel %vm6915_vm13, %v19678_v7, %v8205_v29  ;;  %v8213_v11 = vsel %vm1492_vm7, %v17275_v54, %v8212_v40  ;;  %v7092_v53 = vcombine.high %v7084_v42, %v7084_v42  ;;  %v7112_v47 = vrot.slane %v7084_v42, 1  ;;  %12539 = vmatprep.subr.mxu1 %v11388_v10 }
 0x37a   : > { %v8207_v0 = vsel %vm1492_vm7, %v17174_v62, %v8206_v1  ;;  %v17722_v39 = vsel %vm7351_vm1, %v17517_v27, %v8213_v11  ;;  %v7206_v19 = vsel %vm6653_vm6, %v17250_v12, %v7084_v42  ;;  %v8216_v13 = vsel %vm1488_vm3, %v17323_v63, %v8215_v58  ;;  %12540 = vmatpush3.msra.mxu1 %v11388_v10  ;;  %v19679_v12 = vld [vmem:[#allocation123_spill] sm:$0xff] }
 0x37b   : > { %v8208_v56 = vsel %vm7351_vm1, %v17193_v3, %v8207_v0  ;;  %v7113_v46 = vrot.slane %v7092_v53, 1  ;;  %v7207_v55 = vsel %vm6654_vm8, %v17257_v60, %v7112_v47  ;;  %v7208_v27 = vsel %vm6655_vm9, %v17261_v59, %v7092_v53  ;;  %12535 = vmatmul.mubr.msk.f32.gmra.mxu1 %vm7367_vm4, %v17668_v36  ;;  %12547 = vmatprep.subr.msk.mxu1 %vm7376_vm10, %v11396_v9 }
 0x37c   : > { %vm6656_vm15 = vcmp.gt.f32.partialorder %v19679_v12, 0.0  ;;  %v8185_v24 = vrot.slane %v7206_v19, %v16576_v51  ;;  %v8189_v14 = vrot.slane %v7207_v55, %v16576_v51  ;;  %v8193_v43 = vrot.slane %v7208_v27, %v16576_v51  ;;  %12541 = vmatprep.mubr.msk.f32.mxu1 %vm7367_vm4, %v8059_v57  ;;  %v11395_v57 = vld [vmem:[%s18518_s2 + $0x60] sm:$0xff] }
 0x37d   : > { %v8052_v60 = vrot.slane %v7205_v15, %v16576_v51  ;;  %v7209_v45 = vsel %vm6656_vm15, %v19679_v12, %v7113_v46  ;;  %v8217_v59 = vsel %vm6912_vm12, %v17593_v25, %v8216_v13  ;;  %v8330_v31 = vsel %vm6909_vm11, %v17074_v2, %v17070_v34 }
 0x37e   : > { %v8197_v6 = vrot.slane %v7209_v45, %v16576_v51  ;;  %v8218_v30 = vsel %vm1490_vm5, %v8185_v24, %v8217_v59  ;;  %v8331_v22 = vsel %vm1488_vm3, %v17080_v23, %v8330_v31  ;;  %v8337_v15 = vsel %vm6909_vm11, %v17007_v26, %v17212_v32 }
 0x37f   : > { %v8219_v44 = vsel %vm6915_vm13, %v8189_v14, %v8218_v30  ;;  %v8332_v34 = vsel %vm6912_vm12, %v17089_v8, %v8331_v22  ;;  %v8338_v10 = vsel %vm1488_vm3, %v17326_v16, %v8337_v15  ;;  %v8344_v17 = vsel %vm6909_vm11, %v17323_v63, %v17305_v20  ;;  %12542 = vmatmul.mubr.msk.f32.vlgmr.msra.gmra.mxu1 %vm7367_vm4, %v8066_v52  ;;  %v11403_v16 = vld [vmem:[%s18518_s2 + $0x78] sm:$0x3]  ;;  %v11354_v22 = vld [vmem:[%s18521_s5 + $0x1] ss:$0 sm:$0xff] }
 0x380   : > { %v8220_v26 = vsel %vm1492_vm7, %v8193_v43, %v8219_v44  ;;  %v8333_v61 = vsel %vm1490_vm5, %v16848_v37, %v8332_v34  ;;  %v8339_v42 = vsel %vm6912_vm12, %v17339_v33, %v8338_v10  ;;  %v8345_v29 = vsel %vm1488_vm3, %v17593_v25, %v8344_v17  ;;  %12548 = vmatpush3.msk.msra.mxu1 %vm7376_vm10, %v11396_v9 }
 0x381   : > { %12544 = vmatprep.mubr.msk.f32.mxu1 %vm7367_vm4, %v8073_v18  ;;  %v8221_v52 = vsel %vm7351_vm1, %v8197_v6, %v8220_v26  ;;  %v8334_v40 = vsel %vm6915_vm13, %v17174_v62, %v8333_v61  ;;  %v8340_v58 = vsel %vm1490_vm5, %v17342_v28, %v8339_v42  ;;  %12549 = vmatprep.subr.mxu1 %v11395_v57 }
 0x382   : > { %v8201_v7 = vrot.slane %v7210_v21, %v16576_v51  ;;  %v8335_v9 = vsel %vm1492_vm7, %v17193_v3, %v8334_v40  ;;  %v8341_v18 = vsel %vm6915_vm13, %v17275_v54, %v8340_v58  ;;  %v8346_v1 = vsel %vm6912_vm12, %v17668_v36, %v8345_v29  ;;  %12550 = vmatpush3.msra.mxu1 %v11395_v57 }
 0x383   : > { %v8336_v11 = vsel %vm7351_vm1, %v17203_v35, %v8335_v9  ;;  %v8342_v62 = vsel %vm1492_vm7, %v17291_v38, %v8341_v18  ;;  %v8347_v53 = vsel %vm1490_vm5, %v8189_v14, %v8346_v1  ;;  %v8459_v21 = vsel %vm6909_vm11, %v17080_v23, %v17074_v2  ;;  %12545 = vmatmul.mubr.msk.f32.gmra.mxu1 %vm7367_vm4, %v8052_v60  ;;  %v19680_v2 = vld [vmem:[#allocation99_spill] sm:$0xff] }
 0x384   : > { %12557 = vmatprep.subr.msk.mxu1 %vm7376_vm10, %v11403_v16  ;;  %v8343_v47 = vsel %vm7351_vm1, %v17527_v48, %v8342_v62  ;;  %v8348_v0 = vsel %vm6915_vm13, %v8193_v43, %v8347_v53  ;;  %v8460_v19 = vsel %vm1488_vm3, %v17089_v8, %v8459_v21  ;;  %12551 = vmatprep.mubr.msk.f32.mxu1 %vm7367_vm4, %v8208_v56 }
 0x385   : > { %v8349_v13 = vsel %vm1492_vm7, %v8197_v6, %v8348_v0  ;;  %v8461_v46 = vsel %vm6912_vm12, %v16848_v37, %v8460_v19  ;;  %v8467_v23 = vsel %vm1488_vm3, %v17339_v33, %v19680_v2  ;;  %v8473_v48 = vsel %vm6909_vm11, %v17593_v25, %v17323_v63  ;;  %v11402_v37 = vld [vmem:[%s18518_s2 + $0x70] sm:$0xff] }
 0x386   : > { %v8350_v55 = vsel %vm7351_vm1, %v8201_v7, %v8349_v13  ;;  %v8462_v8 = vsel %vm1490_vm5, %v16851_v41, %v8461_v46  ;;  %v8468_v56 = vsel %vm6912_vm12, %v17342_v28, %v8467_v23  ;;  %v8474_v27 = vsel %vm1488_vm3, %v17668_v36, %v8473_v48 }
 0x387   : > { %v8463_v33 = vsel %vm6915_vm13, %v17193_v3, %v8462_v8  ;;  %v8469_v63 = vsel %vm1490_vm5, %v17275_v54, %v8468_v56  ;;  %v8475_v25 = vsel %vm6912_vm12, %v8052_v60, %v8474_v27  ;;  %v7093_v41 = vcombine.high %v17413_v49, %v17413_v49  ;;  %12552 = vmatmul.mubr.msk.f32.vlgmr.msra.gmra.mxu1 %vm7367_vm4, %v17722_v39  ;;  %v11410_v54 = vld [vmem:[%s18518_s2 + $0x88] sm:$0x3]  ;;  %v17892_v60 = vld [vmem:[%s18519_s3 + $0x18] sm:$0xff] }
 0x388   : > { %v8329_v28 = vrot.slane %v17456_v50, %v16576_v51  ;;  %v8464_v36 = vsel %vm1492_vm7, %v17203_v35, %v8463_v33  ;;  %v8470_v3 = vsel %vm6915_vm13, %v17291_v38, %v8469_v63  ;;  %v8476_v12 = vsel %vm1490_vm5, %v8193_v43, %v8475_v25  ;;  %12558 = vmatpush3.msk.msra.mxu1 %vm7376_vm10, %v11403_v16  ;;  %v9260_v43 = vld [vmem:[%s18519_s3 + $0x8] sm:$0xff] }
 0x389   : > { %vm6659_vm3 = vcmp.gt.f32.partialorder %v17316_v5, 0.0  ;;  %12554 = vmatprep.mubr.msk.f32.mxu1 %vm7367_vm4, %v8221_v52  ;;  %v8465_v49 = vsel %vm7351_vm1, %v17212_v32, %v8464_v36  ;;  %v8471_v35 = vsel %vm1492_vm7, %v17505_v4, %v8470_v3  ;;  %v8477_v38 = vsel %vm6915_vm13, %v8197_v6, %v8476_v12  ;;  %12559 = vmatprep.subr.mxu1 %v11402_v37  ;;  %v11409_v32 = vld [vmem:[%s18518_s2 + $0x80] sm:$0xff]  ;;  %v11447_v4 = vld [vmem:[%s18519_s3 + $0x70] sm:$0xff] }
 0x38a   : > { %v8472_v50 = vsel %vm7351_vm1, %v17305_v20, %v8471_v35  ;;  %v8478_v39 = vsel %vm1492_vm7, %v8201_v7, %v8477_v38  ;;  %v7212_v24 = vsel %vm6659_vm3, %v17316_v5, %v7093_v41  ;;  %12560 = vmatpush3.msra.mxu1 %v11402_v37  ;;  %v11448_v5 = vld [vmem:[%s18519_s3 + $0x78] sm:$0xff]  ;;  %v12717_v56 = vmov 1966171168  }
 0x38b   : > { %v8479_v14 = vsel %vm7351_vm1, %v8329_v28, %v8478_v39  ;;  %12555 = vmatmul.mubr.msk.f32.gmra.mxu1 %vm7367_vm4, %v8201_v7  ;;  %12567 = vmatprep.subr.msk.mxu1 %vm7376_vm10, %v11410_v54  ;;  %v8458_v20 = vrot.slane %v7212_v24, %v16576_v51  ;;  %v9259_v51 = vld [vmem:[%s18519_s3] sm:$0xff]  ;;  %v8586_v27 = vunpack.c.l.s4 %v12717_v56 }
 0x38c   : > { %12561 = vmatprep.mubr.msk.f32.mxu1 %vm7367_vm4, %v8336_v11  ;;  %12626 = vmatprep.subr.mxu0 %v11448_v5 }
 0x38d   : > { %12627 = vmatpush3.msra.mxu0 %v11448_v5  ;;  %v8587_v36 = vunpack.c.0.s8 %v8586_v27 }
 0x38e   : > { %12628 = vmatprep.subr.mxu0 %v11447_v4 }
 0x38f   : > { %12562 = vmatmul.mubr.msk.f32.vlgmr.msra.gmra.mxu1 %vm7367_vm4, %v8343_v47  ;;  %12629 = vmatpush3.msra.mxu0 %v11447_v4 }
 0x390   : > { %12568 = vmatpush3.msk.msra.mxu1 %vm7376_vm10, %v11410_v54  ;;  %12564 = vmatprep.mubr.msk.f32.mxu1 %vm7367_vm4, %v8350_v55 }
 0x391   : > { %12569 = vmatprep.subr.mxu1 %v11409_v32 }
 0x392   : > { %12570 = vmatpush3.msra.mxu1 %v11409_v32 }
 0x393   : > { %12565 = vmatmul.mubr.msk.f32.gmra.mxu1 %vm7367_vm4, %v8329_v28  ;;  %12577 = vmatprep.subr.mxu1 %v9260_v43 }
 0x394   : > { %12571 = vmatprep.mubr.msk.f32.mxu1 %vm7367_vm4, %v8465_v49 }
 0x397   : > { %12572 = vmatmul.mubr.msk.f32.vlgmr.msra.gmra.mxu1 %vm7367_vm4, %v8472_v50  ;;  %v19681_v50 = vld [vmem:[#allocation2_spill] sm:$0xff] }
 0x398   : > { %12574 = vmatprep.mubr.msk.f32.mxu1 %vm7367_vm4, %v8479_v14  ;;  %12578 = vmatpush3.msra.mxu1 %v9260_v43  ;;  %v17899_v39 = vsub.s32 %v8587_v36, %v19681_v50 }
 0x399   : > { %12579 = vmatprep.subr.mxu1 %v9259_v51 }
 0x39a   : > { %12580 = vmatpush3.msra.mxu1 %v9259_v51 }
 0x39b   : > { %12575 = vmatmul.mubr.msk.f32.gmra.mxu1 %vm7367_vm4, %v8458_v20  ;;  %12584 = vmatprep.subr.mxu1 %v17892_v60 }
 0x3f8   : > { %v12493_v45 = vpop.f32.mrf.mxu1 }
 0x3f9   : > { %v7466_v47 = vadd.f32 %v12493_v45, %v11354_v22 }
 0x3fa   : > { %v7446_v59 = vpop.f32.mrf.mxu1 }
 0x3fb   : > { %v7465_v19 = vadd.f32 %v11354_v22, %v7446_v59 }
 0x41a   : > { %v12496_v31 = vpop.f32.mrf.mxu1 }
 0x41b   : > { %v7468_v57 = vadd.f32 %v12496_v31, %v11354_v22 }
 0x41c   : > { %v7456_v6 = vpop.f32.mrf.mxu1 }
 0x41d   : > { %v7467_v14 = vadd.f32 %v11354_v22, %v7456_v6 }
 0x41e   : > { %v12503_v30 = vpop.f32.mrf.mxu1 }
 0x41f   : > { %v7615_v13 = vadd.f32 %v12503_v30, %v7466_v47 }
 0x420   : > { %v7595_v15 = vpop.f32.mrf.mxu1 }
 0x421   : > { %v7614_v2 = vadd.f32 %v7595_v15, %v7465_v19 }
 0x422   : > { %v12506_v44 = vpop.f32.mrf.mxu1 }
 0x423   : > { %v7617_v34 = vadd.f32 %v12506_v44, %v7468_v57 }
 0x424   : > { %v7605_v10 = vpop.f32.mrf.mxu1 }
 0x425   : > { %v7616_v43 = vadd.f32 %v7605_v10, %v7467_v14 }
 0x426   : > { %v12513_v17 = vpop.f32.mrf.mxu1 }
 0x427   : > { %v7764_v23 = vadd.f32 %v12513_v17, %v7615_v13 }
 0x428   : > { %v7744_v26 = vpop.f32.mrf.mxu1 }
 0x429   : > { %v7763_v55 = vadd.f32 %v7744_v26, %v7614_v2 }
 0x42b   : > { %v12516_v61 = vpop.f32.mrf.mxu1 }
 0x42c   : > { %v7766_v5 = vadd.f32 %v12516_v61, %v7617_v34 }
 0x42d   : > { %v7754_v42 = vpop.f32.mrf.mxu1 }
 0x42e   : > { %v7765_v30 = vadd.f32 %v7754_v42, %v7616_v43 }
 0x42f   : > { %v12523_v29 = vpop.f32.mrf.mxu1 }
 0x430   : > { %v7913_v8 = vadd.f32 %v12523_v29, %v7764_v23 }
 0x431   : > { %v7893_v16 = vpop.f32.mrf.mxu1 }
 0x432   : > { %v7912_v33 = vadd.f32 %v7893_v16, %v7763_v55 }
 0x433   : > { %v12526_v52 = vpop.f32.mrf.mxu1 }
 0x434   : > { %v7915_v31 = vadd.f32 %v12526_v52, %v7766_v5 }
 0x435   : > { %v7903_v40 = vpop.f32.mrf.mxu1 }
 0x436   : > { %v7914_v29 = vadd.f32 %v7903_v40, %v7765_v30 }
 0x437   : > { %v12533_v58 = vpop.f32.mrf.mxu1 }
 0x438   : > { %v8042_v63 = vadd.f32 %v12533_v58, %v7913_v8 }
 0x439   : > { %v8022_v7 = vpop.f32.mrf.mxu1 }
 0x43a   : > { %v8041_v41 = vadd.f32 %v8022_v7, %v7912_v33 }
 0x43b   : > { %v12536_v9 = vpop.f32.mrf.mxu1 }
 0x43c   : > { %v8044_v17 = vadd.f32 %v12536_v9, %v7915_v31 }
 0x43d   : > { %v8032_v18 = vpop.f32.mrf.mxu1 }
 0x43e   : > { %v8043_v52 = vadd.f32 %v8032_v18, %v7914_v29 }
 0x43f   : > { %v12543_v1 = vpop.f32.mrf.mxu1 }
 0x440   : > { %v8171_v28 = vadd.f32 %v12543_v1, %v8042_v63 }
 0x441   : > { %v8151_v11 = vpop.f32.mrf.mxu1 }
 0x442   : > { %v8170_v12 = vadd.f32 %v8151_v11, %v8041_v41 }
 0x443   : > { %v12546_v62 = vpop.f32.mrf.mxu1 }
 0x444   : > { %v8173_v10 = vadd.f32 %v12546_v62, %v8044_v17 }
 0x445   : > { %v8161_v53 = vpop.f32.mrf.mxu1 }
 0x447   : > { %v12553_v21 = vpop.f32.mrf.mxu1 }
 0x448   : > { %v8319_v54 = vadd.f32 %v12553_v21, %v8171_v28  ;;  %v8172_v21 = vadd.f32 %v8161_v53, %v8043_v52 }
 0x449   : > { %v8299_v0 = vpop.f32.mrf.mxu1 }
 0x44a   : > { %v8318_v35 = vadd.f32 %v8299_v0, %v8170_v12 }
 0x44b   : > { %v12556_v46 = vpop.f32.mrf.mxu1 }
 0x44c   : > { %v8321_v7 = vadd.f32 %v12556_v46, %v8173_v10 }
 0x44d   : > { %v8309_v48 = vpop.f32.mrf.mxu1 }
 0x44e   : > { %v8320_v53 = vadd.f32 %v8309_v48, %v8172_v21 }
 0x44f   : > { %v12563_v37 = vpop.f32.mrf.mxu1 }
 0x450   : > { %v8448_v38 = vadd.f32 %v12563_v37, %v8319_v54 }
 0x451   : > { %v8428_v25 = vpop.f32.mrf.mxu1 }
 0x452   : > { %v8447_v32 = vadd.f32 %v8428_v25, %v8318_v35 }
 0x453   : > { %v12566_v3 = vpop.f32.mrf.mxu1 }
 0x454   : > { %v8450_v18 = vadd.f32 %v12566_v3, %v8321_v7  ;;  %v17962_v3 = vld [vmem:[%s18521_s5 + $0x5] ss:$0 sm:$0xff] }
 0x455   : > { %v8438_v49 = vpop.f32.mrf.mxu1 }
 0x456   : > { %v8449_v37 = vadd.f32 %v8438_v49, %v8320_v53 }
 0x457   : > { %v12573_v24 = vpop.f32.mrf.mxu1 }
 0x458   : > { %v8577_v20 = vadd.f32 %v12573_v24, %v8448_v38 }
 0x459   : > { %v8557_v4 = vpop.f32.mrf.mxu1 }
 0x45a   : > { %v8633_v51 = vcombine.high %v8577_v20, %v8577_v20  ;;  %v8640_v45 = vrot.slane %v8577_v20, %v17899_v39  ;;  %v8576_v59 = vadd.f32 %v8557_v4, %v8447_v32 }
 0x45b   : > { %v12576_v19 = vpop.f32.mrf.mxu1 }
 0x45c   : > { %v8647_v15 = vrot.slane %v8633_v51, %v17899_v39  ;;  %v8648_v57 = vcombine.high %v8640_v45, %v8640_v45  ;;  %v8584_v44 = vcombine.high %v8576_v59, %v8576_v59  ;;  %v8591_v26 = vrot.slane %v8576_v59, %v17899_v39 }
 0x45d   : > { %v17911_v61 = vrot.slane %v8640_v45, %v17899_v39  ;;  %v8579_v27 = vadd.f32 %v12576_v19, %v8450_v18  ;;  %v8567_v25 = vpop.f32.mrf.mxu1 }
 0x45e   : > { %v8649_v6 = vcombine.high %v8647_v15, %v8647_v15  ;;  %v17905_v22 = vrot.slane %v8647_v15, %v17899_v39  ;;  %v17908_v34 = vrot.slane %v8648_v57, %v17899_v39  ;;  %v8598_v42 = vrot.slane %v8584_v44, %v17899_v39 }
 0x45f   : > { %v8599_v16 = vcombine.high %v8591_v26, %v8591_v26  ;;  %v17943_v55 = vrot.slane %v8591_v26, %v17899_v39  ;;  %v8737_v50 = vrot.slane %v8579_v27, %v17899_v39  ;;  %v8578_v24 = vadd.f32 %v8567_v25, %v8449_v37 }
 0x460   : > { %v17915_v58 = vrot.slane %v8649_v6, %v17899_v39  ;;  %v17919_v40 = vcombine.high %v17905_v22, %v17905_v22  ;;  %v11418_v9 = vcombine.high %v17911_v61, %v17908_v34  ;;  %v8600_v1 = vcombine.high %v8598_v42, %v8598_v42 }
 0x461   : > { %v17924_v11 = vrot.slane %v8598_v42, %v17899_v39  ;;  %v17930_v0 = vrot.slane %v8599_v16, %v17899_v39  ;;  %v17972_v14 = vcombine.high %v17911_v61, %v17911_v61  ;;  %v17977_v5 = vcombine.high %v17908_v34, %v17908_v34 }
 0x462   : > { %v8878_v62 = vcombine.low %v17905_v22, %v17915_v58  ;;  %v8885_v47 = vrot.slane %v11418_v9, %v17899_v39  ;;  %v8899_v46 = vrot.slane %v17919_v40, %v17899_v39  ;;  %v17936_v2 = vrot.slane %v8600_v1, %v17899_v39 }
 0x463   : > { %v17940_v23 = vcombine.high %v17924_v11, %v17924_v11  ;;  %v8799_v33 = vcombine.low %v17943_v55, %v17930_v0  ;;  %v11417_v63 = vcombine.high %v17943_v55, %v17930_v0  ;;  %v8821_v49 = vrot.slane %v17924_v11, %v17899_v39 }
 0x464   : > { %v8892_v13 = vrot.slane %v8878_v62, %v17899_v39  ;;  %v17947_v56 = vcombine.high %v17936_v2, %v17936_v2  ;;  %v8914_v48 = vrot.slane %v8899_v46, %v17899_v39  ;;  %v8682_v43 = vcombine.high %v8578_v24, %v8578_v24 }
 0x465   : > { %v8838_v28 = vcombine.low %v17936_v2, %v17940_v23  ;;  %v8807_v12 = vrot.slane %v8799_v33, %v17899_v39  ;;  %v8814_v54 = vrot.slane %v11417_v63, %v17899_v39  ;;  %v8689_v51 = vrot.slane %v8578_v24, %v17899_v39 }
 0x466   : > { %v8900_v8 = vcombine.low %v8885_v47, %v8892_v13  ;;  %v8839_v36 = vcombine.low %v17947_v56, %v17911_v61  ;;  %vm8782_vm5 = vcmp.gt.f32.partialorder %v17905_v22, 0.0  ;;  %v8836_v59 = vrot.slane %v8821_v49, %v17899_v39 }
 0x467   : > { %v8822_v32 = vcombine.low %v8807_v12, %v8814_v54  ;;  %v8846_v20 = vrot.slane %v8838_v28, %v17899_v39  ;;  %v17986_v57 = vrot.slane %v8737_v50, %v17899_v39  ;;  %v8696_v44 = vrot.slane %v8682_v43, %v17899_v39 }
 0x468   : > { %v8907_v41 = vrot.slane %v8900_v8, %v17899_v39  ;;  %v8853_v38 = vrot.slane %v8839_v36, %v17899_v39  ;;  %v17991_v17 = vcombine.high %v17915_v58, %v17915_v58  ;;  %v8860_v26 = vrot.slane %v17908_v34, %v17899_v39 }
 0x469   : > { %v8829_v45 = vrot.slane %v8822_v32, %v17899_v39  ;;  %v8697_v6 = vcombine.high %v8689_v51, %v8689_v51  ;;  %v17998_v52 = vrot.slane %v8689_v51, %v17899_v39  ;;  %v8698_v1 = vcombine.high %v8696_v44, %v8696_v44 }
 0x46a   : > { %v8915_v35 = vcombine.low %v8907_v41, %v8914_v48  ;;  %v8861_v31 = vcombine.low %v8846_v20, %v8853_v38  ;;  %v8629_v18 = vcombine.high %v17943_v55, %v17943_v55  ;;  %v8977_v47 = vrot.slane %v17986_v57, %v17899_v39 }
 0x46b   : > { %v8837_v29 = vcombine.low %v8829_v45, %v8836_v59  ;;  %v18003_v62 = vrot.slane %v8697_v6, %v17899_v39  ;;  %v18010_v19 = vrot.slane %v8696_v44, %v17899_v39  ;;  %vm8784_vm7 = vcmp.gt.f32.partialorder %v17919_v40, 0.0 }
 0x46c   : > { %v9001_v4 = vmul.f32 %v17962_v3, %v8915_v35  ;;  %v8868_v7 = vrot.slane %v8861_v31, %v17899_v39  ;;  %v8875_v13 = vrot.slane %v8860_v26, %v17899_v39  ;;  %v18022_v27 = vrot.slane %v8698_v1, %v17899_v39 }
 0x46d   : > { %v8999_v9 = vmul.f32 %v17962_v3, %v8837_v29  ;;  %v18026_v37 = vcombine.high %v17998_v52, %v17998_v52  ;;  %v18030_v33 = vcombine.high %v18003_v62, %v18003_v62  ;;  %v18034_v63 = vcombine.high %v17930_v0, %v17930_v0 }
 0x46e   : > { %v9087_v30 = vcombine.high %v9001_v4, %v9001_v4  ;;  %v9094_v15 = vrot.slane %v9001_v4, %v17899_v39  ;;  %vm8770_vm10 = vcmp.gt.f32.partialorder %v17943_v55, 0.0  ;;  %v8876_v25 = vcombine.low %v8868_v7, %v8875_v13 }
 0x46f   : > { %vm8772_vm11 = vcmp.gt.f32.partialorder %v8629_v18, 0.0  ;;  %v9016_v41 = vrot.slane %v8999_v9, %v17899_v39  ;;  %v18039_v48 = vrot.slane %v8977_v47, %v17899_v39  ;;  %v18043_v28 = vcombine.high %v18010_v19, %v18010_v19 }
 0x470   : > { %v9101_v10 = vrot.slane %v9087_v30, %v17899_v39  ;;  %v9102_v42 = vcombine.high %v9094_v15, %v9094_v15  ;;  %v9109_v16 = vrot.slane %v9094_v15, %v17899_v39  ;;  %vm8771_vm12 = vcmp.gt.f32.partialorder %v17930_v0, 0.0 }
 0x471   : > { %vm8780_vm13 = vcmp.gt.f32.partialorder %v17972_v14, 0.0  ;;  %vm8775_vm1 = vcmp.gt.f32.partialorder %v17936_v2, 0.0  ;;  %v8916_v49 = vcombine.low %v17991_v17, %v17998_v52  ;;  %vm8783_vm4 = vcmp.gt.f32.partialorder %v17915_v58, 0.0 }
 0x472   : > { %v9124_v21 = vcombine.high %v9109_v16, %v9109_v16  ;;  %v9116_v46 = vrot.slane %v9101_v10, %v17899_v39  ;;  %v9123_v53 = vrot.slane %v9102_v42, %v17899_v39  ;;  %vm8776_vm0 = vcmp.gt.f32.partialorder %v17940_v23, 0.0 }
 0x473   : > { %vm8777_vm2 = vcmp.gt.f32.partialorder %v17947_v56, 0.0  ;;  %v8917_v35 = vcombine.low %v18003_v62, %v18026_v37  ;;  %v8955_v38 = vcombine.low %v18010_v19, %v18022_v27  ;;  %v11419_v50 = vcombine.high %v18010_v19, %v18022_v27 }
 0x474   : > { %v18019_v8 = vsel %vm8782_vm5, %v17905_v22, %v9124_v21  ;;  %v9009_v22 = vcombine.high %v8999_v9, %v8999_v9  ;;  %v9125_v36 = vcombine.high %v9123_v53, %v9123_v53  ;;  %v18050_v12 = vsel %vm8784_vm7, %v17919_v40, %v9116_v46 }
 0x475   : > { %v9325_v54 = vrot.slane %v18019_v8, %v17899_v39  ;;  %v8938_v40 = vrot.slane %v18030_v33, %v17899_v39  ;;  %v18073_v32 = vcombine.high %v18022_v27, %v18022_v27  ;;  %v8924_v20 = vrot.slane %v8916_v49, %v17899_v39 }
 0x476   : > { %v18069_v24 = vrot.slane %v9009_v22, %v17899_v39  ;;  %v18077_v4 = vmul.f32 %v17962_v3, %v8876_v25  ;;  %v8931_v43 = vrot.slane %v8917_v35, %v17899_v39  ;;  %v8963_v51 = vrot.slane %v8955_v38, %v17899_v39 }
 0x477   : > { %v8970_v45 = vrot.slane %v11419_v50, %v17899_v39  ;;  %vm8781_vm6 = vcmp.gt.f32.partialorder %v17977_v5, 0.0  ;;  %v8953_v59 = vrot.slane %v8938_v40, %v17899_v39  ;;  %v9024_v31 = vcombine.high %v9016_v41, %v9016_v41 }
 0x478   : > { %v9031_v30 = vrot.slane %v9016_v41, %v17899_v39  ;;  %v9055_v15 = vrot.slane %v18077_v4, %v17899_v39  ;;  %vm8778_vm8 = vcmp.gt.f32.partialorder %v17911_v61, 0.0  ;;  %v8939_v44 = vcombine.low %v8924_v20, %v8931_v43 }
 0x479   : > { %v8978_v26 = vcombine.low %v8963_v51, %v8970_v45  ;;  %v18091_v29 = vsel %vm8780_vm13, %v17972_v14, %v9109_v16  ;;  %v18094_v6 = vsel %vm8781_vm6, %v17977_v5, %v9123_v53  ;;  %v9045_v10 = vrot.slane %v9024_v31, %v17899_v39 }
 0x47a   : > { %v9046_v42 = vcombine.high %v9031_v30, %v9031_v30  ;;  %v9063_v7 = vcombine.high %v9055_v15, %v9055_v15  ;;  %v9070_v9 = vrot.slane %v9055_v15, %v17899_v39  ;;  %v8946_v1 = vrot.slane %v8939_v44, %v17899_v39 }
 0x47b   : > { %v18100_v21 = vrot.slane %v8978_v26, %v17899_v39  ;;  %v9229_v47 = vsel %vm8770_vm10, %v17943_v55, %v9031_v30  ;;  %v9273_v14 = vcombine.low %v18091_v29, %v18094_v6  ;;  %v9230_v13 = vsel %vm8771_vm12, %v17930_v0, %v9045_v10 }
 0x47c   : > { %v9084_v5 = vrot.slane %v9063_v7, %v17899_v39  ;;  %v9085_v16 = vcombine.high %v9070_v9, %v9070_v9  ;;  %v18112_v46 = vsel %vm8772_vm11, %v8629_v18, %v9046_v42  ;;  %v8954_v53 = vcombine.low %v8946_v1, %v8953_v59 }
 0x47d   : > { %v8993_v25 = vcombine.low %v18100_v21, %v18039_v48  ;;  %v18119_v55 = vsel %vm8775_vm1, %v17936_v2, %v9070_v9  ;;  %v9270_v22 = vcombine.low %v9229_v47, %v9230_v13  ;;  %v18124_v41 = vsel %vm8783_vm4, %v17915_v58, %v9125_v36 }
 0x47e   : > { %vm8786_vm9 = vcmp.gt.f32.partialorder %v17998_v52, 0.0  ;;  %v18130_v0 = vsel %vm8776_vm0, %v17940_v23, %v9084_v5  ;;  %v18135_v18 = vsel %vm8777_vm2, %v17947_v56, %v9085_v16  ;;  %v9271_v2 = vcombine.low %v18112_v46, %v18119_v55 }
 0x47f   : > { %vm8774_vm14 = vcmp.gt.f32.partialorder %v17924_v11, 0.0  ;;  %vm8785_vm15 = vcmp.gt.f32.partialorder %v17991_v17, 0.0  ;;  %v9002_v58 = vmul.f32 %v17962_v3, %v8954_v53  ;;  %v9272_v48 = vcombine.low %v18130_v0, %v18135_v18 }
 0x480   : > { %vm8773_vm3 = vcmp.gt.f32.partialorder %v18034_v63, 0.0  ;;  %v9047_v23 = vcombine.high %v9045_v10, %v9045_v10  ;;  %v9280_v36 = vrot.slane %v9270_v22, %v17899_v39  ;;  %v9287_v56 = vrot.slane %v9271_v2, %v17899_v39 }
 0x481   : > { %v18148_v49 = vrot.slane %v9273_v14, %v17899_v39  ;;  %vm9333_vm5 = vcmask 130048   ;;  %v9086_v35 = vcombine.high %v9084_v5, %v9084_v5  ;;  %v9133_v40 = vrot.slane %v9002_v58, %v17899_v39 }
 0x482   : > { %v18152_v38 = vrot.slane %v9272_v48, %v17899_v39  ;;  %v18155_v50 = vsel %vm8773_vm3, %v18034_v63, %v9047_v23  ;;  %v9421_v20 = vcombine.low %v9230_v13, %v18112_v46  ;;  %v9126_v43 = vcombine.high %v9002_v58, %v9002_v58 }
 0x483   : > { %v9302_v51 = vcombine.low %v9280_v36, %v9287_v56  ;;  %v18161_v45 = vsel %vm8778_vm8, %v17911_v61, %v9086_v35  ;;  %v9422_v59 = vcombine.low %v18155_v50, %v18130_v0  ;;  %v9141_v31 = vcombine.high %v9133_v40, %v9133_v40 }
 0x484   : > { %v9148_v30 = vrot.slane %v9133_v40, %v17899_v39  ;;  %v9303_v15 = vcombine.low %v18152_v38, %v18148_v49  ;;  %v9424_v63 = vcombine.low %v18094_v6, %v18019_v8  ;;  %v9038_v44 = vrot.slane %v18069_v24, %v17899_v39 }
 0x485   : > { %vm8787_vm7 = vcmp.gt.f32.partialorder %v18003_v62, 0.0  ;;  %v9423_v61 = vcombine.low %v18135_v18, %v18161_v45  ;;  %v9438_v26 = vrot.slane %v9422_v59, %v17899_v39  ;;  %vm8788_vm10 = vcmp.gt.f32.partialorder %v18026_v37, 0.0  ;;  %v11428_v59 = vld [vmem:[%s18519_s3 + $0x28] sm:$0xff] }
 0x486   : > { %v9162_v10 = vrot.slane %v9141_v31, %v17899_v39  ;;  %v9163_v42 = vcombine.high %v9148_v30, %v9148_v30  ;;  %v9431_v7 = vrot.slane %v9421_v20, %v17899_v39  ;;  %v18180_v9 = vrot.slane %v9126_v43, %v17899_v39 }
 0x487   : > { %v9310_v1 = vrot.slane %v9302_v51, %v17899_v39  ;;  %v9317_v24 = vrot.slane %v9303_v15, %v17899_v39  ;;  %v18185_v21 = vrot.slane %v9423_v61, %v17899_v39  ;;  %v18193_v5 = vrot.slane %v9424_v63, %v17899_v39 }
 0x488   : > { %v9164_v47 = vcombine.high %v9162_v10, %v9162_v10  ;;  %v18190_v14 = vsel %vm8786_vm9, %v17998_v52, %v9162_v10  ;;  %v9453_v16 = vcombine.low %v9431_v7, %v9438_v26  ;;  %v9332_v13 = vrot.slane %v9325_v54, %v17899_v39 }
 0x489   : > { %v9233_v53 = vsel %vm8774_vm14, %v17924_v11, %v9038_v44  ;;  %v18205_v22 = vsel %vm8785_vm15, %v17991_v17, %v9148_v30  ;;  %v10267_v52 = vcombine.low %v18124_v41, %v18190_v14  ;;  %v18212_v2 = vsel %vm8787_vm7, %v18003_v62, %v9163_v42 }
 0x48a   : > { %v18217_v54 = vsel %vm8788_vm10, %v18026_v37, %v9164_v47  ;;  %v9318_v58 = vcombine.low %v9310_v1, %v9317_v24  ;;  %v9454_v11 = vcombine.low %v18185_v21, %v18193_v5  ;;  %v9155_v17 = vrot.slane %v18180_v9, %v17899_v39  ;;  %v11423_v37 = vld [vmem:[%s18519_s3 + $0x10] sm:$0xff]  ;;  %v11432_v47 = vld [vmem:[%s18519_s3 + $0x38] sm:$0xff] }
 0x48b   : > { %v9723_v48 = vcombine.low %v18205_v22, %v18190_v14  ;;  %vm8791_vm11 = vcmp.gt.f32.partialorder %v18022_v27, 0.0  ;;  %v18227_v62 = vmul.f32 %v17962_v3, %v8993_v25  ;;  %vm8793_vm12 = vcmp.gt.f32.partialorder %v18073_v32, 0.0 }
 0x48c   : > { %12581 = vmatprep.mubr.msk.f32.mxu1 %vm9333_vm5, %v9318_v58  ;;  %v9461_v23 = vrot.slane %v9453_v16, %v17899_v39  ;;  %v9468_v36 = vrot.slane %v9454_v11, %v17899_v39  ;;  %v10275_v56 = vrot.slane %v10267_v52, %v17899_v39  ;;  %v9476_v35 = vrot.slane %v18124_v41, %v17899_v39 }
 0x48d   : > { %v9768_v3 = vrot.slane %v18212_v2, %v17899_v39  ;;  %12582 = vmatmul.mubr.msk.f32.vlgmr.msra.gmra.mxu1 %vm9333_vm5, %v9332_v13  ;;  %v9172_v25 = vrot.slane %v18227_v62, %v17899_v39  ;;  %v9995_v40 = vcombine.low %v18212_v2, %v18217_v54  ;;  %v9048_v20 = vcombine.high %v18077_v4, %v18077_v4 }
 0x48e   : > { %12585 = vmatpush3.msra.mxu1 %v17892_v60  ;;  %v9469_v43 = vcombine.low %v9461_v23, %v9468_v36  ;;  %v10283_v51 = vcombine.low %v18193_v5, %v10275_v56  ;;  %v9571_v31 = vcombine.low %v18112_v46, %v18155_v50  ;;  %v9572_v30 = vcombine.low %v9233_v53, %v18135_v18  ;;  %v11427_v46 = vld [vmem:[%s18519_s3 + $0x20] sm:$0xff] }
 0x48f   : > { %12586 = vmatprep.subr.mxu1 %v11423_v37  ;;  %v9180_v15 = vcombine.high %v9172_v25, %v9172_v25  ;;  %v18257_v63 = vrot.slane %v9172_v25, %v17899_v39  ;;  %v9483_v4 = vrot.slane %v9476_v35, %v17899_v39  ;;  %v9062_v60 = vrot.slane %v9048_v20, %v17899_v39 }
 0x490   : > { %v9862_v44 = vcombine.low %v18190_v14, %v18212_v2  ;;  %12588 = vmatprep.mubr.msk.f32.mxu1 %vm9333_vm5, %v9469_v43  ;;  %vm8792_vm13 = vcmp.gt.f32.partialorder %v18043_v28, 0.0  ;;  %12587 = vmatpush3.msra.mxu1 %v11423_v37  ;;  %v9574_v50 = vcombine.low %v18019_v8, %v18124_v41  ;;  %v9588_v61 = vrot.slane %v9572_v30, %v17899_v39 }
 0x491   : > { %v9201_v26 = vrot.slane %v9180_v15, %v17899_v39  ;;  %v9202_v10 = vcombine.high %v18257_v63, %v18257_v63  ;;  %12591 = vmatprep.subr.mxu1 %v11428_v59  ;;  %12589 = vmatmul.mubr.msk.f32.vlgmr.msra.gmra.mxu1 %vm9333_vm5, %v9483_v4  ;;  %vm8779_vm1 = vcmp.gt.f32.partialorder %v17908_v34, 0.0  ;;  %v9077_v42 = vrot.slane %v9062_v60, %v17899_v39 }
 0x492   : > { %v18278_v7 = vrot.slane %v9995_v40, %v17899_v39  ;;  %v10291_v1 = vrot.slane %v10283_v51, %v17899_v39  ;;  %12592 = vmatpush3.msra.mxu1 %v11428_v59  ;;  %v9581_v24 = vrot.slane %v9571_v31, %v17899_v39  ;;  %v9721_v14 = vcombine.low %v18119_v55, %v18130_v0 }
 0x493   : > { %v9203_v16 = vcombine.high %v9201_v26, %v9201_v26  ;;  %v18290_v13 = vsel %vm8791_vm11, %v18022_v27, %v9201_v26  ;;  %v18295_v53 = vsel %vm8792_vm13, %v18043_v28, %v9202_v10  ;;  %12593 = vmatprep.subr.mxu1 %v11427_v46  ;;  %v9238_v52 = vsel %vm8779_vm1, %v17908_v34, %v9077_v42 }
 0x494   : > { %v10268_v58 = vcombine.low %v18290_v13, %v18295_v53  ;;  %v9573_v11 = vcombine.low %v18161_v45, %v9238_v52  ;;  %v18302_v55 = vrot.slane %v9574_v50, %v17899_v39  ;;  %v9603_v0 = vcombine.low %v9581_v24, %v9588_v61  ;;  %12594 = vmatpush3.msra.mxu1 %v11427_v46 }
 0x495   : > { %v18307_v27 = vsel %vm8793_vm12, %v18073_v32, %v9203_v16  ;;  %12598 = vmatprep.subr.mxu1 %v11432_v47  ;;  %v9722_v28 = vcombine.low %v18135_v18, %v18091_v29  ;;  %v9730_v34 = vrot.slane %v9721_v14, %v17899_v39  ;;  %v9744_v37 = vrot.slane %v9723_v48, %v17899_v39 }
 0x496   : > { %v10282_v23 = vrot.slane %v10268_v58, %v17899_v39  ;;  %v10306_v36 = vrot.slane %v18307_v27, %v17899_v39  ;;  %v9595_v56 = vrot.slane %v9573_v11, %v17899_v39  ;;  %v9626_v35 = vrot.slane %v18050_v12, %v17899_v39 }
 0x497   : > { %v9737_v32 = vrot.slane %v9722_v28, %v17899_v39  ;;  %v9746_v25 = vcombine.low %v18193_v5, %v9744_v37  ;;  %v9861_v29 = vcombine.low %v18161_v45, %v18094_v6  ;;  %v18324_v18 = vrot.slane %v9862_v44, %v17899_v39 }
 0x498   : > { %v10284_v48 = vcombine.low %v18278_v7, %v10282_v23  ;;  %v9604_v40 = vcombine.low %v9595_v56, %v18302_v55  ;;  %v9611_v20 = vrot.slane %v9603_v0, %v17899_v39  ;;  %vm8790_vm4 = vcmp.gt.f32.partialorder %v18010_v19, 0.0  ;;  %v11439_v56 = vld [vmem:[%s18519_s3 + $0x50] sm:$0xff] }
 0x499   : > { %v9745_v43 = vcombine.low %v9730_v34, %v9737_v32  ;;  %v9760_v51 = vrot.slane %v9746_v25, %v17899_v39  ;;  %v9869_v59 = vrot.slane %v9861_v29, %v17899_v39  ;;  %v9878_v5 = vcombine.low %v18302_v55, %v18324_v18 }
 0x49a   : > { %v10298_v6 = vrot.slane %v10284_v48, %v17899_v39  ;;  %v9618_v45 = vrot.slane %v9604_v40, %v17899_v39  ;;  %v9993_v31 = vcombine.low %v9238_v52, %v18019_v8  ;;  %v9994_v30 = vcombine.low %v18124_v41, %v18050_v12 }
 0x49b   : > { %v10313_v15 = vrot.slane %v10306_v36, %v17899_v39  ;;  %v9633_v4 = vrot.slane %v9626_v35, %v17899_v39  ;;  %v9753_v60 = vrot.slane %v9745_v43, %v17899_v39  ;;  %v9877_v44 = vcombine.low %v18152_v38, %v9869_v59  ;;  %v11431_v38 = vld [vmem:[%s18519_s3 + $0x30] sm:$0xff] }
 0x49c   : > { %v10299_v46 = vcombine.low %v10291_v1, %v10298_v6  ;;  %v9619_v50 = vcombine.low %v9611_v20, %v9618_v45  ;;  %v10002_v61 = vrot.slane %v9993_v31, %v17899_v39  ;;  %v10009_v26 = vrot.slane %v9994_v30, %v17899_v39  ;;  %v11451_v6 = vld [vmem:[%s18519_s3 + $0x80] sm:$0xff]  ;;  %v10790_v31 = vld [vmem:[%s18520_s4 + $0x18] sm:$0xff]  ;;  %v10789_v30 = vld [vmem:[%s18520_s4 + $0x10] sm:$0xff] }
 0x49d   : > { %v9761_v10 = vcombine.low %v9753_v60, %v9760_v51  ;;  %v9885_v42 = vrot.slane %v9877_v44, %v17899_v39  ;;  %v9892_v24 = vrot.slane %v9878_v5, %v17899_v39  ;;  %v9249_v41 = vsel %vm8790_vm4, %v18010_v19, %v18257_v63  ;;  %v11443_v51 = vld [vmem:[%s18519_s3 + $0x60] sm:$0xff]  ;;  %12640 = vmatprep.subr.mxu0 %v10790_v31 }
 0x49e   : > { %vm8789_vm0 = vcmp.gt.f32.partialorder %v18030_v33, 0.0  ;;  %12630 = vmatprep.mubr.msk.f32.mxu0 %vm9333_vm5, %v10299_v46  ;;  %12595 = vmatprep.mubr.msk.f32.mxu1 %vm9333_vm5, %v9619_v50  ;;  %v10017_v1 = vcombine.low %v18185_v21, %v10002_v61  ;;  %v10018_v14 = vcombine.low %v10009_v26, %v18278_v7  ;;  %v10135_v16 = vcombine.low %v18019_v8, %v18205_v22  ;;  %v11436_v8 = vld [vmem:[%s18519_s3 + $0x48] sm:$0xff]  ;;  %v11420_v26 = vld [vmem:[%s18521_s5 + $0x2] ss:$0 sm:$0xff] }
 0x49f   : > { %v9248_v19 = vsel %vm8789_vm0, %v18030_v33, %v9155_v17  ;;  %v9900_v63 = vrot.slane %v18217_v54, %v17899_v39  ;;  %12631 = vmatmul.mubr.msk.f32.vlgmr.msra.gmra.mxu0 %vm9333_vm5, %v10313_v15  ;;  %12596 = vmatmul.mubr.msk.f32.vlgmr.msra.gmra.mxu1 %vm9333_vm5, %v9633_v4  ;;  %v10136_v52 = vcombine.low %v9249_v41, %v18290_v13  ;;  %v11435_v13 = vld [vmem:[%s18519_s3 + $0x40] sm:$0xff]  ;;  %vm8794_vm2 = vcmp.gt.f32.partialorder %v17986_v57, 0.0  ;;  %v10788_v15 = vld [vmem:[%s18520_s4 + $0x8] sm:$0xff] }
 0x4a0   : > { %12599 = vmatpush3.msra.mxu1 %v11432_v47  ;;  %12602 = vmatprep.mubr.msk.f32.mxu1 %vm9333_vm5, %v9761_v10  ;;  %v9775_v33 = vrot.slane %v9768_v3, %v17899_v39  ;;  %v9893_v9 = vcombine.low %v9885_v42, %v9892_v24  ;;  %v10143_v21 = vrot.slane %v10135_v16, %v17899_v39  ;;  %v10787_v4 = vld [vmem:[%s18520_s4] sm:$0xff]  ;;  %vm10867_vm11 = vcmask 261120  }
 0x4a1   : > { %12600 = vmatprep.subr.mxu1 %v11431_v38  ;;  %v10025_v22 = vrot.slane %v10017_v1, %v17899_v39  ;;  %v10150_v17 = vrot.slane %v10136_v52, %v17899_v39  ;;  %v10399_v7 = vcombine.low %v18050_v12, %v18212_v2  ;;  %v10400_v47 = vcombine.low %v18217_v54, %v9248_v19 }
 0x4a2   : > { %12601 = vmatpush3.msra.mxu1 %v11431_v38  ;;  %v10032_v3 = vrot.slane %v10018_v14, %v17899_v39  ;;  %v10151_v58 = vcombine.low %v18148_v49, %v10143_v21  ;;  %v10401_v11 = vcombine.low %v18295_v53, %v18307_v27  ;;  %v9165_v0 = vcombine.high %v18227_v62, %v18227_v62  ;;  %v11440_v49 = vld [vmem:[%s18519_s3 + $0x58] sm:$0xff] }
 0x4a3   : > { %12605 = vmatprep.subr.mxu1 %v11436_v8  ;;  %12603 = vmatmul.mubr.msk.f32.vlgmr.msra.gmra.mxu1 %vm9333_vm5, %v9775_v33  ;;  %v9907_v12 = vrot.slane %v9900_v63, %v17899_v39  ;;  %v10152_v2 = vcombine.low %v18324_v18, %v10150_v17  ;;  %v10408_v54 = vrot.slane %v10399_v7, %v17899_v39 }
 0x4a4   : > { %12606 = vmatpush3.msra.mxu1 %v11436_v8  ;;  %12609 = vmatprep.mubr.msk.f32.mxu1 %vm9333_vm5, %v9893_v9  ;;  %v10415_v27 = vrot.slane %v10400_v47, %v17899_v39  ;;  %v10422_v62 = vrot.slane %v10401_v11, %v17899_v39  ;;  %v9179_v28 = vrot.slane %v9165_v0, %v17899_v39 }
 0x4a5   : > { %12607 = vmatprep.subr.mxu1 %v11435_v13  ;;  %v10040_v34 = vrot.slane %v9248_v19, %v17899_v39  ;;  %v10159_v37 = vrot.slane %v10151_v58, %v17899_v39  ;;  %v10166_v23 = vrot.slane %v10152_v2, %v17899_v39  ;;  %v10423_v36 = vcombine.low %v18302_v55, %v10408_v54  ;;  %v11444_v55 = vld [vmem:[%s18519_s3 + $0x68] sm:$0xff] }
 0x4a6   : > { %12608 = vmatpush3.msra.mxu1 %v11435_v13  ;;  %v10033_v35 = vcombine.low %v10025_v22, %v10032_v3  ;;  %v10424_v32 = vcombine.low %v10415_v27, %v10422_v62  ;;  %v9194_v25 = vrot.slane %v9179_v28, %v17899_v39  ;;  %v10174_v43 = vrot.slane %v18295_v53, %v17899_v39 }
 0x4a7   : > { %12612 = vmatprep.subr.mxu1 %v11440_v49  ;;  %12610 = vmatmul.mubr.msk.f32.vlgmr.msra.gmra.mxu1 %vm9333_vm5, %v9907_v12  ;;  %v10167_v29 = vcombine.low %v10159_v37, %v10166_v23  ;;  %v10431_v18 = vrot.slane %v10423_v36, %v17899_v39  ;;  %v10047_v20 = vrot.slane %v10040_v34, %v17899_v39 }
 0x4a8   : > { %12613 = vmatpush3.msra.mxu1 %v11440_v49  ;;  %12616 = vmatprep.mubr.msk.f32.mxu1 %vm9333_vm5, %v10033_v35  ;;  %v10438_v48 = vrot.slane %v10424_v32, %v17899_v39  ;;  %v9253_v40 = vsel %vm8794_vm2, %v17986_v57, %v9194_v25  ;;  %v11452_v57 = vld [vmem:[%s18519_s3 + $0x88] sm:$0xff]  ;;  %v10181_v5 = vrot.slane %v10174_v43, %v17899_v39 }
 0x4a9   : > { %12614 = vmatprep.subr.mxu1 %v11439_v56  ;;  %v10446_v53 = vrot.slane %v9253_v40, %v17899_v39  ;;  %12641 = vmatpush3.msra.mxu0 %v10790_v31 }
 0x4aa   : > { %12615 = vmatpush3.msra.mxu1 %v11439_v56  ;;  %v10439_v59 = vcombine.low %v10431_v18, %v10438_v48  ;;  %12642 = vmatprep.subr.mxu0 %v10789_v30 }
 0x4ab   : > { %12619 = vmatprep.subr.mxu1 %v11444_v55  ;;  %12617 = vmatmul.mubr.msk.f32.vlgmr.msra.gmra.mxu1 %vm9333_vm5, %v10047_v20  ;;  %v10453_v45 = vrot.slane %v10446_v53, %v17899_v39 }
 0x4ac   : > { %12620 = vmatpush3.msra.mxu1 %v11444_v55  ;;  %12623 = vmatprep.mubr.msk.f32.mxu1 %vm9333_vm5, %v10167_v29 }
 0x4ad   : > { %12621 = vmatprep.subr.mxu1 %v11443_v51  ;;  %12643 = vmatpush3.msra.mxu0 %v10789_v30  ;;  %v11455_v30 = vld [vmem:[%s18521_s5 + $0x6] ss:$0 sm:$0xff] }
 0x4ae   : > { %12622 = vmatpush3.msra.mxu1 %v11443_v51  ;;  %12644 = vmatprep.subr.mxu0 %v10788_v15 }
 0x4af   : > { %12633 = vmatprep.subr.mxu1 %v11452_v57  ;;  %12624 = vmatmul.mubr.msk.f32.vlgmr.msra.gmra.mxu1 %vm9333_vm5, %v10181_v5 }
 0x4b0   : > { %12634 = vmatpush3.msra.mxu1 %v11452_v57  ;;  %12637 = vmatprep.mubr.msk.f32.mxu1 %vm9333_vm5, %v10439_v59 }
 0x4b1   : > { %12635 = vmatprep.subr.mxu1 %v11451_v6  ;;  %12645 = vmatpush3.msra.mxu0 %v10788_v15 }
 0x4b2   : > { %12636 = vmatpush3.msra.mxu1 %v11451_v6  ;;  %12646 = vmatprep.subr.mxu0 %v10787_v4 }
 0x4b3   : > { %12638 = vmatmul.mubr.msk.f32.vlgmr.msra.gmra.mxu1 %vm9333_vm5, %v10453_v45  ;;  %12647 = vmatpush3.msra.mxu0 %v10787_v4 }
 0x54d   : > { %v12583_v60 = vpop.f32.mrf.mxu1 }
 0x54e   : > { %v9414_v24 = vadd.f32 %v12583_v60, %v11420_v26 }
 0x54f   : > { %v9404_v44 = vpop.f32.mrf.mxu1 }
 0x550   : > { %v9413_v38 = vadd.f32 %v11420_v26, %v9404_v44 }
 0x551   : > { %v12590_v46 = vpop.f32.mrf.mxu1 }
 0x552   : > { %v9564_v1 = vadd.f32 %v12590_v46, %v9414_v24 }
 0x553   : > { %v9554_v50 = vpop.f32.mrf.mxu1 }
 0x554   : > { %v9563_v16 = vadd.f32 %v9554_v50, %v9413_v38 }
 0x55f   : > { %v12597_v61 = vpop.f32.mrf.mxu1  ;;  %v12632_v47 = vpop.f32.mrf.mxu0 }
 0x560   : > { %v9714_v19 = vadd.f32 %v12597_v61, %v9564_v1 }
 0x561   : > { %v9704_v10 = vpop.f32.mrf.mxu1  ;;  %v10384_v2 = vpop.f32.mrf.mxu0 }
 0x562   : > { %v9713_v52 = vadd.f32 %v9704_v10, %v9563_v16 }
 0x563   : > { %v12604_v42 = vpop.f32.mrf.mxu1 }
 0x564   : > { %v9856_v8 = vadd.f32 %v12604_v42, %v9714_v19 }
 0x565   : > { %v9846_v41 = vpop.f32.mrf.mxu1 }
 0x566   : > { %v9855_v9 = vadd.f32 %v9846_v41, %v9713_v52 }
 0x567   : > { %v12611_v14 = vpop.f32.mrf.mxu1 }
 0x568   : > { %v9988_v21 = vadd.f32 %v12611_v14, %v9856_v8 }
 0x569   : > { %v9978_v63 = vpop.f32.mrf.mxu1 }
 0x56a   : > { %v9987_v17 = vadd.f32 %v9978_v63, %v9855_v9 }
 0x56b   : > { %v12618_v33 = vpop.f32.mrf.mxu1 }
 0x56c   : > { %v10128_v7 = vadd.f32 %v12618_v33, %v9988_v21 }
 0x56d   : > { %v10118_v22 = vpop.f32.mrf.mxu1 }
 0x56e   : > { %v10127_v3 = vadd.f32 %v10118_v22, %v9987_v17 }
 0x56f   : > { %v12625_v13 = vpop.f32.mrf.mxu1 }
 0x570   : > { %v10262_v58 = vadd.f32 %v12625_v13, %v10128_v7 }
 0x571   : > { %v10252_v11 = vpop.f32.mrf.mxu1 }
 0x572   : > { %v10261_v0 = vadd.f32 %v10252_v11, %v10127_v3  ;;  %v10394_v12 = vadd.f32 %v12632_v47, %v10262_v58 }
 0x573   : > { %v12639_v54 = vpop.f32.mrf.mxu1 }
 0x574   : > { %v10393_v49 = vadd.f32 %v10384_v2, %v10261_v0  ;;  %v10534_v62 = vadd.f32 %v12639_v54, %v10394_v12 }
 0x575   : > { %v10524_v27 = vpop.f32.mrf.mxu1 }
 0x576   : > { %v10533_v28 = vadd.f32 %v10524_v27, %v10393_v49  ;;  %v10592_v23 = vrot.slane %v10534_v62, %v17899_v39 }
 0x578   : > { %v10537_v34 = vcombine.high %v10533_v28, %v10533_v28  ;;  %v10544_v37 = vrot.slane %v10533_v28, %v17899_v39  ;;  %v18462_v55 = vrot.slane %v10592_v23, %v17899_v39 }
 0x57a   : > { %v10551_v36 = vrot.slane %v10537_v34, %v17899_v39  ;;  %v10552_v56 = vcombine.high %v10544_v37, %v10544_v37  ;;  %v10560_v35 = vrot.slane %v10544_v37, %v17899_v39  ;;  %v10682_v5 = vrot.slane %v18462_v55, %v17899_v39 }
 0x57b   : > { %vm10617_vm10 = vcmp.gt.f32.partialorder %v18462_v55, 0.0 }
 0x57c   : > { %v10553_v32 = vcombine.high %v10551_v36, %v10551_v36  ;;  %v10574_v25 = vrot.slane %v10552_v56, %v17899_v39  ;;  %v10582_v29 = vcombine.high %v10560_v35, %v10560_v35  ;;  %v10567_v18 = vrot.slane %v10551_v36, %v17899_v39 }
 0x57d   : > { %vm10609_vm6 = vcmp.gt.f32.partialorder %v10560_v35, 0.0 }
 0x57e   : > { %v10581_v48 = vrot.slane %v10553_v32, %v17899_v39  ;;  %v10584_v40 = vcombine.high %v10574_v25, %v10574_v25  ;;  %v10622_v20 = vcombine.low %v10560_v35, %v10574_v25  ;;  %v10636_v57 = vrot.slane %v10582_v29, %v17899_v39 }
 0x57f   : > { %v10583_v50 = vcombine.high %v10567_v18, %v10567_v18  ;;  %vm10610_vm8 = vcmp.gt.f32.partialorder %v10574_v25, 0.0  ;;  %vm10611_vm9 = vcmp.gt.f32.partialorder %v10582_v29, 0.0  ;;  %vm10613_vm15 = vcmp.gt.f32.partialorder %v10567_v18, 0.0 }
 0x580   : > { %v10645_v43 = vcombine.low %v10584_v40, %v10567_v18  ;;  %v11456_v51 = vcombine.high %v10567_v18, %v10581_v48  ;;  %v10629_v59 = vrot.slane %v10622_v20, %v17899_v39  ;;  %v10659_v6 = vrot.slane %v10581_v48, %v17899_v39 }
 0x581   : > { %v10585_v24 = vcombine.high %v10581_v48, %v10581_v48  ;;  %vm10612_vm14 = vcmp.gt.f32.partialorder %v10584_v40, 0.0  ;;  %vm10614_vm3 = vcmp.gt.f32.partialorder %v10581_v48, 0.0  ;;  %vm10615_vm5 = vcmp.gt.f32.partialorder %v10583_v50, 0.0 }
 0x582   : > { %v10652_v53 = vrot.slane %v10645_v43, %v17899_v39  ;;  %v10675_v45 = vrot.slane %v11456_v51, %v17899_v39  ;;  %v10637_v31 = vcombine.low %v10629_v59, %v10636_v57 }
 0x583   : > { %vm10616_vm7 = vcmp.gt.f32.partialorder %v10585_v24, 0.0 }
 0x584   : > { %v10660_v15 = vcombine.low %v10652_v53, %v10659_v6  ;;  %v10683_v4 = vcombine.low %v10675_v45, %v10682_v5  ;;  %v10644_v60 = vrot.slane %v10637_v31, %v17899_v39  ;;  %v19682_v31 = vlaneseq }
 0x586   : > { %v10667_v44 = vrot.slane %v10660_v15, %v17899_v39  ;;  %v10690_v46 = vrot.slane %v10683_v4, %v17899_v39  ;;  %v10694_v61 = vmul.f32 %v11455_v30, %v10644_v60 }
 0x588   : > { %v10695_v26 = vmul.f32 %v11455_v30, %v10667_v44  ;;  %v10696_v10 = vmul.f32 %v11455_v30, %v10690_v46  ;;  %v10706_v42 = vrot.slane %v10694_v61, %v17899_v39  ;;  %v10958_v30 = vand.u32 127, %v19682_v31 }
 0x58a   : > { %v10729_v41 = vrot.slane %v10695_v26, %v17899_v39  ;;  %v10752_v38 = vrot.slane %v10696_v10, %v17899_v39  ;;  %v10707_v1 = vcombine.high %v10706_v42, %v10706_v42  ;;  %v10714_v14 = vrot.slane %v10706_v42, %v17899_v39 }
 0x58b   : > { %vm10959_vm12 = vcmp.eq.s32.totalorder %v10958_v30, 0 }
 0x58c   : > { %v10730_v16 = vcombine.high %v10729_v41, %v10729_v41  ;;  %v10737_v19 = vrot.slane %v10729_v41, %v17899_v39  ;;  %v10753_v63 = vcombine.high %v10752_v38, %v10752_v38  ;;  %v10760_v52 = vrot.slane %v10752_v38, %v17899_v39 }
 0x58d   : > { %v10721_v8 = vrot.slane %v10707_v1, %v17899_v39  ;;  %v10722_v33 = vcombine.high %v10714_v14, %v10714_v14  ;;  %v10778_v9 = vsel %vm10609_vm6, %v10560_v35, %v10714_v14 }
 0x58e   : > { %v10744_v21 = vrot.slane %v10730_v16, %v17899_v39  ;;  %v10745_v22 = vcombine.high %v10737_v19, %v10737_v19  ;;  %v10767_v17 = vrot.slane %v10753_v63, %v17899_v39  ;;  %v10768_v7 = vcombine.high %v10760_v52, %v10760_v52 }
 0x58f   : > { %v10779_v47 = vsel %vm10610_vm8, %v10574_v25, %v10721_v8  ;;  %v10780_v13 = vsel %vm10611_vm9, %v10582_v29, %v10722_v33  ;;  %v10781_v3 = vsel %vm10612_vm14, %v10584_v40, %v10737_v19  ;;  %v10784_v58 = vsel %vm10615_vm5, %v10583_v50, %v10760_v52 }
 0x590   : > { %v10804_v11 = vcombine.low %v10778_v9, %v10779_v47  ;;  %v10782_v0 = vsel %vm10613_vm15, %v10567_v18, %v10744_v21  ;;  %v10783_v12 = vsel %vm10614_vm3, %v10581_v48, %v10745_v22  ;;  %v10785_v2 = vsel %vm10616_vm7, %v10585_v24, %v10767_v17  ;;  %v11457_v48 = vld [vmem:[%s18521_s5 + $0x3] ss:$0 sm:$0xff] }
 0x591   : > { %v10805_v54 = vcombine.low %v10780_v13, %v10781_v3  ;;  %v10806_v49 = vcombine.low %v10782_v0, %v10783_v12  ;;  %v10807_v27 = vcombine.low %v10784_v58, %v10785_v2  ;;  %v10786_v23 = vsel %vm10617_vm10, %v18462_v55, %v10768_v7 }
 0x592   : > { %v10814_v62 = vrot.slane %v10804_v11, %v17899_v39  ;;  %v10859_v35 = vrot.slane %v10786_v23, %v17899_v39 }
 0x593   : > { %v10821_v28 = vrot.slane %v10805_v54, %v17899_v39  ;;  %v10828_v34 = vrot.slane %v10806_v49, %v17899_v39  ;;  %v10835_v37 = vrot.slane %v10807_v27, %v17899_v39 }
 0x594   : > { %v10866_v18 = vrot.slane %v10859_v35, %v17899_v39 }
 0x595   : > { %v10836_v36 = vcombine.low %v10814_v62, %v10821_v28  ;;  %v10837_v56 = vcombine.low %v10828_v34, %v10835_v37 }
 0x597   : > { %v10844_v32 = vrot.slane %v10836_v36, %v17899_v39  ;;  %v10851_v25 = vrot.slane %v10837_v56, %v17899_v39 }
 0x599   : > { %v10852_v29 = vcombine.low %v10844_v32, %v10851_v25 }
 0x59b   : > { %12648 = vmatprep.mubr.msk.f32.mxu0 %vm10867_vm11, %v10852_v29 }
 0x59c   : > { %12649 = vmatmul.mubr.msk.f32.vlgmr.msra.gmra.mxu0 %vm10867_vm11, %v10866_v18 }
 0x65c   : > { %v12650_v40 = vpop.f32.mrf.mxu0 }
 0x65d   : > { %v10944_v55 = vadd.f32 %v12650_v40, %v11457_v48 }
 0x65e   : > { %v10938_v20 = vpop.f32.mrf.mxu0 }
 0x65f   : > { %v10948_v43 = vsub.f32 0.0, %v10944_v55  ;;  %v10939_v51 = vadd.f32 %v11457_v48, %v10938_v20 }
 0x661   : > { %v10951_v59 = vmul.f32 1.442695, %v10948_v43  ;;  %v10947_v57 = vsub.f32 0.0, %v10939_v51 }
 0x663   : > { %12697 = vpow2.f32 %v10951_v59  ;;  %v10949_v5 = vmul.f32 1.442695, %v10947_v57 }
 0x665   : > { %12699 = vpow2.f32 %v10949_v5 }
 0x670   : > { %v12698_v53 = vpop.eup %12697 }
 0x671   : > { %v10954_v6 = vadd.f32 1.0, %v12698_v53 }
 0x672   : > { %v12700_v39 = vpop.eup %12699 }
 0x673   : > { %12701 = vrcp.f32 %v10954_v6  ;;  %v10953_v45 = vadd.f32 1.0, %v12700_v39 }
 0x675   : > { %12703 = vrcp.f32 %v10953_v45 }
 0x680   : > { %v12702_v15 = vpop.eup %12701 }
 0x681   : > { %v10963_v4 = vsel %vm10959_vm12, %v12702_v15, %v10944_v55 }
 0x682   : > { %v12704_v60 = vpop.eup %12703  ;;  %10965 = vst [vmem:[%s251_s10 + $0x8] sm:$0x1] %v10963_v4 }
 0x683   : > { %v10962_v44 = vsel %vm10959_vm12, %v12704_v60, %v10939_v51 }
 0x684   : > { %10964 = vst [vmem:[%s251_s10] sm:$0xff] %v10962_v44 }
 0x685 PF: > { %s16_s21 = sadd.s32 1, %s12712_s21  }
 0x686   : > { %p13_p4 = scmp.ge.s32.totalorder %s16_s21, 4  }
 0x688   :  { %15 = sbr.rel (!%p13_p4) target bundleno = 1 (0x1), region = 98 }

</bundles_post_ra>
